<compile_context>
chip_gen: v7x
topology: tpu7x:2x2x1
jax: 0.10.0
libtpu: 0.0.40
codegen_flags: <defaults>
</compile_context>

<pallas_src>
import functools

import jax
import jax.numpy as jnp
from jax.experimental import pallas as pl
from jax.experimental.pallas import tpu as pltpu

NEG_INF = -1e9
TIME_TILE = 8          # sequential GRU steps fused per grid point


def _round_up(x, m):
    return ((x + m - 1) // m) * m


def _pick_batch_tile(n):
    for cand in (256, 128, 64, 32, 16, 8):
        if n % cand == 0:
            return cand
    return n            # small / odd batches: single full-batch tile


def _pick_vocab_tile(vp):
    for cand in (1024, 512, 256, 128):
        if vp % cand == 0:
            return cand
    return vp


# ---------------------------------------------------------------------------
# In-kernel helpers (traced jnp code)
# ---------------------------------------------------------------------------
def _gru_gates(gx, gh, h):
    """Standard GRU cell given precomputed input/hid projections."""
    H = h.shape[-1]
    r = jax.nn.sigmoid(gx[:, :H] + gh[:, :H])
    z = jax.nn.sigmoid(gx[:, H:2 * H] + gh[:, H:2 * H])
    n = jnp.tanh(gx[:, 2 * H:] + r * gh[:, 2 * H:])
    return (1.0 - z) * n + z * h


def _dual_attention(h, mem, mem_src, mem_kg, madd, ns):
    """ONE score matmul over the concatenated (src ++ kg) memory, two masked
    softmaxes, two context matmuls.  bf16 MXU inputs, f32 accumulation."""
    hq = h.astype(mem.dtype)[:, None, :]                                  # [B,1,H]
    s = jnp.einsum('bqh,bnh->bqn', hq, mem,
                   preferred_element_type=jnp.float32)[:, 0, :] + madd    # [B,N]
    a_s = jax.nn.softmax(s[:, :ns], axis=-1).astype(mem.dtype)
    a_k = jax.nn.softmax(s[:, ns:], axis=-1).astype(mem.dtype)
    ctx_s = jnp.einsum('bqn,bnh->bqh', a_s[:, None, :], mem_src,
                       preferred_element_type=jnp.float32)[:, 0, :]
    ctx_k = jnp.einsum('bqn,bnh->bqh', a_k[:, None, :], mem_kg,
                       preferred_element_type=jnp.float32)[:, 0, :]
    return ctx_s, ctx_k


# ---------------------------------------------------------------------------
# Pallas kernels
# ---------------------------------------------------------------------------
def _gru_encoder_kernel(gx_ref, valid_ref, wh_ref, bh_ref,
                        out_ref, hlast_ref, h_scr):
    """TIME_TILE GRU steps per grid point; batch-tile axis is 'parallel'."""
    @pl.when(pl.program_id(1) == 0)
    def _():
        h_scr[...] = jnp.zeros_like(h_scr)

    wh = wh_ref[...]
    bh = bh_ref[...]
    tt = gx_ref.shape[0]

    def step(i, carry):
        gx = gx_ref[i]                                       # [BT, 3H]
        h = h_scr[...]
        gh = jnp.dot(h, wh, preferred_element_type=jnp.float32) + bh
        h_new = _gru_gates(gx, gh, h)
        valid = valid_ref[i] > 0.5                           # [BT, 1] packed-seq emu
        h_scr[...] = jnp.where(valid, h_new, h)
        out_ref[i] = jnp.where(valid, h_new, 0.0)
        return carry

    jax.lax.fori_loop(0, tt, step, 0, unroll=True)
    hlast_ref[...] = h_scr[...]


def _dec_recurrence_kernel(gx_ref, h0_ref, mem_ref, madd_ref, wh_ref, bh_ref,
                           act_ref, hlast_ref, h_scr, *, ns):
    """Teacher-forced decoder recurrence + dual attention; emits packed
    [h | ctx_src | ctx_kg] activations (bf16) for the vocab-parallel
    projection kernel.  TIME_TILE steps per grid point."""
    @pl.when(pl.program_id(0) == 0)
    def _():
        h_scr[...] = h0_ref[...]

    H = h_scr.shape[-1]
    wh = wh_ref[...]
    bh = bh_ref[...]
    mem = mem_ref[...]
    mem_src = mem[:, :ns, :]
    mem_kg = mem[:, ns:, :]
    madd = madd_ref[...]
    tt = gx_ref.shape[0]

    def step(i, carry):
        gx = gx_ref[i]                                       # [B, 3H]
        h = h_scr[...]
        gh = jnp.dot(h, wh, preferred_element_type=jnp.float32) + bh
        h_new = _gru_gates(gx, gh, h)
        h_scr[...] = h_new
        ctx_s, ctx_k = _dual_attention(h_new, mem, mem_src, mem_kg, madd, ns)
        act_ref[i, :, 0:H] = h_new.astype(act_ref.dtype)
        act_ref[i, :, H:2 * H] = ctx_s.astype(act_ref.dtype)
        act_ref[i, :, 2 * H:3 * H] = ctx_k.astype(act_ref.dtype)
        return carry

    jax.lax.fori_loop(0, tt, step, 0, unroll=True)
    hlast_ref[...] = h_scr[...]


def _out_proj_kernel(act_ref, w_ref, bo_ref, out_ref):
    """Vocab-tiled, vocab-PARALLEL fused output projection (bf16 in, f32 acc)."""
    out_ref[...] = (jnp.dot(act_ref[...], w_ref[...],
                            preferred_element_type=jnp.float32) + bo_ref[...])


def _greedy_kernel(gx0_ref, h0_ref, gxf_ref, wh_ref, bh_ref, mem_ref, madd_ref,
                   bo_ref, wxe_hbm, wout_hbm,
                   pred_ref,
                   h_scr, gxe_scr, wtile_scr, idx_scr,
                   *, ns, vocab, tv, n_vocab_tiles, max_dec_len):
    """Fused greedy decode: whole max_dec_len loop in one kernel invocation.
    Output-projection weights and the next-token gather table stay in HBM and
    are streamed / row-gathered via DMA; predictions accumulate in SMEM."""
    H = h_scr.shape[-1]
    B = h_scr.shape[0]

    h_scr[...] = h0_ref[...]
    gxe_scr[...] = gx0_ref[...]

    wh = wh_ref[...]
    bh = bh_ref[...]
    gxf = gxf_ref[...]
    mem = mem_ref[...]
    mem_src = mem[:, :ns, :]
    mem_kg = mem[:, ns:, :]
    madd = madd_ref[...]

    def dec_step(t, carry):
        gx = gxe_scr[...] + gxf                              # emb-row gather + const feed
        h = h_scr[...]
        gh = jnp.dot(h, wh, preferred_element_type=jnp.float32) + bh
        h_new = _gru_gates(gx, gh, h)
        h_scr[...] = h_new

        ctx_s, ctx_k = _dual_attention(h_new, mem, mem_src, mem_kg, madd, ns)
        hq = h_new.astype(jnp.bfloat16)
        cs = ctx_s.astype(jnp.bfloat16)
        ck = ctx_k.astype(jnp.bfloat16)

        def vocab_tile(vt, vcarry):
            m_run, i_run = vcarry
            # Stream one [3H, TV] weight tile HBM -> VMEM (w_out never fits
            # VMEM at real vocab).  TODO(synk): double-buffer this DMA.
            pltpu.sync_copy(wout_hbm.at[vt], wtile_scr)
            w = wtile_scr[...]
            lg = (jnp.dot(hq, w[0:H], preferred_element_type=jnp.float32)
                  + jnp.dot(cs, w[H:2 * H], preferred_element_type=jnp.float32)
                  + jnp.dot(ck, w[2 * H:3 * H], preferred_element_type=jnp.float32)
                  + bo_ref[vt])                                            # [B, TV]
            col = vt * tv + jax.lax.broadcasted_iota(jnp.int32, lg.shape, 1)
            lg = jnp.where(col < vocab, lg, NEG_INF)          # mask vocab padding lanes
            t_m = jnp.max(lg, axis=-1, keepdims=True)
            t_i = jnp.min(jnp.where(lg == t_m, col, 2147483647),
                          axis=-1, keepdims=True)
            better = t_m > m_run                  # strict '>' keeps first-max tie-break
            return jnp.maximum(m_run, t_m), jnp.where(better, t_i, i_run)

        m0 = jnp.full((B, 1), NEG_INF, dtype=jnp.float32)
        i0 = jnp.zeros((B, 1), dtype=jnp.int32)
        _, idx = jax.lax.fori_loop(0, n_vocab_tiles, vocab_tile, (m0, i0))
        idx_scr[...] = idx

        # Scalar writeback of predictions (SMEM, lane-dense final copy-out) and
        # TRUE gather of the next-token input-projection rows from HBM
        # (replaces the old one-hot [B,Vp]x[Vp,3H] matmul).  Indices are always
        # < vocab_size, so the reference's unk remap is a no-op here.
        for b in range(B):
            idx_b = idx_scr[b, 0]
            pred_ref[b, t] = idx_b
            pltpu.sync_copy(wxe_hbm.at[pl.ds(idx_b, 1), :],
                            gxe_scr.at[pl.ds(b, 1), :])
        return carry

    jax.lax.fori_loop(0, max_dec_len, dec_step, 0)


# ---------------------------------------------------------------------------
# Python wrappers around pallas_call
# ---------------------------------------------------------------------------
def gru_forward(token_ids, lengths, emb_table, p):
    """token_ids [Btot, T] int32 -> (outputs [T, Btot, H], last hidden [Btot, H])."""
    Btot, T = token_ids.shape
    E = emb_table.shape[1]
    H = p["wh"].shape[0]
    TT = TIME_TILE
    Tp = _round_up(T, TT)

    # Hoisted input projection as ONE big matmul (XLA).
    emb_tb = jnp.take(emb_table, token_ids.T, axis=0)                     # [T,Btot,E]
    gx = (emb_tb.reshape(T * Btot, E) @ p["wx"] + p["bx"]).reshape(T, Btot, 3 * H)
    gx = jnp.pad(gx, ((0, Tp - T), (0, 0), (0, 0)))
    valid = (jnp.arange(Tp)[:, None] < lengths[None, :]).astype(jnp.float32)
    valid = valid[:, :, None]                                             # [Tp,Btot,1]

    BT = _pick_batch_tile(Btot)
    NB = Btot // BT

    outs, h_last = pl.pallas_call(
        _gru_encoder_kernel,
        grid=(NB, Tp // TT),
        in_specs=[
            pl.BlockSpec((TT, BT, 3 * H), lambda b, t: (t, b, 0)),
            pl.BlockSpec((TT, BT, 1), lambda b, t: (t, b, 0)),
            pl.BlockSpec((H, 3 * H), lambda b, t: (0, 0)),
            pl.BlockSpec((1, 3 * H), lambda b, t: (0, 0)),
        ],
        out_specs=[
            pl.BlockSpec((TT, BT, H), lambda b, t: (t, b, 0)),
            pl.BlockSpec((BT, H), lambda b, t: (b, 0)),
        ],
        out_shape=[
            jax.ShapeDtypeStruct((Tp, Btot, H), jnp.float32),
            jax.ShapeDtypeStruct((Btot, H), jnp.float32),
        ],
        scratch_shapes=[pltpu.VMEM((BT, H), jnp.float32)],
        compiler_params=pltpu.CompilerParams(
            dimension_semantics=("parallel", "arbitrary")),
    )(gx, valid, p["wh"], p["bh"])
    return outs[:T], h_last


def _build_out_proj(p):
    """Stack [Woh; Wos; Wok] -> [3H, Vp] (bf16) and zero-pad the bias lanes."""
    V = p["woh"].shape[1]
    Vp = _round_up(V, 128)
    w_out = jnp.concatenate([p["woh"], p["wos"], p["wok"]], axis=0)       # [3H, V]
    w_out = jnp.pad(w_out, ((0, 0), (0, Vp - V))).astype(jnp.bfloat16)
    bo = jnp.pad(p["bo"], ((0, 0), (0, Vp - V)))                          # [1, Vp] f32
    return w_out, bo, V, Vp


def decoder_forward_train(dec_tokens, h0, kg_fusion, mem, madd, ns, emb_table, p):
    """Teacher-forced decoder.  Returns (logits [B,Td,V], last hidden [B,H])."""
    B, Td = dec_tokens.shape
    E = emb_table.shape[1]
    H = h0.shape[-1]
    N = mem.shape[1]
    w_out, bo, V, Vp = _build_out_proj(p)
    TT = TIME_TILE
    Tdp = _round_up(Td, TT)

    # Hoisted input projection: all-step embeddings + constant fusion feed.
    emb_tb = jnp.take(emb_table, dec_tokens.T, axis=0)                    # [Td,B,E]
    gx_e = (emb_tb.reshape(Td * B, E) @ p["wxe"]).reshape(Td, B, 3 * H)
    gx_f = kg_fusion @ p["wxf"] + p["bx"]                                 # [B,3H]
    gx = gx_e + gx_f[None]
    gx = jnp.pad(gx, ((0, Tdp - Td), (0, 0), (0, 0)))

    act, h_last = pl.pallas_call(
        functools.partial(_dec_recurrence_kernel, ns=ns),
        grid=(Tdp // TT,),
        in_specs=[
            pl.BlockSpec((TT, B, 3 * H), lambda t: (t, 0, 0)),
            pl.BlockSpec((B, H), lambda t: (0, 0)),
            pl.BlockSpec((B, N, H), lambda t: (0, 0, 0)),
            pl.BlockSpec((B, N), lambda t: (0, 0)),
            pl.BlockSpec((H, 3 * H), lambda t: (0, 0)),
            pl.BlockSpec((1, 3 * H), lambda t: (0, 0)),
        ],
        out_specs=[
            pl.BlockSpec((TT, B, 3 * H), lambda t: (t, 0, 0)),
            pl.BlockSpec((B, H), lambda t: (0, 0)),
        ],
        out_shape=[
            jax.ShapeDtypeStruct((Tdp, B, 3 * H), jnp.bfloat16),
            jax.ShapeDtypeStruct((B, H), jnp.float32),
        ],
        scratch_shapes=[pltpu.VMEM((B, H), jnp.float32)],
        compiler_params=pltpu.CompilerParams(
            dimension_semantics=("arbitrary",),
            vmem_limit_bytes=48 * 1024 * 1024),
    )(gx, h0, mem, madd, p["wh"], p["bh"])

    # Vocab-parallel fused output projection (off the sequential critical path).
    act_flat = act[:Td].reshape(Td * B, 3 * H)
    R = Td * B
    TV = _pick_vocab_tile(Vp)
    NT = Vp // TV

    logits_flat = pl.pallas_call(
        _out_proj_kernel,
        grid=(NT,),
        in_specs=[
            pl.BlockSpec((R, 3 * H), lambda j: (0, 0)),
            pl.BlockSpec((3 * H, TV), lambda j: (0, j)),
            pl.BlockSpec((1, TV), lambda j: (0, j)),
        ],
        out_specs=pl.BlockSpec((R, TV), lambda j: (0, j)),
        out_shape=jax.ShapeDtypeStruct((R, Vp), jnp.float32),
        compiler_params=pltpu.CompilerParams(
            dimension_semantics=("parallel",),
            vmem_limit_bytes=48 * 1024 * 1024),
    )(act_flat, w_out, bo)

    logits = logits_flat[:, :V].reshape(Td, B, V).transpose(1, 0, 2)      # [B,Td,V]
    return logits, h_last


def decoder_greedy_decode(y0, h0, kg_fusion, mem, madd, ns, emb_table, p,
                          max_dec_len):
    """Fused greedy decoding; returns pred_ids [B, max_dec_len] int32."""
    B = y0.shape[0]
    H = h0.shape[-1]
    w_out, bo, V, Vp = _build_out_proj(p)
    TV = _pick_vocab_tile(Vp)
    NT = Vp // TV

    # Tile-major HBM layouts so each in-kernel DMA is a contiguous block.
    wout_tiles = w_out.reshape(3 * H, NT, TV).transpose(1, 0, 2)          # [NT,3H,TV] bf16
    bo_tiles = bo.reshape(1, NT, TV).transpose(1, 0, 2)                   # [NT,1,TV]  f32

    # Next-token gather table (emb_table @ Wxe), HBM resident; f32 rows so a
    # single-row DMA is sublane-aligned.
    wxe_full = emb_table @ p["wxe"]                                       # [V,3H]
    Vr = _round_up(V, 8)
    wxe_full = jnp.pad(wxe_full, ((0, Vr - V), (0, 0)))

    gx0 = jnp.take(wxe_full, y0[:, 0], axis=0)                            # [B,3H]
    gxf = kg_fusion @ p["wxf"] + p["bx"]                                  # [B,3H] const

    vmem = pl.BlockSpec(memory_space=pltpu.MemorySpace.VMEM)
    preds = pl.pallas_call(
        functools.partial(_greedy_kernel, ns=ns, vocab=V, tv=TV,
                          n_vocab_tiles=NT, max_dec_len=max_dec_len),
        in_specs=[vmem, vmem, vmem, vmem, vmem, vmem, vmem, vmem,
                  pl.BlockSpec(memory_space=pl.ANY),      # wxe gather table (HBM)
                  pl.BlockSpec(memory_space=pl.ANY)],     # w_out tiles     (HBM)
        out_specs=pl.BlockSpec(memory_space=pltpu.MemorySpace.SMEM),
        out_shape=jax.ShapeDtypeStruct((B, max_dec_len), jnp.int32),
        scratch_shapes=[
            pltpu.VMEM((B, H), jnp.float32),              # hidden state
            pltpu.VMEM((B, 3 * H), jnp.float32),          # gathered emb@Wxe rows
            pltpu.VMEM((3 * H, TV), jnp.bfloat16),        # streamed weight tile
            pltpu.VMEM((B, 1), jnp.int32),                # per-step argmax
        ],
        compiler_params=pltpu.CompilerParams(
            vmem_limit_bytes=48 * 1024 * 1024),
    )(gx0, h0, gxf, p["wh"], p["bh"], mem, madd, bo_tiles, wxe_full, wout_tiles)
    return preds


# ---------------------------------------------------------------------------
# Tiny glue ops (plain jnp so XLA fuses them — no per-op kernel launches)
# ---------------------------------------------------------------------------
def _masked_softmax_attn(q, v, mask):
    s = jnp.einsum('bh,bnh->bn', q, v)
    s = jnp.where(mask > 0.5, s, NEG_INF)
    a = jax.nn.softmax(s, axis=-1)
    ctx = jnp.einsum('bn,bnh->bh', a, v)
    return ctx, a


def _bow_mlp(x, w1, b1, w2, b2):
    return jax.nn.softmax(jnp.tanh(x @ w1 + b1) @ w2 + b2, axis=-1)


# ---------------------------------------------------------------------------
# Full Seq2Seq forward
# ---------------------------------------------------------------------------
def seq2seq_forward(params, src_input, src_len, src_padding_mask,
                    kg_input, kg_len, kg_mask, kg_padding_mask,
                    kg_extend_vocab, extra_zero, tgt_input, tgt_len,
                    is_train=True, max_dec_len=8, unk_id=1):
    del kg_extend_vocab, extra_zero, unk_id  # TODO(synk): copy mechanism omitted
    emb_table = params["embedding"]
    B, Ts = src_input.shape
    Kn = kg_mask.shape[-1]
    Tk = kg_input.shape[1]
    H = params["utt_enc"]["wh"].shape[0]

    # ---------------- encoders (Pallas GRU recurrence kernels) -------------
    if is_train:
        # src and tgt encoders share utt_enc weights -> ONE batched recurrence.
        Td = tgt_input.shape[1] - 1
        Tmax = max(Ts, Td)
        src_pad = jnp.pad(src_input, ((0, 0), (0, Tmax - Ts)))
        tgt_pad = jnp.pad(tgt_input[:, 1:], ((0, 0), (0, Tmax - Td)))
        tokens = jnp.concatenate([src_pad, tgt_pad], axis=0)              # [2B,Tmax]
        lens = jnp.concatenate([src_len, tgt_len - 1], axis=0)
        outs, h_last = gru_forward(tokens, lens, emb_table, params["utt_enc"])
        src_outputs = jnp.transpose(outs[:Ts, :B], (1, 0, 2))             # [B,Ts,H]
        src_hidden = h_last[:B]
        tgt_hidden = h_last[B:]
    else:
        outs, src_hidden = gru_forward(src_input, src_len, emb_table,
                                       params["utt_enc"])
        src_outputs = jnp.transpose(outs, (1, 0, 2))                      # [B,Ts,H]
        tgt_hidden = None

    kg_outs, kg_hidden_flat = gru_forward(kg_input, kg_len, emb_table,
                                          params["kg_enc"])
    kg_outputs = jnp.transpose(kg_outs, (1, 0, 2))                        # [B*Kn,Tk,H]
    kg_hidden = kg_hidden_flat.reshape(B, Kn, H)

    # ---------------- knowledge-selection glue (fused by XLA) --------------
    top_src_hidden = jnp.tanh(src_hidden @ params["bridge_w"]
                              + params["bridge_b"])                       # [B,H]
    kg_sent_mask = kg_mask.astype(jnp.float32)

    pre_kg_fusion, _ = _masked_softmax_attn(top_src_hidden, kg_hidden,
                                            kg_sent_mask)
    bow_in = jnp.concatenate([top_src_hidden, pre_kg_fusion], axis=-1)
    pos_bow_dist = _bow_mlp(bow_in, params["bow1_w1"], params["bow1_b1"],
                            params["bow1_w2"], params["bow1_b2"])         # [B,V]
    pos_info = pos_bow_dist @ emb_table                                   # [B,E]
    prior_q = jnp.concatenate([top_src_hidden, pos_info], axis=-1) @ params["prior_w"]
    kg_fusion, prior_dist = _masked_softmax_attn(prior_q, kg_hidden, kg_sent_mask)

    # ------------- decoder attention memory (concat, bf16) -----------------
    src_pmask = src_padding_mask.astype(jnp.float32)
    kg_pmask = kg_padding_mask.astype(jnp.float32)
    kg_out_flat = kg_outputs.reshape(B, Kn * Tk, H)
    mem = jnp.concatenate([src_outputs, kg_out_flat], axis=1).astype(jnp.bfloat16)
    madd = (1.0 - jnp.concatenate([src_pmask, kg_pmask], axis=1)) * NEG_INF

    if is_train:
        post_q = jnp.concatenate([top_src_hidden, tgt_hidden], axis=-1) @ params["post_w"]
        kg_fusion, posterior_dist = _masked_softmax_attn(post_q, kg_hidden,
                                                         kg_sent_mask)
        posterior_dist = jax.lax.stop_gradient(posterior_dist)

        bow_logits = _bow_mlp(kg_fusion, params["bow2_w1"], params["bow2_b1"],
                              params["bow2_w2"], params["bow2_b2"])       # [B,V]

        dec_init = (jnp.concatenate([top_src_hidden, kg_fusion], axis=-1)
                    @ params["init_w"] + params["init_b"])                # [B,H]
        logits, _ = decoder_forward_train(tgt_input[:, :-1], dec_init, kg_fusion,
                                          mem, madd, Ts, emb_table,
                                          params["dec"])
        decode_logits = jax.nn.softmax(logits, axis=-1)                   # [B,Td,V]
        return [bow_logits[:, None, :], decode_logits,
                prior_dist[:, None, :], posterior_dist[:, None, :]]
    else:
        dec_init = (jnp.concatenate([top_src_hidden, kg_fusion], axis=-1)
                    @ params["init_w"] + params["init_b"])                # [B,H]
        pred_ids = decoder_greedy_decode(tgt_input[:, 0:1], dec_init, kg_fusion,
                                         mem, madd, Ts, emb_table,
                                         params["dec"], max_dec_len)
        return pred_ids, prior_dist


# ---------------------------------------------------------------------------
# Deterministic parameter init
# ---------------------------------------------------------------------------
def init_params(key, V, E, H):
    keys = iter(jax.random.split(key, 32))

    def nrm(shape, scale=0.1):
        return scale * jax.random.normal(next(keys), shape, dtype=jnp.float32)

    def gru_p(in_dim):
        return dict(wx=nrm((in_dim, 3 * H)), wh=nrm((H, 3 * H)),
                    bx=jnp.zeros((1, 3 * H), jnp.float32),
                    bh=jnp.zeros((1, 3 * H), jnp.float32))

    return dict(
        embedding=nrm((V, E)),
        utt_enc=gru_p(E),
        kg_enc=gru_p(E),
        bridge_w=nrm((H, H)), bridge_b=jnp.zeros((H,), jnp.float32),
        prior_w=nrm((H + E, H)),
        post_w=nrm((2 * H, H)),
        init_w=nrm((2 * H, H)), init_b=jnp.zeros((H,), jnp.float32),
        bow1_w1=nrm((2 * H, H)), bow1_b1=jnp.zeros((H,), jnp.float32),
        bow1_w2=nrm((H, V)), bow1_b2=jnp.zeros((V,), jnp.float32),
        bow2_w1=nrm((H, H)), bow2_b1=jnp.zeros((H,), jnp.float32),
        bow2_w2=nrm((H, V)), bow2_b2=jnp.zeros((V,), jnp.float32),
        dec=dict(wxe=nrm((E, 3 * H)), wxf=nrm((H, 3 * H)), wh=nrm((H, 3 * H)),
                 bx=jnp.zeros((1, 3 * H), jnp.float32),
                 bh=jnp.zeros((1, 3 * H), jnp.float32),
                 woh=nrm((H, V)), wos=nrm((H, V)), wok=nrm((H, V)),
                 bo=jnp.zeros((1, V), jnp.float32)),
    )


if __name__ == "__main__":
    # NOTE: real configs should use H % 128 == 0 and B % 8 == 0 for lane/sublane
    # alignment; the toy shapes below just exercise the kernels end-to-end.
    V, E, H = 64, 32, 32
    B, T_src, K_num, T_kg, T_tgt = 2, 8, 3, 6, 8
    MAX_DEC_LEN, UNK_ID = 8, 1

    key = jax.random.PRNGKey(0)
    kp, k1, k2, k3 = jax.random.split(key, 4)
    params = init_params(kp, V, E, H)

    src_input = jax.random.randint(k1, (B, T_src), 0, V, dtype=jnp.int32)
    src_len = jnp.array([8, 6], jnp.int32)
    src_padding_mask = (jnp.arange(T_src)[None, :] < src_len[:, None]).astype(jnp.float32)

    kg_input = jax.random.randint(k2, (B * K_num, T_kg), 0, V, dtype=jnp.int32)
    kg_len = jnp.array([6, 5, 4, 6, 3, 6], jnp.int32)
    kg_tok_mask = (jnp.arange(T_kg)[None, :] < kg_len[:, None]).astype(jnp.float32)
    kg_padding_mask = kg_tok_mask.reshape(B, K_num * T_kg)
    kg_mask = jnp.array([[1, 1, 1], [1, 1, 0]], jnp.float32)

    tgt_input = jax.random.randint(k3, (B, T_tgt), 0, V, dtype=jnp.int32)
    tgt_len = jnp.array([8, 7], jnp.int32)

    kg_extend_vocab = kg_input          # unused (copy mechanism omitted)
    extra_zero = jnp.zeros((B, 1), jnp.float32)

    train_fn = jax.jit(functools.partial(seq2seq_forward, is_train=True))
    eval_fn = jax.jit(functools.partial(seq2seq_forward, is_train=False,
                                        max_dec_len=MAX_DEC_LEN, unk_id=UNK_ID))

    train_outs = train_fn(params, src_input, src_len, src_padding_mask,
                          kg_input, kg_len, kg_mask, kg_padding_mask,
                          kg_extend_vocab, extra_zero, tgt_input, tgt_len)
    jax.block_until_ready(train_outs)

    eval_outs = eval_fn(params, src_input, src_len, src_padding_mask,
                        kg_input, kg_len, kg_mask, kg_padding_mask,
                        kg_extend_vocab, extra_zero, tgt_input, tgt_len)
    jax.block_until_ready(eval_outs)

    print("KERNEL_OK")
</pallas_src>

<mosaic_0001>
module attributes {stable_mosaic.version = 11 : i64} {
  func.func @_gru_encoder_kernel(%arg0: i32, %arg1: i32, %arg2: memref<8x6x96xf32, #tpu.memory_space<vmem>>, %arg3: memref<8x6x1xf32, #tpu.memory_space<vmem>>, %arg4: memref<32x96xf32, #tpu.memory_space<vmem>>, %arg5: memref<1x96xf32, #tpu.memory_space<vmem>>, %arg6: memref<8x6x32xf32, #tpu.memory_space<vmem>>, %arg7: memref<6x32xf32, #tpu.memory_space<vmem>>, %arg8: memref<6x32xf32, #tpu.memory_space<vmem>>) attributes {dimension_semantics = [#tpu.dimension_semantics<parallel>, #tpu.dimension_semantics<arbitrary>], iteration_bounds = array<i64: 1, 1>, scalar_prefetch = 0 : i64, scratch_operands = 1 : i64, tpu.core_type = #tpu.core_type<tc>, window_params = [{transform_indices = @transform_0, window_bounds = array<i64: 8, 6, 96>}, {transform_indices = @transform_1, window_bounds = array<i64: 8, 6, 1>}, {pipeline_mode = #tpu.pipeline_mode<synchronous>, transform_indices = @transform_2, window_bounds = array<i64: 32, 96>}, {pipeline_mode = #tpu.pipeline_mode<synchronous>, transform_indices = @transform_3, window_bounds = array<i64: 1, 96>}, {transform_indices = @transform_4, window_bounds = array<i64: 8, 6, 32>}, {transform_indices = @transform_5, window_bounds = array<i64: 6, 32>}]} {
    %c0_i32 = arith.constant 0 : i32
    %0 = arith.cmpi eq, %arg1, %c0_i32 : i32
    %1 = arith.extui %0 : i1 to i32
    %c0_i32_0 = arith.constant 0 : i32
    %2 = arith.cmpi ne, %1, %c0_i32_0 : i32
    scf.if %2 {
      %cst_136 = arith.constant 0.000000e+00 : f32
      %407 = vector.broadcast %cst_136 : f32 to vector<6x32xf32>
      %c0_137 = arith.constant 0 : index
      %c0_138 = arith.constant 0 : index
      %408 = vector.load %arg8[%c0_137, %c0_138] : memref<6x32xf32, #tpu.memory_space<vmem>>, vector<6x32xf32>
      tpu.vector_store %arg8[%c0_137, %c0_138], %407 {strides = array<i32>} : memref<6x32xf32, #tpu.memory_space<vmem>>, vector<6x32xf32>,
    } else {
    }
    %c0 = arith.constant 0 : index
    %c0_1 = arith.constant 0 : index
    %3 = vector.load %arg4[%c0, %c0_1] : memref<32x96xf32, #tpu.memory_space<vmem>>, vector<32x96xf32>
    %c0_2 = arith.constant 0 : index
    %c0_3 = arith.constant 0 : index
    %4 = vector.load %arg5[%c0_2, %c0_3] : memref<1x96xf32, #tpu.memory_space<vmem>>, vector<1x96xf32>
    %c0_i32_4 = arith.constant 0 : i32
    %5 = arith.index_cast %c0_i32_4 : i32 to index
    %c0_5 = arith.constant 0 : index
    %c0_6 = arith.constant 0 : index
    %6 = vector.load %arg2[%5, %c0_5, %c0_6] : memref<8x6x96xf32, #tpu.memory_space<vmem>>, vector<1x6x96xf32>
    %7 = vector.shape_cast %6 : vector<1x6x96xf32> to vector<6x96xf32>
    %c0_7 = arith.constant 0 : index
    %c0_8 = arith.constant 0 : index
    %8 = vector.load %arg8[%c0_7, %c0_8] : memref<6x32xf32, #tpu.memory_space<vmem>>, vector<6x32xf32>
    %cst = arith.constant dense<0.000000e+00> : vector<6x96xf32>
    %9 = tpu.matmul %8, %3, %cst {dimension_numbers = #tpu.dot_dimension_numbers<[1], [0], [0], [1], [0, 0, 1, 1], [], []>} : vector<6x32xf32>, vector<32x96xf32>, vector<6x96xf32> -> vector<6x96xf32>
    %10 = vector.broadcast %4 : vector<1x96xf32> to vector<6x96xf32>
    %11 = arith.addf %9, %10 : vector<6x96xf32>
    %12 = vector.extract_strided_slice %7 {offsets = [0, 0], sizes = [6, 32], strides = [1, 1]} : vector<6x96xf32> to vector<6x32xf32>
    %13 = vector.extract_strided_slice %11 {offsets = [0, 0], sizes = [6, 32], strides = [1, 1]} : vector<6x96xf32> to vector<6x32xf32>
    %14 = arith.addf %12, %13 : vector<6x32xf32>
    %15 = arith.negf %14 : vector<6x32xf32>
    %16 = math.exp %15 : vector<6x32xf32>
    %cst_9 = arith.constant 1.000000e+00 : f32
    %17 = vector.broadcast %cst_9 : f32 to vector<6x32xf32>
    %18 = arith.addf %17, %16 : vector<6x32xf32>
    %19 = arith.divf %17, %18 : vector<6x32xf32>
    %20 = vector.extract_strided_slice %7 {offsets = [0, 32], sizes = [6, 32], strides = [1, 1]} : vector<6x96xf32> to vector<6x32xf32>
    %21 = vector.extract_strided_slice %11 {offsets = [0, 32], sizes = [6, 32], strides = [1, 1]} : vector<6x96xf32> to vector<6x32xf32>
    %22 = arith.addf %20, %21 : vector<6x32xf32>
    %23 = arith.negf %22 : vector<6x32xf32>
    %24 = math.exp %23 : vector<6x32xf32>
    %cst_10 = arith.constant 1.000000e+00 : f32
    %25 = vector.broadcast %cst_10 : f32 to vector<6x32xf32>
    %26 = arith.addf %25, %24 : vector<6x32xf32>
    %27 = arith.divf %25, %26 : vector<6x32xf32>
    %28 = vector.extract_strided_slice %7 {offsets = [0, 64], sizes = [6, 32], strides = [1, 1]} : vector<6x96xf32> to vector<6x32xf32>
    %29 = vector.extract_strided_slice %11 {offsets = [0, 64], sizes = [6, 32], strides = [1, 1]} : vector<6x96xf32> to vector<6x32xf32>
    %30 = arith.mulf %19, %29 : vector<6x32xf32>
    %31 = arith.addf %28, %30 : vector<6x32xf32>
    %32 = math.tanh %31 : vector<6x32xf32>
    %cst_11 = arith.constant 1.000000e+00 : f32
    %33 = vector.broadcast %cst_11 : f32 to vector<6x32xf32>
    %34 = arith.subf %33, %27 : vector<6x32xf32>
    %35 = arith.mulf %34, %32 : vector<6x32xf32>
    %36 = arith.mulf %27, %8 : vector<6x32xf32>
    %37 = arith.addf %35, %36 : vector<6x32xf32>
    %38 = arith.index_cast %c0_i32_4 : i32 to index
    %c0_12 = arith.constant 0 : index
    %c0_13 = arith.constant 0 : index
    %39 = vector.load %arg3[%38, %c0_12, %c0_13] : memref<8x6x1xf32, #tpu.memory_space<vmem>>, vector<1x6x1xf32>
    %40 = vector.shape_cast %39 : vector<1x6x1xf32> to vector<6x1xf32>
    %cst_14 = arith.constant 5.000000e-01 : f32
    %41 = vector.broadcast %cst_14 : f32 to vector<6x1xf32>
    %42 = arith.cmpf ogt, %40, %41 : vector<6x1xf32>
    %43 = vector.shape_cast %42 : vector<6x1xi1> to vector<6x1xi1>
    %44 = vector.broadcast %43 : vector<6x1xi1> to vector<6x32xi1>
    %45 = arith.select %44, %37, %8 : vector<6x32xi1>, vector<6x32xf32>
    %c0_15 = arith.constant 0 : index
    %c0_16 = arith.constant 0 : index
    %46 = vector.load %arg8[%c0_15, %c0_16] : memref<6x32xf32, #tpu.memory_space<vmem>>, vector<6x32xf32>
    tpu.vector_store %arg8[%c0_15, %c0_16], %45 {strides = array<i32>} : memref<6x32xf32, #tpu.memory_space<vmem>>, vector<6x32xf32>,
    %cst_17 = arith.constant 0.000000e+00 : f32
    %47 = vector.shape_cast %42 : vector<6x1xi1> to vector<6x1xi1>
    %48 = vector.broadcast %47 : vector<6x1xi1> to vector<6x32xi1>
    %49 = vector.broadcast %cst_17 : f32 to vector<6x32xf32>
    %50 = arith.select %48, %37, %49 : vector<6x32xi1>, vector<6x32xf32>
    %51 = arith.index_cast %c0_i32_4 : i32 to index
    %c0_18 = arith.constant 0 : index
    %c0_19 = arith.constant 0 : index
    %52 = vector.load %arg6[%51, %c0_18, %c0_19] : memref<8x6x32xf32, #tpu.memory_space<vmem>>, vector<1x6x32xf32>
    %53 = vector.shape_cast %52 : vector<1x6x32xf32> to vector<6x32xf32>
    %54 = vector.shape_cast %50 : vector<6x32xf32> to vector<1x6x32xf32>
    tpu.vector_store %arg6[%51, %c0_18, %c0_19], %54 {strides = array<i32>} : memref<8x6x32xf32, #tpu.memory_space<vmem>>, vector<1x6x32xf32>,
    %c1_i32 = arith.constant 1 : i32
    %55 = arith.index_cast %c1_i32 : i32 to index
    %c0_20 = arith.constant 0 : index
    %c0_21 = arith.constant 0 : index
    %56 = vector.load %arg2[%55, %c0_20, %c0_21] : memref<8x6x96xf32, #tpu.memory_space<vmem>>, vector<1x6x96xf32>
    %57 = vector.shape_cast %56 : vector<1x6x96xf32> to vector<6x96xf32>
    %c0_22 = arith.constant 0 : index
    %c0_23 = arith.constant 0 : index
    %58 = vector.load %arg8[%c0_22, %c0_23] : memref<6x32xf32, #tpu.memory_space<vmem>>, vector<6x32xf32>
    %cst_24 = arith.constant dense<0.000000e+00> : vector<6x96xf32>
    %59 = tpu.matmul %58, %3, %cst_24 {dimension_numbers = #tpu.dot_dimension_numbers<[1], [0], [0], [1], [0, 0, 1, 1], [], []>} : vector<6x32xf32>, vector<32x96xf32>, vector<6x96xf32> -> vector<6x96xf32>
    %60 = vector.broadcast %4 : vector<1x96xf32> to vector<6x96xf32>
    %61 = arith.addf %59, %60 : vector<6x96xf32>
    %62 = vector.extract_strided_slice %57 {offsets = [0, 0], sizes = [6, 32], strides = [1, 1]} : vector<6x96xf32> to vector<6x32xf32>
    %63 = vector.extract_strided_slice %61 {offsets = [0, 0], sizes = [6, 32], strides = [1, 1]} : vector<6x96xf32> to vector<6x32xf32>
    %64 = arith.addf %62, %63 : vector<6x32xf32>
    %65 = arith.negf %64 : vector<6x32xf32>
    %66 = math.exp %65 : vector<6x32xf32>
    %cst_25 = arith.constant 1.000000e+00 : f32
    %67 = vector.broadcast %cst_25 : f32 to vector<6x32xf32>
    %68 = arith.addf %67, %66 : vector<6x32xf32>
    %69 = arith.divf %67, %68 : vector<6x32xf32>
    %70 = vector.extract_strided_slice %57 {offsets = [0, 32], sizes = [6, 32], strides = [1, 1]} : vector<6x96xf32> to vector<6x32xf32>
    %71 = vector.extract_strided_slice %61 {offsets = [0, 32], sizes = [6, 32], strides = [1, 1]} : vector<6x96xf32> to vector<6x32xf32>
    %72 = arith.addf %70, %71 : vector<6x32xf32>
    %73 = arith.negf %72 : vector<6x32xf32>
    %74 = math.exp %73 : vector<6x32xf32>
    %cst_26 = arith.constant 1.000000e+00 : f32
    %75 = vector.broadcast %cst_26 : f32 to vector<6x32xf32>
    %76 = arith.addf %75, %74 : vector<6x32xf32>
    %77 = arith.divf %75, %76 : vector<6x32xf32>
    %78 = vector.extract_strided_slice %57 {offsets = [0, 64], sizes = [6, 32], strides = [1, 1]} : vector<6x96xf32> to vector<6x32xf32>
    %79 = vector.extract_strided_slice %61 {offsets = [0, 64], sizes = [6, 32], strides = [1, 1]} : vector<6x96xf32> to vector<6x32xf32>
    %80 = arith.mulf %69, %79 : vector<6x32xf32>
    %81 = arith.addf %78, %80 : vector<6x32xf32>
    %82 = math.tanh %81 : vector<6x32xf32>
    %cst_27 = arith.constant 1.000000e+00 : f32
    %83 = vector.broadcast %cst_27 : f32 to vector<6x32xf32>
    %84 = arith.subf %83, %77 : vector<6x32xf32>
    %85 = arith.mulf %84, %82 : vector<6x32xf32>
    %86 = arith.mulf %77, %58 : vector<6x32xf32>
    %87 = arith.addf %85, %86 : vector<6x32xf32>
    %88 = arith.index_cast %c1_i32 : i32 to index
    %c0_28 = arith.constant 0 : index
    %c0_29 = arith.constant 0 : index
    %89 = vector.load %arg3[%88, %c0_28, %c0_29] : memref<8x6x1xf32, #tpu.memory_space<vmem>>, vector<1x6x1xf32>
    %90 = vector.shape_cast %89 : vector<1x6x1xf32> to vector<6x1xf32>
    %cst_30 = arith.constant 5.000000e-01 : f32
    %91 = vector.broadcast %cst_30 : f32 to vector<6x1xf32>
    %92 = arith.cmpf ogt, %90, %91 : vector<6x1xf32>
    %93 = vector.shape_cast %92 : vector<6x1xi1> to vector<6x1xi1>
    %94 = vector.broadcast %93 : vector<6x1xi1> to vector<6x32xi1>
    %95 = arith.select %94, %87, %58 : vector<6x32xi1>, vector<6x32xf32>
    %c0_31 = arith.constant 0 : index
    %c0_32 = arith.constant 0 : index
    %96 = vector.load %arg8[%c0_31, %c0_32] : memref<6x32xf32, #tpu.memory_space<vmem>>, vector<6x32xf32>
    tpu.vector_store %arg8[%c0_31, %c0_32], %95 {strides = array<i32>} : memref<6x32xf32, #tpu.memory_space<vmem>>, vector<6x32xf32>,
    %cst_33 = arith.constant 0.000000e+00 : f32
    %97 = vector.shape_cast %92 : vector<6x1xi1> to vector<6x1xi1>
    %98 = vector.broadcast %97 : vector<6x1xi1> to vector<6x32xi1>
    %99 = vector.broadcast %cst_33 : f32 to vector<6x32xf32>
    %100 = arith.select %98, %87, %99 : vector<6x32xi1>, vector<6x32xf32>
    %101 = arith.index_cast %c1_i32 : i32 to index
    %c0_34 = arith.constant 0 : index
    %c0_35 = arith.constant 0 : index
    %102 = vector.load %arg6[%101, %c0_34, %c0_35] : memref<8x6x32xf32, #tpu.memory_space<vmem>>, vector<1x6x32xf32>
    %103 = vector.shape_cast %102 : vector<1x6x32xf32> to vector<6x32xf32>
    %104 = vector.shape_cast %100 : vector<6x32xf32> to vector<1x6x32xf32>
    tpu.vector_store %arg6[%101, %c0_34, %c0_35], %104 {strides = array<i32>} : memref<8x6x32xf32, #tpu.memory_space<vmem>>, vector<1x6x32xf32>,
    %c2_i32 = arith.constant 2 : i32
    %105 = arith.index_cast %c2_i32 : i32 to index
    %c0_36 = arith.constant 0 : index
    %c0_37 = arith.constant 0 : index
    %106 = vector.load %arg2[%105, %c0_36, %c0_37] : memref<8x6x96xf32, #tpu.memory_space<vmem>>, vector<1x6x96xf32>
    %107 = vector.shape_cast %106 : vector<1x6x96xf32> to vector<6x96xf32>
    %c0_38 = arith.constant 0 : index
    %c0_39 = arith.constant 0 : index
    %108 = vector.load %arg8[%c0_38, %c0_39] : memref<6x32xf32, #tpu.memory_space<vmem>>, vector<6x32xf32>
    %cst_40 = arith.constant dense<0.000000e+00> : vector<6x96xf32>
    %109 = tpu.matmul %108, %3, %cst_40 {dimension_numbers = #tpu.dot_dimension_numbers<[1], [0], [0], [1], [0, 0, 1, 1], [], []>} : vector<6x32xf32>, vector<32x96xf32>, vector<6x96xf32> -> vector<6x96xf32>
    %110 = vector.broadcast %4 : vector<1x96xf32> to vector<6x96xf32>
    %111 = arith.addf %109, %110 : vector<6x96xf32>
    %112 = vector.extract_strided_slice %107 {offsets = [0, 0], sizes = [6, 32], strides = [1, 1]} : vector<6x96xf32> to vector<6x32xf32>
    %113 = vector.extract_strided_slice %111 {offsets = [0, 0], sizes = [6, 32], strides = [1, 1]} : vector<6x96xf32> to vector<6x32xf32>
    %114 = arith.addf %112, %113 : vector<6x32xf32>
    %115 = arith.negf %114 : vector<6x32xf32>
    %116 = math.exp %115 : vector<6x32xf32>
    %cst_41 = arith.constant 1.000000e+00 : f32
    %117 = vector.broadcast %cst_41 : f32 to vector<6x32xf32>
    %118 = arith.addf %117, %116 : vector<6x32xf32>
    %119 = arith.divf %117, %118 : vector<6x32xf32>
    %120 = vector.extract_strided_slice %107 {offsets = [0, 32], sizes = [6, 32], strides = [1, 1]} : vector<6x96xf32> to vector<6x32xf32>
    %121 = vector.extract_strided_slice %111 {offsets = [0, 32], sizes = [6, 32], strides = [1, 1]} : vector<6x96xf32> to vector<6x32xf32>
    %122 = arith.addf %120, %121 : vector<6x32xf32>
    %123 = arith.negf %122 : vector<6x32xf32>
    %124 = math.exp %123 : vector<6x32xf32>
    %cst_42 = arith.constant 1.000000e+00 : f32
    %125 = vector.broadcast %cst_42 : f32 to vector<6x32xf32>
    %126 = arith.addf %125, %124 : vector<6x32xf32>
    %127 = arith.divf %125, %126 : vector<6x32xf32>
    %128 = vector.extract_strided_slice %107 {offsets = [0, 64], sizes = [6, 32], strides = [1, 1]} : vector<6x96xf32> to vector<6x32xf32>
    %129 = vector.extract_strided_slice %111 {offsets = [0, 64], sizes = [6, 32], strides = [1, 1]} : vector<6x96xf32> to vector<6x32xf32>
    %130 = arith.mulf %119, %129 : vector<6x32xf32>
    %131 = arith.addf %128, %130 : vector<6x32xf32>
    %132 = math.tanh %131 : vector<6x32xf32>
    %cst_43 = arith.constant 1.000000e+00 : f32
    %133 = vector.broadcast %cst_43 : f32 to vector<6x32xf32>
    %134 = arith.subf %133, %127 : vector<6x32xf32>
    %135 = arith.mulf %134, %132 : vector<6x32xf32>
    %136 = arith.mulf %127, %108 : vector<6x32xf32>
    %137 = arith.addf %135, %136 : vector<6x32xf32>
    %138 = arith.index_cast %c2_i32 : i32 to index
    %c0_44 = arith.constant 0 : index
    %c0_45 = arith.constant 0 : index
    %139 = vector.load %arg3[%138, %c0_44, %c0_45] : memref<8x6x1xf32, #tpu.memory_space<vmem>>, vector<1x6x1xf32>
    %140 = vector.shape_cast %139 : vector<1x6x1xf32> to vector<6x1xf32>
    %cst_46 = arith.constant 5.000000e-01 : f32
    %141 = vector.broadcast %cst_46 : f32 to vector<6x1xf32>
    %142 = arith.cmpf ogt, %140, %141 : vector<6x1xf32>
    %143 = vector.shape_cast %142 : vector<6x1xi1> to vector<6x1xi1>
    %144 = vector.broadcast %143 : vector<6x1xi1> to vector<6x32xi1>
    %145 = arith.select %144, %137, %108 : vector<6x32xi1>, vector<6x32xf32>
    %c0_47 = arith.constant 0 : index
    %c0_48 = arith.constant 0 : index
    %146 = vector.load %arg8[%c0_47, %c0_48] : memref<6x32xf32, #tpu.memory_space<vmem>>, vector<6x32xf32>
    tpu.vector_store %arg8[%c0_47, %c0_48], %145 {strides = array<i32>} : memref<6x32xf32, #tpu.memory_space<vmem>>, vector<6x32xf32>,
    %cst_49 = arith.constant 0.000000e+00 : f32
    %147 = vector.shape_cast %142 : vector<6x1xi1> to vector<6x1xi1>
    %148 = vector.broadcast %147 : vector<6x1xi1> to vector<6x32xi1>
    %149 = vector.broadcast %cst_49 : f32 to vector<6x32xf32>
    %150 = arith.select %148, %137, %149 : vector<6x32xi1>, vector<6x32xf32>
    %151 = arith.index_cast %c2_i32 : i32 to index
    %c0_50 = arith.constant 0 : index
    %c0_51 = arith.constant 0 : index
    %152 = vector.load %arg6[%151, %c0_50, %c0_51] : memref<8x6x32xf32, #tpu.memory_space<vmem>>, vector<1x6x32xf32>
    %153 = vector.shape_cast %152 : vector<1x6x32xf32> to vector<6x32xf32>
    %154 = vector.shape_cast %150 : vector<6x32xf32> to vector<1x6x32xf32>
    tpu.vector_store %arg6[%151, %c0_50, %c0_51], %154 {strides = array<i32>} : memref<8x6x32xf32, #tpu.memory_space<vmem>>, vector<1x6x32xf32>,
    %c3_i32 = arith.constant 3 : i32
    %155 = arith.index_cast %c3_i32 : i32 to index
    %c0_52 = arith.constant 0 : index
    %c0_53 = arith.constant 0 : index
    %156 = vector.load %arg2[%155, %c0_52, %c0_53] : memref<8x6x96xf32, #tpu.memory_space<vmem>>, vector<1x6x96xf32>
    %157 = vector.shape_cast %156 : vector<1x6x96xf32> to vector<6x96xf32>
    %c0_54 = arith.constant 0 : index
    %c0_55 = arith.constant 0 : index
    %158 = vector.load %arg8[%c0_54, %c0_55] : memref<6x32xf32, #tpu.memory_space<vmem>>, vector<6x32xf32>
    %cst_56 = arith.constant dense<0.000000e+00> : vector<6x96xf32>
    %159 = tpu.matmul %158, %3, %cst_56 {dimension_numbers = #tpu.dot_dimension_numbers<[1], [0], [0], [1], [0, 0, 1, 1], [], []>} : vector<6x32xf32>, vector<32x96xf32>, vector<6x96xf32> -> vector<6x96xf32>
    %160 = vector.broadcast %4 : vector<1x96xf32> to vector<6x96xf32>
    %161 = arith.addf %159, %160 : vector<6x96xf32>
    %162 = vector.extract_strided_slice %157 {offsets = [0, 0], sizes = [6, 32], strides = [1, 1]} : vector<6x96xf32> to vector<6x32xf32>
    %163 = vector.extract_strided_slice %161 {offsets = [0, 0], sizes = [6, 32], strides = [1, 1]} : vector<6x96xf32> to vector<6x32xf32>
    %164 = arith.addf %162, %163 : vector<6x32xf32>
    %165 = arith.negf %164 : vector<6x32xf32>
    %166 = math.exp %165 : vector<6x32xf32>
    %cst_57 = arith.constant 1.000000e+00 : f32
    %167 = vector.broadcast %cst_57 : f32 to vector<6x32xf32>
    %168 = arith.addf %167, %166 : vector<6x32xf32>
    %169 = arith.divf %167, %168 : vector<6x32xf32>
    %170 = vector.extract_strided_slice %157 {offsets = [0, 32], sizes = [6, 32], strides = [1, 1]} : vector<6x96xf32> to vector<6x32xf32>
    %171 = vector.extract_strided_slice %161 {offsets = [0, 32], sizes = [6, 32], strides = [1, 1]} : vector<6x96xf32> to vector<6x32xf32>
    %172 = arith.addf %170, %171 : vector<6x32xf32>
    %173 = arith.negf %172 : vector<6x32xf32>
    %174 = math.exp %173 : vector<6x32xf32>
    %cst_58 = arith.constant 1.000000e+00 : f32
    %175 = vector.broadcast %cst_58 : f32 to vector<6x32xf32>
    %176 = arith.addf %175, %174 : vector<6x32xf32>
    %177 = arith.divf %175, %176 : vector<6x32xf32>
    %178 = vector.extract_strided_slice %157 {offsets = [0, 64], sizes = [6, 32], strides = [1, 1]} : vector<6x96xf32> to vector<6x32xf32>
    %179 = vector.extract_strided_slice %161 {offsets = [0, 64], sizes = [6, 32], strides = [1, 1]} : vector<6x96xf32> to vector<6x32xf32>
    %180 = arith.mulf %169, %179 : vector<6x32xf32>
    %181 = arith.addf %178, %180 : vector<6x32xf32>
    %182 = math.tanh %181 : vector<6x32xf32>
    %cst_59 = arith.constant 1.000000e+00 : f32
    %183 = vector.broadcast %cst_59 : f32 to vector<6x32xf32>
    %184 = arith.subf %183, %177 : vector<6x32xf32>
    %185 = arith.mulf %184, %182 : vector<6x32xf32>
    %186 = arith.mulf %177, %158 : vector<6x32xf32>
    %187 = arith.addf %185, %186 : vector<6x32xf32>
    %188 = arith.index_cast %c3_i32 : i32 to index
    %c0_60 = arith.constant 0 : index
    %c0_61 = arith.constant 0 : index
    %189 = vector.load %arg3[%188, %c0_60, %c0_61] : memref<8x6x1xf32, #tpu.memory_space<vmem>>, vector<1x6x1xf32>
    %190 = vector.shape_cast %189 : vector<1x6x1xf32> to vector<6x1xf32>
    %cst_62 = arith.constant 5.000000e-01 : f32
    %191 = vector.broadcast %cst_62 : f32 to vector<6x1xf32>
    %192 = arith.cmpf ogt, %190, %191 : vector<6x1xf32>
    %193 = vector.shape_cast %192 : vector<6x1xi1> to vector<6x1xi1>
    %194 = vector.broadcast %193 : vector<6x1xi1> to vector<6x32xi1>
    %195 = arith.select %194, %187, %158 : vector<6x32xi1>, vector<6x32xf32>
    %c0_63 = arith.constant 0 : index
    %c0_64 = arith.constant 0 : index
    %196 = vector.load %arg8[%c0_63, %c0_64] : memref<6x32xf32, #tpu.memory_space<vmem>>, vector<6x32xf32>
    tpu.vector_store %arg8[%c0_63, %c0_64], %195 {strides = array<i32>} : memref<6x32xf32, #tpu.memory_space<vmem>>, vector<6x32xf32>,
    %cst_65 = arith.constant 0.000000e+00 : f32
    %197 = vector.shape_cast %192 : vector<6x1xi1> to vector<6x1xi1>
    %198 = vector.broadcast %197 : vector<6x1xi1> to vector<6x32xi1>
    %199 = vector.broadcast %cst_65 : f32 to vector<6x32xf32>
    %200 = arith.select %198, %187, %199 : vector<6x32xi1>, vector<6x32xf32>
    %201 = arith.index_cast %c3_i32 : i32 to index
    %c0_66 = arith.constant 0 : index
    %c0_67 = arith.constant 0 : index
    %202 = vector.load %arg6[%201, %c0_66, %c0_67] : memref<8x6x32xf32, #tpu.memory_space<vmem>>, vector<1x6x32xf32>
    %203 = vector.shape_cast %202 : vector<1x6x32xf32> to vector<6x32xf32>
    %204 = vector.shape_cast %200 : vector<6x32xf32> to vector<1x6x32xf32>
    tpu.vector_store %arg6[%201, %c0_66, %c0_67], %204 {strides = array<i32>} : memref<8x6x32xf32, #tpu.memory_space<vmem>>, vector<1x6x32xf32>,
    %c4_i32 = arith.constant 4 : i32
    %205 = arith.index_cast %c4_i32 : i32 to index
    %c0_68 = arith.constant 0 : index
    %c0_69 = arith.constant 0 : index
    %206 = vector.load %arg2[%205, %c0_68, %c0_69] : memref<8x6x96xf32, #tpu.memory_space<vmem>>, vector<1x6x96xf32>
    %207 = vector.shape_cast %206 : vector<1x6x96xf32> to vector<6x96xf32>
    %c0_70 = arith.constant 0 : index
    %c0_71 = arith.constant 0 : index
    %208 = vector.load %arg8[%c0_70, %c0_71] : memref<6x32xf32, #tpu.memory_space<vmem>>, vector<6x32xf32>
    %cst_72 = arith.constant dense<0.000000e+00> : vector<6x96xf32>
    %209 = tpu.matmul %208, %3, %cst_72 {dimension_numbers = #tpu.dot_dimension_numbers<[1], [0], [0], [1], [0, 0, 1, 1], [], []>} : vector<6x32xf32>, vector<32x96xf32>, vector<6x96xf32> -> vector<6x96xf32>
    %210 = vector.broadcast %4 : vector<1x96xf32> to vector<6x96xf32>
    %211 = arith.addf %209, %210 : vector<6x96xf32>
    %212 = vector.extract_strided_slice %207 {offsets = [0, 0], sizes = [6, 32], strides = [1, 1]} : vector<6x96xf32> to vector<6x32xf32>
    %213 = vector.extract_strided_slice %211 {offsets = [0, 0], sizes = [6, 32], strides = [1, 1]} : vector<6x96xf32> to vector<6x32xf32>
    %214 = arith.addf %212, %213 : vector<6x32xf32>
    %215 = arith.negf %214 : vector<6x32xf32>
    %216 = math.exp %215 : vector<6x32xf32>
    %cst_73 = arith.constant 1.000000e+00 : f32
    %217 = vector.broadcast %cst_73 : f32 to vector<6x32xf32>
    %218 = arith.addf %217, %216 : vector<6x32xf32>
    %219 = arith.divf %217, %218 : vector<6x32xf32>
    %220 = vector.extract_strided_slice %207 {offsets = [0, 32], sizes = [6, 32], strides = [1, 1]} : vector<6x96xf32> to vector<6x32xf32>
    %221 = vector.extract_strided_slice %211 {offsets = [0, 32], sizes = [6, 32], strides = [1, 1]} : vector<6x96xf32> to vector<6x32xf32>
    %222 = arith.addf %220, %221 : vector<6x32xf32>
    %223 = arith.negf %222 : vector<6x32xf32>
    %224 = math.exp %223 : vector<6x32xf32>
    %cst_74 = arith.constant 1.000000e+00 : f32
    %225 = vector.broadcast %cst_74 : f32 to vector<6x32xf32>
    %226 = arith.addf %225, %224 : vector<6x32xf32>
    %227 = arith.divf %225, %226 : vector<6x32xf32>
    %228 = vector.extract_strided_slice %207 {offsets = [0, 64], sizes = [6, 32], strides = [1, 1]} : vector<6x96xf32> to vector<6x32xf32>
    %229 = vector.extract_strided_slice %211 {offsets = [0, 64], sizes = [6, 32], strides = [1, 1]} : vector<6x96xf32> to vector<6x32xf32>
    %230 = arith.mulf %219, %229 : vector<6x32xf32>
    %231 = arith.addf %228, %230 : vector<6x32xf32>
    %232 = math.tanh %231 : vector<6x32xf32>
    %cst_75 = arith.constant 1.000000e+00 : f32
    %233 = vector.broadcast %cst_75 : f32 to vector<6x32xf32>
    %234 = arith.subf %233, %227 : vector<6x32xf32>
    %235 = arith.mulf %234, %232 : vector<6x32xf32>
    %236 = arith.mulf %227, %208 : vector<6x32xf32>
    %237 = arith.addf %235, %236 : vector<6x32xf32>
    %238 = arith.index_cast %c4_i32 : i32 to index
    %c0_76 = arith.constant 0 : index
    %c0_77 = arith.constant 0 : index
    %239 = vector.load %arg3[%238, %c0_76, %c0_77] : memref<8x6x1xf32, #tpu.memory_space<vmem>>, vector<1x6x1xf32>
    %240 = vector.shape_cast %239 : vector<1x6x1xf32> to vector<6x1xf32>
    %cst_78 = arith.constant 5.000000e-01 : f32
    %241 = vector.broadcast %cst_78 : f32 to vector<6x1xf32>
    %242 = arith.cmpf ogt, %240, %241 : vector<6x1xf32>
    %243 = vector.shape_cast %242 : vector<6x1xi1> to vector<6x1xi1>
    %244 = vector.broadcast %243 : vector<6x1xi1> to vector<6x32xi1>
    %245 = arith.select %244, %237, %208 : vector<6x32xi1>, vector<6x32xf32>
    %c0_79 = arith.constant 0 : index
    %c0_80 = arith.constant 0 : index
    %246 = vector.load %arg8[%c0_79, %c0_80] : memref<6x32xf32, #tpu.memory_space<vmem>>, vector<6x32xf32>
    tpu.vector_store %arg8[%c0_79, %c0_80], %245 {strides = array<i32>} : memref<6x32xf32, #tpu.memory_space<vmem>>, vector<6x32xf32>,
    %cst_81 = arith.constant 0.000000e+00 : f32
    %247 = vector.shape_cast %242 : vector<6x1xi1> to vector<6x1xi1>
    %248 = vector.broadcast %247 : vector<6x1xi1> to vector<6x32xi1>
    %249 = vector.broadcast %cst_81 : f32 to vector<6x32xf32>
    %250 = arith.select %248, %237, %249 : vector<6x32xi1>, vector<6x32xf32>
    %251 = arith.index_cast %c4_i32 : i32 to index
    %c0_82 = arith.constant 0 : index
    %c0_83 = arith.constant 0 : index
    %252 = vector.load %arg6[%251, %c0_82, %c0_83] : memref<8x6x32xf32, #tpu.memory_space<vmem>>, vector<1x6x32xf32>
    %253 = vector.shape_cast %252 : vector<1x6x32xf32> to vector<6x32xf32>
    %254 = vector.shape_cast %250 : vector<6x32xf32> to vector<1x6x32xf32>
    tpu.vector_store %arg6[%251, %c0_82, %c0_83], %254 {strides = array<i32>} : memref<8x6x32xf32, #tpu.memory_space<vmem>>, vector<1x6x32xf32>,
    %c5_i32 = arith.constant 5 : i32
    %255 = arith.index_cast %c5_i32 : i32 to index
    %c0_84 = arith.constant 0 : index
    %c0_85 = arith.constant 0 : index
    %256 = vector.load %arg2[%255, %c0_84, %c0_85] : memref<8x6x96xf32, #tpu.memory_space<vmem>>, vector<1x6x96xf32>
    %257 = vector.shape_cast %256 : vector<1x6x96xf32> to vector<6x96xf32>
    %c0_86 = arith.constant 0 : index
    %c0_87 = arith.constant 0 : index
    %258 = vector.load %arg8[%c0_86, %c0_87] : memref<6x32xf32, #tpu.memory_space<vmem>>, vector<6x32xf32>
    %cst_88 = arith.constant dense<0.000000e+00> : vector<6x96xf32>
    %259 = tpu.matmul %258, %3, %cst_88 {dimension_numbers = #tpu.dot_dimension_numbers<[1], [0], [0], [1], [0, 0, 1, 1], [], []>} : vector<6x32xf32>, vector<32x96xf32>, vector<6x96xf32> -> vector<6x96xf32>
    %260 = vector.broadcast %4 : vector<1x96xf32> to vector<6x96xf32>
    %261 = arith.addf %259, %260 : vector<6x96xf32>
    %262 = vector.extract_strided_slice %257 {offsets = [0, 0], sizes = [6, 32], strides = [1, 1]} : vector<6x96xf32> to vector<6x32xf32>
    %263 = vector.extract_strided_slice %261 {offsets = [0, 0], sizes = [6, 32], strides = [1, 1]} : vector<6x96xf32> to vector<6x32xf32>
    %264 = arith.addf %262, %263 : vector<6x32xf32>
    %265 = arith.negf %264 : vector<6x32xf32>
    %266 = math.exp %265 : vector<6x32xf32>
    %cst_89 = arith.constant 1.000000e+00 : f32
    %267 = vector.broadcast %cst_89 : f32 to vector<6x32xf32>
    %268 = arith.addf %267, %266 : vector<6x32xf32>
    %269 = arith.divf %267, %268 : vector<6x32xf32>
    %270 = vector.extract_strided_slice %257 {offsets = [0, 32], sizes = [6, 32], strides = [1, 1]} : vector<6x96xf32> to vector<6x32xf32>
    %271 = vector.extract_strided_slice %261 {offsets = [0, 32], sizes = [6, 32], strides = [1, 1]} : vector<6x96xf32> to vector<6x32xf32>
    %272 = arith.addf %270, %271 : vector<6x32xf32>
    %273 = arith.negf %272 : vector<6x32xf32>
    %274 = math.exp %273 : vector<6x32xf32>
    %cst_90 = arith.constant 1.000000e+00 : f32
    %275 = vector.broadcast %cst_90 : f32 to vector<6x32xf32>
    %276 = arith.addf %275, %274 : vector<6x32xf32>
    %277 = arith.divf %275, %276 : vector<6x32xf32>
    %278 = vector.extract_strided_slice %257 {offsets = [0, 64], sizes = [6, 32], strides = [1, 1]} : vector<6x96xf32> to vector<6x32xf32>
    %279 = vector.extract_strided_slice %261 {offsets = [0, 64], sizes = [6, 32], strides = [1, 1]} : vector<6x96xf32> to vector<6x32xf32>
    %280 = arith.mulf %269, %279 : vector<6x32xf32>
    %281 = arith.addf %278, %280 : vector<6x32xf32>
    %282 = math.tanh %281 : vector<6x32xf32>
    %cst_91 = arith.constant 1.000000e+00 : f32
    %283 = vector.broadcast %cst_91 : f32 to vector<6x32xf32>
    %284 = arith.subf %283, %277 : vector<6x32xf32>
    %285 = arith.mulf %284, %282 : vector<6x32xf32>
    %286 = arith.mulf %277, %258 : vector<6x32xf32>
    %287 = arith.addf %285, %286 : vector<6x32xf32>
    %288 = arith.index_cast %c5_i32 : i32 to index
    %c0_92 = arith.constant 0 : index
    %c0_93 = arith.constant 0 : index
    %289 = vector.load %arg3[%288, %c0_92, %c0_93] : memref<8x6x1xf32, #tpu.memory_space<vmem>>, vector<1x6x1xf32>
    %290 = vector.shape_cast %289 : vector<1x6x1xf32> to vector<6x1xf32>
    %cst_94 = arith.constant 5.000000e-01 : f32
    %291 = vector.broadcast %cst_94 : f32 to vector<6x1xf32>
    %292 = arith.cmpf ogt, %290, %291 : vector<6x1xf32>
    %293 = vector.shape_cast %292 : vector<6x1xi1> to vector<6x1xi1>
    %294 = vector.broadcast %293 : vector<6x1xi1> to vector<6x32xi1>
    %295 = arith.select %294, %287, %258 : vector<6x32xi1>, vector<6x32xf32>
    %c0_95 = arith.constant 0 : index
    %c0_96 = arith.constant 0 : index
    %296 = vector.load %arg8[%c0_95, %c0_96] : memref<6x32xf32, #tpu.memory_space<vmem>>, vector<6x32xf32>
    tpu.vector_store %arg8[%c0_95, %c0_96], %295 {strides = array<i32>} : memref<6x32xf32, #tpu.memory_space<vmem>>, vector<6x32xf32>,
    %cst_97 = arith.constant 0.000000e+00 : f32
    %297 = vector.shape_cast %292 : vector<6x1xi1> to vector<6x1xi1>
    %298 = vector.broadcast %297 : vector<6x1xi1> to vector<6x32xi1>
    %299 = vector.broadcast %cst_97 : f32 to vector<6x32xf32>
    %300 = arith.select %298, %287, %299 : vector<6x32xi1>, vector<6x32xf32>
    %301 = arith.index_cast %c5_i32 : i32 to index
    %c0_98 = arith.constant 0 : index
    %c0_99 = arith.constant 0 : index
    %302 = vector.load %arg6[%301, %c0_98, %c0_99] : memref<8x6x32xf32, #tpu.memory_space<vmem>>, vector<1x6x32xf32>
    %303 = vector.shape_cast %302 : vector<1x6x32xf32> to vector<6x32xf32>
    %304 = vector.shape_cast %300 : vector<6x32xf32> to vector<1x6x32xf32>
    tpu.vector_store %arg6[%301, %c0_98, %c0_99], %304 {strides = array<i32>} : memref<8x6x32xf32, #tpu.memory_space<vmem>>, vector<1x6x32xf32>,
    %c6_i32 = arith.constant 6 : i32
    %305 = arith.index_cast %c6_i32 : i32 to index
    %c0_100 = arith.constant 0 : index
    %c0_101 = arith.constant 0 : index
    %306 = vector.load %arg2[%305, %c0_100, %c0_101] : memref<8x6x96xf32, #tpu.memory_space<vmem>>, vector<1x6x96xf32>
    %307 = vector.shape_cast %306 : vector<1x6x96xf32> to vector<6x96xf32>
    %c0_102 = arith.constant 0 : index
    %c0_103 = arith.constant 0 : index
    %308 = vector.load %arg8[%c0_102, %c0_103] : memref<6x32xf32, #tpu.memory_space<vmem>>, vector<6x32xf32>
    %cst_104 = arith.constant dense<0.000000e+00> : vector<6x96xf32>
    %309 = tpu.matmul %308, %3, %cst_104 {dimension_numbers = #tpu.dot_dimension_numbers<[1], [0], [0], [1], [0, 0, 1, 1], [], []>} : vector<6x32xf32>, vector<32x96xf32>, vector<6x96xf32> -> vector<6x96xf32>
    %310 = vector.broadcast %4 : vector<1x96xf32> to vector<6x96xf32>
    %311 = arith.addf %309, %310 : vector<6x96xf32>
    %312 = vector.extract_strided_slice %307 {offsets = [0, 0], sizes = [6, 32], strides = [1, 1]} : vector<6x96xf32> to vector<6x32xf32>
    %313 = vector.extract_strided_slice %311 {offsets = [0, 0], sizes = [6, 32], strides = [1, 1]} : vector<6x96xf32> to vector<6x32xf32>
    %314 = arith.addf %312, %313 : vector<6x32xf32>
    %315 = arith.negf %314 : vector<6x32xf32>
    %316 = math.exp %315 : vector<6x32xf32>
    %cst_105 = arith.constant 1.000000e+00 : f32
    %317 = vector.broadcast %cst_105 : f32 to vector<6x32xf32>
    %318 = arith.addf %317, %316 : vector<6x32xf32>
    %319 = arith.divf %317, %318 : vector<6x32xf32>
    %320 = vector.extract_strided_slice %307 {offsets = [0, 32], sizes = [6, 32], strides = [1, 1]} : vector<6x96xf32> to vector<6x32xf32>
    %321 = vector.extract_strided_slice %311 {offsets = [0, 32], sizes = [6, 32], strides = [1, 1]} : vector<6x96xf32> to vector<6x32xf32>
    %322 = arith.addf %320, %321 : vector<6x32xf32>
    %323 = arith.negf %322 : vector<6x32xf32>
    %324 = math.exp %323 : vector<6x32xf32>
    %cst_106 = arith.constant 1.000000e+00 : f32
    %325 = vector.broadcast %cst_106 : f32 to vector<6x32xf32>
    %326 = arith.addf %325, %324 : vector<6x32xf32>
    %327 = arith.divf %325, %326 : vector<6x32xf32>
    %328 = vector.extract_strided_slice %307 {offsets = [0, 64], sizes = [6, 32], strides = [1, 1]} : vector<6x96xf32> to vector<6x32xf32>
    %329 = vector.extract_strided_slice %311 {offsets = [0, 64], sizes = [6, 32], strides = [1, 1]} : vector<6x96xf32> to vector<6x32xf32>
    %330 = arith.mulf %319, %329 : vector<6x32xf32>
    %331 = arith.addf %328, %330 : vector<6x32xf32>
    %332 = math.tanh %331 : vector<6x32xf32>
    %cst_107 = arith.constant 1.000000e+00 : f32
    %333 = vector.broadcast %cst_107 : f32 to vector<6x32xf32>
    %334 = arith.subf %333, %327 : vector<6x32xf32>
    %335 = arith.mulf %334, %332 : vector<6x32xf32>
    %336 = arith.mulf %327, %308 : vector<6x32xf32>
    %337 = arith.addf %335, %336 : vector<6x32xf32>
    %338 = arith.index_cast %c6_i32 : i32 to index
    %c0_108 = arith.constant 0 : index
    %c0_109 = arith.constant 0 : index
    %339 = vector.load %arg3[%338, %c0_108, %c0_109] : memref<8x6x1xf32, #tpu.memory_space<vmem>>, vector<1x6x1xf32>
    %340 = vector.shape_cast %339 : vector<1x6x1xf32> to vector<6x1xf32>
    %cst_110 = arith.constant 5.000000e-01 : f32
    %341 = vector.broadcast %cst_110 : f32 to vector<6x1xf32>
    %342 = arith.cmpf ogt, %340, %341 : vector<6x1xf32>
    %343 = vector.shape_cast %342 : vector<6x1xi1> to vector<6x1xi1>
    %344 = vector.broadcast %343 : vector<6x1xi1> to vector<6x32xi1>
    %345 = arith.select %344, %337, %308 : vector<6x32xi1>, vector<6x32xf32>
    %c0_111 = arith.constant 0 : index
    %c0_112 = arith.constant 0 : index
    %346 = vector.load %arg8[%c0_111, %c0_112] : memref<6x32xf32, #tpu.memory_space<vmem>>, vector<6x32xf32>
    tpu.vector_store %arg8[%c0_111, %c0_112], %345 {strides = array<i32>} : memref<6x32xf32, #tpu.memory_space<vmem>>, vector<6x32xf32>,
    %cst_113 = arith.constant 0.000000e+00 : f32
    %347 = vector.shape_cast %342 : vector<6x1xi1> to vector<6x1xi1>
    %348 = vector.broadcast %347 : vector<6x1xi1> to vector<6x32xi1>
    %349 = vector.broadcast %cst_113 : f32 to vector<6x32xf32>
    %350 = arith.select %348, %337, %349 : vector<6x32xi1>, vector<6x32xf32>
    %351 = arith.index_cast %c6_i32 : i32 to index
    %c0_114 = arith.constant 0 : index
    %c0_115 = arith.constant 0 : index
    %352 = vector.load %arg6[%351, %c0_114, %c0_115] : memref<8x6x32xf32, #tpu.memory_space<vmem>>, vector<1x6x32xf32>
    %353 = vector.shape_cast %352 : vector<1x6x32xf32> to vector<6x32xf32>
    %354 = vector.shape_cast %350 : vector<6x32xf32> to vector<1x6x32xf32>
    tpu.vector_store %arg6[%351, %c0_114, %c0_115], %354 {strides = array<i32>} : memref<8x6x32xf32, #tpu.memory_space<vmem>>, vector<1x6x32xf32>,
    %c7_i32 = arith.constant 7 : i32
    %355 = arith.index_cast %c7_i32 : i32 to index
    %c0_116 = arith.constant 0 : index
    %c0_117 = arith.constant 0 : index
    %356 = vector.load %arg2[%355, %c0_116, %c0_117] : memref<8x6x96xf32, #tpu.memory_space<vmem>>, vector<1x6x96xf32>
    %357 = vector.shape_cast %356 : vector<1x6x96xf32> to vector<6x96xf32>
    %c0_118 = arith.constant 0 : index
    %c0_119 = arith.constant 0 : index
    %358 = vector.load %arg8[%c0_118, %c0_119] : memref<6x32xf32, #tpu.memory_space<vmem>>, vector<6x32xf32>
    %cst_120 = arith.constant dense<0.000000e+00> : vector<6x96xf32>
    %359 = tpu.matmul %358, %3, %cst_120 {dimension_numbers = #tpu.dot_dimension_numbers<[1], [0], [0], [1], [0, 0, 1, 1], [], []>} : vector<6x32xf32>, vector<32x96xf32>, vector<6x96xf32> -> vector<6x96xf32>
    %360 = vector.broadcast %4 : vector<1x96xf32> to vector<6x96xf32>
    %361 = arith.addf %359, %360 : vector<6x96xf32>
    %362 = vector.extract_strided_slice %357 {offsets = [0, 0], sizes = [6, 32], strides = [1, 1]} : vector<6x96xf32> to vector<6x32xf32>
    %363 = vector.extract_strided_slice %361 {offsets = [0, 0], sizes = [6, 32], strides = [1, 1]} : vector<6x96xf32> to vector<6x32xf32>
    %364 = arith.addf %362, %363 : vector<6x32xf32>
    %365 = arith.negf %364 : vector<6x32xf32>
    %366 = math.exp %365 : vector<6x32xf32>
    %cst_121 = arith.constant 1.000000e+00 : f32
    %367 = vector.broadcast %cst_121 : f32 to vector<6x32xf32>
    %368 = arith.addf %367, %366 : vector<6x32xf32>
    %369 = arith.divf %367, %368 : vector<6x32xf32>
    %370 = vector.extract_strided_slice %357 {offsets = [0, 32], sizes = [6, 32], strides = [1, 1]} : vector<6x96xf32> to vector<6x32xf32>
    %371 = vector.extract_strided_slice %361 {offsets = [0, 32], sizes = [6, 32], strides = [1, 1]} : vector<6x96xf32> to vector<6x32xf32>
    %372 = arith.addf %370, %371 : vector<6x32xf32>
    %373 = arith.negf %372 : vector<6x32xf32>
    %374 = math.exp %373 : vector<6x32xf32>
    %cst_122 = arith.constant 1.000000e+00 : f32
    %375 = vector.broadcast %cst_122 : f32 to vector<6x32xf32>
    %376 = arith.addf %375, %374 : vector<6x32xf32>
    %377 = arith.divf %375, %376 : vector<6x32xf32>
    %378 = vector.extract_strided_slice %357 {offsets = [0, 64], sizes = [6, 32], strides = [1, 1]} : vector<6x96xf32> to vector<6x32xf32>
    %379 = vector.extract_strided_slice %361 {offsets = [0, 64], sizes = [6, 32], strides = [1, 1]} : vector<6x96xf32> to vector<6x32xf32>
    %380 = arith.mulf %369, %379 : vector<6x32xf32>
    %381 = arith.addf %378, %380 : vector<6x32xf32>
    %382 = math.tanh %381 : vector<6x32xf32>
    %cst_123 = arith.constant 1.000000e+00 : f32
    %383 = vector.broadcast %cst_123 : f32 to vector<6x32xf32>
    %384 = arith.subf %383, %377 : vector<6x32xf32>
    %385 = arith.mulf %384, %382 : vector<6x32xf32>
    %386 = arith.mulf %377, %358 : vector<6x32xf32>
    %387 = arith.addf %385, %386 : vector<6x32xf32>
    %388 = arith.index_cast %c7_i32 : i32 to index
    %c0_124 = arith.constant 0 : index
    %c0_125 = arith.constant 0 : index
    %389 = vector.load %arg3[%388, %c0_124, %c0_125] : memref<8x6x1xf32, #tpu.memory_space<vmem>>, vector<1x6x1xf32>
    %390 = vector.shape_cast %389 : vector<1x6x1xf32> to vector<6x1xf32>
    %cst_126 = arith.constant 5.000000e-01 : f32
    %391 = vector.broadcast %cst_126 : f32 to vector<6x1xf32>
    %392 = arith.cmpf ogt, %390, %391 : vector<6x1xf32>
    %393 = vector.shape_cast %392 : vector<6x1xi1> to vector<6x1xi1>
    %394 = vector.broadcast %393 : vector<6x1xi1> to vector<6x32xi1>
    %395 = arith.select %394, %387, %358 : vector<6x32xi1>, vector<6x32xf32>
    %c0_127 = arith.constant 0 : index
    %c0_128 = arith.constant 0 : index
    %396 = vector.load %arg8[%c0_127, %c0_128] : memref<6x32xf32, #tpu.memory_space<vmem>>, vector<6x32xf32>
    tpu.vector_store %arg8[%c0_127, %c0_128], %395 {strides = array<i32>} : memref<6x32xf32, #tpu.memory_space<vmem>>, vector<6x32xf32>,
    %cst_129 = arith.constant 0.000000e+00 : f32
    %397 = vector.shape_cast %392 : vector<6x1xi1> to vector<6x1xi1>
    %398 = vector.broadcast %397 : vector<6x1xi1> to vector<6x32xi1>
    %399 = vector.broadcast %cst_129 : f32 to vector<6x32xf32>
    %400 = arith.select %398, %387, %399 : vector<6x32xi1>, vector<6x32xf32>
    %401 = arith.index_cast %c7_i32 : i32 to index
    %c0_130 = arith.constant 0 : index
    %c0_131 = arith.constant 0 : index
    %402 = vector.load %arg6[%401, %c0_130, %c0_131] : memref<8x6x32xf32, #tpu.memory_space<vmem>>, vector<1x6x32xf32>
    %403 = vector.shape_cast %402 : vector<1x6x32xf32> to vector<6x32xf32>
    %404 = vector.shape_cast %400 : vector<6x32xf32> to vector<1x6x32xf32>
    tpu.vector_store %arg6[%401, %c0_130, %c0_131], %404 {strides = array<i32>} : memref<8x6x32xf32, #tpu.memory_space<vmem>>, vector<1x6x32xf32>,
    %c8_i32 = arith.constant 8 : i32
    %c0_132 = arith.constant 0 : index
    %c0_133 = arith.constant 0 : index
    %405 = vector.load %arg8[%c0_132, %c0_133] : memref<6x32xf32, #tpu.memory_space<vmem>>, vector<6x32xf32>
    %c0_134 = arith.constant 0 : index
    %c0_135 = arith.constant 0 : index
    %406 = vector.load %arg7[%c0_134, %c0_135] : memref<6x32xf32, #tpu.memory_space<vmem>>, vector<6x32xf32>
    tpu.vector_store %arg7[%c0_134, %c0_135], %405 {strides = array<i32>} : memref<6x32xf32, #tpu.memory_space<vmem>>, vector<6x32xf32>,
    return
  }
  func.func @transform_0(%arg0: i32, %arg1: i32) -> (i32, i32, i32) {
    %c0_i32 = arith.constant 0 : i32
    %c0_i32_0 = arith.constant 0 : i32
    return %arg1, %arg0, %c0_i32 : i32, i32, i32
  }
  func.func @transform_1(%arg0: i32, %arg1: i32) -> (i32, i32, i32) {
    %c0_i32 = arith.constant 0 : i32
    %c0_i32_0 = arith.constant 0 : i32
    return %arg1, %arg0, %c0_i32 : i32, i32, i32
  }
  func.func @transform_2(%arg0: i32, %arg1: i32) -> (i32, i32) {
    %c0_i32 = arith.constant 0 : i32
    %c0_i32_0 = arith.constant 0 : i32
    %c0_i32_1 = arith.constant 0 : i32
    return %c0_i32, %c0_i32_0 : i32, i32
  }
  func.func @transform_3(%arg0: i32, %arg1: i32) -> (i32, i32) {
    %c0_i32 = arith.constant 0 : i32
    %c0_i32_0 = arith.constant 0 : i32
    %c0_i32_1 = arith.constant 0 : i32
    return %c0_i32, %c0_i32_0 : i32, i32
  }
  func.func @transform_4(%arg0: i32, %arg1: i32) -> (i32, i32, i32) {
    %c0_i32 = arith.constant 0 : i32
    %c0_i32_0 = arith.constant 0 : i32
    return %arg1, %arg0, %c0_i32 : i32, i32, i32
  }
  func.func @transform_5(%arg0: i32, %arg1: i32) -> (i32, i32) {
    %c0_i32 = arith.constant 0 : i32
    %c0_i32_0 = arith.constant 0 : i32
    return %arg0, %c0_i32 : i32, i32
  }
}

module attributes {stable_mosaic.version = 11 : i64} {
  func.func @_gru_encoder_kernel(%arg0: i32, %arg1: i32, %arg2: memref<8x4x96xf32, #tpu.memory_space<vmem>>, %arg3: memref<8x4x1xf32, #tpu.memory_space<vmem>>, %arg4: memref<32x96xf32, #tpu.memory_space<vmem>>, %arg5: memref<1x96xf32, #tpu.memory_space<vmem>>, %arg6: memref<8x4x32xf32, #tpu.memory_space<vmem>>, %arg7: memref<4x32xf32, #tpu.memory_space<vmem>>, %arg8: memref<4x32xf32, #tpu.memory_space<vmem>>) attributes {dimension_semantics = [#tpu.dimension_semantics<parallel>, #tpu.dimension_semantics<arbitrary>], iteration_bounds = array<i64: 1, 1>, scalar_prefetch = 0 : i64, scratch_operands = 1 : i64, tpu.core_type = #tpu.core_type<tc>, window_params = [{transform_indices = @transform_0, window_bounds = array<i64: 8, 4, 96>}, {transform_indices = @transform_1, window_bounds = array<i64: 8, 4, 1>}, {pipeline_mode = #tpu.pipeline_mode<synchronous>, transform_indices = @transform_2, window_bounds = array<i64: 32, 96>}, {pipeline_mode = #tpu.pipeline_mode<synchronous>, transform_indices = @transform_3, window_bounds = array<i64: 1, 96>}, {transform_indices = @transform_4, window_bounds = array<i64: 8, 4, 32>}, {transform_indices = @transform_5, window_bounds = array<i64: 4, 32>}]} {
    %c0_i32 = arith.constant 0 : i32
    %0 = arith.cmpi eq, %arg1, %c0_i32 : i32
    %1 = arith.extui %0 : i1 to i32
    %c0_i32_0 = arith.constant 0 : i32
    %2 = arith.cmpi ne, %1, %c0_i32_0 : i32
    scf.if %2 {
      %cst_136 = arith.constant 0.000000e+00 : f32
      %407 = vector.broadcast %cst_136 : f32 to vector<4x32xf32>
      %c0_137 = arith.constant 0 : index
      %c0_138 = arith.constant 0 : index
      %408 = vector.load %arg8[%c0_137, %c0_138] : memref<4x32xf32, #tpu.memory_space<vmem>>, vector<4x32xf32>
      tpu.vector_store %arg8[%c0_137, %c0_138], %407 {strides = array<i32>} : memref<4x32xf32, #tpu.memory_space<vmem>>, vector<4x32xf32>,
    } else {
    }
    %c0 = arith.constant 0 : index
    %c0_1 = arith.constant 0 : index
    %3 = vector.load %arg4[%c0, %c0_1] : memref<32x96xf32, #tpu.memory_space<vmem>>, vector<32x96xf32>
    %c0_2 = arith.constant 0 : index
    %c0_3 = arith.constant 0 : index
    %4 = vector.load %arg5[%c0_2, %c0_3] : memref<1x96xf32, #tpu.memory_space<vmem>>, vector<1x96xf32>
    %c0_i32_4 = arith.constant 0 : i32
    %5 = arith.index_cast %c0_i32_4 : i32 to index
    %c0_5 = arith.constant 0 : index
    %c0_6 = arith.constant 0 : index
    %6 = vector.load %arg2[%5, %c0_5, %c0_6] : memref<8x4x96xf32, #tpu.memory_space<vmem>>, vector<1x4x96xf32>
    %7 = vector.shape_cast %6 : vector<1x4x96xf32> to vector<4x96xf32>
    %c0_7 = arith.constant 0 : index
    %c0_8 = arith.constant 0 : index
    %8 = vector.load %arg8[%c0_7, %c0_8] : memref<4x32xf32, #tpu.memory_space<vmem>>, vector<4x32xf32>
    %cst = arith.constant dense<0.000000e+00> : vector<4x96xf32>
    %9 = tpu.matmul %8, %3, %cst {dimension_numbers = #tpu.dot_dimension_numbers<[1], [0], [0], [1], [0, 0, 1, 1], [], []>} : vector<4x32xf32>, vector<32x96xf32>, vector<4x96xf32> -> vector<4x96xf32>
    %10 = vector.broadcast %4 : vector<1x96xf32> to vector<4x96xf32>
    %11 = arith.addf %9, %10 : vector<4x96xf32>
    %12 = vector.extract_strided_slice %7 {offsets = [0, 0], sizes = [4, 32], strides = [1, 1]} : vector<4x96xf32> to vector<4x32xf32>
    %13 = vector.extract_strided_slice %11 {offsets = [0, 0], sizes = [4, 32], strides = [1, 1]} : vector<4x96xf32> to vector<4x32xf32>
    %14 = arith.addf %12, %13 : vector<4x32xf32>
    %15 = arith.negf %14 : vector<4x32xf32>
    %16 = math.exp %15 : vector<4x32xf32>
    %cst_9 = arith.constant 1.000000e+00 : f32
    %17 = vector.broadcast %cst_9 : f32 to vector<4x32xf32>
    %18 = arith.addf %17, %16 : vector<4x32xf32>
    %19 = arith.divf %17, %18 : vector<4x32xf32>
    %20 = vector.extract_strided_slice %7 {offsets = [0, 32], sizes = [4, 32], strides = [1, 1]} : vector<4x96xf32> to vector<4x32xf32>
    %21 = vector.extract_strided_slice %11 {offsets = [0, 32], sizes = [4, 32], strides = [1, 1]} : vector<4x96xf32> to vector<4x32xf32>
    %22 = arith.addf %20, %21 : vector<4x32xf32>
    %23 = arith.negf %22 : vector<4x32xf32>
    %24 = math.exp %23 : vector<4x32xf32>
    %cst_10 = arith.constant 1.000000e+00 : f32
    %25 = vector.broadcast %cst_10 : f32 to vector<4x32xf32>
    %26 = arith.addf %25, %24 : vector<4x32xf32>
    %27 = arith.divf %25, %26 : vector<4x32xf32>
    %28 = vector.extract_strided_slice %7 {offsets = [0, 64], sizes = [4, 32], strides = [1, 1]} : vector<4x96xf32> to vector<4x32xf32>
    %29 = vector.extract_strided_slice %11 {offsets = [0, 64], sizes = [4, 32], strides = [1, 1]} : vector<4x96xf32> to vector<4x32xf32>
    %30 = arith.mulf %19, %29 : vector<4x32xf32>
    %31 = arith.addf %28, %30 : vector<4x32xf32>
    %32 = math.tanh %31 : vector<4x32xf32>
    %cst_11 = arith.constant 1.000000e+00 : f32
    %33 = vector.broadcast %cst_11 : f32 to vector<4x32xf32>
    %34 = arith.subf %33, %27 : vector<4x32xf32>
    %35 = arith.mulf %34, %32 : vector<4x32xf32>
    %36 = arith.mulf %27, %8 : vector<4x32xf32>
    %37 = arith.addf %35, %36 : vector<4x32xf32>
    %38 = arith.index_cast %c0_i32_4 : i32 to index
    %c0_12 = arith.constant 0 : index
    %c0_13 = arith.constant 0 : index
    %39 = vector.load %arg3[%38, %c0_12, %c0_13] : memref<8x4x1xf32, #tpu.memory_space<vmem>>, vector<1x4x1xf32>
    %40 = vector.shape_cast %39 : vector<1x4x1xf32> to vector<4x1xf32>
    %cst_14 = arith.constant 5.000000e-01 : f32
    %41 = vector.broadcast %cst_14 : f32 to vector<4x1xf32>
    %42 = arith.cmpf ogt, %40, %41 : vector<4x1xf32>
    %43 = vector.shape_cast %42 : vector<4x1xi1> to vector<4x1xi1>
    %44 = vector.broadcast %43 : vector<4x1xi1> to vector<4x32xi1>
    %45 = arith.select %44, %37, %8 : vector<4x32xi1>, vector<4x32xf32>
    %c0_15 = arith.constant 0 : index
    %c0_16 = arith.constant 0 : index
    %46 = vector.load %arg8[%c0_15, %c0_16] : memref<4x32xf32, #tpu.memory_space<vmem>>, vector<4x32xf32>
    tpu.vector_store %arg8[%c0_15, %c0_16], %45 {strides = array<i32>} : memref<4x32xf32, #tpu.memory_space<vmem>>, vector<4x32xf32>,
    %cst_17 = arith.constant 0.000000e+00 : f32
    %47 = vector.shape_cast %42 : vector<4x1xi1> to vector<4x1xi1>
    %48 = vector.broadcast %47 : vector<4x1xi1> to vector<4x32xi1>
    %49 = vector.broadcast %cst_17 : f32 to vector<4x32xf32>
    %50 = arith.select %48, %37, %49 : vector<4x32xi1>, vector<4x32xf32>
    %51 = arith.index_cast %c0_i32_4 : i32 to index
    %c0_18 = arith.constant 0 : index
    %c0_19 = arith.constant 0 : index
    %52 = vector.load %arg6[%51, %c0_18, %c0_19] : memref<8x4x32xf32, #tpu.memory_space<vmem>>, vector<1x4x32xf32>
    %53 = vector.shape_cast %52 : vector<1x4x32xf32> to vector<4x32xf32>
    %54 = vector.shape_cast %50 : vector<4x32xf32> to vector<1x4x32xf32>
    tpu.vector_store %arg6[%51, %c0_18, %c0_19], %54 {strides = array<i32>} : memref<8x4x32xf32, #tpu.memory_space<vmem>>, vector<1x4x32xf32>,
    %c1_i32 = arith.constant 1 : i32
    %55 = arith.index_cast %c1_i32 : i32 to index
    %c0_20 = arith.constant 0 : index
    %c0_21 = arith.constant 0 : index
    %56 = vector.load %arg2[%55, %c0_20, %c0_21] : memref<8x4x96xf32, #tpu.memory_space<vmem>>, vector<1x4x96xf32>
    %57 = vector.shape_cast %56 : vector<1x4x96xf32> to vector<4x96xf32>
    %c0_22 = arith.constant 0 : index
    %c0_23 = arith.constant 0 : index
    %58 = vector.load %arg8[%c0_22, %c0_23] : memref<4x32xf32, #tpu.memory_space<vmem>>, vector<4x32xf32>
    %cst_24 = arith.constant dense<0.000000e+00> : vector<4x96xf32>
    %59 = tpu.matmul %58, %3, %cst_24 {dimension_numbers = #tpu.dot_dimension_numbers<[1], [0], [0], [1], [0, 0, 1, 1], [], []>} : vector<4x32xf32>, vector<32x96xf32>, vector<4x96xf32> -> vector<4x96xf32>
    %60 = vector.broadcast %4 : vector<1x96xf32> to vector<4x96xf32>
    %61 = arith.addf %59, %60 : vector<4x96xf32>
    %62 = vector.extract_strided_slice %57 {offsets = [0, 0], sizes = [4, 32], strides = [1, 1]} : vector<4x96xf32> to vector<4x32xf32>
    %63 = vector.extract_strided_slice %61 {offsets = [0, 0], sizes = [4, 32], strides = [1, 1]} : vector<4x96xf32> to vector<4x32xf32>
    %64 = arith.addf %62, %63 : vector<4x32xf32>
    %65 = arith.negf %64 : vector<4x32xf32>
    %66 = math.exp %65 : vector<4x32xf32>
    %cst_25 = arith.constant 1.000000e+00 : f32
    %67 = vector.broadcast %cst_25 : f32 to vector<4x32xf32>
    %68 = arith.addf %67, %66 : vector<4x32xf32>
    %69 = arith.divf %67, %68 : vector<4x32xf32>
    %70 = vector.extract_strided_slice %57 {offsets = [0, 32], sizes = [4, 32], strides = [1, 1]} : vector<4x96xf32> to vector<4x32xf32>
    %71 = vector.extract_strided_slice %61 {offsets = [0, 32], sizes = [4, 32], strides = [1, 1]} : vector<4x96xf32> to vector<4x32xf32>
    %72 = arith.addf %70, %71 : vector<4x32xf32>
    %73 = arith.negf %72 : vector<4x32xf32>
    %74 = math.exp %73 : vector<4x32xf32>
    %cst_26 = arith.constant 1.000000e+00 : f32
    %75 = vector.broadcast %cst_26 : f32 to vector<4x32xf32>
    %76 = arith.addf %75, %74 : vector<4x32xf32>
    %77 = arith.divf %75, %76 : vector<4x32xf32>
    %78 = vector.extract_strided_slice %57 {offsets = [0, 64], sizes = [4, 32], strides = [1, 1]} : vector<4x96xf32> to vector<4x32xf32>
    %79 = vector.extract_strided_slice %61 {offsets = [0, 64], sizes = [4, 32], strides = [1, 1]} : vector<4x96xf32> to vector<4x32xf32>
    %80 = arith.mulf %69, %79 : vector<4x32xf32>
    %81 = arith.addf %78, %80 : vector<4x32xf32>
    %82 = math.tanh %81 : vector<4x32xf32>
    %cst_27 = arith.constant 1.000000e+00 : f32
    %83 = vector.broadcast %cst_27 : f32 to vector<4x32xf32>
    %84 = arith.subf %83, %77 : vector<4x32xf32>
    %85 = arith.mulf %84, %82 : vector<4x32xf32>
    %86 = arith.mulf %77, %58 : vector<4x32xf32>
    %87 = arith.addf %85, %86 : vector<4x32xf32>
    %88 = arith.index_cast %c1_i32 : i32 to index
    %c0_28 = arith.constant 0 : index
    %c0_29 = arith.constant 0 : index
    %89 = vector.load %arg3[%88, %c0_28, %c0_29] : memref<8x4x1xf32, #tpu.memory_space<vmem>>, vector<1x4x1xf32>
    %90 = vector.shape_cast %89 : vector<1x4x1xf32> to vector<4x1xf32>
    %cst_30 = arith.constant 5.000000e-01 : f32
    %91 = vector.broadcast %cst_30 : f32 to vector<4x1xf32>
    %92 = arith.cmpf ogt, %90, %91 : vector<4x1xf32>
    %93 = vector.shape_cast %92 : vector<4x1xi1> to vector<4x1xi1>
    %94 = vector.broadcast %93 : vector<4x1xi1> to vector<4x32xi1>
    %95 = arith.select %94, %87, %58 : vector<4x32xi1>, vector<4x32xf32>
    %c0_31 = arith.constant 0 : index
    %c0_32 = arith.constant 0 : index
    %96 = vector.load %arg8[%c0_31, %c0_32] : memref<4x32xf32, #tpu.memory_space<vmem>>, vector<4x32xf32>
    tpu.vector_store %arg8[%c0_31, %c0_32], %95 {strides = array<i32>} : memref<4x32xf32, #tpu.memory_space<vmem>>, vector<4x32xf32>,
    %cst_33 = arith.constant 0.000000e+00 : f32
    %97 = vector.shape_cast %92 : vector<4x1xi1> to vector<4x1xi1>
    %98 = vector.broadcast %97 : vector<4x1xi1> to vector<4x32xi1>
    %99 = vector.broadcast %cst_33 : f32 to vector<4x32xf32>
    %100 = arith.select %98, %87, %99 : vector<4x32xi1>, vector<4x32xf32>
    %101 = arith.index_cast %c1_i32 : i32 to index
    %c0_34 = arith.constant 0 : index
    %c0_35 = arith.constant 0 : index
    %102 = vector.load %arg6[%101, %c0_34, %c0_35] : memref<8x4x32xf32, #tpu.memory_space<vmem>>, vector<1x4x32xf32>
    %103 = vector.shape_cast %102 : vector<1x4x32xf32> to vector<4x32xf32>
    %104 = vector.shape_cast %100 : vector<4x32xf32> to vector<1x4x32xf32>
    tpu.vector_store %arg6[%101, %c0_34, %c0_35], %104 {strides = array<i32>} : memref<8x4x32xf32, #tpu.memory_space<vmem>>, vector<1x4x32xf32>,
    %c2_i32 = arith.constant 2 : i32
    %105 = arith.index_cast %c2_i32 : i32 to index
    %c0_36 = arith.constant 0 : index
    %c0_37 = arith.constant 0 : index
    %106 = vector.load %arg2[%105, %c0_36, %c0_37] : memref<8x4x96xf32, #tpu.memory_space<vmem>>, vector<1x4x96xf32>
    %107 = vector.shape_cast %106 : vector<1x4x96xf32> to vector<4x96xf32>
    %c0_38 = arith.constant 0 : index
    %c0_39 = arith.constant 0 : index
    %108 = vector.load %arg8[%c0_38, %c0_39] : memref<4x32xf32, #tpu.memory_space<vmem>>, vector<4x32xf32>
    %cst_40 = arith.constant dense<0.000000e+00> : vector<4x96xf32>
    %109 = tpu.matmul %108, %3, %cst_40 {dimension_numbers = #tpu.dot_dimension_numbers<[1], [0], [0], [1], [0, 0, 1, 1], [], []>} : vector<4x32xf32>, vector<32x96xf32>, vector<4x96xf32> -> vector<4x96xf32>
    %110 = vector.broadcast %4 : vector<1x96xf32> to vector<4x96xf32>
    %111 = arith.addf %109, %110 : vector<4x96xf32>
    %112 = vector.extract_strided_slice %107 {offsets = [0, 0], sizes = [4, 32], strides = [1, 1]} : vector<4x96xf32> to vector<4x32xf32>
    %113 = vector.extract_strided_slice %111 {offsets = [0, 0], sizes = [4, 32], strides = [1, 1]} : vector<4x96xf32> to vector<4x32xf32>
    %114 = arith.addf %112, %113 : vector<4x32xf32>
    %115 = arith.negf %114 : vector<4x32xf32>
    %116 = math.exp %115 : vector<4x32xf32>
    %cst_41 = arith.constant 1.000000e+00 : f32
    %117 = vector.broadcast %cst_41 : f32 to vector<4x32xf32>
    %118 = arith.addf %117, %116 : vector<4x32xf32>
    %119 = arith.divf %117, %118 : vector<4x32xf32>
    %120 = vector.extract_strided_slice %107 {offsets = [0, 32], sizes = [4, 32], strides = [1, 1]} : vector<4x96xf32> to vector<4x32xf32>
    %121 = vector.extract_strided_slice %111 {offsets = [0, 32], sizes = [4, 32], strides = [1, 1]} : vector<4x96xf32> to vector<4x32xf32>
    %122 = arith.addf %120, %121 : vector<4x32xf32>
    %123 = arith.negf %122 : vector<4x32xf32>
    %124 = math.exp %123 : vector<4x32xf32>
    %cst_42 = arith.constant 1.000000e+00 : f32
    %125 = vector.broadcast %cst_42 : f32 to vector<4x32xf32>
    %126 = arith.addf %125, %124 : vector<4x32xf32>
    %127 = arith.divf %125, %126 : vector<4x32xf32>
    %128 = vector.extract_strided_slice %107 {offsets = [0, 64], sizes = [4, 32], strides = [1, 1]} : vector<4x96xf32> to vector<4x32xf32>
    %129 = vector.extract_strided_slice %111 {offsets = [0, 64], sizes = [4, 32], strides = [1, 1]} : vector<4x96xf32> to vector<4x32xf32>
    %130 = arith.mulf %119, %129 : vector<4x32xf32>
    %131 = arith.addf %128, %130 : vector<4x32xf32>
    %132 = math.tanh %131 : vector<4x32xf32>
    %cst_43 = arith.constant 1.000000e+00 : f32
    %133 = vector.broadcast %cst_43 : f32 to vector<4x32xf32>
    %134 = arith.subf %133, %127 : vector<4x32xf32>
    %135 = arith.mulf %134, %132 : vector<4x32xf32>
    %136 = arith.mulf %127, %108 : vector<4x32xf32>
    %137 = arith.addf %135, %136 : vector<4x32xf32>
    %138 = arith.index_cast %c2_i32 : i32 to index
    %c0_44 = arith.constant 0 : index
    %c0_45 = arith.constant 0 : index
    %139 = vector.load %arg3[%138, %c0_44, %c0_45] : memref<8x4x1xf32, #tpu.memory_space<vmem>>, vector<1x4x1xf32>
    %140 = vector.shape_cast %139 : vector<1x4x1xf32> to vector<4x1xf32>
    %cst_46 = arith.constant 5.000000e-01 : f32
    %141 = vector.broadcast %cst_46 : f32 to vector<4x1xf32>
    %142 = arith.cmpf ogt, %140, %141 : vector<4x1xf32>
    %143 = vector.shape_cast %142 : vector<4x1xi1> to vector<4x1xi1>
    %144 = vector.broadcast %143 : vector<4x1xi1> to vector<4x32xi1>
    %145 = arith.select %144, %137, %108 : vector<4x32xi1>, vector<4x32xf32>
    %c0_47 = arith.constant 0 : index
    %c0_48 = arith.constant 0 : index
    %146 = vector.load %arg8[%c0_47, %c0_48] : memref<4x32xf32, #tpu.memory_space<vmem>>, vector<4x32xf32>
    tpu.vector_store %arg8[%c0_47, %c0_48], %145 {strides = array<i32>} : memref<4x32xf32, #tpu.memory_space<vmem>>, vector<4x32xf32>,
    %cst_49 = arith.constant 0.000000e+00 : f32
    %147 = vector.shape_cast %142 : vector<4x1xi1> to vector<4x1xi1>
    %148 = vector.broadcast %147 : vector<4x1xi1> to vector<4x32xi1>
    %149 = vector.broadcast %cst_49 : f32 to vector<4x32xf32>
    %150 = arith.select %148, %137, %149 : vector<4x32xi1>, vector<4x32xf32>
    %151 = arith.index_cast %c2_i32 : i32 to index
    %c0_50 = arith.constant 0 : index
    %c0_51 = arith.constant 0 : index
    %152 = vector.load %arg6[%151, %c0_50, %c0_51] : memref<8x4x32xf32, #tpu.memory_space<vmem>>, vector<1x4x32xf32>
    %153 = vector.shape_cast %152 : vector<1x4x32xf32> to vector<4x32xf32>
    %154 = vector.shape_cast %150 : vector<4x32xf32> to vector<1x4x32xf32>
    tpu.vector_store %arg6[%151, %c0_50, %c0_51], %154 {strides = array<i32>} : memref<8x4x32xf32, #tpu.memory_space<vmem>>, vector<1x4x32xf32>,
    %c3_i32 = arith.constant 3 : i32
    %155 = arith.index_cast %c3_i32 : i32 to index
    %c0_52 = arith.constant 0 : index
    %c0_53 = arith.constant 0 : index
    %156 = vector.load %arg2[%155, %c0_52, %c0_53] : memref<8x4x96xf32, #tpu.memory_space<vmem>>, vector<1x4x96xf32>
    %157 = vector.shape_cast %156 : vector<1x4x96xf32> to vector<4x96xf32>
    %c0_54 = arith.constant 0 : index
    %c0_55 = arith.constant 0 : index
    %158 = vector.load %arg8[%c0_54, %c0_55] : memref<4x32xf32, #tpu.memory_space<vmem>>, vector<4x32xf32>
    %cst_56 = arith.constant dense<0.000000e+00> : vector<4x96xf32>
    %159 = tpu.matmul %158, %3, %cst_56 {dimension_numbers = #tpu.dot_dimension_numbers<[1], [0], [0], [1], [0, 0, 1, 1], [], []>} : vector<4x32xf32>, vector<32x96xf32>, vector<4x96xf32> -> vector<4x96xf32>
    %160 = vector.broadcast %4 : vector<1x96xf32> to vector<4x96xf32>
    %161 = arith.addf %159, %160 : vector<4x96xf32>
    %162 = vector.extract_strided_slice %157 {offsets = [0, 0], sizes = [4, 32], strides = [1, 1]} : vector<4x96xf32> to vector<4x32xf32>
    %163 = vector.extract_strided_slice %161 {offsets = [0, 0], sizes = [4, 32], strides = [1, 1]} : vector<4x96xf32> to vector<4x32xf32>
    %164 = arith.addf %162, %163 : vector<4x32xf32>
    %165 = arith.negf %164 : vector<4x32xf32>
    %166 = math.exp %165 : vector<4x32xf32>
    %cst_57 = arith.constant 1.000000e+00 : f32
    %167 = vector.broadcast %cst_57 : f32 to vector<4x32xf32>
    %168 = arith.addf %167, %166 : vector<4x32xf32>
    %169 = arith.divf %167, %168 : vector<4x32xf32>
    %170 = vector.extract_strided_slice %157 {offsets = [0, 32], sizes = [4, 32], strides = [1, 1]} : vector<4x96xf32> to vector<4x32xf32>
    %171 = vector.extract_strided_slice %161 {offsets = [0, 32], sizes = [4, 32], strides = [1, 1]} : vector<4x96xf32> to vector<4x32xf32>
    %172 = arith.addf %170, %171 : vector<4x32xf32>
    %173 = arith.negf %172 : vector<4x32xf32>
    %174 = math.exp %173 : vector<4x32xf32>
    %cst_58 = arith.constant 1.000000e+00 : f32
    %175 = vector.broadcast %cst_58 : f32 to vector<4x32xf32>
    %176 = arith.addf %175, %174 : vector<4x32xf32>
    %177 = arith.divf %175, %176 : vector<4x32xf32>
    %178 = vector.extract_strided_slice %157 {offsets = [0, 64], sizes = [4, 32], strides = [1, 1]} : vector<4x96xf32> to vector<4x32xf32>
    %179 = vector.extract_strided_slice %161 {offsets = [0, 64], sizes = [4, 32], strides = [1, 1]} : vector<4x96xf32> to vector<4x32xf32>
    %180 = arith.mulf %169, %179 : vector<4x32xf32>
    %181 = arith.addf %178, %180 : vector<4x32xf32>
    %182 = math.tanh %181 : vector<4x32xf32>
    %cst_59 = arith.constant 1.000000e+00 : f32
    %183 = vector.broadcast %cst_59 : f32 to vector<4x32xf32>
    %184 = arith.subf %183, %177 : vector<4x32xf32>
    %185 = arith.mulf %184, %182 : vector<4x32xf32>
    %186 = arith.mulf %177, %158 : vector<4x32xf32>
    %187 = arith.addf %185, %186 : vector<4x32xf32>
    %188 = arith.index_cast %c3_i32 : i32 to index
    %c0_60 = arith.constant 0 : index
    %c0_61 = arith.constant 0 : index
    %189 = vector.load %arg3[%188, %c0_60, %c0_61] : memref<8x4x1xf32, #tpu.memory_space<vmem>>, vector<1x4x1xf32>
    %190 = vector.shape_cast %189 : vector<1x4x1xf32> to vector<4x1xf32>
    %cst_62 = arith.constant 5.000000e-01 : f32
    %191 = vector.broadcast %cst_62 : f32 to vector<4x1xf32>
    %192 = arith.cmpf ogt, %190, %191 : vector<4x1xf32>
    %193 = vector.shape_cast %192 : vector<4x1xi1> to vector<4x1xi1>
    %194 = vector.broadcast %193 : vector<4x1xi1> to vector<4x32xi1>
    %195 = arith.select %194, %187, %158 : vector<4x32xi1>, vector<4x32xf32>
    %c0_63 = arith.constant 0 : index
    %c0_64 = arith.constant 0 : index
    %196 = vector.load %arg8[%c0_63, %c0_64] : memref<4x32xf32, #tpu.memory_space<vmem>>, vector<4x32xf32>
    tpu.vector_store %arg8[%c0_63, %c0_64], %195 {strides = array<i32>} : memref<4x32xf32, #tpu.memory_space<vmem>>, vector<4x32xf32>,
    %cst_65 = arith.constant 0.000000e+00 : f32
    %197 = vector.shape_cast %192 : vector<4x1xi1> to vector<4x1xi1>
    %198 = vector.broadcast %197 : vector<4x1xi1> to vector<4x32xi1>
    %199 = vector.broadcast %cst_65 : f32 to vector<4x32xf32>
    %200 = arith.select %198, %187, %199 : vector<4x32xi1>, vector<4x32xf32>
    %201 = arith.index_cast %c3_i32 : i32 to index
    %c0_66 = arith.constant 0 : index
    %c0_67 = arith.constant 0 : index
    %202 = vector.load %arg6[%201, %c0_66, %c0_67] : memref<8x4x32xf32, #tpu.memory_space<vmem>>, vector<1x4x32xf32>
    %203 = vector.shape_cast %202 : vector<1x4x32xf32> to vector<4x32xf32>
    %204 = vector.shape_cast %200 : vector<4x32xf32> to vector<1x4x32xf32>
    tpu.vector_store %arg6[%201, %c0_66, %c0_67], %204 {strides = array<i32>} : memref<8x4x32xf32, #tpu.memory_space<vmem>>, vector<1x4x32xf32>,
    %c4_i32 = arith.constant 4 : i32
    %205 = arith.index_cast %c4_i32 : i32 to index
    %c0_68 = arith.constant 0 : index
    %c0_69 = arith.constant 0 : index
    %206 = vector.load %arg2[%205, %c0_68, %c0_69] : memref<8x4x96xf32, #tpu.memory_space<vmem>>, vector<1x4x96xf32>
    %207 = vector.shape_cast %206 : vector<1x4x96xf32> to vector<4x96xf32>
    %c0_70 = arith.constant 0 : index
    %c0_71 = arith.constant 0 : index
    %208 = vector.load %arg8[%c0_70, %c0_71] : memref<4x32xf32, #tpu.memory_space<vmem>>, vector<4x32xf32>
    %cst_72 = arith.constant dense<0.000000e+00> : vector<4x96xf32>
    %209 = tpu.matmul %208, %3, %cst_72 {dimension_numbers = #tpu.dot_dimension_numbers<[1], [0], [0], [1], [0, 0, 1, 1], [], []>} : vector<4x32xf32>, vector<32x96xf32>, vector<4x96xf32> -> vector<4x96xf32>
    %210 = vector.broadcast %4 : vector<1x96xf32> to vector<4x96xf32>
    %211 = arith.addf %209, %210 : vector<4x96xf32>
    %212 = vector.extract_strided_slice %207 {offsets = [0, 0], sizes = [4, 32], strides = [1, 1]} : vector<4x96xf32> to vector<4x32xf32>
    %213 = vector.extract_strided_slice %211 {offsets = [0, 0], sizes = [4, 32], strides = [1, 1]} : vector<4x96xf32> to vector<4x32xf32>
    %214 = arith.addf %212, %213 : vector<4x32xf32>
    %215 = arith.negf %214 : vector<4x32xf32>
    %216 = math.exp %215 : vector<4x32xf32>
    %cst_73 = arith.constant 1.000000e+00 : f32
    %217 = vector.broadcast %cst_73 : f32 to vector<4x32xf32>
    %218 = arith.addf %217, %216 : vector<4x32xf32>
    %219 = arith.divf %217, %218 : vector<4x32xf32>
    %220 = vector.extract_strided_slice %207 {offsets = [0, 32], sizes = [4, 32], strides = [1, 1]} : vector<4x96xf32> to vector<4x32xf32>
    %221 = vector.extract_strided_slice %211 {offsets = [0, 32], sizes = [4, 32], strides = [1, 1]} : vector<4x96xf32> to vector<4x32xf32>
    %222 = arith.addf %220, %221 : vector<4x32xf32>
    %223 = arith.negf %222 : vector<4x32xf32>
    %224 = math.exp %223 : vector<4x32xf32>
    %cst_74 = arith.constant 1.000000e+00 : f32
    %225 = vector.broadcast %cst_74 : f32 to vector<4x32xf32>
    %226 = arith.addf %225, %224 : vector<4x32xf32>
    %227 = arith.divf %225, %226 : vector<4x32xf32>
    %228 = vector.extract_strided_slice %207 {offsets = [0, 64], sizes = [4, 32], strides = [1, 1]} : vector<4x96xf32> to vector<4x32xf32>
    %229 = vector.extract_strided_slice %211 {offsets = [0, 64], sizes = [4, 32], strides = [1, 1]} : vector<4x96xf32> to vector<4x32xf32>
    %230 = arith.mulf %219, %229 : vector<4x32xf32>
    %231 = arith.addf %228, %230 : vector<4x32xf32>
    %232 = math.tanh %231 : vector<4x32xf32>
    %cst_75 = arith.constant 1.000000e+00 : f32
    %233 = vector.broadcast %cst_75 : f32 to vector<4x32xf32>
    %234 = arith.subf %233, %227 : vector<4x32xf32>
    %235 = arith.mulf %234, %232 : vector<4x32xf32>
    %236 = arith.mulf %227, %208 : vector<4x32xf32>
    %237 = arith.addf %235, %236 : vector<4x32xf32>
    %238 = arith.index_cast %c4_i32 : i32 to index
    %c0_76 = arith.constant 0 : index
    %c0_77 = arith.constant 0 : index
    %239 = vector.load %arg3[%238, %c0_76, %c0_77] : memref<8x4x1xf32, #tpu.memory_space<vmem>>, vector<1x4x1xf32>
    %240 = vector.shape_cast %239 : vector<1x4x1xf32> to vector<4x1xf32>
    %cst_78 = arith.constant 5.000000e-01 : f32
    %241 = vector.broadcast %cst_78 : f32 to vector<4x1xf32>
    %242 = arith.cmpf ogt, %240, %241 : vector<4x1xf32>
    %243 = vector.shape_cast %242 : vector<4x1xi1> to vector<4x1xi1>
    %244 = vector.broadcast %243 : vector<4x1xi1> to vector<4x32xi1>
    %245 = arith.select %244, %237, %208 : vector<4x32xi1>, vector<4x32xf32>
    %c0_79 = arith.constant 0 : index
    %c0_80 = arith.constant 0 : index
    %246 = vector.load %arg8[%c0_79, %c0_80] : memref<4x32xf32, #tpu.memory_space<vmem>>, vector<4x32xf32>
    tpu.vector_store %arg8[%c0_79, %c0_80], %245 {strides = array<i32>} : memref<4x32xf32, #tpu.memory_space<vmem>>, vector<4x32xf32>,
    %cst_81 = arith.constant 0.000000e+00 : f32
    %247 = vector.shape_cast %242 : vector<4x1xi1> to vector<4x1xi1>
    %248 = vector.broadcast %247 : vector<4x1xi1> to vector<4x32xi1>
    %249 = vector.broadcast %cst_81 : f32 to vector<4x32xf32>
    %250 = arith.select %248, %237, %249 : vector<4x32xi1>, vector<4x32xf32>
    %251 = arith.index_cast %c4_i32 : i32 to index
    %c0_82 = arith.constant 0 : index
    %c0_83 = arith.constant 0 : index
    %252 = vector.load %arg6[%251, %c0_82, %c0_83] : memref<8x4x32xf32, #tpu.memory_space<vmem>>, vector<1x4x32xf32>
    %253 = vector.shape_cast %252 : vector<1x4x32xf32> to vector<4x32xf32>
    %254 = vector.shape_cast %250 : vector<4x32xf32> to vector<1x4x32xf32>
    tpu.vector_store %arg6[%251, %c0_82, %c0_83], %254 {strides = array<i32>} : memref<8x4x32xf32, #tpu.memory_space<vmem>>, vector<1x4x32xf32>,
    %c5_i32 = arith.constant 5 : i32
    %255 = arith.index_cast %c5_i32 : i32 to index
    %c0_84 = arith.constant 0 : index
    %c0_85 = arith.constant 0 : index
    %256 = vector.load %arg2[%255, %c0_84, %c0_85] : memref<8x4x96xf32, #tpu.memory_space<vmem>>, vector<1x4x96xf32>
    %257 = vector.shape_cast %256 : vector<1x4x96xf32> to vector<4x96xf32>
    %c0_86 = arith.constant 0 : index
    %c0_87 = arith.constant 0 : index
    %258 = vector.load %arg8[%c0_86, %c0_87] : memref<4x32xf32, #tpu.memory_space<vmem>>, vector<4x32xf32>
    %cst_88 = arith.constant dense<0.000000e+00> : vector<4x96xf32>
    %259 = tpu.matmul %258, %3, %cst_88 {dimension_numbers = #tpu.dot_dimension_numbers<[1], [0], [0], [1], [0, 0, 1, 1], [], []>} : vector<4x32xf32>, vector<32x96xf32>, vector<4x96xf32> -> vector<4x96xf32>
    %260 = vector.broadcast %4 : vector<1x96xf32> to vector<4x96xf32>
    %261 = arith.addf %259, %260 : vector<4x96xf32>
    %262 = vector.extract_strided_slice %257 {offsets = [0, 0], sizes = [4, 32], strides = [1, 1]} : vector<4x96xf32> to vector<4x32xf32>
    %263 = vector.extract_strided_slice %261 {offsets = [0, 0], sizes = [4, 32], strides = [1, 1]} : vector<4x96xf32> to vector<4x32xf32>
    %264 = arith.addf %262, %263 : vector<4x32xf32>
    %265 = arith.negf %264 : vector<4x32xf32>
    %266 = math.exp %265 : vector<4x32xf32>
    %cst_89 = arith.constant 1.000000e+00 : f32
    %267 = vector.broadcast %cst_89 : f32 to vector<4x32xf32>
    %268 = arith.addf %267, %266 : vector<4x32xf32>
    %269 = arith.divf %267, %268 : vector<4x32xf32>
    %270 = vector.extract_strided_slice %257 {offsets = [0, 32], sizes = [4, 32], strides = [1, 1]} : vector<4x96xf32> to vector<4x32xf32>
    %271 = vector.extract_strided_slice %261 {offsets = [0, 32], sizes = [4, 32], strides = [1, 1]} : vector<4x96xf32> to vector<4x32xf32>
    %272 = arith.addf %270, %271 : vector<4x32xf32>
    %273 = arith.negf %272 : vector<4x32xf32>
    %274 = math.exp %273 : vector<4x32xf32>
    %cst_90 = arith.constant 1.000000e+00 : f32
    %275 = vector.broadcast %cst_90 : f32 to vector<4x32xf32>
    %276 = arith.addf %275, %274 : vector<4x32xf32>
    %277 = arith.divf %275, %276 : vector<4x32xf32>
    %278 = vector.extract_strided_slice %257 {offsets = [0, 64], sizes = [4, 32], strides = [1, 1]} : vector<4x96xf32> to vector<4x32xf32>
    %279 = vector.extract_strided_slice %261 {offsets = [0, 64], sizes = [4, 32], strides = [1, 1]} : vector<4x96xf32> to vector<4x32xf32>
    %280 = arith.mulf %269, %279 : vector<4x32xf32>
    %281 = arith.addf %278, %280 : vector<4x32xf32>
    %282 = math.tanh %281 : vector<4x32xf32>
    %cst_91 = arith.constant 1.000000e+00 : f32
    %283 = vector.broadcast %cst_91 : f32 to vector<4x32xf32>
    %284 = arith.subf %283, %277 : vector<4x32xf32>
    %285 = arith.mulf %284, %282 : vector<4x32xf32>
    %286 = arith.mulf %277, %258 : vector<4x32xf32>
    %287 = arith.addf %285, %286 : vector<4x32xf32>
    %288 = arith.index_cast %c5_i32 : i32 to index
    %c0_92 = arith.constant 0 : index
    %c0_93 = arith.constant 0 : index
    %289 = vector.load %arg3[%288, %c0_92, %c0_93] : memref<8x4x1xf32, #tpu.memory_space<vmem>>, vector<1x4x1xf32>
    %290 = vector.shape_cast %289 : vector<1x4x1xf32> to vector<4x1xf32>
    %cst_94 = arith.constant 5.000000e-01 : f32
    %291 = vector.broadcast %cst_94 : f32 to vector<4x1xf32>
    %292 = arith.cmpf ogt, %290, %291 : vector<4x1xf32>
    %293 = vector.shape_cast %292 : vector<4x1xi1> to vector<4x1xi1>
    %294 = vector.broadcast %293 : vector<4x1xi1> to vector<4x32xi1>
    %295 = arith.select %294, %287, %258 : vector<4x32xi1>, vector<4x32xf32>
    %c0_95 = arith.constant 0 : index
    %c0_96 = arith.constant 0 : index
    %296 = vector.load %arg8[%c0_95, %c0_96] : memref<4x32xf32, #tpu.memory_space<vmem>>, vector<4x32xf32>
    tpu.vector_store %arg8[%c0_95, %c0_96], %295 {strides = array<i32>} : memref<4x32xf32, #tpu.memory_space<vmem>>, vector<4x32xf32>,
    %cst_97 = arith.constant 0.000000e+00 : f32
    %297 = vector.shape_cast %292 : vector<4x1xi1> to vector<4x1xi1>
    %298 = vector.broadcast %297 : vector<4x1xi1> to vector<4x32xi1>
    %299 = vector.broadcast %cst_97 : f32 to vector<4x32xf32>
    %300 = arith.select %298, %287, %299 : vector<4x32xi1>, vector<4x32xf32>
    %301 = arith.index_cast %c5_i32 : i32 to index
    %c0_98 = arith.constant 0 : index
    %c0_99 = arith.constant 0 : index
    %302 = vector.load %arg6[%301, %c0_98, %c0_99] : memref<8x4x32xf32, #tpu.memory_space<vmem>>, vector<1x4x32xf32>
    %303 = vector.shape_cast %302 : vector<1x4x32xf32> to vector<4x32xf32>
    %304 = vector.shape_cast %300 : vector<4x32xf32> to vector<1x4x32xf32>
    tpu.vector_store %arg6[%301, %c0_98, %c0_99], %304 {strides = array<i32>} : memref<8x4x32xf32, #tpu.memory_space<vmem>>, vector<1x4x32xf32>,
    %c6_i32 = arith.constant 6 : i32
    %305 = arith.index_cast %c6_i32 : i32 to index
    %c0_100 = arith.constant 0 : index
    %c0_101 = arith.constant 0 : index
    %306 = vector.load %arg2[%305, %c0_100, %c0_101] : memref<8x4x96xf32, #tpu.memory_space<vmem>>, vector<1x4x96xf32>
    %307 = vector.shape_cast %306 : vector<1x4x96xf32> to vector<4x96xf32>
    %c0_102 = arith.constant 0 : index
    %c0_103 = arith.constant 0 : index
    %308 = vector.load %arg8[%c0_102, %c0_103] : memref<4x32xf32, #tpu.memory_space<vmem>>, vector<4x32xf32>
    %cst_104 = arith.constant dense<0.000000e+00> : vector<4x96xf32>
    %309 = tpu.matmul %308, %3, %cst_104 {dimension_numbers = #tpu.dot_dimension_numbers<[1], [0], [0], [1], [0, 0, 1, 1], [], []>} : vector<4x32xf32>, vector<32x96xf32>, vector<4x96xf32> -> vector<4x96xf32>
    %310 = vector.broadcast %4 : vector<1x96xf32> to vector<4x96xf32>
    %311 = arith.addf %309, %310 : vector<4x96xf32>
    %312 = vector.extract_strided_slice %307 {offsets = [0, 0], sizes = [4, 32], strides = [1, 1]} : vector<4x96xf32> to vector<4x32xf32>
    %313 = vector.extract_strided_slice %311 {offsets = [0, 0], sizes = [4, 32], strides = [1, 1]} : vector<4x96xf32> to vector<4x32xf32>
    %314 = arith.addf %312, %313 : vector<4x32xf32>
    %315 = arith.negf %314 : vector<4x32xf32>
    %316 = math.exp %315 : vector<4x32xf32>
    %cst_105 = arith.constant 1.000000e+00 : f32
    %317 = vector.broadcast %cst_105 : f32 to vector<4x32xf32>
    %318 = arith.addf %317, %316 : vector<4x32xf32>
    %319 = arith.divf %317, %318 : vector<4x32xf32>
    %320 = vector.extract_strided_slice %307 {offsets = [0, 32], sizes = [4, 32], strides = [1, 1]} : vector<4x96xf32> to vector<4x32xf32>
    %321 = vector.extract_strided_slice %311 {offsets = [0, 32], sizes = [4, 32], strides = [1, 1]} : vector<4x96xf32> to vector<4x32xf32>
    %322 = arith.addf %320, %321 : vector<4x32xf32>
    %323 = arith.negf %322 : vector<4x32xf32>
    %324 = math.exp %323 : vector<4x32xf32>
    %cst_106 = arith.constant 1.000000e+00 : f32
    %325 = vector.broadcast %cst_106 : f32 to vector<4x32xf32>
    %326 = arith.addf %325, %324 : vector<4x32xf32>
    %327 = arith.divf %325, %326 : vector<4x32xf32>
    %328 = vector.extract_strided_slice %307 {offsets = [0, 64], sizes = [4, 32], strides = [1, 1]} : vector<4x96xf32> to vector<4x32xf32>
    %329 = vector.extract_strided_slice %311 {offsets = [0, 64], sizes = [4, 32], strides = [1, 1]} : vector<4x96xf32> to vector<4x32xf32>
    %330 = arith.mulf %319, %329 : vector<4x32xf32>
    %331 = arith.addf %328, %330 : vector<4x32xf32>
    %332 = math.tanh %331 : vector<4x32xf32>
    %cst_107 = arith.constant 1.000000e+00 : f32
    %333 = vector.broadcast %cst_107 : f32 to vector<4x32xf32>
    %334 = arith.subf %333, %327 : vector<4x32xf32>
    %335 = arith.mulf %334, %332 : vector<4x32xf32>
    %336 = arith.mulf %327, %308 : vector<4x32xf32>
    %337 = arith.addf %335, %336 : vector<4x32xf32>
    %338 = arith.index_cast %c6_i32 : i32 to index
    %c0_108 = arith.constant 0 : index
    %c0_109 = arith.constant 0 : index
    %339 = vector.load %arg3[%338, %c0_108, %c0_109] : memref<8x4x1xf32, #tpu.memory_space<vmem>>, vector<1x4x1xf32>
    %340 = vector.shape_cast %339 : vector<1x4x1xf32> to vector<4x1xf32>
    %cst_110 = arith.constant 5.000000e-01 : f32
    %341 = vector.broadcast %cst_110 : f32 to vector<4x1xf32>
    %342 = arith.cmpf ogt, %340, %341 : vector<4x1xf32>
    %343 = vector.shape_cast %342 : vector<4x1xi1> to vector<4x1xi1>
    %344 = vector.broadcast %343 : vector<4x1xi1> to vector<4x32xi1>
    %345 = arith.select %344, %337, %308 : vector<4x32xi1>, vector<4x32xf32>
    %c0_111 = arith.constant 0 : index
    %c0_112 = arith.constant 0 : index
    %346 = vector.load %arg8[%c0_111, %c0_112] : memref<4x32xf32, #tpu.memory_space<vmem>>, vector<4x32xf32>
    tpu.vector_store %arg8[%c0_111, %c0_112], %345 {strides = array<i32>} : memref<4x32xf32, #tpu.memory_space<vmem>>, vector<4x32xf32>,
    %cst_113 = arith.constant 0.000000e+00 : f32
    %347 = vector.shape_cast %342 : vector<4x1xi1> to vector<4x1xi1>
    %348 = vector.broadcast %347 : vector<4x1xi1> to vector<4x32xi1>
    %349 = vector.broadcast %cst_113 : f32 to vector<4x32xf32>
    %350 = arith.select %348, %337, %349 : vector<4x32xi1>, vector<4x32xf32>
    %351 = arith.index_cast %c6_i32 : i32 to index
    %c0_114 = arith.constant 0 : index
    %c0_115 = arith.constant 0 : index
    %352 = vector.load %arg6[%351, %c0_114, %c0_115] : memref<8x4x32xf32, #tpu.memory_space<vmem>>, vector<1x4x32xf32>
    %353 = vector.shape_cast %352 : vector<1x4x32xf32> to vector<4x32xf32>
    %354 = vector.shape_cast %350 : vector<4x32xf32> to vector<1x4x32xf32>
    tpu.vector_store %arg6[%351, %c0_114, %c0_115], %354 {strides = array<i32>} : memref<8x4x32xf32, #tpu.memory_space<vmem>>, vector<1x4x32xf32>,
    %c7_i32 = arith.constant 7 : i32
    %355 = arith.index_cast %c7_i32 : i32 to index
    %c0_116 = arith.constant 0 : index
    %c0_117 = arith.constant 0 : index
    %356 = vector.load %arg2[%355, %c0_116, %c0_117] : memref<8x4x96xf32, #tpu.memory_space<vmem>>, vector<1x4x96xf32>
    %357 = vector.shape_cast %356 : vector<1x4x96xf32> to vector<4x96xf32>
    %c0_118 = arith.constant 0 : index
    %c0_119 = arith.constant 0 : index
    %358 = vector.load %arg8[%c0_118, %c0_119] : memref<4x32xf32, #tpu.memory_space<vmem>>, vector<4x32xf32>
    %cst_120 = arith.constant dense<0.000000e+00> : vector<4x96xf32>
    %359 = tpu.matmul %358, %3, %cst_120 {dimension_numbers = #tpu.dot_dimension_numbers<[1], [0], [0], [1], [0, 0, 1, 1], [], []>} : vector<4x32xf32>, vector<32x96xf32>, vector<4x96xf32> -> vector<4x96xf32>
    %360 = vector.broadcast %4 : vector<1x96xf32> to vector<4x96xf32>
    %361 = arith.addf %359, %360 : vector<4x96xf32>
    %362 = vector.extract_strided_slice %357 {offsets = [0, 0], sizes = [4, 32], strides = [1, 1]} : vector<4x96xf32> to vector<4x32xf32>
    %363 = vector.extract_strided_slice %361 {offsets = [0, 0], sizes = [4, 32], strides = [1, 1]} : vector<4x96xf32> to vector<4x32xf32>
    %364 = arith.addf %362, %363 : vector<4x32xf32>
    %365 = arith.negf %364 : vector<4x32xf32>
    %366 = math.exp %365 : vector<4x32xf32>
    %cst_121 = arith.constant 1.000000e+00 : f32
    %367 = vector.broadcast %cst_121 : f32 to vector<4x32xf32>
    %368 = arith.addf %367, %366 : vector<4x32xf32>
    %369 = arith.divf %367, %368 : vector<4x32xf32>
    %370 = vector.extract_strided_slice %357 {offsets = [0, 32], sizes = [4, 32], strides = [1, 1]} : vector<4x96xf32> to vector<4x32xf32>
    %371 = vector.extract_strided_slice %361 {offsets = [0, 32], sizes = [4, 32], strides = [1, 1]} : vector<4x96xf32> to vector<4x32xf32>
    %372 = arith.addf %370, %371 : vector<4x32xf32>
    %373 = arith.negf %372 : vector<4x32xf32>
    %374 = math.exp %373 : vector<4x32xf32>
    %cst_122 = arith.constant 1.000000e+00 : f32
    %375 = vector.broadcast %cst_122 : f32 to vector<4x32xf32>
    %376 = arith.addf %375, %374 : vector<4x32xf32>
    %377 = arith.divf %375, %376 : vector<4x32xf32>
    %378 = vector.extract_strided_slice %357 {offsets = [0, 64], sizes = [4, 32], strides = [1, 1]} : vector<4x96xf32> to vector<4x32xf32>
    %379 = vector.extract_strided_slice %361 {offsets = [0, 64], sizes = [4, 32], strides = [1, 1]} : vector<4x96xf32> to vector<4x32xf32>
    %380 = arith.mulf %369, %379 : vector<4x32xf32>
    %381 = arith.addf %378, %380 : vector<4x32xf32>
    %382 = math.tanh %381 : vector<4x32xf32>
    %cst_123 = arith.constant 1.000000e+00 : f32
    %383 = vector.broadcast %cst_123 : f32 to vector<4x32xf32>
    %384 = arith.subf %383, %377 : vector<4x32xf32>
    %385 = arith.mulf %384, %382 : vector<4x32xf32>
    %386 = arith.mulf %377, %358 : vector<4x32xf32>
    %387 = arith.addf %385, %386 : vector<4x32xf32>
    %388 = arith.index_cast %c7_i32 : i32 to index
    %c0_124 = arith.constant 0 : index
    %c0_125 = arith.constant 0 : index
    %389 = vector.load %arg3[%388, %c0_124, %c0_125] : memref<8x4x1xf32, #tpu.memory_space<vmem>>, vector<1x4x1xf32>
    %390 = vector.shape_cast %389 : vector<1x4x1xf32> to vector<4x1xf32>
    %cst_126 = arith.constant 5.000000e-01 : f32
    %391 = vector.broadcast %cst_126 : f32 to vector<4x1xf32>
    %392 = arith.cmpf ogt, %390, %391 : vector<4x1xf32>
    %393 = vector.shape_cast %392 : vector<4x1xi1> to vector<4x1xi1>
    %394 = vector.broadcast %393 : vector<4x1xi1> to vector<4x32xi1>
    %395 = arith.select %394, %387, %358 : vector<4x32xi1>, vector<4x32xf32>
    %c0_127 = arith.constant 0 : index
    %c0_128 = arith.constant 0 : index
    %396 = vector.load %arg8[%c0_127, %c0_128] : memref<4x32xf32, #tpu.memory_space<vmem>>, vector<4x32xf32>
    tpu.vector_store %arg8[%c0_127, %c0_128], %395 {strides = array<i32>} : memref<4x32xf32, #tpu.memory_space<vmem>>, vector<4x32xf32>,
    %cst_129 = arith.constant 0.000000e+00 : f32
    %397 = vector.shape_cast %392 : vector<4x1xi1> to vector<4x1xi1>
    %398 = vector.broadcast %397 : vector<4x1xi1> to vector<4x32xi1>
    %399 = vector.broadcast %cst_129 : f32 to vector<4x32xf32>
    %400 = arith.select %398, %387, %399 : vector<4x32xi1>, vector<4x32xf32>
    %401 = arith.index_cast %c7_i32 : i32 to index
    %c0_130 = arith.constant 0 : index
    %c0_131 = arith.constant 0 : index
    %402 = vector.load %arg6[%401, %c0_130, %c0_131] : memref<8x4x32xf32, #tpu.memory_space<vmem>>, vector<1x4x32xf32>
    %403 = vector.shape_cast %402 : vector<1x4x32xf32> to vector<4x32xf32>
    %404 = vector.shape_cast %400 : vector<4x32xf32> to vector<1x4x32xf32>
    tpu.vector_store %arg6[%401, %c0_130, %c0_131], %404 {strides = array<i32>} : memref<8x4x32xf32, #tpu.memory_space<vmem>>, vector<1x4x32xf32>,
    %c8_i32 = arith.constant 8 : i32
    %c0_132 = arith.constant 0 : index
    %c0_133 = arith.constant 0 : index
    %405 = vector.load %arg8[%c0_132, %c0_133] : memref<4x32xf32, #tpu.memory_space<vmem>>, vector<4x32xf32>
    %c0_134 = arith.constant 0 : index
    %c0_135 = arith.constant 0 : index
    %406 = vector.load %arg7[%c0_134, %c0_135] : memref<4x32xf32, #tpu.memory_space<vmem>>, vector<4x32xf32>
    tpu.vector_store %arg7[%c0_134, %c0_135], %405 {strides = array<i32>} : memref<4x32xf32, #tpu.memory_space<vmem>>, vector<4x32xf32>,
    return
  }
  func.func @transform_0(%arg0: i32, %arg1: i32) -> (i32, i32, i32) {
    %c0_i32 = arith.constant 0 : i32
    %c0_i32_0 = arith.constant 0 : i32
    return %arg1, %arg0, %c0_i32 : i32, i32, i32
  }
  func.func @transform_1(%arg0: i32, %arg1: i32) -> (i32, i32, i32) {
    %c0_i32 = arith.constant 0 : i32
    %c0_i32_0 = arith.constant 0 : i32
    return %arg1, %arg0, %c0_i32 : i32, i32, i32
  }
  func.func @transform_2(%arg0: i32, %arg1: i32) -> (i32, i32) {
    %c0_i32 = arith.constant 0 : i32
    %c0_i32_0 = arith.constant 0 : i32
    %c0_i32_1 = arith.constant 0 : i32
    return %c0_i32, %c0_i32_0 : i32, i32
  }
  func.func @transform_3(%arg0: i32, %arg1: i32) -> (i32, i32) {
    %c0_i32 = arith.constant 0 : i32
    %c0_i32_0 = arith.constant 0 : i32
    %c0_i32_1 = arith.constant 0 : i32
    return %c0_i32, %c0_i32_0 : i32, i32
  }
  func.func @transform_4(%arg0: i32, %arg1: i32) -> (i32, i32, i32) {
    %c0_i32 = arith.constant 0 : i32
    %c0_i32_0 = arith.constant 0 : i32
    return %arg1, %arg0, %c0_i32 : i32, i32, i32
  }
  func.func @transform_5(%arg0: i32, %arg1: i32) -> (i32, i32) {
    %c0_i32 = arith.constant 0 : i32
    %c0_i32_0 = arith.constant 0 : i32
    return %arg0, %c0_i32 : i32, i32
  }
}

module attributes {stable_mosaic.version = 11 : i64} {
  func.func @_dec_recurrence_kernel(%arg0: i32, %arg1: memref<8x2x96xf32, #tpu.memory_space<vmem>>, %arg2: memref<2x32xf32, #tpu.memory_space<vmem>>, %arg3: memref<2x26x32xbf16, #tpu.memory_space<vmem>>, %arg4: memref<2x26xf32, #tpu.memory_space<vmem>>, %arg5: memref<32x96xf32, #tpu.memory_space<vmem>>, %arg6: memref<1x96xf32, #tpu.memory_space<vmem>>, %arg7: memref<8x2x96xbf16, #tpu.memory_space<vmem>>, %arg8: memref<2x32xf32, #tpu.memory_space<vmem>>, %arg9: memref<2x32xf32, #tpu.memory_space<vmem>>) attributes {dimension_semantics = [#tpu.dimension_semantics<arbitrary>], iteration_bounds = array<i64: 1>, scalar_prefetch = 0 : i64, scratch_operands = 1 : i64, tpu.core_type = #tpu.core_type<tc>, window_params = [{transform_indices = @transform_0, window_bounds = array<i64: 8, 2, 96>}, {pipeline_mode = #tpu.pipeline_mode<synchronous>, transform_indices = @transform_1, window_bounds = array<i64: 2, 32>}, {pipeline_mode = #tpu.pipeline_mode<synchronous>, transform_indices = @transform_2, window_bounds = array<i64: 2, 26, 32>}, {pipeline_mode = #tpu.pipeline_mode<synchronous>, transform_indices = @transform_3, window_bounds = array<i64: 2, 26>}, {pipeline_mode = #tpu.pipeline_mode<synchronous>, transform_indices = @transform_4, window_bounds = array<i64: 32, 96>}, {pipeline_mode = #tpu.pipeline_mode<synchronous>, transform_indices = @transform_5, window_bounds = array<i64: 1, 96>}, {transform_indices = @transform_6, window_bounds = array<i64: 8, 2, 96>}, {pipeline_mode = #tpu.pipeline_mode<synchronous>, transform_indices = @transform_7, window_bounds = array<i64: 2, 32>}]} {
    %c0_i32 = arith.constant 0 : i32
    %0 = arith.cmpi eq, %arg0, %c0_i32 : i32
    %1 = arith.extui %0 : i1 to i32
    %c0_i32_0 = arith.constant 0 : i32
    %2 = arith.cmpi ne, %1, %c0_i32_0 : i32
    scf.if %2 {
      %c0_211 = arith.constant 0 : index
      %c0_212 = arith.constant 0 : index
      %699 = vector.load %arg2[%c0_211, %c0_212] : memref<2x32xf32, #tpu.memory_space<vmem>>, vector<2x32xf32>
      %c0_213 = arith.constant 0 : index
      %c0_214 = arith.constant 0 : index
      %700 = vector.load %arg9[%c0_213, %c0_214] : memref<2x32xf32, #tpu.memory_space<vmem>>, vector<2x32xf32>
      tpu.vector_store %arg9[%c0_213, %c0_214], %699 {strides = array<i32>} : memref<2x32xf32, #tpu.memory_space<vmem>>, vector<2x32xf32>,
    } else {
    }
    %c0 = arith.constant 0 : index
    %c0_1 = arith.constant 0 : index
    %3 = vector.load %arg5[%c0, %c0_1] : memref<32x96xf32, #tpu.memory_space<vmem>>, vector<32x96xf32>
    %c0_2 = arith.constant 0 : index
    %c0_3 = arith.constant 0 : index
    %4 = vector.load %arg6[%c0_2, %c0_3] : memref<1x96xf32, #tpu.memory_space<vmem>>, vector<1x96xf32>
    %c0_4 = arith.constant 0 : index
    %c0_5 = arith.constant 0 : index
    %c0_6 = arith.constant 0 : index
    %5 = vector.load %arg3[%c0_4, %c0_5, %c0_6] : memref<2x26x32xbf16, #tpu.memory_space<vmem>>, vector<2x26x32xbf16>
    %6 = vector.extract_strided_slice %5 {offsets = [0, 0, 0], sizes = [2, 8, 32], strides = [1, 1, 1]} : vector<2x26x32xbf16> to vector<2x8x32xbf16>
    %7 = vector.extract_strided_slice %5 {offsets = [0, 8, 0], sizes = [2, 18, 32], strides = [1, 1, 1]} : vector<2x26x32xbf16> to vector<2x18x32xbf16>
    %c0_7 = arith.constant 0 : index
    %c0_8 = arith.constant 0 : index
    %8 = vector.load %arg4[%c0_7, %c0_8] : memref<2x26xf32, #tpu.memory_space<vmem>>, vector<2x26xf32>
    %c0_i32_9 = arith.constant 0 : i32
    %9 = arith.index_cast %c0_i32_9 : i32 to index
    %c0_10 = arith.constant 0 : index
    %c0_11 = arith.constant 0 : index
    %10 = vector.load %arg1[%9, %c0_10, %c0_11] : memref<8x2x96xf32, #tpu.memory_space<vmem>>, vector<1x2x96xf32>
    %11 = vector.shape_cast %10 : vector<1x2x96xf32> to vector<2x96xf32>
    %c0_12 = arith.constant 0 : index
    %c0_13 = arith.constant 0 : index
    %12 = vector.load %arg9[%c0_12, %c0_13] : memref<2x32xf32, #tpu.memory_space<vmem>>, vector<2x32xf32>
    %cst = arith.constant dense<0.000000e+00> : vector<2x96xf32>
    %13 = tpu.matmul %12, %3, %cst {dimension_numbers = #tpu.dot_dimension_numbers<[1], [0], [0], [1], [0, 0, 1, 1], [], []>} : vector<2x32xf32>, vector<32x96xf32>, vector<2x96xf32> -> vector<2x96xf32>
    %14 = vector.broadcast %4 : vector<1x96xf32> to vector<2x96xf32>
    %15 = arith.addf %13, %14 : vector<2x96xf32>
    %16 = vector.extract_strided_slice %11 {offsets = [0, 0], sizes = [2, 32], strides = [1, 1]} : vector<2x96xf32> to vector<2x32xf32>
    %17 = vector.extract_strided_slice %15 {offsets = [0, 0], sizes = [2, 32], strides = [1, 1]} : vector<2x96xf32> to vector<2x32xf32>
    %18 = arith.addf %16, %17 : vector<2x32xf32>
    %19 = arith.negf %18 : vector<2x32xf32>
    %20 = math.exp %19 : vector<2x32xf32>
    %cst_14 = arith.constant 1.000000e+00 : f32
    %21 = vector.broadcast %cst_14 : f32 to vector<2x32xf32>
    %22 = arith.addf %21, %20 : vector<2x32xf32>
    %23 = arith.divf %21, %22 : vector<2x32xf32>
    %24 = vector.extract_strided_slice %11 {offsets = [0, 32], sizes = [2, 32], strides = [1, 1]} : vector<2x96xf32> to vector<2x32xf32>
    %25 = vector.extract_strided_slice %15 {offsets = [0, 32], sizes = [2, 32], strides = [1, 1]} : vector<2x96xf32> to vector<2x32xf32>
    %26 = arith.addf %24, %25 : vector<2x32xf32>
    %27 = arith.negf %26 : vector<2x32xf32>
    %28 = math.exp %27 : vector<2x32xf32>
    %cst_15 = arith.constant 1.000000e+00 : f32
    %29 = vector.broadcast %cst_15 : f32 to vector<2x32xf32>
    %30 = arith.addf %29, %28 : vector<2x32xf32>
    %31 = arith.divf %29, %30 : vector<2x32xf32>
    %32 = vector.extract_strided_slice %11 {offsets = [0, 64], sizes = [2, 32], strides = [1, 1]} : vector<2x96xf32> to vector<2x32xf32>
    %33 = vector.extract_strided_slice %15 {offsets = [0, 64], sizes = [2, 32], strides = [1, 1]} : vector<2x96xf32> to vector<2x32xf32>
    %34 = arith.mulf %23, %33 : vector<2x32xf32>
    %35 = arith.addf %32, %34 : vector<2x32xf32>
    %36 = math.tanh %35 : vector<2x32xf32>
    %cst_16 = arith.constant 1.000000e+00 : f32
    %37 = vector.broadcast %cst_16 : f32 to vector<2x32xf32>
    %38 = arith.subf %37, %31 : vector<2x32xf32>
    %39 = arith.mulf %38, %36 : vector<2x32xf32>
    %40 = arith.mulf %31, %12 : vector<2x32xf32>
    %41 = arith.addf %39, %40 : vector<2x32xf32>
    %c0_17 = arith.constant 0 : index
    %c0_18 = arith.constant 0 : index
    %42 = vector.load %arg9[%c0_17, %c0_18] : memref<2x32xf32, #tpu.memory_space<vmem>>, vector<2x32xf32>
    tpu.vector_store %arg9[%c0_17, %c0_18], %41 {strides = array<i32>} : memref<2x32xf32, #tpu.memory_space<vmem>>, vector<2x32xf32>,
    %43 = arith.truncf %41 : vector<2x32xf32> to vector<2x32xbf16>
    %44 = vector.shape_cast %43 : vector<2x32xbf16> to vector<2x1x32xbf16>
    "tpu.trace_start"() <{level = 10 : i32, message = "bqh,bnh->bqn"}> : () -> ()
    %cst_19 = arith.constant dense<0.000000e+00> : vector<2x1x26xf32>
    %45 = tpu.matmul %44, %5, %cst_19 {dimension_numbers = #tpu.dot_dimension_numbers<[2], [2], [1], [1], [0, 0, 0, 1, 1, 1], [0], [0]>} : vector<2x1x32xbf16>, vector<2x26x32xbf16>, vector<2x1x26xf32> -> vector<2x1x26xf32>
    "tpu.trace_stop"() : () -> ()
    %46 = vector.shape_cast %45 : vector<2x1x26xf32> to vector<2x26xf32>
    %47 = arith.addf %46, %8 : vector<2x26xf32>
    %48 = vector.extract_strided_slice %47 {offsets = [0, 0], sizes = [2, 8], strides = [1, 1]} : vector<2x26xf32> to vector<2x8xf32>
    %cst_20 = arith.constant dense<0xFF800000> : vector<2xf32>
    %49 = vector.multi_reduction <maximumf>, %48, %cst_20 [1] : vector<2x8xf32> to vector<2xf32>
    %cst_21 = arith.constant 0xFF800000 : f32
    %50 = vector.broadcast %cst_21 : f32 to vector<2xf32>
    %51 = arith.maximumf %50, %49 : vector<2xf32>
    %52 = vector.shape_cast %51 : vector<2xf32> to vector<2x1xf32>
    %53 = vector.broadcast %52 : vector<2x1xf32> to vector<2x8xf32>
    %54 = arith.subf %48, %53 : vector<2x8xf32>
    %55 = math.exp %54 : vector<2x8xf32>
    %cst_22 = arith.constant dense<0.000000e+00> : vector<2xf32>
    %56 = vector.multi_reduction <add>, %55, %cst_22 [1] : vector<2x8xf32> to vector<2xf32>
    %57 = vector.shape_cast %56 : vector<2xf32> to vector<2x1xf32>
    %58 = vector.broadcast %57 : vector<2x1xf32> to vector<2x8xf32>
    %59 = arith.divf %55, %58 : vector<2x8xf32>
    %60 = arith.truncf %59 : vector<2x8xf32> to vector<2x8xbf16>
    %61 = vector.extract_strided_slice %47 {offsets = [0, 8], sizes = [2, 18], strides = [1, 1]} : vector<2x26xf32> to vector<2x18xf32>
    %cst_23 = arith.constant dense<0xFF800000> : vector<2xf32>
    %62 = vector.multi_reduction <maximumf>, %61, %cst_23 [1] : vector<2x18xf32> to vector<2xf32>
    %cst_24 = arith.constant 0xFF800000 : f32
    %63 = vector.broadcast %cst_24 : f32 to vector<2xf32>
    %64 = arith.maximumf %63, %62 : vector<2xf32>
    %65 = vector.shape_cast %64 : vector<2xf32> to vector<2x1xf32>
    %66 = vector.broadcast %65 : vector<2x1xf32> to vector<2x18xf32>
    %67 = arith.subf %61, %66 : vector<2x18xf32>
    %68 = math.exp %67 : vector<2x18xf32>
    %cst_25 = arith.constant dense<0.000000e+00> : vector<2xf32>
    %69 = vector.multi_reduction <add>, %68, %cst_25 [1] : vector<2x18xf32> to vector<2xf32>
    %70 = vector.shape_cast %69 : vector<2xf32> to vector<2x1xf32>
    %71 = vector.broadcast %70 : vector<2x1xf32> to vector<2x18xf32>
    %72 = arith.divf %68, %71 : vector<2x18xf32>
    %73 = arith.truncf %72 : vector<2x18xf32> to vector<2x18xbf16>
    %74 = vector.shape_cast %60 : vector<2x8xbf16> to vector<2x1x8xbf16>
    "tpu.trace_start"() <{level = 10 : i32, message = "bqn,bnh->bqh"}> : () -> ()
    %cst_26 = arith.constant dense<0.000000e+00> : vector<2x1x32xf32>
    %75 = tpu.matmul %74, %6, %cst_26 {dimension_numbers = #tpu.dot_dimension_numbers<[2], [1], [1], [2], [0, 0, 0, 1, 1, 2], [0], [0]>} : vector<2x1x8xbf16>, vector<2x8x32xbf16>, vector<2x1x32xf32> -> vector<2x1x32xf32>
    "tpu.trace_stop"() : () -> ()
    %76 = vector.shape_cast %75 : vector<2x1x32xf32> to vector<2x32xf32>
    %77 = vector.shape_cast %73 : vector<2x18xbf16> to vector<2x1x18xbf16>
    "tpu.trace_start"() <{level = 10 : i32, message = "bqn,bnh->bqh"}> : () -> ()
    %cst_27 = arith.constant dense<0.000000e+00> : vector<2x1x32xf32>
    %78 = tpu.matmul %77, %7, %cst_27 {dimension_numbers = #tpu.dot_dimension_numbers<[2], [1], [1], [2], [0, 0, 0, 1, 1, 2], [0], [0]>} : vector<2x1x18xbf16>, vector<2x18x32xbf16>, vector<2x1x32xf32> -> vector<2x1x32xf32>
    "tpu.trace_stop"() : () -> ()
    %79 = vector.shape_cast %78 : vector<2x1x32xf32> to vector<2x32xf32>
    %80 = arith.truncf %41 : vector<2x32xf32> to vector<2x32xbf16>
    %81 = arith.index_cast %c0_i32_9 : i32 to index
    %c0_28 = arith.constant 0 : index
    %c0_29 = arith.constant 0 : index
    %82 = vector.load %arg7[%81, %c0_28, %c0_29] : memref<8x2x96xbf16, #tpu.memory_space<vmem>>, vector<1x2x32xbf16>
    %83 = vector.shape_cast %82 : vector<1x2x32xbf16> to vector<2x32xbf16>
    %84 = vector.shape_cast %80 : vector<2x32xbf16> to vector<1x2x32xbf16>
    tpu.vector_store %arg7[%81, %c0_28, %c0_29], %84 {strides = array<i32>} : memref<8x2x96xbf16, #tpu.memory_space<vmem>>, vector<1x2x32xbf16>,
    %85 = arith.truncf %76 : vector<2x32xf32> to vector<2x32xbf16>
    %86 = arith.index_cast %c0_i32_9 : i32 to index
    %c0_30 = arith.constant 0 : index
    %c32 = arith.constant 32 : index
    %87 = vector.load %arg7[%86, %c0_30, %c32] : memref<8x2x96xbf16, #tpu.memory_space<vmem>>, vector<1x2x32xbf16>
    %88 = vector.shape_cast %87 : vector<1x2x32xbf16> to vector<2x32xbf16>
    %89 = vector.shape_cast %85 : vector<2x32xbf16> to vector<1x2x32xbf16>
    tpu.vector_store %arg7[%86, %c0_30, %c32], %89 {strides = array<i32>} : memref<8x2x96xbf16, #tpu.memory_space<vmem>>, vector<1x2x32xbf16>,
    %90 = arith.truncf %79 : vector<2x32xf32> to vector<2x32xbf16>
    %91 = arith.index_cast %c0_i32_9 : i32 to index
    %c0_31 = arith.constant 0 : index
    %c64 = arith.constant 64 : index
    %92 = vector.load %arg7[%91, %c0_31, %c64] : memref<8x2x96xbf16, #tpu.memory_space<vmem>>, vector<1x2x32xbf16>
    %93 = vector.shape_cast %92 : vector<1x2x32xbf16> to vector<2x32xbf16>
    %94 = vector.shape_cast %90 : vector<2x32xbf16> to vector<1x2x32xbf16>
    tpu.vector_store %arg7[%91, %c0_31, %c64], %94 {strides = array<i32>} : memref<8x2x96xbf16, #tpu.memory_space<vmem>>, vector<1x2x32xbf16>,
    %c1_i32 = arith.constant 1 : i32
    %95 = arith.index_cast %c1_i32 : i32 to index
    %c0_32 = arith.constant 0 : index
    %c0_33 = arith.constant 0 : index
    %96 = vector.load %arg1[%95, %c0_32, %c0_33] : memref<8x2x96xf32, #tpu.memory_space<vmem>>, vector<1x2x96xf32>
    %97 = vector.shape_cast %96 : vector<1x2x96xf32> to vector<2x96xf32>
    %c0_34 = arith.constant 0 : index
    %c0_35 = arith.constant 0 : index
    %98 = vector.load %arg9[%c0_34, %c0_35] : memref<2x32xf32, #tpu.memory_space<vmem>>, vector<2x32xf32>
    %cst_36 = arith.constant dense<0.000000e+00> : vector<2x96xf32>
    %99 = tpu.matmul %98, %3, %cst_36 {dimension_numbers = #tpu.dot_dimension_numbers<[1], [0], [0], [1], [0, 0, 1, 1], [], []>} : vector<2x32xf32>, vector<32x96xf32>, vector<2x96xf32> -> vector<2x96xf32>
    %100 = vector.broadcast %4 : vector<1x96xf32> to vector<2x96xf32>
    %101 = arith.addf %99, %100 : vector<2x96xf32>
    %102 = vector.extract_strided_slice %97 {offsets = [0, 0], sizes = [2, 32], strides = [1, 1]} : vector<2x96xf32> to vector<2x32xf32>
    %103 = vector.extract_strided_slice %101 {offsets = [0, 0], sizes = [2, 32], strides = [1, 1]} : vector<2x96xf32> to vector<2x32xf32>
    %104 = arith.addf %102, %103 : vector<2x32xf32>
    %105 = arith.negf %104 : vector<2x32xf32>
    %106 = math.exp %105 : vector<2x32xf32>
    %cst_37 = arith.constant 1.000000e+00 : f32
    %107 = vector.broadcast %cst_37 : f32 to vector<2x32xf32>
    %108 = arith.addf %107, %106 : vector<2x32xf32>
    %109 = arith.divf %107, %108 : vector<2x32xf32>
    %110 = vector.extract_strided_slice %97 {offsets = [0, 32], sizes = [2, 32], strides = [1, 1]} : vector<2x96xf32> to vector<2x32xf32>
    %111 = vector.extract_strided_slice %101 {offsets = [0, 32], sizes = [2, 32], strides = [1, 1]} : vector<2x96xf32> to vector<2x32xf32>
    %112 = arith.addf %110, %111 : vector<2x32xf32>
    %113 = arith.negf %112 : vector<2x32xf32>
    %114 = math.exp %113 : vector<2x32xf32>
    %cst_38 = arith.constant 1.000000e+00 : f32
    %115 = vector.broadcast %cst_38 : f32 to vector<2x32xf32>
    %116 = arith.addf %115, %114 : vector<2x32xf32>
    %117 = arith.divf %115, %116 : vector<2x32xf32>
    %118 = vector.extract_strided_slice %97 {offsets = [0, 64], sizes = [2, 32], strides = [1, 1]} : vector<2x96xf32> to vector<2x32xf32>
    %119 = vector.extract_strided_slice %101 {offsets = [0, 64], sizes = [2, 32], strides = [1, 1]} : vector<2x96xf32> to vector<2x32xf32>
    %120 = arith.mulf %109, %119 : vector<2x32xf32>
    %121 = arith.addf %118, %120 : vector<2x32xf32>
    %122 = math.tanh %121 : vector<2x32xf32>
    %cst_39 = arith.constant 1.000000e+00 : f32
    %123 = vector.broadcast %cst_39 : f32 to vector<2x32xf32>
    %124 = arith.subf %123, %117 : vector<2x32xf32>
    %125 = arith.mulf %124, %122 : vector<2x32xf32>
    %126 = arith.mulf %117, %98 : vector<2x32xf32>
    %127 = arith.addf %125, %126 : vector<2x32xf32>
    %c0_40 = arith.constant 0 : index
    %c0_41 = arith.constant 0 : index
    %128 = vector.load %arg9[%c0_40, %c0_41] : memref<2x32xf32, #tpu.memory_space<vmem>>, vector<2x32xf32>
    tpu.vector_store %arg9[%c0_40, %c0_41], %127 {strides = array<i32>} : memref<2x32xf32, #tpu.memory_space<vmem>>, vector<2x32xf32>,
    %129 = arith.truncf %127 : vector<2x32xf32> to vector<2x32xbf16>
    %130 = vector.shape_cast %129 : vector<2x32xbf16> to vector<2x1x32xbf16>
    "tpu.trace_start"() <{level = 10 : i32, message = "bqh,bnh->bqn"}> : () -> ()
    %cst_42 = arith.constant dense<0.000000e+00> : vector<2x1x26xf32>
    %131 = tpu.matmul %130, %5, %cst_42 {dimension_numbers = #tpu.dot_dimension_numbers<[2], [2], [1], [1], [0, 0, 0, 1, 1, 1], [0], [0]>} : vector<2x1x32xbf16>, vector<2x26x32xbf16>, vector<2x1x26xf32> -> vector<2x1x26xf32>
    "tpu.trace_stop"() : () -> ()
    %132 = vector.shape_cast %131 : vector<2x1x26xf32> to vector<2x26xf32>
    %133 = arith.addf %132, %8 : vector<2x26xf32>
    %134 = vector.extract_strided_slice %133 {offsets = [0, 0], sizes = [2, 8], strides = [1, 1]} : vector<2x26xf32> to vector<2x8xf32>
    %cst_43 = arith.constant dense<0xFF800000> : vector<2xf32>
    %135 = vector.multi_reduction <maximumf>, %134, %cst_43 [1] : vector<2x8xf32> to vector<2xf32>
    %cst_44 = arith.constant 0xFF800000 : f32
    %136 = vector.broadcast %cst_44 : f32 to vector<2xf32>
    %137 = arith.maximumf %136, %135 : vector<2xf32>
    %138 = vector.shape_cast %137 : vector<2xf32> to vector<2x1xf32>
    %139 = vector.broadcast %138 : vector<2x1xf32> to vector<2x8xf32>
    %140 = arith.subf %134, %139 : vector<2x8xf32>
    %141 = math.exp %140 : vector<2x8xf32>
    %cst_45 = arith.constant dense<0.000000e+00> : vector<2xf32>
    %142 = vector.multi_reduction <add>, %141, %cst_45 [1] : vector<2x8xf32> to vector<2xf32>
    %143 = vector.shape_cast %142 : vector<2xf32> to vector<2x1xf32>
    %144 = vector.broadcast %143 : vector<2x1xf32> to vector<2x8xf32>
    %145 = arith.divf %141, %144 : vector<2x8xf32>
    %146 = arith.truncf %145 : vector<2x8xf32> to vector<2x8xbf16>
    %147 = vector.extract_strided_slice %133 {offsets = [0, 8], sizes = [2, 18], strides = [1, 1]} : vector<2x26xf32> to vector<2x18xf32>
    %cst_46 = arith.constant dense<0xFF800000> : vector<2xf32>
    %148 = vector.multi_reduction <maximumf>, %147, %cst_46 [1] : vector<2x18xf32> to vector<2xf32>
    %cst_47 = arith.constant 0xFF800000 : f32
    %149 = vector.broadcast %cst_47 : f32 to vector<2xf32>
    %150 = arith.maximumf %149, %148 : vector<2xf32>
    %151 = vector.shape_cast %150 : vector<2xf32> to vector<2x1xf32>
    %152 = vector.broadcast %151 : vector<2x1xf32> to vector<2x18xf32>
    %153 = arith.subf %147, %152 : vector<2x18xf32>
    %154 = math.exp %153 : vector<2x18xf32>
    %cst_48 = arith.constant dense<0.000000e+00> : vector<2xf32>
    %155 = vector.multi_reduction <add>, %154, %cst_48 [1] : vector<2x18xf32> to vector<2xf32>
    %156 = vector.shape_cast %155 : vector<2xf32> to vector<2x1xf32>
    %157 = vector.broadcast %156 : vector<2x1xf32> to vector<2x18xf32>
    %158 = arith.divf %154, %157 : vector<2x18xf32>
    %159 = arith.truncf %158 : vector<2x18xf32> to vector<2x18xbf16>
    %160 = vector.shape_cast %146 : vector<2x8xbf16> to vector<2x1x8xbf16>
    "tpu.trace_start"() <{level = 10 : i32, message = "bqn,bnh->bqh"}> : () -> ()
    %cst_49 = arith.constant dense<0.000000e+00> : vector<2x1x32xf32>
    %161 = tpu.matmul %160, %6, %cst_49 {dimension_numbers = #tpu.dot_dimension_numbers<[2], [1], [1], [2], [0, 0, 0, 1, 1, 2], [0], [0]>} : vector<2x1x8xbf16>, vector<2x8x32xbf16>, vector<2x1x32xf32> -> vector<2x1x32xf32>
    "tpu.trace_stop"() : () -> ()
    %162 = vector.shape_cast %161 : vector<2x1x32xf32> to vector<2x32xf32>
    %163 = vector.shape_cast %159 : vector<2x18xbf16> to vector<2x1x18xbf16>
    "tpu.trace_start"() <{level = 10 : i32, message = "bqn,bnh->bqh"}> : () -> ()
    %cst_50 = arith.constant dense<0.000000e+00> : vector<2x1x32xf32>
    %164 = tpu.matmul %163, %7, %cst_50 {dimension_numbers = #tpu.dot_dimension_numbers<[2], [1], [1], [2], [0, 0, 0, 1, 1, 2], [0], [0]>} : vector<2x1x18xbf16>, vector<2x18x32xbf16>, vector<2x1x32xf32> -> vector<2x1x32xf32>
    "tpu.trace_stop"() : () -> ()
    %165 = vector.shape_cast %164 : vector<2x1x32xf32> to vector<2x32xf32>
    %166 = arith.truncf %127 : vector<2x32xf32> to vector<2x32xbf16>
    %167 = arith.index_cast %c1_i32 : i32 to index
    %c0_51 = arith.constant 0 : index
    %c0_52 = arith.constant 0 : index
    %168 = vector.load %arg7[%167, %c0_51, %c0_52] : memref<8x2x96xbf16, #tpu.memory_space<vmem>>, vector<1x2x32xbf16>
    %169 = vector.shape_cast %168 : vector<1x2x32xbf16> to vector<2x32xbf16>
    %170 = vector.shape_cast %166 : vector<2x32xbf16> to vector<1x2x32xbf16>
    tpu.vector_store %arg7[%167, %c0_51, %c0_52], %170 {strides = array<i32>} : memref<8x2x96xbf16, #tpu.memory_space<vmem>>, vector<1x2x32xbf16>,
    %171 = arith.truncf %162 : vector<2x32xf32> to vector<2x32xbf16>
    %172 = arith.index_cast %c1_i32 : i32 to index
    %c0_53 = arith.constant 0 : index
    %c32_54 = arith.constant 32 : index
    %173 = vector.load %arg7[%172, %c0_53, %c32_54] : memref<8x2x96xbf16, #tpu.memory_space<vmem>>, vector<1x2x32xbf16>
    %174 = vector.shape_cast %173 : vector<1x2x32xbf16> to vector<2x32xbf16>
    %175 = vector.shape_cast %171 : vector<2x32xbf16> to vector<1x2x32xbf16>
    tpu.vector_store %arg7[%172, %c0_53, %c32_54], %175 {strides = array<i32>} : memref<8x2x96xbf16, #tpu.memory_space<vmem>>, vector<1x2x32xbf16>,
    %176 = arith.truncf %165 : vector<2x32xf32> to vector<2x32xbf16>
    %177 = arith.index_cast %c1_i32 : i32 to index
    %c0_55 = arith.constant 0 : index
    %c64_56 = arith.constant 64 : index
    %178 = vector.load %arg7[%177, %c0_55, %c64_56] : memref<8x2x96xbf16, #tpu.memory_space<vmem>>, vector<1x2x32xbf16>
    %179 = vector.shape_cast %178 : vector<1x2x32xbf16> to vector<2x32xbf16>
    %180 = vector.shape_cast %176 : vector<2x32xbf16> to vector<1x2x32xbf16>
    tpu.vector_store %arg7[%177, %c0_55, %c64_56], %180 {strides = array<i32>} : memref<8x2x96xbf16, #tpu.memory_space<vmem>>, vector<1x2x32xbf16>,
    %c2_i32 = arith.constant 2 : i32
    %181 = arith.index_cast %c2_i32 : i32 to index
    %c0_57 = arith.constant 0 : index
    %c0_58 = arith.constant 0 : index
    %182 = vector.load %arg1[%181, %c0_57, %c0_58] : memref<8x2x96xf32, #tpu.memory_space<vmem>>, vector<1x2x96xf32>
    %183 = vector.shape_cast %182 : vector<1x2x96xf32> to vector<2x96xf32>
    %c0_59 = arith.constant 0 : index
    %c0_60 = arith.constant 0 : index
    %184 = vector.load %arg9[%c0_59, %c0_60] : memref<2x32xf32, #tpu.memory_space<vmem>>, vector<2x32xf32>
    %cst_61 = arith.constant dense<0.000000e+00> : vector<2x96xf32>
    %185 = tpu.matmul %184, %3, %cst_61 {dimension_numbers = #tpu.dot_dimension_numbers<[1], [0], [0], [1], [0, 0, 1, 1], [], []>} : vector<2x32xf32>, vector<32x96xf32>, vector<2x96xf32> -> vector<2x96xf32>
    %186 = vector.broadcast %4 : vector<1x96xf32> to vector<2x96xf32>
    %187 = arith.addf %185, %186 : vector<2x96xf32>
    %188 = vector.extract_strided_slice %183 {offsets = [0, 0], sizes = [2, 32], strides = [1, 1]} : vector<2x96xf32> to vector<2x32xf32>
    %189 = vector.extract_strided_slice %187 {offsets = [0, 0], sizes = [2, 32], strides = [1, 1]} : vector<2x96xf32> to vector<2x32xf32>
    %190 = arith.addf %188, %189 : vector<2x32xf32>
    %191 = arith.negf %190 : vector<2x32xf32>
    %192 = math.exp %191 : vector<2x32xf32>
    %cst_62 = arith.constant 1.000000e+00 : f32
    %193 = vector.broadcast %cst_62 : f32 to vector<2x32xf32>
    %194 = arith.addf %193, %192 : vector<2x32xf32>
    %195 = arith.divf %193, %194 : vector<2x32xf32>
    %196 = vector.extract_strided_slice %183 {offsets = [0, 32], sizes = [2, 32], strides = [1, 1]} : vector<2x96xf32> to vector<2x32xf32>
    %197 = vector.extract_strided_slice %187 {offsets = [0, 32], sizes = [2, 32], strides = [1, 1]} : vector<2x96xf32> to vector<2x32xf32>
    %198 = arith.addf %196, %197 : vector<2x32xf32>
    %199 = arith.negf %198 : vector<2x32xf32>
    %200 = math.exp %199 : vector<2x32xf32>
    %cst_63 = arith.constant 1.000000e+00 : f32
    %201 = vector.broadcast %cst_63 : f32 to vector<2x32xf32>
    %202 = arith.addf %201, %200 : vector<2x32xf32>
    %203 = arith.divf %201, %202 : vector<2x32xf32>
    %204 = vector.extract_strided_slice %183 {offsets = [0, 64], sizes = [2, 32], strides = [1, 1]} : vector<2x96xf32> to vector<2x32xf32>
    %205 = vector.extract_strided_slice %187 {offsets = [0, 64], sizes = [2, 32], strides = [1, 1]} : vector<2x96xf32> to vector<2x32xf32>
    %206 = arith.mulf %195, %205 : vector<2x32xf32>
    %207 = arith.addf %204, %206 : vector<2x32xf32>
    %208 = math.tanh %207 : vector<2x32xf32>
    %cst_64 = arith.constant 1.000000e+00 : f32
    %209 = vector.broadcast %cst_64 : f32 to vector<2x32xf32>
    %210 = arith.subf %209, %203 : vector<2x32xf32>
    %211 = arith.mulf %210, %208 : vector<2x32xf32>
    %212 = arith.mulf %203, %184 : vector<2x32xf32>
    %213 = arith.addf %211, %212 : vector<2x32xf32>
    %c0_65 = arith.constant 0 : index
    %c0_66 = arith.constant 0 : index
    %214 = vector.load %arg9[%c0_65, %c0_66] : memref<2x32xf32, #tpu.memory_space<vmem>>, vector<2x32xf32>
    tpu.vector_store %arg9[%c0_65, %c0_66], %213 {strides = array<i32>} : memref<2x32xf32, #tpu.memory_space<vmem>>, vector<2x32xf32>,
    %215 = arith.truncf %213 : vector<2x32xf32> to vector<2x32xbf16>
    %216 = vector.shape_cast %215 : vector<2x32xbf16> to vector<2x1x32xbf16>
    "tpu.trace_start"() <{level = 10 : i32, message = "bqh,bnh->bqn"}> : () -> ()
    %cst_67 = arith.constant dense<0.000000e+00> : vector<2x1x26xf32>
    %217 = tpu.matmul %216, %5, %cst_67 {dimension_numbers = #tpu.dot_dimension_numbers<[2], [2], [1], [1], [0, 0, 0, 1, 1, 1], [0], [0]>} : vector<2x1x32xbf16>, vector<2x26x32xbf16>, vector<2x1x26xf32> -> vector<2x1x26xf32>
    "tpu.trace_stop"() : () -> ()
    %218 = vector.shape_cast %217 : vector<2x1x26xf32> to vector<2x26xf32>
    %219 = arith.addf %218, %8 : vector<2x26xf32>
    %220 = vector.extract_strided_slice %219 {offsets = [0, 0], sizes = [2, 8], strides = [1, 1]} : vector<2x26xf32> to vector<2x8xf32>
    %cst_68 = arith.constant dense<0xFF800000> : vector<2xf32>
    %221 = vector.multi_reduction <maximumf>, %220, %cst_68 [1] : vector<2x8xf32> to vector<2xf32>
    %cst_69 = arith.constant 0xFF800000 : f32
    %222 = vector.broadcast %cst_69 : f32 to vector<2xf32>
    %223 = arith.maximumf %222, %221 : vector<2xf32>
    %224 = vector.shape_cast %223 : vector<2xf32> to vector<2x1xf32>
    %225 = vector.broadcast %224 : vector<2x1xf32> to vector<2x8xf32>
    %226 = arith.subf %220, %225 : vector<2x8xf32>
    %227 = math.exp %226 : vector<2x8xf32>
    %cst_70 = arith.constant dense<0.000000e+00> : vector<2xf32>
    %228 = vector.multi_reduction <add>, %227, %cst_70 [1] : vector<2x8xf32> to vector<2xf32>
    %229 = vector.shape_cast %228 : vector<2xf32> to vector<2x1xf32>
    %230 = vector.broadcast %229 : vector<2x1xf32> to vector<2x8xf32>
    %231 = arith.divf %227, %230 : vector<2x8xf32>
    %232 = arith.truncf %231 : vector<2x8xf32> to vector<2x8xbf16>
    %233 = vector.extract_strided_slice %219 {offsets = [0, 8], sizes = [2, 18], strides = [1, 1]} : vector<2x26xf32> to vector<2x18xf32>
    %cst_71 = arith.constant dense<0xFF800000> : vector<2xf32>
    %234 = vector.multi_reduction <maximumf>, %233, %cst_71 [1] : vector<2x18xf32> to vector<2xf32>
    %cst_72 = arith.constant 0xFF800000 : f32
    %235 = vector.broadcast %cst_72 : f32 to vector<2xf32>
    %236 = arith.maximumf %235, %234 : vector<2xf32>
    %237 = vector.shape_cast %236 : vector<2xf32> to vector<2x1xf32>
    %238 = vector.broadcast %237 : vector<2x1xf32> to vector<2x18xf32>
    %239 = arith.subf %233, %238 : vector<2x18xf32>
    %240 = math.exp %239 : vector<2x18xf32>
    %cst_73 = arith.constant dense<0.000000e+00> : vector<2xf32>
    %241 = vector.multi_reduction <add>, %240, %cst_73 [1] : vector<2x18xf32> to vector<2xf32>
    %242 = vector.shape_cast %241 : vector<2xf32> to vector<2x1xf32>
    %243 = vector.broadcast %242 : vector<2x1xf32> to vector<2x18xf32>
    %244 = arith.divf %240, %243 : vector<2x18xf32>
    %245 = arith.truncf %244 : vector<2x18xf32> to vector<2x18xbf16>
    %246 = vector.shape_cast %232 : vector<2x8xbf16> to vector<2x1x8xbf16>
    "tpu.trace_start"() <{level = 10 : i32, message = "bqn,bnh->bqh"}> : () -> ()
    %cst_74 = arith.constant dense<0.000000e+00> : vector<2x1x32xf32>
    %247 = tpu.matmul %246, %6, %cst_74 {dimension_numbers = #tpu.dot_dimension_numbers<[2], [1], [1], [2], [0, 0, 0, 1, 1, 2], [0], [0]>} : vector<2x1x8xbf16>, vector<2x8x32xbf16>, vector<2x1x32xf32> -> vector<2x1x32xf32>
    "tpu.trace_stop"() : () -> ()
    %248 = vector.shape_cast %247 : vector<2x1x32xf32> to vector<2x32xf32>
    %249 = vector.shape_cast %245 : vector<2x18xbf16> to vector<2x1x18xbf16>
    "tpu.trace_start"() <{level = 10 : i32, message = "bqn,bnh->bqh"}> : () -> ()
    %cst_75 = arith.constant dense<0.000000e+00> : vector<2x1x32xf32>
    %250 = tpu.matmul %249, %7, %cst_75 {dimension_numbers = #tpu.dot_dimension_numbers<[2], [1], [1], [2], [0, 0, 0, 1, 1, 2], [0], [0]>} : vector<2x1x18xbf16>, vector<2x18x32xbf16>, vector<2x1x32xf32> -> vector<2x1x32xf32>
    "tpu.trace_stop"() : () -> ()
    %251 = vector.shape_cast %250 : vector<2x1x32xf32> to vector<2x32xf32>
    %252 = arith.truncf %213 : vector<2x32xf32> to vector<2x32xbf16>
    %253 = arith.index_cast %c2_i32 : i32 to index
    %c0_76 = arith.constant 0 : index
    %c0_77 = arith.constant 0 : index
    %254 = vector.load %arg7[%253, %c0_76, %c0_77] : memref<8x2x96xbf16, #tpu.memory_space<vmem>>, vector<1x2x32xbf16>
    %255 = vector.shape_cast %254 : vector<1x2x32xbf16> to vector<2x32xbf16>
    %256 = vector.shape_cast %252 : vector<2x32xbf16> to vector<1x2x32xbf16>
    tpu.vector_store %arg7[%253, %c0_76, %c0_77], %256 {strides = array<i32>} : memref<8x2x96xbf16, #tpu.memory_space<vmem>>, vector<1x2x32xbf16>,
    %257 = arith.truncf %248 : vector<2x32xf32> to vector<2x32xbf16>
    %258 = arith.index_cast %c2_i32 : i32 to index
    %c0_78 = arith.constant 0 : index
    %c32_79 = arith.constant 32 : index
    %259 = vector.load %arg7[%258, %c0_78, %c32_79] : memref<8x2x96xbf16, #tpu.memory_space<vmem>>, vector<1x2x32xbf16>
    %260 = vector.shape_cast %259 : vector<1x2x32xbf16> to vector<2x32xbf16>
    %261 = vector.shape_cast %257 : vector<2x32xbf16> to vector<1x2x32xbf16>
    tpu.vector_store %arg7[%258, %c0_78, %c32_79], %261 {strides = array<i32>} : memref<8x2x96xbf16, #tpu.memory_space<vmem>>, vector<1x2x32xbf16>,
    %262 = arith.truncf %251 : vector<2x32xf32> to vector<2x32xbf16>
    %263 = arith.index_cast %c2_i32 : i32 to index
    %c0_80 = arith.constant 0 : index
    %c64_81 = arith.constant 64 : index
    %264 = vector.load %arg7[%263, %c0_80, %c64_81] : memref<8x2x96xbf16, #tpu.memory_space<vmem>>, vector<1x2x32xbf16>
    %265 = vector.shape_cast %264 : vector<1x2x32xbf16> to vector<2x32xbf16>
    %266 = vector.shape_cast %262 : vector<2x32xbf16> to vector<1x2x32xbf16>
    tpu.vector_store %arg7[%263, %c0_80, %c64_81], %266 {strides = array<i32>} : memref<8x2x96xbf16, #tpu.memory_space<vmem>>, vector<1x2x32xbf16>,
    %c3_i32 = arith.constant 3 : i32
    %267 = arith.index_cast %c3_i32 : i32 to index
    %c0_82 = arith.constant 0 : index
    %c0_83 = arith.constant 0 : index
    %268 = vector.load %arg1[%267, %c0_82, %c0_83] : memref<8x2x96xf32, #tpu.memory_space<vmem>>, vector<1x2x96xf32>
    %269 = vector.shape_cast %268 : vector<1x2x96xf32> to vector<2x96xf32>
    %c0_84 = arith.constant 0 : index
    %c0_85 = arith.constant 0 : index
    %270 = vector.load %arg9[%c0_84, %c0_85] : memref<2x32xf32, #tpu.memory_space<vmem>>, vector<2x32xf32>
    %cst_86 = arith.constant dense<0.000000e+00> : vector<2x96xf32>
    %271 = tpu.matmul %270, %3, %cst_86 {dimension_numbers = #tpu.dot_dimension_numbers<[1], [0], [0], [1], [0, 0, 1, 1], [], []>} : vector<2x32xf32>, vector<32x96xf32>, vector<2x96xf32> -> vector<2x96xf32>
    %272 = vector.broadcast %4 : vector<1x96xf32> to vector<2x96xf32>
    %273 = arith.addf %271, %272 : vector<2x96xf32>
    %274 = vector.extract_strided_slice %269 {offsets = [0, 0], sizes = [2, 32], strides = [1, 1]} : vector<2x96xf32> to vector<2x32xf32>
    %275 = vector.extract_strided_slice %273 {offsets = [0, 0], sizes = [2, 32], strides = [1, 1]} : vector<2x96xf32> to vector<2x32xf32>
    %276 = arith.addf %274, %275 : vector<2x32xf32>
    %277 = arith.negf %276 : vector<2x32xf32>
    %278 = math.exp %277 : vector<2x32xf32>
    %cst_87 = arith.constant 1.000000e+00 : f32
    %279 = vector.broadcast %cst_87 : f32 to vector<2x32xf32>
    %280 = arith.addf %279, %278 : vector<2x32xf32>
    %281 = arith.divf %279, %280 : vector<2x32xf32>
    %282 = vector.extract_strided_slice %269 {offsets = [0, 32], sizes = [2, 32], strides = [1, 1]} : vector<2x96xf32> to vector<2x32xf32>
    %283 = vector.extract_strided_slice %273 {offsets = [0, 32], sizes = [2, 32], strides = [1, 1]} : vector<2x96xf32> to vector<2x32xf32>
    %284 = arith.addf %282, %283 : vector<2x32xf32>
    %285 = arith.negf %284 : vector<2x32xf32>
    %286 = math.exp %285 : vector<2x32xf32>
    %cst_88 = arith.constant 1.000000e+00 : f32
    %287 = vector.broadcast %cst_88 : f32 to vector<2x32xf32>
    %288 = arith.addf %287, %286 : vector<2x32xf32>
    %289 = arith.divf %287, %288 : vector<2x32xf32>
    %290 = vector.extract_strided_slice %269 {offsets = [0, 64], sizes = [2, 32], strides = [1, 1]} : vector<2x96xf32> to vector<2x32xf32>
    %291 = vector.extract_strided_slice %273 {offsets = [0, 64], sizes = [2, 32], strides = [1, 1]} : vector<2x96xf32> to vector<2x32xf32>
    %292 = arith.mulf %281, %291 : vector<2x32xf32>
    %293 = arith.addf %290, %292 : vector<2x32xf32>
    %294 = math.tanh %293 : vector<2x32xf32>
    %cst_89 = arith.constant 1.000000e+00 : f32
    %295 = vector.broadcast %cst_89 : f32 to vector<2x32xf32>
    %296 = arith.subf %295, %289 : vector<2x32xf32>
    %297 = arith.mulf %296, %294 : vector<2x32xf32>
    %298 = arith.mulf %289, %270 : vector<2x32xf32>
    %299 = arith.addf %297, %298 : vector<2x32xf32>
    %c0_90 = arith.constant 0 : index
    %c0_91 = arith.constant 0 : index
    %300 = vector.load %arg9[%c0_90, %c0_91] : memref<2x32xf32, #tpu.memory_space<vmem>>, vector<2x32xf32>
    tpu.vector_store %arg9[%c0_90, %c0_91], %299 {strides = array<i32>} : memref<2x32xf32, #tpu.memory_space<vmem>>, vector<2x32xf32>,
    %301 = arith.truncf %299 : vector<2x32xf32> to vector<2x32xbf16>
    %302 = vector.shape_cast %301 : vector<2x32xbf16> to vector<2x1x32xbf16>
    "tpu.trace_start"() <{level = 10 : i32, message = "bqh,bnh->bqn"}> : () -> ()
    %cst_92 = arith.constant dense<0.000000e+00> : vector<2x1x26xf32>
    %303 = tpu.matmul %302, %5, %cst_92 {dimension_numbers = #tpu.dot_dimension_numbers<[2], [2], [1], [1], [0, 0, 0, 1, 1, 1], [0], [0]>} : vector<2x1x32xbf16>, vector<2x26x32xbf16>, vector<2x1x26xf32> -> vector<2x1x26xf32>
    "tpu.trace_stop"() : () -> ()
    %304 = vector.shape_cast %303 : vector<2x1x26xf32> to vector<2x26xf32>
    %305 = arith.addf %304, %8 : vector<2x26xf32>
    %306 = vector.extract_strided_slice %305 {offsets = [0, 0], sizes = [2, 8], strides = [1, 1]} : vector<2x26xf32> to vector<2x8xf32>
    %cst_93 = arith.constant dense<0xFF800000> : vector<2xf32>
    %307 = vector.multi_reduction <maximumf>, %306, %cst_93 [1] : vector<2x8xf32> to vector<2xf32>
    %cst_94 = arith.constant 0xFF800000 : f32
    %308 = vector.broadcast %cst_94 : f32 to vector<2xf32>
    %309 = arith.maximumf %308, %307 : vector<2xf32>
    %310 = vector.shape_cast %309 : vector<2xf32> to vector<2x1xf32>
    %311 = vector.broadcast %310 : vector<2x1xf32> to vector<2x8xf32>
    %312 = arith.subf %306, %311 : vector<2x8xf32>
    %313 = math.exp %312 : vector<2x8xf32>
    %cst_95 = arith.constant dense<0.000000e+00> : vector<2xf32>
    %314 = vector.multi_reduction <add>, %313, %cst_95 [1] : vector<2x8xf32> to vector<2xf32>
    %315 = vector.shape_cast %314 : vector<2xf32> to vector<2x1xf32>
    %316 = vector.broadcast %315 : vector<2x1xf32> to vector<2x8xf32>
    %317 = arith.divf %313, %316 : vector<2x8xf32>
    %318 = arith.truncf %317 : vector<2x8xf32> to vector<2x8xbf16>
    %319 = vector.extract_strided_slice %305 {offsets = [0, 8], sizes = [2, 18], strides = [1, 1]} : vector<2x26xf32> to vector<2x18xf32>
    %cst_96 = arith.constant dense<0xFF800000> : vector<2xf32>
    %320 = vector.multi_reduction <maximumf>, %319, %cst_96 [1] : vector<2x18xf32> to vector<2xf32>
    %cst_97 = arith.constant 0xFF800000 : f32
    %321 = vector.broadcast %cst_97 : f32 to vector<2xf32>
    %322 = arith.maximumf %321, %320 : vector<2xf32>
    %323 = vector.shape_cast %322 : vector<2xf32> to vector<2x1xf32>
    %324 = vector.broadcast %323 : vector<2x1xf32> to vector<2x18xf32>
    %325 = arith.subf %319, %324 : vector<2x18xf32>
    %326 = math.exp %325 : vector<2x18xf32>
    %cst_98 = arith.constant dense<0.000000e+00> : vector<2xf32>
    %327 = vector.multi_reduction <add>, %326, %cst_98 [1] : vector<2x18xf32> to vector<2xf32>
    %328 = vector.shape_cast %327 : vector<2xf32> to vector<2x1xf32>
    %329 = vector.broadcast %328 : vector<2x1xf32> to vector<2x18xf32>
    %330 = arith.divf %326, %329 : vector<2x18xf32>
    %331 = arith.truncf %330 : vector<2x18xf32> to vector<2x18xbf16>
    %332 = vector.shape_cast %318 : vector<2x8xbf16> to vector<2x1x8xbf16>
    "tpu.trace_start"() <{level = 10 : i32, message = "bqn,bnh->bqh"}> : () -> ()
    %cst_99 = arith.constant dense<0.000000e+00> : vector<2x1x32xf32>
    %333 = tpu.matmul %332, %6, %cst_99 {dimension_numbers = #tpu.dot_dimension_numbers<[2], [1], [1], [2], [0, 0, 0, 1, 1, 2], [0], [0]>} : vector<2x1x8xbf16>, vector<2x8x32xbf16>, vector<2x1x32xf32> -> vector<2x1x32xf32>
    "tpu.trace_stop"() : () -> ()
    %334 = vector.shape_cast %333 : vector<2x1x32xf32> to vector<2x32xf32>
    %335 = vector.shape_cast %331 : vector<2x18xbf16> to vector<2x1x18xbf16>
    "tpu.trace_start"() <{level = 10 : i32, message = "bqn,bnh->bqh"}> : () -> ()
    %cst_100 = arith.constant dense<0.000000e+00> : vector<2x1x32xf32>
    %336 = tpu.matmul %335, %7, %cst_100 {dimension_numbers = #tpu.dot_dimension_numbers<[2], [1], [1], [2], [0, 0, 0, 1, 1, 2], [0], [0]>} : vector<2x1x18xbf16>, vector<2x18x32xbf16>, vector<2x1x32xf32> -> vector<2x1x32xf32>
    "tpu.trace_stop"() : () -> ()
    %337 = vector.shape_cast %336 : vector<2x1x32xf32> to vector<2x32xf32>
    %338 = arith.truncf %299 : vector<2x32xf32> to vector<2x32xbf16>
    %339 = arith.index_cast %c3_i32 : i32 to index
    %c0_101 = arith.constant 0 : index
    %c0_102 = arith.constant 0 : index
    %340 = vector.load %arg7[%339, %c0_101, %c0_102] : memref<8x2x96xbf16, #tpu.memory_space<vmem>>, vector<1x2x32xbf16>
    %341 = vector.shape_cast %340 : vector<1x2x32xbf16> to vector<2x32xbf16>
    %342 = vector.shape_cast %338 : vector<2x32xbf16> to vector<1x2x32xbf16>
    tpu.vector_store %arg7[%339, %c0_101, %c0_102], %342 {strides = array<i32>} : memref<8x2x96xbf16, #tpu.memory_space<vmem>>, vector<1x2x32xbf16>,
    %343 = arith.truncf %334 : vector<2x32xf32> to vector<2x32xbf16>
    %344 = arith.index_cast %c3_i32 : i32 to index
    %c0_103 = arith.constant 0 : index
    %c32_104 = arith.constant 32 : index
    %345 = vector.load %arg7[%344, %c0_103, %c32_104] : memref<8x2x96xbf16, #tpu.memory_space<vmem>>, vector<1x2x32xbf16>
    %346 = vector.shape_cast %345 : vector<1x2x32xbf16> to vector<2x32xbf16>
    %347 = vector.shape_cast %343 : vector<2x32xbf16> to vector<1x2x32xbf16>
    tpu.vector_store %arg7[%344, %c0_103, %c32_104], %347 {strides = array<i32>} : memref<8x2x96xbf16, #tpu.memory_space<vmem>>, vector<1x2x32xbf16>,
    %348 = arith.truncf %337 : vector<2x32xf32> to vector<2x32xbf16>
    %349 = arith.index_cast %c3_i32 : i32 to index
    %c0_105 = arith.constant 0 : index
    %c64_106 = arith.constant 64 : index
    %350 = vector.load %arg7[%349, %c0_105, %c64_106] : memref<8x2x96xbf16, #tpu.memory_space<vmem>>, vector<1x2x32xbf16>
    %351 = vector.shape_cast %350 : vector<1x2x32xbf16> to vector<2x32xbf16>
    %352 = vector.shape_cast %348 : vector<2x32xbf16> to vector<1x2x32xbf16>
    tpu.vector_store %arg7[%349, %c0_105, %c64_106], %352 {strides = array<i32>} : memref<8x2x96xbf16, #tpu.memory_space<vmem>>, vector<1x2x32xbf16>,
    %c4_i32 = arith.constant 4 : i32
    %353 = arith.index_cast %c4_i32 : i32 to index
    %c0_107 = arith.constant 0 : index
    %c0_108 = arith.constant 0 : index
    %354 = vector.load %arg1[%353, %c0_107, %c0_108] : memref<8x2x96xf32, #tpu.memory_space<vmem>>, vector<1x2x96xf32>
    %355 = vector.shape_cast %354 : vector<1x2x96xf32> to vector<2x96xf32>
    %c0_109 = arith.constant 0 : index
    %c0_110 = arith.constant 0 : index
    %356 = vector.load %arg9[%c0_109, %c0_110] : memref<2x32xf32, #tpu.memory_space<vmem>>, vector<2x32xf32>
    %cst_111 = arith.constant dense<0.000000e+00> : vector<2x96xf32>
    %357 = tpu.matmul %356, %3, %cst_111 {dimension_numbers = #tpu.dot_dimension_numbers<[1], [0], [0], [1], [0, 0, 1, 1], [], []>} : vector<2x32xf32>, vector<32x96xf32>, vector<2x96xf32> -> vector<2x96xf32>
    %358 = vector.broadcast %4 : vector<1x96xf32> to vector<2x96xf32>
    %359 = arith.addf %357, %358 : vector<2x96xf32>
    %360 = vector.extract_strided_slice %355 {offsets = [0, 0], sizes = [2, 32], strides = [1, 1]} : vector<2x96xf32> to vector<2x32xf32>
    %361 = vector.extract_strided_slice %359 {offsets = [0, 0], sizes = [2, 32], strides = [1, 1]} : vector<2x96xf32> to vector<2x32xf32>
    %362 = arith.addf %360, %361 : vector<2x32xf32>
    %363 = arith.negf %362 : vector<2x32xf32>
    %364 = math.exp %363 : vector<2x32xf32>
    %cst_112 = arith.constant 1.000000e+00 : f32
    %365 = vector.broadcast %cst_112 : f32 to vector<2x32xf32>
    %366 = arith.addf %365, %364 : vector<2x32xf32>
    %367 = arith.divf %365, %366 : vector<2x32xf32>
    %368 = vector.extract_strided_slice %355 {offsets = [0, 32], sizes = [2, 32], strides = [1, 1]} : vector<2x96xf32> to vector<2x32xf32>
    %369 = vector.extract_strided_slice %359 {offsets = [0, 32], sizes = [2, 32], strides = [1, 1]} : vector<2x96xf32> to vector<2x32xf32>
    %370 = arith.addf %368, %369 : vector<2x32xf32>
    %371 = arith.negf %370 : vector<2x32xf32>
    %372 = math.exp %371 : vector<2x32xf32>
    %cst_113 = arith.constant 1.000000e+00 : f32
    %373 = vector.broadcast %cst_113 : f32 to vector<2x32xf32>
    %374 = arith.addf %373, %372 : vector<2x32xf32>
    %375 = arith.divf %373, %374 : vector<2x32xf32>
    %376 = vector.extract_strided_slice %355 {offsets = [0, 64], sizes = [2, 32], strides = [1, 1]} : vector<2x96xf32> to vector<2x32xf32>
    %377 = vector.extract_strided_slice %359 {offsets = [0, 64], sizes = [2, 32], strides = [1, 1]} : vector<2x96xf32> to vector<2x32xf32>
    %378 = arith.mulf %367, %377 : vector<2x32xf32>
    %379 = arith.addf %376, %378 : vector<2x32xf32>
    %380 = math.tanh %379 : vector<2x32xf32>
    %cst_114 = arith.constant 1.000000e+00 : f32
    %381 = vector.broadcast %cst_114 : f32 to vector<2x32xf32>
    %382 = arith.subf %381, %375 : vector<2x32xf32>
    %383 = arith.mulf %382, %380 : vector<2x32xf32>
    %384 = arith.mulf %375, %356 : vector<2x32xf32>
    %385 = arith.addf %383, %384 : vector<2x32xf32>
    %c0_115 = arith.constant 0 : index
    %c0_116 = arith.constant 0 : index
    %386 = vector.load %arg9[%c0_115, %c0_116] : memref<2x32xf32, #tpu.memory_space<vmem>>, vector<2x32xf32>
    tpu.vector_store %arg9[%c0_115, %c0_116], %385 {strides = array<i32>} : memref<2x32xf32, #tpu.memory_space<vmem>>, vector<2x32xf32>,
    %387 = arith.truncf %385 : vector<2x32xf32> to vector<2x32xbf16>
    %388 = vector.shape_cast %387 : vector<2x32xbf16> to vector<2x1x32xbf16>
    "tpu.trace_start"() <{level = 10 : i32, message = "bqh,bnh->bqn"}> : () -> ()
    %cst_117 = arith.constant dense<0.000000e+00> : vector<2x1x26xf32>
    %389 = tpu.matmul %388, %5, %cst_117 {dimension_numbers = #tpu.dot_dimension_numbers<[2], [2], [1], [1], [0, 0, 0, 1, 1, 1], [0], [0]>} : vector<2x1x32xbf16>, vector<2x26x32xbf16>, vector<2x1x26xf32> -> vector<2x1x26xf32>
    "tpu.trace_stop"() : () -> ()
    %390 = vector.shape_cast %389 : vector<2x1x26xf32> to vector<2x26xf32>
    %391 = arith.addf %390, %8 : vector<2x26xf32>
    %392 = vector.extract_strided_slice %391 {offsets = [0, 0], sizes = [2, 8], strides = [1, 1]} : vector<2x26xf32> to vector<2x8xf32>
    %cst_118 = arith.constant dense<0xFF800000> : vector<2xf32>
    %393 = vector.multi_reduction <maximumf>, %392, %cst_118 [1] : vector<2x8xf32> to vector<2xf32>
    %cst_119 = arith.constant 0xFF800000 : f32
    %394 = vector.broadcast %cst_119 : f32 to vector<2xf32>
    %395 = arith.maximumf %394, %393 : vector<2xf32>
    %396 = vector.shape_cast %395 : vector<2xf32> to vector<2x1xf32>
    %397 = vector.broadcast %396 : vector<2x1xf32> to vector<2x8xf32>
    %398 = arith.subf %392, %397 : vector<2x8xf32>
    %399 = math.exp %398 : vector<2x8xf32>
    %cst_120 = arith.constant dense<0.000000e+00> : vector<2xf32>
    %400 = vector.multi_reduction <add>, %399, %cst_120 [1] : vector<2x8xf32> to vector<2xf32>
    %401 = vector.shape_cast %400 : vector<2xf32> to vector<2x1xf32>
    %402 = vector.broadcast %401 : vector<2x1xf32> to vector<2x8xf32>
    %403 = arith.divf %399, %402 : vector<2x8xf32>
    %404 = arith.truncf %403 : vector<2x8xf32> to vector<2x8xbf16>
    %405 = vector.extract_strided_slice %391 {offsets = [0, 8], sizes = [2, 18], strides = [1, 1]} : vector<2x26xf32> to vector<2x18xf32>
    %cst_121 = arith.constant dense<0xFF800000> : vector<2xf32>
    %406 = vector.multi_reduction <maximumf>, %405, %cst_121 [1] : vector<2x18xf32> to vector<2xf32>
    %cst_122 = arith.constant 0xFF800000 : f32
    %407 = vector.broadcast %cst_122 : f32 to vector<2xf32>
    %408 = arith.maximumf %407, %406 : vector<2xf32>
    %409 = vector.shape_cast %408 : vector<2xf32> to vector<2x1xf32>
    %410 = vector.broadcast %409 : vector<2x1xf32> to vector<2x18xf32>
    %411 = arith.subf %405, %410 : vector<2x18xf32>
    %412 = math.exp %411 : vector<2x18xf32>
    %cst_123 = arith.constant dense<0.000000e+00> : vector<2xf32>
    %413 = vector.multi_reduction <add>, %412, %cst_123 [1] : vector<2x18xf32> to vector<2xf32>
    %414 = vector.shape_cast %413 : vector<2xf32> to vector<2x1xf32>
    %415 = vector.broadcast %414 : vector<2x1xf32> to vector<2x18xf32>
    %416 = arith.divf %412, %415 : vector<2x18xf32>
    %417 = arith.truncf %416 : vector<2x18xf32> to vector<2x18xbf16>
    %418 = vector.shape_cast %404 : vector<2x8xbf16> to vector<2x1x8xbf16>
    "tpu.trace_start"() <{level = 10 : i32, message = "bqn,bnh->bqh"}> : () -> ()
    %cst_124 = arith.constant dense<0.000000e+00> : vector<2x1x32xf32>
    %419 = tpu.matmul %418, %6, %cst_124 {dimension_numbers = #tpu.dot_dimension_numbers<[2], [1], [1], [2], [0, 0, 0, 1, 1, 2], [0], [0]>} : vector<2x1x8xbf16>, vector<2x8x32xbf16>, vector<2x1x32xf32> -> vector<2x1x32xf32>
    "tpu.trace_stop"() : () -> ()
    %420 = vector.shape_cast %419 : vector<2x1x32xf32> to vector<2x32xf32>
    %421 = vector.shape_cast %417 : vector<2x18xbf16> to vector<2x1x18xbf16>
    "tpu.trace_start"() <{level = 10 : i32, message = "bqn,bnh->bqh"}> : () -> ()
    %cst_125 = arith.constant dense<0.000000e+00> : vector<2x1x32xf32>
    %422 = tpu.matmul %421, %7, %cst_125 {dimension_numbers = #tpu.dot_dimension_numbers<[2], [1], [1], [2], [0, 0, 0, 1, 1, 2], [0], [0]>} : vector<2x1x18xbf16>, vector<2x18x32xbf16>, vector<2x1x32xf32> -> vector<2x1x32xf32>
    "tpu.trace_stop"() : () -> ()
    %423 = vector.shape_cast %422 : vector<2x1x32xf32> to vector<2x32xf32>
    %424 = arith.truncf %385 : vector<2x32xf32> to vector<2x32xbf16>
    %425 = arith.index_cast %c4_i32 : i32 to index
    %c0_126 = arith.constant 0 : index
    %c0_127 = arith.constant 0 : index
    %426 = vector.load %arg7[%425, %c0_126, %c0_127] : memref<8x2x96xbf16, #tpu.memory_space<vmem>>, vector<1x2x32xbf16>
    %427 = vector.shape_cast %426 : vector<1x2x32xbf16> to vector<2x32xbf16>
    %428 = vector.shape_cast %424 : vector<2x32xbf16> to vector<1x2x32xbf16>
    tpu.vector_store %arg7[%425, %c0_126, %c0_127], %428 {strides = array<i32>} : memref<8x2x96xbf16, #tpu.memory_space<vmem>>, vector<1x2x32xbf16>,
    %429 = arith.truncf %420 : vector<2x32xf32> to vector<2x32xbf16>
    %430 = arith.index_cast %c4_i32 : i32 to index
    %c0_128 = arith.constant 0 : index
    %c32_129 = arith.constant 32 : index
    %431 = vector.load %arg7[%430, %c0_128, %c32_129] : memref<8x2x96xbf16, #tpu.memory_space<vmem>>, vector<1x2x32xbf16>
    %432 = vector.shape_cast %431 : vector<1x2x32xbf16> to vector<2x32xbf16>
    %433 = vector.shape_cast %429 : vector<2x32xbf16> to vector<1x2x32xbf16>
    tpu.vector_store %arg7[%430, %c0_128, %c32_129], %433 {strides = array<i32>} : memref<8x2x96xbf16, #tpu.memory_space<vmem>>, vector<1x2x32xbf16>,
    %434 = arith.truncf %423 : vector<2x32xf32> to vector<2x32xbf16>
    %435 = arith.index_cast %c4_i32 : i32 to index
    %c0_130 = arith.constant 0 : index
    %c64_131 = arith.constant 64 : index
    %436 = vector.load %arg7[%435, %c0_130, %c64_131] : memref<8x2x96xbf16, #tpu.memory_space<vmem>>, vector<1x2x32xbf16>
    %437 = vector.shape_cast %436 : vector<1x2x32xbf16> to vector<2x32xbf16>
    %438 = vector.shape_cast %434 : vector<2x32xbf16> to vector<1x2x32xbf16>
    tpu.vector_store %arg7[%435, %c0_130, %c64_131], %438 {strides = array<i32>} : memref<8x2x96xbf16, #tpu.memory_space<vmem>>, vector<1x2x32xbf16>,
    %c5_i32 = arith.constant 5 : i32
    %439 = arith.index_cast %c5_i32 : i32 to index
    %c0_132 = arith.constant 0 : index
    %c0_133 = arith.constant 0 : index
    %440 = vector.load %arg1[%439, %c0_132, %c0_133] : memref<8x2x96xf32, #tpu.memory_space<vmem>>, vector<1x2x96xf32>
    %441 = vector.shape_cast %440 : vector<1x2x96xf32> to vector<2x96xf32>
    %c0_134 = arith.constant 0 : index
    %c0_135 = arith.constant 0 : index
    %442 = vector.load %arg9[%c0_134, %c0_135] : memref<2x32xf32, #tpu.memory_space<vmem>>, vector<2x32xf32>
    %cst_136 = arith.constant dense<0.000000e+00> : vector<2x96xf32>
    %443 = tpu.matmul %442, %3, %cst_136 {dimension_numbers = #tpu.dot_dimension_numbers<[1], [0], [0], [1], [0, 0, 1, 1], [], []>} : vector<2x32xf32>, vector<32x96xf32>, vector<2x96xf32> -> vector<2x96xf32>
    %444 = vector.broadcast %4 : vector<1x96xf32> to vector<2x96xf32>
    %445 = arith.addf %443, %444 : vector<2x96xf32>
    %446 = vector.extract_strided_slice %441 {offsets = [0, 0], sizes = [2, 32], strides = [1, 1]} : vector<2x96xf32> to vector<2x32xf32>
    %447 = vector.extract_strided_slice %445 {offsets = [0, 0], sizes = [2, 32], strides = [1, 1]} : vector<2x96xf32> to vector<2x32xf32>
    %448 = arith.addf %446, %447 : vector<2x32xf32>
    %449 = arith.negf %448 : vector<2x32xf32>
    %450 = math.exp %449 : vector<2x32xf32>
    %cst_137 = arith.constant 1.000000e+00 : f32
    %451 = vector.broadcast %cst_137 : f32 to vector<2x32xf32>
    %452 = arith.addf %451, %450 : vector<2x32xf32>
    %453 = arith.divf %451, %452 : vector<2x32xf32>
    %454 = vector.extract_strided_slice %441 {offsets = [0, 32], sizes = [2, 32], strides = [1, 1]} : vector<2x96xf32> to vector<2x32xf32>
    %455 = vector.extract_strided_slice %445 {offsets = [0, 32], sizes = [2, 32], strides = [1, 1]} : vector<2x96xf32> to vector<2x32xf32>
    %456 = arith.addf %454, %455 : vector<2x32xf32>
    %457 = arith.negf %456 : vector<2x32xf32>
    %458 = math.exp %457 : vector<2x32xf32>
    %cst_138 = arith.constant 1.000000e+00 : f32
    %459 = vector.broadcast %cst_138 : f32 to vector<2x32xf32>
    %460 = arith.addf %459, %458 : vector<2x32xf32>
    %461 = arith.divf %459, %460 : vector<2x32xf32>
    %462 = vector.extract_strided_slice %441 {offsets = [0, 64], sizes = [2, 32], strides = [1, 1]} : vector<2x96xf32> to vector<2x32xf32>
    %463 = vector.extract_strided_slice %445 {offsets = [0, 64], sizes = [2, 32], strides = [1, 1]} : vector<2x96xf32> to vector<2x32xf32>
    %464 = arith.mulf %453, %463 : vector<2x32xf32>
    %465 = arith.addf %462, %464 : vector<2x32xf32>
    %466 = math.tanh %465 : vector<2x32xf32>
    %cst_139 = arith.constant 1.000000e+00 : f32
    %467 = vector.broadcast %cst_139 : f32 to vector<2x32xf32>
    %468 = arith.subf %467, %461 : vector<2x32xf32>
    %469 = arith.mulf %468, %466 : vector<2x32xf32>
    %470 = arith.mulf %461, %442 : vector<2x32xf32>
    %471 = arith.addf %469, %470 : vector<2x32xf32>
    %c0_140 = arith.constant 0 : index
    %c0_141 = arith.constant 0 : index
    %472 = vector.load %arg9[%c0_140, %c0_141] : memref<2x32xf32, #tpu.memory_space<vmem>>, vector<2x32xf32>
    tpu.vector_store %arg9[%c0_140, %c0_141], %471 {strides = array<i32>} : memref<2x32xf32, #tpu.memory_space<vmem>>, vector<2x32xf32>,
    %473 = arith.truncf %471 : vector<2x32xf32> to vector<2x32xbf16>
    %474 = vector.shape_cast %473 : vector<2x32xbf16> to vector<2x1x32xbf16>
    "tpu.trace_start"() <{level = 10 : i32, message = "bqh,bnh->bqn"}> : () -> ()
    %cst_142 = arith.constant dense<0.000000e+00> : vector<2x1x26xf32>
    %475 = tpu.matmul %474, %5, %cst_142 {dimension_numbers = #tpu.dot_dimension_numbers<[2], [2], [1], [1], [0, 0, 0, 1, 1, 1], [0], [0]>} : vector<2x1x32xbf16>, vector<2x26x32xbf16>, vector<2x1x26xf32> -> vector<2x1x26xf32>
    "tpu.trace_stop"() : () -> ()
    %476 = vector.shape_cast %475 : vector<2x1x26xf32> to vector<2x26xf32>
    %477 = arith.addf %476, %8 : vector<2x26xf32>
    %478 = vector.extract_strided_slice %477 {offsets = [0, 0], sizes = [2, 8], strides = [1, 1]} : vector<2x26xf32> to vector<2x8xf32>
    %cst_143 = arith.constant dense<0xFF800000> : vector<2xf32>
    %479 = vector.multi_reduction <maximumf>, %478, %cst_143 [1] : vector<2x8xf32> to vector<2xf32>
    %cst_144 = arith.constant 0xFF800000 : f32
    %480 = vector.broadcast %cst_144 : f32 to vector<2xf32>
    %481 = arith.maximumf %480, %479 : vector<2xf32>
    %482 = vector.shape_cast %481 : vector<2xf32> to vector<2x1xf32>
    %483 = vector.broadcast %482 : vector<2x1xf32> to vector<2x8xf32>
    %484 = arith.subf %478, %483 : vector<2x8xf32>
    %485 = math.exp %484 : vector<2x8xf32>
    %cst_145 = arith.constant dense<0.000000e+00> : vector<2xf32>
    %486 = vector.multi_reduction <add>, %485, %cst_145 [1] : vector<2x8xf32> to vector<2xf32>
    %487 = vector.shape_cast %486 : vector<2xf32> to vector<2x1xf32>
    %488 = vector.broadcast %487 : vector<2x1xf32> to vector<2x8xf32>
    %489 = arith.divf %485, %488 : vector<2x8xf32>
    %490 = arith.truncf %489 : vector<2x8xf32> to vector<2x8xbf16>
    %491 = vector.extract_strided_slice %477 {offsets = [0, 8], sizes = [2, 18], strides = [1, 1]} : vector<2x26xf32> to vector<2x18xf32>
    %cst_146 = arith.constant dense<0xFF800000> : vector<2xf32>
    %492 = vector.multi_reduction <maximumf>, %491, %cst_146 [1] : vector<2x18xf32> to vector<2xf32>
    %cst_147 = arith.constant 0xFF800000 : f32
    %493 = vector.broadcast %cst_147 : f32 to vector<2xf32>
    %494 = arith.maximumf %493, %492 : vector<2xf32>
    %495 = vector.shape_cast %494 : vector<2xf32> to vector<2x1xf32>
    %496 = vector.broadcast %495 : vector<2x1xf32> to vector<2x18xf32>
    %497 = arith.subf %491, %496 : vector<2x18xf32>
    %498 = math.exp %497 : vector<2x18xf32>
    %cst_148 = arith.constant dense<0.000000e+00> : vector<2xf32>
    %499 = vector.multi_reduction <add>, %498, %cst_148 [1] : vector<2x18xf32> to vector<2xf32>
    %500 = vector.shape_cast %499 : vector<2xf32> to vector<2x1xf32>
    %501 = vector.broadcast %500 : vector<2x1xf32> to vector<2x18xf32>
    %502 = arith.divf %498, %501 : vector<2x18xf32>
    %503 = arith.truncf %502 : vector<2x18xf32> to vector<2x18xbf16>
    %504 = vector.shape_cast %490 : vector<2x8xbf16> to vector<2x1x8xbf16>
    "tpu.trace_start"() <{level = 10 : i32, message = "bqn,bnh->bqh"}> : () -> ()
    %cst_149 = arith.constant dense<0.000000e+00> : vector<2x1x32xf32>
    %505 = tpu.matmul %504, %6, %cst_149 {dimension_numbers = #tpu.dot_dimension_numbers<[2], [1], [1], [2], [0, 0, 0, 1, 1, 2], [0], [0]>} : vector<2x1x8xbf16>, vector<2x8x32xbf16>, vector<2x1x32xf32> -> vector<2x1x32xf32>
    "tpu.trace_stop"() : () -> ()
    %506 = vector.shape_cast %505 : vector<2x1x32xf32> to vector<2x32xf32>
    %507 = vector.shape_cast %503 : vector<2x18xbf16> to vector<2x1x18xbf16>
    "tpu.trace_start"() <{level = 10 : i32, message = "bqn,bnh->bqh"}> : () -> ()
    %cst_150 = arith.constant dense<0.000000e+00> : vector<2x1x32xf32>
    %508 = tpu.matmul %507, %7, %cst_150 {dimension_numbers = #tpu.dot_dimension_numbers<[2], [1], [1], [2], [0, 0, 0, 1, 1, 2], [0], [0]>} : vector<2x1x18xbf16>, vector<2x18x32xbf16>, vector<2x1x32xf32> -> vector<2x1x32xf32>
    "tpu.trace_stop"() : () -> ()
    %509 = vector.shape_cast %508 : vector<2x1x32xf32> to vector<2x32xf32>
    %510 = arith.truncf %471 : vector<2x32xf32> to vector<2x32xbf16>
    %511 = arith.index_cast %c5_i32 : i32 to index
    %c0_151 = arith.constant 0 : index
    %c0_152 = arith.constant 0 : index
    %512 = vector.load %arg7[%511, %c0_151, %c0_152] : memref<8x2x96xbf16, #tpu.memory_space<vmem>>, vector<1x2x32xbf16>
    %513 = vector.shape_cast %512 : vector<1x2x32xbf16> to vector<2x32xbf16>
    %514 = vector.shape_cast %510 : vector<2x32xbf16> to vector<1x2x32xbf16>
    tpu.vector_store %arg7[%511, %c0_151, %c0_152], %514 {strides = array<i32>} : memref<8x2x96xbf16, #tpu.memory_space<vmem>>, vector<1x2x32xbf16>,
    %515 = arith.truncf %506 : vector<2x32xf32> to vector<2x32xbf16>
    %516 = arith.index_cast %c5_i32 : i32 to index
    %c0_153 = arith.constant 0 : index
    %c32_154 = arith.constant 32 : index
    %517 = vector.load %arg7[%516, %c0_153, %c32_154] : memref<8x2x96xbf16, #tpu.memory_space<vmem>>, vector<1x2x32xbf16>
    %518 = vector.shape_cast %517 : vector<1x2x32xbf16> to vector<2x32xbf16>
    %519 = vector.shape_cast %515 : vector<2x32xbf16> to vector<1x2x32xbf16>
    tpu.vector_store %arg7[%516, %c0_153, %c32_154], %519 {strides = array<i32>} : memref<8x2x96xbf16, #tpu.memory_space<vmem>>, vector<1x2x32xbf16>,
    %520 = arith.truncf %509 : vector<2x32xf32> to vector<2x32xbf16>
    %521 = arith.index_cast %c5_i32 : i32 to index
    %c0_155 = arith.constant 0 : index
    %c64_156 = arith.constant 64 : index
    %522 = vector.load %arg7[%521, %c0_155, %c64_156] : memref<8x2x96xbf16, #tpu.memory_space<vmem>>, vector<1x2x32xbf16>
    %523 = vector.shape_cast %522 : vector<1x2x32xbf16> to vector<2x32xbf16>
    %524 = vector.shape_cast %520 : vector<2x32xbf16> to vector<1x2x32xbf16>
    tpu.vector_store %arg7[%521, %c0_155, %c64_156], %524 {strides = array<i32>} : memref<8x2x96xbf16, #tpu.memory_space<vmem>>, vector<1x2x32xbf16>,
    %c6_i32 = arith.constant 6 : i32
    %525 = arith.index_cast %c6_i32 : i32 to index
    %c0_157 = arith.constant 0 : index
    %c0_158 = arith.constant 0 : index
    %526 = vector.load %arg1[%525, %c0_157, %c0_158] : memref<8x2x96xf32, #tpu.memory_space<vmem>>, vector<1x2x96xf32>
    %527 = vector.shape_cast %526 : vector<1x2x96xf32> to vector<2x96xf32>
    %c0_159 = arith.constant 0 : index
    %c0_160 = arith.constant 0 : index
    %528 = vector.load %arg9[%c0_159, %c0_160] : memref<2x32xf32, #tpu.memory_space<vmem>>, vector<2x32xf32>
    %cst_161 = arith.constant dense<0.000000e+00> : vector<2x96xf32>
    %529 = tpu.matmul %528, %3, %cst_161 {dimension_numbers = #tpu.dot_dimension_numbers<[1], [0], [0], [1], [0, 0, 1, 1], [], []>} : vector<2x32xf32>, vector<32x96xf32>, vector<2x96xf32> -> vector<2x96xf32>
    %530 = vector.broadcast %4 : vector<1x96xf32> to vector<2x96xf32>
    %531 = arith.addf %529, %530 : vector<2x96xf32>
    %532 = vector.extract_strided_slice %527 {offsets = [0, 0], sizes = [2, 32], strides = [1, 1]} : vector<2x96xf32> to vector<2x32xf32>
    %533 = vector.extract_strided_slice %531 {offsets = [0, 0], sizes = [2, 32], strides = [1, 1]} : vector<2x96xf32> to vector<2x32xf32>
    %534 = arith.addf %532, %533 : vector<2x32xf32>
    %535 = arith.negf %534 : vector<2x32xf32>
    %536 = math.exp %535 : vector<2x32xf32>
    %cst_162 = arith.constant 1.000000e+00 : f32
    %537 = vector.broadcast %cst_162 : f32 to vector<2x32xf32>
    %538 = arith.addf %537, %536 : vector<2x32xf32>
    %539 = arith.divf %537, %538 : vector<2x32xf32>
    %540 = vector.extract_strided_slice %527 {offsets = [0, 32], sizes = [2, 32], strides = [1, 1]} : vector<2x96xf32> to vector<2x32xf32>
    %541 = vector.extract_strided_slice %531 {offsets = [0, 32], sizes = [2, 32], strides = [1, 1]} : vector<2x96xf32> to vector<2x32xf32>
    %542 = arith.addf %540, %541 : vector<2x32xf32>
    %543 = arith.negf %542 : vector<2x32xf32>
    %544 = math.exp %543 : vector<2x32xf32>
    %cst_163 = arith.constant 1.000000e+00 : f32
    %545 = vector.broadcast %cst_163 : f32 to vector<2x32xf32>
    %546 = arith.addf %545, %544 : vector<2x32xf32>
    %547 = arith.divf %545, %546 : vector<2x32xf32>
    %548 = vector.extract_strided_slice %527 {offsets = [0, 64], sizes = [2, 32], strides = [1, 1]} : vector<2x96xf32> to vector<2x32xf32>
    %549 = vector.extract_strided_slice %531 {offsets = [0, 64], sizes = [2, 32], strides = [1, 1]} : vector<2x96xf32> to vector<2x32xf32>
    %550 = arith.mulf %539, %549 : vector<2x32xf32>
    %551 = arith.addf %548, %550 : vector<2x32xf32>
    %552 = math.tanh %551 : vector<2x32xf32>
    %cst_164 = arith.constant 1.000000e+00 : f32
    %553 = vector.broadcast %cst_164 : f32 to vector<2x32xf32>
    %554 = arith.subf %553, %547 : vector<2x32xf32>
    %555 = arith.mulf %554, %552 : vector<2x32xf32>
    %556 = arith.mulf %547, %528 : vector<2x32xf32>
    %557 = arith.addf %555, %556 : vector<2x32xf32>
    %c0_165 = arith.constant 0 : index
    %c0_166 = arith.constant 0 : index
    %558 = vector.load %arg9[%c0_165, %c0_166] : memref<2x32xf32, #tpu.memory_space<vmem>>, vector<2x32xf32>
    tpu.vector_store %arg9[%c0_165, %c0_166], %557 {strides = array<i32>} : memref<2x32xf32, #tpu.memory_space<vmem>>, vector<2x32xf32>,
    %559 = arith.truncf %557 : vector<2x32xf32> to vector<2x32xbf16>
    %560 = vector.shape_cast %559 : vector<2x32xbf16> to vector<2x1x32xbf16>
    "tpu.trace_start"() <{level = 10 : i32, message = "bqh,bnh->bqn"}> : () -> ()
    %cst_167 = arith.constant dense<0.000000e+00> : vector<2x1x26xf32>
    %561 = tpu.matmul %560, %5, %cst_167 {dimension_numbers = #tpu.dot_dimension_numbers<[2], [2], [1], [1], [0, 0, 0, 1, 1, 1], [0], [0]>} : vector<2x1x32xbf16>, vector<2x26x32xbf16>, vector<2x1x26xf32> -> vector<2x1x26xf32>
    "tpu.trace_stop"() : () -> ()
    %562 = vector.shape_cast %561 : vector<2x1x26xf32> to vector<2x26xf32>
    %563 = arith.addf %562, %8 : vector<2x26xf32>
    %564 = vector.extract_strided_slice %563 {offsets = [0, 0], sizes = [2, 8], strides = [1, 1]} : vector<2x26xf32> to vector<2x8xf32>
    %cst_168 = arith.constant dense<0xFF800000> : vector<2xf32>
    %565 = vector.multi_reduction <maximumf>, %564, %cst_168 [1] : vector<2x8xf32> to vector<2xf32>
    %cst_169 = arith.constant 0xFF800000 : f32
    %566 = vector.broadcast %cst_169 : f32 to vector<2xf32>
    %567 = arith.maximumf %566, %565 : vector<2xf32>
    %568 = vector.shape_cast %567 : vector<2xf32> to vector<2x1xf32>
    %569 = vector.broadcast %568 : vector<2x1xf32> to vector<2x8xf32>
    %570 = arith.subf %564, %569 : vector<2x8xf32>
    %571 = math.exp %570 : vector<2x8xf32>
    %cst_170 = arith.constant dense<0.000000e+00> : vector<2xf32>
    %572 = vector.multi_reduction <add>, %571, %cst_170 [1] : vector<2x8xf32> to vector<2xf32>
    %573 = vector.shape_cast %572 : vector<2xf32> to vector<2x1xf32>
    %574 = vector.broadcast %573 : vector<2x1xf32> to vector<2x8xf32>
    %575 = arith.divf %571, %574 : vector<2x8xf32>
    %576 = arith.truncf %575 : vector<2x8xf32> to vector<2x8xbf16>
    %577 = vector.extract_strided_slice %563 {offsets = [0, 8], sizes = [2, 18], strides = [1, 1]} : vector<2x26xf32> to vector<2x18xf32>
    %cst_171 = arith.constant dense<0xFF800000> : vector<2xf32>
    %578 = vector.multi_reduction <maximumf>, %577, %cst_171 [1] : vector<2x18xf32> to vector<2xf32>
    %cst_172 = arith.constant 0xFF800000 : f32
    %579 = vector.broadcast %cst_172 : f32 to vector<2xf32>
    %580 = arith.maximumf %579, %578 : vector<2xf32>
    %581 = vector.shape_cast %580 : vector<2xf32> to vector<2x1xf32>
    %582 = vector.broadcast %581 : vector<2x1xf32> to vector<2x18xf32>
    %583 = arith.subf %577, %582 : vector<2x18xf32>
    %584 = math.exp %583 : vector<2x18xf32>
    %cst_173 = arith.constant dense<0.000000e+00> : vector<2xf32>
    %585 = vector.multi_reduction <add>, %584, %cst_173 [1] : vector<2x18xf32> to vector<2xf32>
    %586 = vector.shape_cast %585 : vector<2xf32> to vector<2x1xf32>
    %587 = vector.broadcast %586 : vector<2x1xf32> to vector<2x18xf32>
    %588 = arith.divf %584, %587 : vector<2x18xf32>
    %589 = arith.truncf %588 : vector<2x18xf32> to vector<2x18xbf16>
    %590 = vector.shape_cast %576 : vector<2x8xbf16> to vector<2x1x8xbf16>
    "tpu.trace_start"() <{level = 10 : i32, message = "bqn,bnh->bqh"}> : () -> ()
    %cst_174 = arith.constant dense<0.000000e+00> : vector<2x1x32xf32>
    %591 = tpu.matmul %590, %6, %cst_174 {dimension_numbers = #tpu.dot_dimension_numbers<[2], [1], [1], [2], [0, 0, 0, 1, 1, 2], [0], [0]>} : vector<2x1x8xbf16>, vector<2x8x32xbf16>, vector<2x1x32xf32> -> vector<2x1x32xf32>
    "tpu.trace_stop"() : () -> ()
    %592 = vector.shape_cast %591 : vector<2x1x32xf32> to vector<2x32xf32>
    %593 = vector.shape_cast %589 : vector<2x18xbf16> to vector<2x1x18xbf16>
    "tpu.trace_start"() <{level = 10 : i32, message = "bqn,bnh->bqh"}> : () -> ()
    %cst_175 = arith.constant dense<0.000000e+00> : vector<2x1x32xf32>
    %594 = tpu.matmul %593, %7, %cst_175 {dimension_numbers = #tpu.dot_dimension_numbers<[2], [1], [1], [2], [0, 0, 0, 1, 1, 2], [0], [0]>} : vector<2x1x18xbf16>, vector<2x18x32xbf16>, vector<2x1x32xf32> -> vector<2x1x32xf32>
    "tpu.trace_stop"() : () -> ()
    %595 = vector.shape_cast %594 : vector<2x1x32xf32> to vector<2x32xf32>
    %596 = arith.truncf %557 : vector<2x32xf32> to vector<2x32xbf16>
    %597 = arith.index_cast %c6_i32 : i32 to index
    %c0_176 = arith.constant 0 : index
    %c0_177 = arith.constant 0 : index
    %598 = vector.load %arg7[%597, %c0_176, %c0_177] : memref<8x2x96xbf16, #tpu.memory_space<vmem>>, vector<1x2x32xbf16>
    %599 = vector.shape_cast %598 : vector<1x2x32xbf16> to vector<2x32xbf16>
    %600 = vector.shape_cast %596 : vector<2x32xbf16> to vector<1x2x32xbf16>
    tpu.vector_store %arg7[%597, %c0_176, %c0_177], %600 {strides = array<i32>} : memref<8x2x96xbf16, #tpu.memory_space<vmem>>, vector<1x2x32xbf16>,
    %601 = arith.truncf %592 : vector<2x32xf32> to vector<2x32xbf16>
    %602 = arith.index_cast %c6_i32 : i32 to index
    %c0_178 = arith.constant 0 : index
    %c32_179 = arith.constant 32 : index
    %603 = vector.load %arg7[%602, %c0_178, %c32_179] : memref<8x2x96xbf16, #tpu.memory_space<vmem>>, vector<1x2x32xbf16>
    %604 = vector.shape_cast %603 : vector<1x2x32xbf16> to vector<2x32xbf16>
    %605 = vector.shape_cast %601 : vector<2x32xbf16> to vector<1x2x32xbf16>
    tpu.vector_store %arg7[%602, %c0_178, %c32_179], %605 {strides = array<i32>} : memref<8x2x96xbf16, #tpu.memory_space<vmem>>, vector<1x2x32xbf16>,
    %606 = arith.truncf %595 : vector<2x32xf32> to vector<2x32xbf16>
    %607 = arith.index_cast %c6_i32 : i32 to index
    %c0_180 = arith.constant 0 : index
    %c64_181 = arith.constant 64 : index
    %608 = vector.load %arg7[%607, %c0_180, %c64_181] : memref<8x2x96xbf16, #tpu.memory_space<vmem>>, vector<1x2x32xbf16>
    %609 = vector.shape_cast %608 : vector<1x2x32xbf16> to vector<2x32xbf16>
    %610 = vector.shape_cast %606 : vector<2x32xbf16> to vector<1x2x32xbf16>
    tpu.vector_store %arg7[%607, %c0_180, %c64_181], %610 {strides = array<i32>} : memref<8x2x96xbf16, #tpu.memory_space<vmem>>, vector<1x2x32xbf16>,
    %c7_i32 = arith.constant 7 : i32
    %611 = arith.index_cast %c7_i32 : i32 to index
    %c0_182 = arith.constant 0 : index
    %c0_183 = arith.constant 0 : index
    %612 = vector.load %arg1[%611, %c0_182, %c0_183] : memref<8x2x96xf32, #tpu.memory_space<vmem>>, vector<1x2x96xf32>
    %613 = vector.shape_cast %612 : vector<1x2x96xf32> to vector<2x96xf32>
    %c0_184 = arith.constant 0 : index
    %c0_185 = arith.constant 0 : index
    %614 = vector.load %arg9[%c0_184, %c0_185] : memref<2x32xf32, #tpu.memory_space<vmem>>, vector<2x32xf32>
    %cst_186 = arith.constant dense<0.000000e+00> : vector<2x96xf32>
    %615 = tpu.matmul %614, %3, %cst_186 {dimension_numbers = #tpu.dot_dimension_numbers<[1], [0], [0], [1], [0, 0, 1, 1], [], []>} : vector<2x32xf32>, vector<32x96xf32>, vector<2x96xf32> -> vector<2x96xf32>
    %616 = vector.broadcast %4 : vector<1x96xf32> to vector<2x96xf32>
    %617 = arith.addf %615, %616 : vector<2x96xf32>
    %618 = vector.extract_strided_slice %613 {offsets = [0, 0], sizes = [2, 32], strides = [1, 1]} : vector<2x96xf32> to vector<2x32xf32>
    %619 = vector.extract_strided_slice %617 {offsets = [0, 0], sizes = [2, 32], strides = [1, 1]} : vector<2x96xf32> to vector<2x32xf32>
    %620 = arith.addf %618, %619 : vector<2x32xf32>
    %621 = arith.negf %620 : vector<2x32xf32>
    %622 = math.exp %621 : vector<2x32xf32>
    %cst_187 = arith.constant 1.000000e+00 : f32
    %623 = vector.broadcast %cst_187 : f32 to vector<2x32xf32>
    %624 = arith.addf %623, %622 : vector<2x32xf32>
    %625 = arith.divf %623, %624 : vector<2x32xf32>
    %626 = vector.extract_strided_slice %613 {offsets = [0, 32], sizes = [2, 32], strides = [1, 1]} : vector<2x96xf32> to vector<2x32xf32>
    %627 = vector.extract_strided_slice %617 {offsets = [0, 32], sizes = [2, 32], strides = [1, 1]} : vector<2x96xf32> to vector<2x32xf32>
    %628 = arith.addf %626, %627 : vector<2x32xf32>
    %629 = arith.negf %628 : vector<2x32xf32>
    %630 = math.exp %629 : vector<2x32xf32>
    %cst_188 = arith.constant 1.000000e+00 : f32
    %631 = vector.broadcast %cst_188 : f32 to vector<2x32xf32>
    %632 = arith.addf %631, %630 : vector<2x32xf32>
    %633 = arith.divf %631, %632 : vector<2x32xf32>
    %634 = vector.extract_strided_slice %613 {offsets = [0, 64], sizes = [2, 32], strides = [1, 1]} : vector<2x96xf32> to vector<2x32xf32>
    %635 = vector.extract_strided_slice %617 {offsets = [0, 64], sizes = [2, 32], strides = [1, 1]} : vector<2x96xf32> to vector<2x32xf32>
    %636 = arith.mulf %625, %635 : vector<2x32xf32>
    %637 = arith.addf %634, %636 : vector<2x32xf32>
    %638 = math.tanh %637 : vector<2x32xf32>
    %cst_189 = arith.constant 1.000000e+00 : f32
    %639 = vector.broadcast %cst_189 : f32 to vector<2x32xf32>
    %640 = arith.subf %639, %633 : vector<2x32xf32>
    %641 = arith.mulf %640, %638 : vector<2x32xf32>
    %642 = arith.mulf %633, %614 : vector<2x32xf32>
    %643 = arith.addf %641, %642 : vector<2x32xf32>
    %c0_190 = arith.constant 0 : index
    %c0_191 = arith.constant 0 : index
    %644 = vector.load %arg9[%c0_190, %c0_191] : memref<2x32xf32, #tpu.memory_space<vmem>>, vector<2x32xf32>
    tpu.vector_store %arg9[%c0_190, %c0_191], %643 {strides = array<i32>} : memref<2x32xf32, #tpu.memory_space<vmem>>, vector<2x32xf32>,
    %645 = arith.truncf %643 : vector<2x32xf32> to vector<2x32xbf16>
    %646 = vector.shape_cast %645 : vector<2x32xbf16> to vector<2x1x32xbf16>
    "tpu.trace_start"() <{level = 10 : i32, message = "bqh,bnh->bqn"}> : () -> ()
    %cst_192 = arith.constant dense<0.000000e+00> : vector<2x1x26xf32>
    %647 = tpu.matmul %646, %5, %cst_192 {dimension_numbers = #tpu.dot_dimension_numbers<[2], [2], [1], [1], [0, 0, 0, 1, 1, 1], [0], [0]>} : vector<2x1x32xbf16>, vector<2x26x32xbf16>, vector<2x1x26xf32> -> vector<2x1x26xf32>
    "tpu.trace_stop"() : () -> ()
    %648 = vector.shape_cast %647 : vector<2x1x26xf32> to vector<2x26xf32>
    %649 = arith.addf %648, %8 : vector<2x26xf32>
    %650 = vector.extract_strided_slice %649 {offsets = [0, 0], sizes = [2, 8], strides = [1, 1]} : vector<2x26xf32> to vector<2x8xf32>
    %cst_193 = arith.constant dense<0xFF800000> : vector<2xf32>
    %651 = vector.multi_reduction <maximumf>, %650, %cst_193 [1] : vector<2x8xf32> to vector<2xf32>
    %cst_194 = arith.constant 0xFF800000 : f32
    %652 = vector.broadcast %cst_194 : f32 to vector<2xf32>
    %653 = arith.maximumf %652, %651 : vector<2xf32>
    %654 = vector.shape_cast %653 : vector<2xf32> to vector<2x1xf32>
    %655 = vector.broadcast %654 : vector<2x1xf32> to vector<2x8xf32>
    %656 = arith.subf %650, %655 : vector<2x8xf32>
    %657 = math.exp %656 : vector<2x8xf32>
    %cst_195 = arith.constant dense<0.000000e+00> : vector<2xf32>
    %658 = vector.multi_reduction <add>, %657, %cst_195 [1] : vector<2x8xf32> to vector<2xf32>
    %659 = vector.shape_cast %658 : vector<2xf32> to vector<2x1xf32>
    %660 = vector.broadcast %659 : vector<2x1xf32> to vector<2x8xf32>
    %661 = arith.divf %657, %660 : vector<2x8xf32>
    %662 = arith.truncf %661 : vector<2x8xf32> to vector<2x8xbf16>
    %663 = vector.extract_strided_slice %649 {offsets = [0, 8], sizes = [2, 18], strides = [1, 1]} : vector<2x26xf32> to vector<2x18xf32>
    %cst_196 = arith.constant dense<0xFF800000> : vector<2xf32>
    %664 = vector.multi_reduction <maximumf>, %663, %cst_196 [1] : vector<2x18xf32> to vector<2xf32>
    %cst_197 = arith.constant 0xFF800000 : f32
    %665 = vector.broadcast %cst_197 : f32 to vector<2xf32>
    %666 = arith.maximumf %665, %664 : vector<2xf32>
    %667 = vector.shape_cast %666 : vector<2xf32> to vector<2x1xf32>
    %668 = vector.broadcast %667 : vector<2x1xf32> to vector<2x18xf32>
    %669 = arith.subf %663, %668 : vector<2x18xf32>
    %670 = math.exp %669 : vector<2x18xf32>
    %cst_198 = arith.constant dense<0.000000e+00> : vector<2xf32>
    %671 = vector.multi_reduction <add>, %670, %cst_198 [1] : vector<2x18xf32> to vector<2xf32>
    %672 = vector.shape_cast %671 : vector<2xf32> to vector<2x1xf32>
    %673 = vector.broadcast %672 : vector<2x1xf32> to vector<2x18xf32>
    %674 = arith.divf %670, %673 : vector<2x18xf32>
    %675 = arith.truncf %674 : vector<2x18xf32> to vector<2x18xbf16>
    %676 = vector.shape_cast %662 : vector<2x8xbf16> to vector<2x1x8xbf16>
    "tpu.trace_start"() <{level = 10 : i32, message = "bqn,bnh->bqh"}> : () -> ()
    %cst_199 = arith.constant dense<0.000000e+00> : vector<2x1x32xf32>
    %677 = tpu.matmul %676, %6, %cst_199 {dimension_numbers = #tpu.dot_dimension_numbers<[2], [1], [1], [2], [0, 0, 0, 1, 1, 2], [0], [0]>} : vector<2x1x8xbf16>, vector<2x8x32xbf16>, vector<2x1x32xf32> -> vector<2x1x32xf32>
    "tpu.trace_stop"() : () -> ()
    %678 = vector.shape_cast %677 : vector<2x1x32xf32> to vector<2x32xf32>
    %679 = vector.shape_cast %675 : vector<2x18xbf16> to vector<2x1x18xbf16>
    "tpu.trace_start"() <{level = 10 : i32, message = "bqn,bnh->bqh"}> : () -> ()
    %cst_200 = arith.constant dense<0.000000e+00> : vector<2x1x32xf32>
    %680 = tpu.matmul %679, %7, %cst_200 {dimension_numbers = #tpu.dot_dimension_numbers<[2], [1], [1], [2], [0, 0, 0, 1, 1, 2], [0], [0]>} : vector<2x1x18xbf16>, vector<2x18x32xbf16>, vector<2x1x32xf32> -> vector<2x1x32xf32>
    "tpu.trace_stop"() : () -> ()
    %681 = vector.shape_cast %680 : vector<2x1x32xf32> to vector<2x32xf32>
    %682 = arith.truncf %643 : vector<2x32xf32> to vector<2x32xbf16>
    %683 = arith.index_cast %c7_i32 : i32 to index
    %c0_201 = arith.constant 0 : index
    %c0_202 = arith.constant 0 : index
    %684 = vector.load %arg7[%683, %c0_201, %c0_202] : memref<8x2x96xbf16, #tpu.memory_space<vmem>>, vector<1x2x32xbf16>
    %685 = vector.shape_cast %684 : vector<1x2x32xbf16> to vector<2x32xbf16>
    %686 = vector.shape_cast %682 : vector<2x32xbf16> to vector<1x2x32xbf16>
    tpu.vector_store %arg7[%683, %c0_201, %c0_202], %686 {strides = array<i32>} : memref<8x2x96xbf16, #tpu.memory_space<vmem>>, vector<1x2x32xbf16>,
    %687 = arith.truncf %678 : vector<2x32xf32> to vector<2x32xbf16>
    %688 = arith.index_cast %c7_i32 : i32 to index
    %c0_203 = arith.constant 0 : index
    %c32_204 = arith.constant 32 : index
    %689 = vector.load %arg7[%688, %c0_203, %c32_204] : memref<8x2x96xbf16, #tpu.memory_space<vmem>>, vector<1x2x32xbf16>
    %690 = vector.shape_cast %689 : vector<1x2x32xbf16> to vector<2x32xbf16>
    %691 = vector.shape_cast %687 : vector<2x32xbf16> to vector<1x2x32xbf16>
    tpu.vector_store %arg7[%688, %c0_203, %c32_204], %691 {strides = array<i32>} : memref<8x2x96xbf16, #tpu.memory_space<vmem>>, vector<1x2x32xbf16>,
    %692 = arith.truncf %681 : vector<2x32xf32> to vector<2x32xbf16>
    %693 = arith.index_cast %c7_i32 : i32 to index
    %c0_205 = arith.constant 0 : index
    %c64_206 = arith.constant 64 : index
    %694 = vector.load %arg7[%693, %c0_205, %c64_206] : memref<8x2x96xbf16, #tpu.memory_space<vmem>>, vector<1x2x32xbf16>
    %695 = vector.shape_cast %694 : vector<1x2x32xbf16> to vector<2x32xbf16>
    %696 = vector.shape_cast %692 : vector<2x32xbf16> to vector<1x2x32xbf16>
    tpu.vector_store %arg7[%693, %c0_205, %c64_206], %696 {strides = array<i32>} : memref<8x2x96xbf16, #tpu.memory_space<vmem>>, vector<1x2x32xbf16>,
    %c8_i32 = arith.constant 8 : i32
    %c0_207 = arith.constant 0 : index
    %c0_208 = arith.constant 0 : index
    %697 = vector.load %arg9[%c0_207, %c0_208] : memref<2x32xf32, #tpu.memory_space<vmem>>, vector<2x32xf32>
    %c0_209 = arith.constant 0 : index
    %c0_210 = arith.constant 0 : index
    %698 = vector.load %arg8[%c0_209, %c0_210] : memref<2x32xf32, #tpu.memory_space<vmem>>, vector<2x32xf32>
    tpu.vector_store %arg8[%c0_209, %c0_210], %697 {strides = array<i32>} : memref<2x32xf32, #tpu.memory_space<vmem>>, vector<2x32xf32>,
    return
  }
  func.func @transform_0(%arg0: i32) -> (i32, i32, i32) {
    %c0_i32 = arith.constant 0 : i32
    %c0_i32_0 = arith.constant 0 : i32
    %c0_i32_1 = arith.constant 0 : i32
    return %arg0, %c0_i32, %c0_i32_0 : i32, i32, i32
  }
  func.func @transform_1(%arg0: i32) -> (i32, i32) {
    %c0_i32 = arith.constant 0 : i32
    %c0_i32_0 = arith.constant 0 : i32
    %c0_i32_1 = arith.constant 0 : i32
    return %c0_i32, %c0_i32_0 : i32, i32
  }
  func.func @transform_2(%arg0: i32) -> (i32, i32, i32) {
    %c0_i32 = arith.constant 0 : i32
    %c0_i32_0 = arith.constant 0 : i32
    %c0_i32_1 = arith.constant 0 : i32
    %c0_i32_2 = arith.constant 0 : i32
    return %c0_i32, %c0_i32_0, %c0_i32_1 : i32, i32, i32
  }
  func.func @transform_3(%arg0: i32) -> (i32, i32) {
    %c0_i32 = arith.constant 0 : i32
    %c0_i32_0 = arith.constant 0 : i32
    %c0_i32_1 = arith.constant 0 : i32
    return %c0_i32, %c0_i32_0 : i32, i32
  }
  func.func @transform_4(%arg0: i32) -> (i32, i32) {
    %c0_i32 = arith.constant 0 : i32
    %c0_i32_0 = arith.constant 0 : i32
    %c0_i32_1 = arith.constant 0 : i32
    return %c0_i32, %c0_i32_0 : i32, i32
  }
  func.func @transform_5(%arg0: i32) -> (i32, i32) {
    %c0_i32 = arith.constant 0 : i32
    %c0_i32_0 = arith.constant 0 : i32
    %c0_i32_1 = arith.constant 0 : i32
    return %c0_i32, %c0_i32_0 : i32, i32
  }
  func.func @transform_6(%arg0: i32) -> (i32, i32, i32) {
    %c0_i32 = arith.constant 0 : i32
    %c0_i32_0 = arith.constant 0 : i32
    %c0_i32_1 = arith.constant 0 : i32
    return %arg0, %c0_i32, %c0_i32_0 : i32, i32, i32
  }
  func.func @transform_7(%arg0: i32) -> (i32, i32) {
    %c0_i32 = arith.constant 0 : i32
    %c0_i32_0 = arith.constant 0 : i32
    %c0_i32_1 = arith.constant 0 : i32
    return %c0_i32, %c0_i32_0 : i32, i32
  }
}

module attributes {stable_mosaic.version = 11 : i64} {
  func.func @_out_proj_kernel(%arg0: i32, %arg1: memref<14x96xbf16, #tpu.memory_space<vmem>>, %arg2: memref<96x128xbf16, #tpu.memory_space<vmem>>, %arg3: memref<1x128xf32, #tpu.memory_space<vmem>>, %arg4: memref<14x128xf32, #tpu.memory_space<vmem>>) attributes {dimension_semantics = [#tpu.dimension_semantics<parallel>], iteration_bounds = array<i64: 1>, scalar_prefetch = 0 : i64, scratch_operands = 0 : i64, tpu.core_type = #tpu.core_type<tc>, window_params = [{pipeline_mode = #tpu.pipeline_mode<synchronous>, transform_indices = @transform_0, window_bounds = array<i64: 14, 96>}, {transform_indices = @transform_1, window_bounds = array<i64: 96, 128>}, {transform_indices = @transform_2, window_bounds = array<i64: 1, 128>}, {transform_indices = @transform_3, window_bounds = array<i64: 14, 128>}]} {
    %c0 = arith.constant 0 : index
    %c0_0 = arith.constant 0 : index
    %0 = vector.load %arg1[%c0, %c0_0] : memref<14x96xbf16, #tpu.memory_space<vmem>>, vector<14x96xbf16>
    %c0_1 = arith.constant 0 : index
    %c0_2 = arith.constant 0 : index
    %1 = vector.load %arg2[%c0_1, %c0_2] : memref<96x128xbf16, #tpu.memory_space<vmem>>, vector<96x128xbf16>
    %cst = arith.constant dense<0.000000e+00> : vector<14x128xf32>
    %2 = tpu.matmul %0, %1, %cst {dimension_numbers = #tpu.dot_dimension_numbers<[1], [0], [0], [1], [0, 0, 1, 1], [], []>} : vector<14x96xbf16>, vector<96x128xbf16>, vector<14x128xf32> -> vector<14x128xf32>
    %c0_3 = arith.constant 0 : index
    %c0_4 = arith.constant 0 : index
    %3 = vector.load %arg3[%c0_3, %c0_4] : memref<1x128xf32, #tpu.memory_space<vmem>>, vector<1x128xf32>
    %4 = vector.broadcast %3 : vector<1x128xf32> to vector<14x128xf32>
    %5 = arith.addf %2, %4 : vector<14x128xf32>
    %c0_5 = arith.constant 0 : index
    %c0_6 = arith.constant 0 : index
    %6 = vector.load %arg4[%c0_5, %c0_6] : memref<14x128xf32, #tpu.memory_space<vmem>>, vector<14x128xf32>
    tpu.vector_store %arg4[%c0_5, %c0_6], %5 {strides = array<i32>} : memref<14x128xf32, #tpu.memory_space<vmem>>, vector<14x128xf32>,
    return
  }
  func.func @transform_0(%arg0: i32) -> (i32, i32) {
    %c0_i32 = arith.constant 0 : i32
    %c0_i32_0 = arith.constant 0 : i32
    %c0_i32_1 = arith.constant 0 : i32
    return %c0_i32, %c0_i32_0 : i32, i32
  }
  func.func @transform_1(%arg0: i32) -> (i32, i32) {
    %c0_i32 = arith.constant 0 : i32
    %c0_i32_0 = arith.constant 0 : i32
    return %c0_i32, %arg0 : i32, i32
  }
  func.func @transform_2(%arg0: i32) -> (i32, i32) {
    %c0_i32 = arith.constant 0 : i32
    %c0_i32_0 = arith.constant 0 : i32
    return %c0_i32, %arg0 : i32, i32
  }
  func.func @transform_3(%arg0: i32) -> (i32, i32) {
    %c0_i32 = arith.constant 0 : i32
    %c0_i32_0 = arith.constant 0 : i32
    return %c0_i32, %arg0 : i32, i32
  }
}

</mosaic_0001>

<bundles_post_ra>
// kernel: seq2seq_forward.4
= control target key start
LH: loop header
LB: loop body
LE: loop exit
PB: predicated region body
PF: predicated region fallthrough
CT: control target
= control target key end

     0   :  { %vm23_vm0 = vcmask 257024   ;;  %v1324_v0 = vmov 0.0|0.0   ;;  %v1325_v4 = vmov 0.0   ;;  %vm1326_vm1 = vmmov 0   ;;  %s1328_s29 = smov 64   ;;  %s1330_s7 = smov 96   ;;  %s1616_s2 = inlined_call_operand.vmem [shape: f32[32,96], index: 2, kind: input, shape index: {}]   ;;  %s1617_s3 = inlined_call_operand.vmem [shape: f32[1,96], index: 3, kind: input, shape index: {}]   ;;  %s1618_s1 = inlined_call_operand.vmem [shape: f32[8,4,1], index: 1, kind: input, shape index: {}]   ;;  %s1619_s0 = inlined_call_operand.vmem [shape: f32[8,4,96], index: 0, kind: input, shape index: {}]   ;;  %s1620_s4 = inlined_call_operand.vmem [shape: f32[8,4,32], index: 4, kind: output, shape index: {0}]   ;;  %s1621_s5 = inlined_call_operand.vmem [shape: f32[4,32], index: 5, kind: output, shape index: {1}]  }
   0x1   :  { %1219 = vmatprep.subr.bf16.mxu0 %v1324_v0  ;;  %v25_v1 = vld [vmem:[%s1616_s2] sm:$0xff]  ;;  %v26_v2 = vld [vmem:[%s1616_s2 + $0x8] sm:$0xff]  ;;  %v27_v3 = vld [vmem:[%s1616_s2 + $0x10] sm:$0xff]  ;;  %24 = vst.msk [vmem:[#allocation2] sm:$0xf] %vm23_vm0, %v1325_v4  ;;  %1139 = vmatprep.mubr.msk.f32.mxu0 %vm1326_vm1, %v1325_v4  ;;  %vm38_vm2 = vcmask 261120  }
   0x2   :  { %v1375_v5 = vpack.c.bf16 %v26_v2, %v25_v1  ;;  %v28_v6 = vld [vmem:[%s1616_s2 + $0x18] sm:$0xff]  ;;  %1225 = vmatprep.subr.bf16.mxu1 %v1324_v0  ;;  %1150 = vmatprep.mubr.msk.f32.mxu1 %vm1326_vm1, %v1325_v4  ;;  %v1327_v9 = vmov 0   ;;  %v141_v10 = vld [vmem:[%s1618_s1] sm:$0xf]  ;;  %v1056_v41 = vld [vmem:[%s1619_s0 + $0x4] sm:$0xf] }
   0x3   :  { %v1384_v7 = vpack.c.bf16 %v28_v6, %v27_v3  ;;  %1274 = vset.pattern.permute.xlu1 %v1327_v9  ;;  %1275 = vset.pattern.permute.xlu0 %v1327_v9  ;;  %v1408_v11 = vld [vmem:[%s1617_s3] ss:$0 sm:$0xff]  ;;  %vm142_vm3 = vcmp.gt.f32.partialorder %v141_v10, 0.5  ;;  %s1329_s3 = smov 32   ;;  %v1059_v46 = vld [vmem:[%s1618_s1 + $0x4] sm:$0xf] }
   0x4   :  { %1221 = vmatpush3.bf16.msra.mxu0 %v1375_v5  ;;  %1227 = vmatpush3.bf16.msra.mxu1 %v1375_v5  ;;  %v143_v12 = vsel %vm142_vm3, 1, %v1327_v9  ;;  %v30_v16 = vld [vmem:[%s1619_s0] sm:$0xf]  ;;  %vm268_vm5 = vcmp.gt.f32.partialorder %v1059_v46, 0.5  ;;  %v1064_v2 = vld [vmem:[%s1618_s1 + $0x8] sm:$0xf] }
   0x5   :  { %1222 = vmatprep.subr.bf16.mxu0 %v1324_v0  ;;  %1228 = vmatprep.subr.bf16.mxu1 %v1324_v0  ;;  %v269_v47 = vsel %vm268_vm5, 1, %v1327_v9  ;;  %vm394_vm7 = vcmp.gt.f32.partialorder %v1064_v2, 0.5 }
   0x6   :  { %145 = vperm.xlu1 %1274, %v143_v12   ;;  %v395_v10 = vsel %vm394_vm7, 1, %v1327_v9  ;;  %v1061_v12 = vld [vmem:[%s1619_s0 + $0x8] sm:$0xf] }
   0x8   :  { %1224 = vmatpush3.bf16.msra.mxu0 %v1384_v7  ;;  %v31_v8 = vld [vmem:[#allocation2] sm:$0xf]  ;;  %1230 = vmatpush3.bf16.msra.mxu1 %v1384_v7 }
   0x9   :  { %1231 = vmatprep.subr.bf16.mxu0 %v1324_v0  ;;  %1237 = vmatprep.subr.bf16.mxu1 %v1324_v0 }
   0xb   :  { %1140 = vmatmul.mubr.msk.f32.vlgmr.msra.gmra.mrb[0].mxu0 %vm38_vm2, %v31_v8 }
   0xc   :  { %1233 = vmatpush3.bf16.msra.mxu0 %v1375_v5  ;;  %1161 = vmatprep.mubr.msk.f32.mxu0 %vm1326_vm1, %v1325_v4 }
   0xd   :  { %1234 = vmatprep.subr.bf16.mxu0 %v1324_v0 }
  0x10   :  { %1236 = vmatpush3.bf16.msra.mxu0 %v1384_v7 }
  0x11   :  { %1243 = vmatprep.subr.bf16.mxu0 %v1324_v0 }
  0x85   :  { %v146_v27 = vpop.permute.xlu1 %145 }
  0x86   :  { %vm147_vm4 = vcmp.eq.s32.totalorder %v146_v27, 1 }
  0xde   :  { %v108_v13 = vpop.f32.mrb[0].mxu0 }
  0xdf   :  { %v109_v14 = vadd.f32 %v1408_v11, %v108_v13  ;;  %v1141_v15 = vpop.f32.mrb[1].mxu0 }
  0xe1   :  { %120 = vrot.lane.b32.xlu0 %v109_v14, %s1328_s29  ;;  %v112_v17 = vadd.f32 %v109_v14, %v30_v16 }
  0xe3   :  { %v1055_v18 = vmul.f32 -1.442695, %v112_v17 }
  0xe5   :  { %1276 = vpow2.f32 %v1055_v18 }
  0xef   :  { %v1277_v19 = vpop.eup %1276 }
  0xf0   :  { %v116_v20 = vadd.f32 1.0, %v1277_v19 }
  0xf2   :  { %1278 = vrcp.f32 %v116_v20 }
  0xfc   :  { %v1279_v21 = vpop.eup %1278 }
  0xfd   :  { %v130_v29 = vsub.f32 1.0, %v1279_v21 }
 0x153   :  { %v121_v22 = vpop.permute.xlu0 %120 }
 0x154   :  { %v123_v23 = vmul.f32 %v1279_v21, %v121_v22 }
 0x156   :  { %125 = vrot.lane.b32.xlu0 %v123_v23, %s1328_s29 }
 0x15a   :  { %136 = vrot.lane.b32.xlu0 %v31_v8, %s1329_s3 }
 0x1c8   :  { %v126_v24 = vpop.permute.xlu0 %125 }
 0x1c9   :  { %v128_v25 = vadd.f32 %v126_v24, %v30_v16 }
 0x1cb   :  { %1280 = vtanh.f32 %v128_v25 }
 0x1cc   :  { %v137_v28 = vpop.permute.xlu0 %136 }
 0x1cd   :  { %v139_v31 = vmul.f32 %v1279_v21, %v137_v28 }
 0x1d5   :  { %v1281_v26 = vpop.eup %1280 }
 0x1d6   :  { %132 = vrot.lane.b32.xlu1 %v1281_v26, %s1330_s7 }
 0x248   :  { %v133_v30 = vpop.permute.xlu1 %132 }
 0x249   :  { %v135_v32 = vmul.f32 %v133_v30, %v130_v29 }
 0x24b   :  { %v140_v33 = vadd.f32 %v139_v31, %v135_v32 }
 0x24d   :  { %v148_v34 = vsel %vm147_vm4, %v140_v33, %v137_v28  ;;  %v1419_v35 = vsel %vm147_vm4, %v140_v33, 0.0 }
 0x24e   :  { %150 = vrot.lane.b32.xlu1 %v148_v34, %s1330_s7  ;;  %v1069_v34 = vld [vmem:[%s1618_s1 + $0xc] sm:$0xf] }
 0x24f   :  { %vm520_vm9 = vcmp.gt.f32.partialorder %v1069_v34, 0.5 }
 0x2c0   :  { %v151_v36 = vpop.permute.xlu1 %150 }
 0x2c1   :  { %154 = vst.msk [vmem:[#allocation2] sm:$0xf] %vm23_vm0, %v151_v36 }
 0x2c8   :  { %v163_v37 = vld [vmem:[#allocation2] sm:$0xf] }
 0x2c9   :  { %1151 = vmatmul.mubr.msk.f32.vlgmr.msra.gmra.mrb[0].mxu1 %vm38_vm2, %v163_v37 }
 0x2ca   :  { %1239 = vmatpush3.bf16.msra.mxu1 %v1375_v5  ;;  %1172 = vmatprep.mubr.msk.f32.mxu1 %vm1326_vm1, %v1325_v4 }
 0x2cb   :  { %1240 = vmatprep.subr.bf16.mxu1 %v1324_v0 }
 0x2ce   :  { %1242 = vmatpush3.bf16.msra.mxu1 %v1384_v7 }
 0x2cf   :  { %1249 = vmatprep.subr.bf16.mxu1 %v1324_v0 }
 0x39c   :  { %v233_v38 = vpop.f32.mrb[0].mxu1 }
 0x39d   :  { %v234_v39 = vadd.f32 %v1408_v11, %v233_v38  ;;  %v1152_v40 = vpop.f32.mrb[1].mxu1 }
 0x39e   :  { %v1066_v40 = vld [vmem:[%s1619_s0 + $0xc] sm:$0xf] }
 0x39f   :  { %245 = vrot.lane.b32.xlu0 %v234_v39, %s1328_s29  ;;  %v237_v42 = vadd.f32 %v1056_v41, %v234_v39  ;;  %v521_v39 = vsel %vm520_vm9, 1, %v1327_v9 }
 0x3a1   :  { %v1058_v43 = vmul.f32 -1.442695, %v237_v42 }
 0x3a3   :  { %1282 = vpow2.f32 %v1058_v43  ;;  %271 = vperm.xlu0 %1275, %v269_v47  }
 0x3ad   :  { %v1283_v44 = vpop.eup %1282 }
 0x3ae   :  { %v241_v45 = vadd.f32 1.0, %v1283_v44 }
 0x3b0   :  { %1284 = vrcp.f32 %v241_v45 }
 0x3ba   :  { %v1285_v48 = vpop.eup %1284 }
 0x3bb   :  { %v255_v55 = vsub.f32 1.0, %v1285_v48 }
 0x411   :  { %v246_v49 = vpop.permute.xlu0 %245 }
 0x412   :  { %v248_v50 = vmul.f32 %v1285_v48, %v246_v49 }
 0x414   :  { %250 = vrot.lane.b32.xlu1 %v248_v50, %s1328_s29 }
 0x422   :  { %v272_v56 = vpop.permute.xlu0 %271 }
 0x423   :  { %vm273_vm6 = vcmp.eq.s32.totalorder %v272_v56, 1 }
 0x486   :  { %v251_v51 = vpop.permute.xlu1 %250 }
 0x487   :  { %v253_v52 = vadd.f32 %v1056_v41, %v251_v51 }
 0x489   :  { %1286 = vtanh.f32 %v253_v52 }
 0x493   :  { %v1287_v53 = vpop.eup %1286 }
 0x494   :  { %257 = vrot.lane.b32.xlu1 %v1287_v53, %s1330_s7 }
 0x498   :  { %261 = vrot.lane.b32.xlu1 %v163_v37, %s1329_s3 }
 0x506   :  { %v258_v54 = vpop.permute.xlu1 %257 }
 0x507   :  { %v260_v58 = vmul.f32 %v258_v54, %v255_v55 }
 0x50a   :  { %v262_v57 = vpop.permute.xlu1 %261 }
 0x50b   :  { %v264_v59 = vmul.f32 %v1285_v48, %v262_v57 }
 0x50d   :  { %v265_v60 = vadd.f32 %v264_v59, %v260_v58 }
 0x50f   :  { %v1442_v61 = vsel %vm273_vm6, %v265_v60, 0.0  ;;  %v274_v62 = vsel %vm273_vm6, %v265_v60, %v262_v57 }
 0x510   :  { %276 = vrot.lane.b32.xlu0 %v274_v62, %s1330_s7 }
 0x582   :  { %v277_v63 = vpop.permute.xlu0 %276 }
 0x583   :  { %279 = vst.msk [vmem:[#allocation2] sm:$0xf] %vm23_vm0, %v277_v63  ;;  %v1074_v63 = vld [vmem:[%s1618_s1 + $0x10] sm:$0xf] }
 0x584   :  { %vm646_vm11 = vcmp.gt.f32.partialorder %v1074_v63, 0.5 }
 0x58a   :  { %v289_v1 = vld [vmem:[#allocation2] sm:$0xf] }
 0x58b   :  { %1162 = vmatmul.mubr.msk.f32.vlgmr.msra.gmra.mrb[2].mxu0 %vm38_vm2, %v289_v1 }
 0x58c   :  { %1245 = vmatpush3.bf16.msra.mxu0 %v1375_v5  ;;  %1183 = vmatprep.mubr.msk.f32.mxu0 %vm1326_vm1, %v1325_v4 }
 0x58d   :  { %1246 = vmatprep.subr.bf16.mxu0 %v1324_v0 }
 0x590   :  { %1248 = vmatpush3.bf16.msra.mxu0 %v1384_v7 }
 0x591   :  { %1255 = vmatprep.subr.bf16.mxu0 %v1324_v0 }
 0x65e   :  { %v359_v3 = vpop.f32.mrb[2].mxu0 }
 0x65f   :  { %v360_v6 = vadd.f32 %v1408_v11, %v359_v3  ;;  %v1163_v8 = vpop.f32.mrb[3].mxu0 }
 0x660   :  { %v1071_v8 = vld [vmem:[%s1619_s0 + $0x10] sm:$0xf] }
 0x661   :  { %371 = vrot.lane.b32.xlu1 %v360_v6, %s1328_s29  ;;  %v363_v13 = vadd.f32 %v1061_v12, %v360_v6  ;;  %v647_v6 = vsel %vm646_vm11, 1, %v1327_v9 }
 0x663   :  { %v1063_v14 = vmul.f32 -1.442695, %v363_v13 }
 0x665   :  { %397 = vperm.xlu1 %1274, %v395_v10   ;;  %1288 = vpow2.f32 %v1063_v14 }
 0x669   :  { %387 = vrot.lane.b32.xlu1 %v289_v1, %s1329_s3 }
 0x66f   :  { %v1289_v15 = vpop.eup %1288 }
 0x670   :  { %v367_v16 = vadd.f32 1.0, %v1289_v15 }
 0x672   :  { %1290 = vrcp.f32 %v367_v16 }
 0x67c   :  { %v1291_v17 = vpop.eup %1290 }
 0x67d   :  { %v381_v25 = vsub.f32 1.0, %v1291_v17 }
 0x6d3   :  { %v372_v18 = vpop.permute.xlu1 %371 }
 0x6d4   :  { %v374_v19 = vmul.f32 %v1291_v17, %v372_v18 }
 0x6d6   :  { %376 = vrot.lane.b32.xlu0 %v374_v19, %s1328_s29 }
 0x6e4   :  { %v398_v23 = vpop.permute.xlu1 %397 }
 0x6e5   :  { %vm399_vm8 = vcmp.eq.s32.totalorder %v398_v23, 1 }
 0x6e8   :  { %v388_v24 = vpop.permute.xlu1 %387 }
 0x6e9   :  { %v390_v27 = vmul.f32 %v1291_v17, %v388_v24 }
 0x748   :  { %v377_v20 = vpop.permute.xlu0 %376 }
 0x749   :  { %v379_v21 = vadd.f32 %v1061_v12, %v377_v20 }
 0x74b   :  { %1292 = vtanh.f32 %v379_v21 }
 0x755   :  { %v1293_v22 = vpop.eup %1292 }
 0x756   :  { %383 = vrot.lane.b32.xlu0 %v1293_v22, %s1330_s7 }
 0x7c8   :  { %v384_v26 = vpop.permute.xlu0 %383 }
 0x7c9   :  { %v386_v28 = vmul.f32 %v384_v26, %v381_v25 }
 0x7cb   :  { %v391_v29 = vadd.f32 %v390_v27, %v386_v28 }
 0x7cd   :  { %v400_v30 = vsel %vm399_vm8, %v391_v29, %v388_v24  ;;  %v1465_v31 = vsel %vm399_vm8, %v391_v29, 0.0 }
 0x7ce   :  { %402 = vrot.lane.b32.xlu0 %v400_v30, %s1330_s7 }
 0x840   :  { %v403_v32 = vpop.permute.xlu0 %402 }
 0x841   :  { %405 = vst.msk [vmem:[#allocation2] sm:$0xf] %vm23_vm0, %v403_v32 }
 0x848   :  { %v415_v33 = vld [vmem:[#allocation2] sm:$0xf] }
 0x849   :  { %1173 = vmatmul.mubr.msk.f32.vlgmr.msra.gmra.mrb[2].mxu1 %vm38_vm2, %v415_v33 }
 0x84a   :  { %1251 = vmatpush3.bf16.msra.mxu1 %v1375_v5  ;;  %1194 = vmatprep.mubr.msk.f32.mxu1 %vm1326_vm1, %v1325_v4 }
 0x84b   :  { %1252 = vmatprep.subr.bf16.mxu1 %v1324_v0 }
 0x84e   :  { %1254 = vmatpush3.bf16.msra.mxu1 %v1384_v7 }
 0x84f   :  { %1261 = vmatprep.subr.bf16.mxu1 %v1324_v0 }
 0x91c   :  { %v485_v36 = vpop.f32.mrb[2].mxu1 }
 0x91d   :  { %v486_v37 = vadd.f32 %v1408_v11, %v485_v36  ;;  %v1174_v38 = vpop.f32.mrb[3].mxu1 }
 0x91f   :  { %497 = vrot.lane.b32.xlu1 %v486_v37, %s1328_s29  ;;  %v489_v41 = vadd.f32 %v1066_v40, %v486_v37 }
 0x921   :  { %v1068_v42 = vmul.f32 -1.442695, %v489_v41 }
 0x923   :  { %523 = vperm.xlu1 %1274, %v521_v39   ;;  %1294 = vpow2.f32 %v1068_v42 }
 0x927   :  { %513 = vrot.lane.b32.xlu1 %v415_v33, %s1329_s3  ;;  %v1079_v33 = vld [vmem:[%s1618_s1 + $0x14] sm:$0xf] }
 0x928   :  { %vm772_vm13 = vcmp.gt.f32.partialorder %v1079_v33, 0.5 }
 0x92d   :  { %v1295_v43 = vpop.eup %1294 }
 0x92e   :  { %v493_v44 = vadd.f32 1.0, %v1295_v43 }
 0x930   :  { %1296 = vrcp.f32 %v493_v44 }
 0x93a   :  { %v1297_v45 = vpop.eup %1296 }
 0x93b   :  { %v507_v53 = vsub.f32 1.0, %v1297_v45 }
 0x991   :  { %v498_v46 = vpop.permute.xlu1 %497 }
 0x992   :  { %v500_v47 = vmul.f32 %v1297_v45, %v498_v46 }
 0x994   :  { %502 = vrot.lane.b32.xlu0 %v500_v47, %s1328_s29 }
 0x9a2   :  { %v524_v51 = vpop.permute.xlu1 %523 }
 0x9a3   :  { %vm525_vm10 = vcmp.eq.s32.totalorder %v524_v51, 1 }
 0x9a6   :  { %v514_v52 = vpop.permute.xlu1 %513 }
 0x9a7   :  { %v516_v55 = vmul.f32 %v1297_v45, %v514_v52 }
 0xa06   :  { %v503_v48 = vpop.permute.xlu0 %502 }
 0xa07   :  { %v505_v49 = vadd.f32 %v1066_v40, %v503_v48 }
 0xa09   :  { %1298 = vtanh.f32 %v505_v49 }
 0xa13   :  { %v1299_v50 = vpop.eup %1298 }
 0xa14   :  { %509 = vrot.lane.b32.xlu0 %v1299_v50, %s1330_s7 }
 0xa86   :  { %v510_v54 = vpop.permute.xlu0 %509 }
 0xa87   :  { %v512_v56 = vmul.f32 %v510_v54, %v507_v53 }
 0xa89   :  { %v517_v57 = vadd.f32 %v516_v55, %v512_v56 }
 0xa8b   :  { %v526_v58 = vsel %vm525_vm10, %v517_v57, %v514_v52  ;;  %v1488_v59 = vsel %vm525_vm10, %v517_v57, 0.0  ;;  %v1084_v57 = vld [vmem:[%s1618_s1 + $0x18] sm:$0xf] }
 0xa8c   :  { %528 = vrot.lane.b32.xlu0 %v526_v58, %s1330_s7  ;;  %vm898_vm15 = vcmp.gt.f32.partialorder %v1084_v57, 0.5 }
 0xa8d   :  { %v899_v63 = vsel %vm898_vm15, 1, %v1327_v9 }
 0xafe   :  { %v529_v60 = vpop.permute.xlu0 %528 }
 0xaff   :  { %531 = vst.msk [vmem:[#allocation2] sm:$0xf] %vm23_vm0, %v529_v60 }
 0xb06   :  { %v541_v62 = vld [vmem:[#allocation2] sm:$0xf] }
 0xb07   :  { %1184 = vmatmul.mubr.msk.f32.vlgmr.msra.gmra.mrb[4].mxu0 %vm38_vm2, %v541_v62 }
 0xb08   :  { %1257 = vmatpush3.bf16.msra.mxu0 %v1375_v5  ;;  %1205 = vmatprep.mubr.msk.f32.mxu0 %vm1326_vm1, %v1325_v4 }
 0xb09   :  { %1258 = vmatprep.subr.bf16.mxu0 %v1324_v0 }
 0xb0c   :  { %1260 = vmatpush3.bf16.msra.mxu0 %v1384_v7 }
 0xbda   :  { %v611_v1 = vpop.f32.mrb[4].mxu0 }
 0xbdb   :  { %v612_v2 = vadd.f32 %v1408_v11, %v611_v1  ;;  %v1185_v3 = vpop.f32.mrb[5].mxu0  ;;  %v1081_v1 = vld [vmem:[%s1619_s0 + $0x18] sm:$0xf] }
 0xbdd   :  { %623 = vrot.lane.b32.xlu1 %v612_v2, %s1328_s29  ;;  %v615_v10 = vadd.f32 %v1071_v8, %v612_v2 }
 0xbdf   :  { %v1073_v12 = vmul.f32 -1.442695, %v615_v10 }
 0xbe1   :  { %649 = vperm.xlu1 %1274, %v647_v6   ;;  %1300 = vpow2.f32 %v1073_v12 }
 0xbe5   :  { %639 = vrot.lane.b32.xlu1 %v541_v62, %s1329_s3 }
 0xbeb   :  { %v1301_v13 = vpop.eup %1300 }
 0xbec   :  { %v619_v14 = vadd.f32 1.0, %v1301_v13 }
 0xbee   :  { %1302 = vrcp.f32 %v619_v14 }
 0xbf8   :  { %v1303_v15 = vpop.eup %1302 }
 0xbf9   :  { %v633_v23 = vsub.f32 1.0, %v1303_v15 }
 0xc4f   :  { %v624_v16 = vpop.permute.xlu1 %623 }
 0xc50   :  { %v626_v17 = vmul.f32 %v1303_v15, %v624_v16 }
 0xc52   :  { %628 = vrot.lane.b32.xlu0 %v626_v17, %s1328_s29 }
 0xc60   :  { %v650_v21 = vpop.permute.xlu1 %649 }
 0xc61   :  { %vm651_vm12 = vcmp.eq.s32.totalorder %v650_v21, 1 }
 0xc64   :  { %v640_v22 = vpop.permute.xlu1 %639 }
 0xc65   :  { %v642_v25 = vmul.f32 %v1303_v15, %v640_v22 }
 0xcc4   :  { %v629_v18 = vpop.permute.xlu0 %628 }
 0xcc5   :  { %v631_v19 = vadd.f32 %v1071_v8, %v629_v18 }
 0xcc7   :  { %1304 = vtanh.f32 %v631_v19 }
 0xcd1   :  { %v1305_v20 = vpop.eup %1304 }
 0xcd2   :  { %635 = vrot.lane.b32.xlu0 %v1305_v20, %s1330_s7 }
 0xd44   :  { %v636_v24 = vpop.permute.xlu0 %635 }
 0xd45   :  { %v638_v26 = vmul.f32 %v636_v24, %v633_v23 }
 0xd47   :  { %v643_v27 = vadd.f32 %v642_v25, %v638_v26 }
 0xd49   :  { %v652_v28 = vsel %vm651_vm12, %v643_v27, %v640_v22  ;;  %v1510_v29 = vsel %vm651_vm12, %v643_v27, 0.0 }
 0xd4a   :  { %654 = vrot.lane.b32.xlu0 %v652_v28, %s1330_s7  ;;  %v1089_v28 = vld [vmem:[%s1618_s1 + $0x1c] sm:$0xf] }
 0xd4b   :  { %vm1024_vm3 = vcmp.gt.f32.partialorder %v1089_v28, 0.5 }
 0xdbc   :  { %v655_v30 = vpop.permute.xlu0 %654 }
 0xdbd   :  { %657 = vst.msk [vmem:[#allocation2] sm:$0xf] %vm23_vm0, %v655_v30 }
 0xdc4   :  { %v667_v32 = vld [vmem:[#allocation2] sm:$0xf] }
 0xdc5   :  { %1195 = vmatmul.mubr.msk.f32.vlgmr.msra.gmra.mrb[4].mxu1 %vm38_vm2, %v667_v32 }
 0xdc6   :  { %1263 = vmatpush3.bf16.msra.mxu1 %v1375_v5  ;;  %1216 = vmatprep.mubr.msk.f32.mxu1 %vm1326_vm1, %v1325_v4  ;;  %v773_v5 = vsel %vm772_vm13, 1, %v1327_v9 }
 0xdc7   :  { %1264 = vmatprep.subr.bf16.mxu1 %v1324_v0  ;;  %v1076_v0 = vld [vmem:[%s1619_s0 + $0x14] sm:$0xf] }
 0xdca   :  { %1266 = vmatpush3.bf16.msra.mxu1 %v1384_v7 }
 0xe98   :  { %v737_v34 = vpop.f32.mrb[4].mxu1 }
 0xe99   :  { %v738_v36 = vadd.f32 %v1408_v11, %v737_v34  ;;  %v1196_v37 = vpop.f32.mrb[5].mxu1  ;;  %v1025_v34 = vsel %vm1024_vm3, 1, %v1327_v9 }
 0xe9b   :  { %749 = vrot.lane.b32.xlu1 %v738_v36, %s1328_s29  ;;  %v741_v4 = vadd.f32 %v1076_v0, %v738_v36 }
 0xe9d   :  { %v1078_v7 = vmul.f32 -1.442695, %v741_v4 }
 0xe9f   :  { %775 = vperm.xlu1 %1274, %v773_v5   ;;  %1306 = vpow2.f32 %v1078_v7 }
 0xea3   :  { %765 = vrot.lane.b32.xlu1 %v667_v32, %s1329_s3 }
 0xea9   :  { %v1307_v38 = vpop.eup %1306 }
 0xeaa   :  { %v745_v39 = vadd.f32 1.0, %v1307_v38 }
 0xeac   :  { %1308 = vrcp.f32 %v745_v39 }
 0xeb6   :  { %v1309_v40 = vpop.eup %1308 }
 0xeb7   :  { %v759_v48 = vsub.f32 1.0, %v1309_v40 }
 0xf0d   :  { %v750_v41 = vpop.permute.xlu1 %749 }
 0xf0e   :  { %v752_v42 = vmul.f32 %v1309_v40, %v750_v41 }
 0xf10   :  { %754 = vrot.lane.b32.xlu0 %v752_v42, %s1328_s29 }
 0xf1e   :  { %v776_v46 = vpop.permute.xlu1 %775 }
 0xf1f   :  { %vm777_vm14 = vcmp.eq.s32.totalorder %v776_v46, 1 }
 0xf22   :  { %v766_v47 = vpop.permute.xlu1 %765 }
 0xf23   :  { %v768_v50 = vmul.f32 %v1309_v40, %v766_v47 }
 0xf82   :  { %v755_v43 = vpop.permute.xlu0 %754 }
 0xf83   :  { %v757_v44 = vadd.f32 %v1076_v0, %v755_v43 }
 0xf85   :  { %1310 = vtanh.f32 %v757_v44 }
 0xf8f   :  { %v1311_v45 = vpop.eup %1310 }
 0xf90   :  { %761 = vrot.lane.b32.xlu0 %v1311_v45, %s1330_s7 }
0x1002   :  { %v762_v49 = vpop.permute.xlu0 %761 }
0x1003   :  { %v764_v51 = vmul.f32 %v762_v49, %v759_v48 }
0x1005   :  { %v769_v52 = vadd.f32 %v768_v50, %v764_v51 }
0x1007   :  { %v778_v53 = vsel %vm777_vm14, %v769_v52, %v766_v47  ;;  %v1532_v54 = vsel %vm777_vm14, %v769_v52, 0.0 }
0x1008   :  { %780 = vrot.lane.b32.xlu0 %v778_v53, %s1330_s7 }
0x107a   :  { %v781_v55 = vpop.permute.xlu0 %780 }
0x107b   :  { %783 = vst.msk [vmem:[#allocation2] sm:$0xf] %vm23_vm0, %v781_v55 }
0x1082   :  { %v793_v56 = vld [vmem:[#allocation2] sm:$0xf] }
0x1083   :  { %1206 = vmatmul.mubr.msk.f32.vlgmr.msra.gmra.mrb[6].mxu0 %vm38_vm2, %v793_v56 }
0x1156   :  { %v863_v58 = vpop.f32.mrb[6].mxu0 }
0x1157   :  { %v864_v60 = vadd.f32 %v1408_v11, %v863_v58  ;;  %v1207_v62 = vpop.f32.mrb[7].mxu0 }
0x1159   :  { %875 = vrot.lane.b32.xlu1 %v864_v60, %s1328_s29  ;;  %v867_v2 = vadd.f32 %v1081_v1, %v864_v60 }
0x115b   :  { %v1083_v3 = vmul.f32 -1.442695, %v867_v2 }
0x115d   :  { %901 = vperm.xlu1 %1274, %v899_v63   ;;  %1312 = vpow2.f32 %v1083_v3 }
0x1161   :  { %891 = vrot.lane.b32.xlu1 %v793_v56, %s1329_s3 }
0x1167   :  { %v1313_v6 = vpop.eup %1312 }
0x1168   :  { %v871_v8 = vadd.f32 1.0, %v1313_v6 }
0x116a   :  { %1314 = vrcp.f32 %v871_v8 }
0x1174   :  { %v1315_v10 = vpop.eup %1314 }
0x1175   :  { %v885_v19 = vsub.f32 1.0, %v1315_v10 }
0x11cb   :  { %v876_v12 = vpop.permute.xlu1 %875 }
0x11cc   :  { %v878_v13 = vmul.f32 %v1315_v10, %v876_v12 }
0x11ce   :  { %880 = vrot.lane.b32.xlu0 %v878_v13, %s1328_s29 }
0x11dc   :  { %v902_v17 = vpop.permute.xlu1 %901 }
0x11dd   :  { %vm903_vm1 = vcmp.eq.s32.totalorder %v902_v17, 1 }
0x11e0   :  { %v892_v18 = vpop.permute.xlu1 %891 }
0x11e1   :  { %v894_v21 = vmul.f32 %v1315_v10, %v892_v18 }
0x1240   :  { %v881_v14 = vpop.permute.xlu0 %880 }
0x1241   :  { %v883_v15 = vadd.f32 %v1081_v1, %v881_v14 }
0x1243   :  { %1316 = vtanh.f32 %v883_v15 }
0x124d   :  { %v1317_v16 = vpop.eup %1316 }
0x124e   :  { %887 = vrot.lane.b32.xlu0 %v1317_v16, %s1330_s7 }
0x12c0   :  { %v888_v20 = vpop.permute.xlu0 %887 }
0x12c1   :  { %v890_v22 = vmul.f32 %v888_v20, %v885_v19 }
0x12c3   :  { %v895_v23 = vadd.f32 %v894_v21, %v890_v22 }
0x12c5   :  { %v904_v24 = vsel %vm903_vm1, %v895_v23, %v892_v18  ;;  %v910_v25 = vsel %vm903_vm1, %v895_v23, 0.0 }
0x12c6   :  { %906 = vrot.lane.b32.xlu0 %v904_v24, %s1330_s7 }
0x1338   :  { %v907_v26 = vpop.permute.xlu0 %906 }
0x1339   :  { %909 = vst.msk [vmem:[#allocation2] sm:$0xf] %vm23_vm0, %v907_v26 }
0x1340   :  { %v919_v27 = vld [vmem:[#allocation2] sm:$0xf] }
0x1341   :  { %1217 = vmatmul.mubr.msk.f32.vlgmr.msra.gmra.mrb[6].mxu1 %vm38_vm2, %v919_v27 }
0x1414   :  { %v989_v30 = vpop.f32.mrb[6].mxu1 }
0x1415   :  { %v990_v32 = vadd.f32 %v1408_v11, %v989_v30  ;;  %v1218_v33 = vpop.f32.mrb[7].mxu1  ;;  %v1086_v11 = vld [vmem:[%s1619_s0 + $0x1c] sm:$0xf] }
0x1417   :  { %1001 = vrot.lane.b32.xlu1 %v990_v32, %s1328_s29  ;;  %v993_v36 = vadd.f32 %v1086_v11, %v990_v32 }
0x1419   :  { %v1088_v9 = vmul.f32 -1.442695, %v993_v36 }
0x141b   :  { %1027 = vperm.xlu1 %1274, %v1025_v34   ;;  %1318 = vpow2.f32 %v1088_v9 }
0x141f   :  { %1017 = vrot.lane.b32.xlu1 %v919_v27, %s1329_s3 }
0x1423   :  { %157 = vrot.lane.b32.xlu1 %v1419_v35, %s1330_s7 }
0x1425   :  { %v1319_v37 = vpop.eup %1318 }
0x1426   :  { %v997_v5 = vadd.f32 1.0, %v1319_v37 }
0x1427   :  { %408 = vrot.lane.b32.xlu1 %v1465_v31, %s1330_s7 }
0x1428   :  { %1320 = vrcp.f32 %v997_v5 }
0x142b   :  { %660 = vrot.lane.b32.xlu1 %v1510_v29, %s1330_s7 }
0x142f   :  { %912 = vrot.lane.b32.xlu1 %v910_v25, %s1330_s7 }
0x1432   :  { %v1321_v0 = vpop.eup %1320 }
0x1433   :  { %v1011_v44 = vsub.f32 1.0, %v1321_v0 }
0x1489   :  { %v1002_v35 = vpop.permute.xlu1 %1001 }
0x148a   :  { %v1004_v4 = vmul.f32 %v1321_v0, %v1002_v35 }
0x148c   :  { %1006 = vrot.lane.b32.xlu0 %v1004_v4, %s1328_s29 }
0x149a   :  { %v1028_v31 = vpop.permute.xlu1 %1027 }
0x149b   :  { %vm1029_vm2 = vcmp.eq.s32.totalorder %v1028_v31, 1 }
0x149e   :  { %v1018_v7 = vpop.permute.xlu1 %1017 }
0x149f   :  { %v1020_v46 = vmul.f32 %v1321_v0, %v1018_v7 }
0x14a2   :  { %v158_v29 = vpop.permute.xlu1 %157 }
0x14a3   :  { %160 = vst.msk [vmem:[%s1620_s4] sm:$0xf] %vm23_vm0, %v158_v29 }
0x14a6   :  { %v409_v38 = vpop.permute.xlu1 %408 }
0x14a7   :  { %1065 = vst.msk [vmem:[%s1620_s4 + $0x8] sm:$0xf] %vm23_vm0, %v409_v38 }
0x14aa   :  { %v661_v39 = vpop.permute.xlu1 %660 }
0x14ab   :  { %1075 = vst.msk [vmem:[%s1620_s4 + $0x10] sm:$0xf] %vm23_vm0, %v661_v39 }
0x14ae   :  { %v913_v40 = vpop.permute.xlu1 %912 }
0x14af   :  { %1085 = vst.msk [vmem:[%s1620_s4 + $0x18] sm:$0xf] %vm23_vm0, %v913_v40 }
0x14fe   :  { %v1007_v41 = vpop.permute.xlu0 %1006 }
0x14ff   :  { %v1009_v42 = vadd.f32 %v1086_v11, %v1007_v41 }
0x1501   :  { %1322 = vtanh.f32 %v1009_v42 }
0x150b   :  { %v1323_v43 = vpop.eup %1322 }
0x150c   :  { %1013 = vrot.lane.b32.xlu0 %v1323_v43, %s1330_s7 }
0x1510   :  { %282 = vrot.lane.b32.xlu0 %v1442_v61, %s1330_s7 }
0x1514   :  { %534 = vrot.lane.b32.xlu0 %v1488_v59, %s1330_s7 }
0x157e   :  { %v1014_v45 = vpop.permute.xlu0 %1013 }
0x157f   :  { %v1016_v47 = vmul.f32 %v1014_v45, %v1011_v44 }
0x1581   :  { %v1021_v48 = vadd.f32 %v1020_v46, %v1016_v47 }
0x1582   :  { %v283_v49 = vpop.permute.xlu0 %282 }
0x1583   :  { %1060 = vst.msk [vmem:[%s1620_s4 + $0x4] sm:$0xf] %vm23_vm0, %v283_v49  ;;  %v1030_v50 = vsel %vm1029_vm2, %v1021_v48, %v1018_v7  ;;  %v1036_v61 = vsel %vm1029_vm2, %v1021_v48, 0.0 }
0x1584   :  { %1032 = vrot.lane.b32.xlu0 %v1030_v50, %s1330_s7 }
0x1586   :  { %v535_v51 = vpop.permute.xlu0 %534 }
0x1587   :  { %1070 = vst.msk [vmem:[%s1620_s4 + $0xc] sm:$0xf] %vm23_vm0, %v535_v51 }
0x1588   :  { %786 = vrot.lane.b32.xlu0 %v1532_v54, %s1330_s7 }
0x158c   :  { %1038 = vrot.lane.b32.xlu0 %v1036_v61, %s1330_s7 }
0x15f6   :  { %v1033_v59 = vpop.permute.xlu0 %1032 }
0x15f7   :  { %1035 = vst.msk [vmem:[#allocation2] sm:$0xf] %vm23_vm0, %v1033_v59 }
0x15fa   :  { %v787_v52 = vpop.permute.xlu0 %786 }
0x15fb   :  { %1080 = vst.msk [vmem:[%s1620_s4 + $0x14] sm:$0xf] %vm23_vm0, %v787_v52 }
0x15fe   :  { %v1043_v53 = vld [vmem:[#allocation2] sm:$0xf]  ;;  %v1039_v55 = vpop.permute.xlu0 %1038 }
0x15ff   :  { %1044 = vst.msk [vmem:[%s1621_s5] sm:$0xf] %vm23_vm0, %v1043_v53  ;;  %1090 = vst.msk [vmem:[%s1620_s4 + $0x1c] sm:$0xf] %vm23_vm0, %v1039_v55 }

// kernel: seq2seq_forward.5
= control target key start
LH: loop header
LB: loop body
LE: loop exit
PB: predicated region body
PF: predicated region fallthrough
CT: control target
= control target key end

     0   :  { %vm23_vm0 = vcmask 259072   ;;  %v1324_v0 = vmov 0.0|0.0   ;;  %v1325_v4 = vmov 0.0   ;;  %vm1326_vm1 = vmmov 0   ;;  %s1328_s29 = smov 64   ;;  %s1330_s7 = smov 96   ;;  %s1616_s2 = inlined_call_operand.vmem [shape: f32[32,96], index: 2, kind: input, shape index: {}]   ;;  %s1617_s3 = inlined_call_operand.vmem [shape: f32[1,96], index: 3, kind: input, shape index: {}]   ;;  %s1618_s1 = inlined_call_operand.vmem [shape: f32[8,6,1], index: 1, kind: input, shape index: {}]   ;;  %s1619_s0 = inlined_call_operand.vmem [shape: f32[8,6,96], index: 0, kind: input, shape index: {}]   ;;  %s1620_s4 = inlined_call_operand.vmem [shape: f32[8,6,32], index: 4, kind: output, shape index: {0}]   ;;  %s1621_s5 = inlined_call_operand.vmem [shape: f32[6,32], index: 5, kind: output, shape index: {1}]  }
   0x1   :  { %1219 = vmatprep.subr.bf16.mxu0 %v1324_v0  ;;  %v25_v1 = vld [vmem:[%s1616_s2] sm:$0xff]  ;;  %v26_v2 = vld [vmem:[%s1616_s2 + $0x8] sm:$0xff]  ;;  %v27_v3 = vld [vmem:[%s1616_s2 + $0x10] sm:$0xff]  ;;  %24 = vst.msk [vmem:[#allocation2] sm:$0x3f] %vm23_vm0, %v1325_v4  ;;  %1139 = vmatprep.mubr.msk.f32.mxu0 %vm1326_vm1, %v1325_v4  ;;  %vm38_vm2 = vcmask 261120  }
   0x2   :  { %v1375_v5 = vpack.c.bf16 %v26_v2, %v25_v1  ;;  %v28_v6 = vld [vmem:[%s1616_s2 + $0x18] sm:$0xff]  ;;  %1225 = vmatprep.subr.bf16.mxu1 %v1324_v0  ;;  %1150 = vmatprep.mubr.msk.f32.mxu1 %vm1326_vm1, %v1325_v4  ;;  %v1327_v9 = vmov 0   ;;  %v141_v10 = vld [vmem:[%s1618_s1] sm:$0x3f]  ;;  %v1056_v41 = vld [vmem:[%s1619_s0 + $0x8] sm:$0x3f] }
   0x3   :  { %v1384_v7 = vpack.c.bf16 %v28_v6, %v27_v3  ;;  %1274 = vset.pattern.permute.xlu1 %v1327_v9  ;;  %1275 = vset.pattern.permute.xlu0 %v1327_v9  ;;  %v1408_v11 = vld [vmem:[%s1617_s3] ss:$0 sm:$0xff]  ;;  %vm142_vm3 = vcmp.gt.f32.partialorder %v141_v10, 0.5  ;;  %s1329_s3 = smov 32   ;;  %v1059_v46 = vld [vmem:[%s1618_s1 + $0x8] sm:$0x3f] }
   0x4   :  { %1221 = vmatpush3.bf16.msra.mxu0 %v1375_v5  ;;  %1227 = vmatpush3.bf16.msra.mxu1 %v1375_v5  ;;  %v143_v12 = vsel %vm142_vm3, 1, %v1327_v9  ;;  %v30_v16 = vld [vmem:[%s1619_s0] sm:$0x3f]  ;;  %vm268_vm5 = vcmp.gt.f32.partialorder %v1059_v46, 0.5  ;;  %v1064_v2 = vld [vmem:[%s1618_s1 + $0x10] sm:$0x3f] }
   0x5   :  { %1222 = vmatprep.subr.bf16.mxu0 %v1324_v0  ;;  %1228 = vmatprep.subr.bf16.mxu1 %v1324_v0  ;;  %v269_v47 = vsel %vm268_vm5, 1, %v1327_v9  ;;  %vm394_vm7 = vcmp.gt.f32.partialorder %v1064_v2, 0.5 }
   0x6   :  { %145 = vperm.xlu1 %1274, %v143_v12   ;;  %v395_v10 = vsel %vm394_vm7, 1, %v1327_v9  ;;  %v1061_v12 = vld [vmem:[%s1619_s0 + $0x10] sm:$0x3f] }
   0x8   :  { %1224 = vmatpush3.bf16.msra.mxu0 %v1384_v7  ;;  %v31_v8 = vld [vmem:[#allocation2] sm:$0x3f]  ;;  %1230 = vmatpush3.bf16.msra.mxu1 %v1384_v7 }
   0x9   :  { %1231 = vmatprep.subr.bf16.mxu0 %v1324_v0  ;;  %1237 = vmatprep.subr.bf16.mxu1 %v1324_v0 }
   0xb   :  { %1140 = vmatmul.mubr.msk.f32.vlgmr.msra.gmra.mrb[0].mxu0 %vm38_vm2, %v31_v8 }
   0xc   :  { %1233 = vmatpush3.bf16.msra.mxu0 %v1375_v5  ;;  %1161 = vmatprep.mubr.msk.f32.mxu0 %vm1326_vm1, %v1325_v4 }
   0xd   :  { %1234 = vmatprep.subr.bf16.mxu0 %v1324_v0 }
  0x10   :  { %1236 = vmatpush3.bf16.msra.mxu0 %v1384_v7 }
  0x11   :  { %1243 = vmatprep.subr.bf16.mxu0 %v1324_v0 }
  0x85   :  { %v146_v27 = vpop.permute.xlu1 %145 }
  0x86   :  { %vm147_vm4 = vcmp.eq.s32.totalorder %v146_v27, 1 }
  0xde   :  { %v108_v13 = vpop.f32.mrb[0].mxu0 }
  0xdf   :  { %v109_v14 = vadd.f32 %v1408_v11, %v108_v13  ;;  %v1141_v15 = vpop.f32.mrb[1].mxu0 }
  0xe1   :  { %120 = vrot.lane.b32.xlu0 %v109_v14, %s1328_s29  ;;  %v112_v17 = vadd.f32 %v109_v14, %v30_v16 }
  0xe3   :  { %v1055_v18 = vmul.f32 -1.442695, %v112_v17 }
  0xe5   :  { %1276 = vpow2.f32 %v1055_v18 }
  0xef   :  { %v1277_v19 = vpop.eup %1276 }
  0xf0   :  { %v116_v20 = vadd.f32 1.0, %v1277_v19 }
  0xf2   :  { %1278 = vrcp.f32 %v116_v20 }
  0xfc   :  { %v1279_v21 = vpop.eup %1278 }
  0xfd   :  { %v130_v29 = vsub.f32 1.0, %v1279_v21 }
 0x153   :  { %v121_v22 = vpop.permute.xlu0 %120 }
 0x154   :  { %v123_v23 = vmul.f32 %v1279_v21, %v121_v22 }
 0x156   :  { %125 = vrot.lane.b32.xlu0 %v123_v23, %s1328_s29 }
 0x15a   :  { %136 = vrot.lane.b32.xlu0 %v31_v8, %s1329_s3 }
 0x1c8   :  { %v126_v24 = vpop.permute.xlu0 %125 }
 0x1c9   :  { %v128_v25 = vadd.f32 %v126_v24, %v30_v16 }
 0x1cb   :  { %1280 = vtanh.f32 %v128_v25 }
 0x1cc   :  { %v137_v28 = vpop.permute.xlu0 %136 }
 0x1cd   :  { %v139_v31 = vmul.f32 %v1279_v21, %v137_v28 }
 0x1d5   :  { %v1281_v26 = vpop.eup %1280 }
 0x1d6   :  { %132 = vrot.lane.b32.xlu1 %v1281_v26, %s1330_s7 }
 0x248   :  { %v133_v30 = vpop.permute.xlu1 %132 }
 0x249   :  { %v135_v32 = vmul.f32 %v133_v30, %v130_v29 }
 0x24b   :  { %v140_v33 = vadd.f32 %v139_v31, %v135_v32 }
 0x24d   :  { %v148_v34 = vsel %vm147_vm4, %v140_v33, %v137_v28  ;;  %v1419_v35 = vsel %vm147_vm4, %v140_v33, 0.0 }
 0x24e   :  { %150 = vrot.lane.b32.xlu1 %v148_v34, %s1330_s7  ;;  %v1069_v34 = vld [vmem:[%s1618_s1 + $0x18] sm:$0x3f] }
 0x24f   :  { %vm520_vm9 = vcmp.gt.f32.partialorder %v1069_v34, 0.5 }
 0x2c0   :  { %v151_v36 = vpop.permute.xlu1 %150 }
 0x2c1   :  { %154 = vst.msk [vmem:[#allocation2] sm:$0x3f] %vm23_vm0, %v151_v36 }
 0x2c8   :  { %v163_v37 = vld [vmem:[#allocation2] sm:$0x3f] }
 0x2c9   :  { %1151 = vmatmul.mubr.msk.f32.vlgmr.msra.gmra.mrb[0].mxu1 %vm38_vm2, %v163_v37 }
 0x2ca   :  { %1239 = vmatpush3.bf16.msra.mxu1 %v1375_v5  ;;  %1172 = vmatprep.mubr.msk.f32.mxu1 %vm1326_vm1, %v1325_v4 }
 0x2cb   :  { %1240 = vmatprep.subr.bf16.mxu1 %v1324_v0 }
 0x2ce   :  { %1242 = vmatpush3.bf16.msra.mxu1 %v1384_v7 }
 0x2cf   :  { %1249 = vmatprep.subr.bf16.mxu1 %v1324_v0 }
 0x39c   :  { %v233_v38 = vpop.f32.mrb[0].mxu1 }
 0x39d   :  { %v234_v39 = vadd.f32 %v1408_v11, %v233_v38  ;;  %v1152_v40 = vpop.f32.mrb[1].mxu1 }
 0x39e   :  { %v1066_v40 = vld [vmem:[%s1619_s0 + $0x18] sm:$0x3f] }
 0x39f   :  { %245 = vrot.lane.b32.xlu0 %v234_v39, %s1328_s29  ;;  %v237_v42 = vadd.f32 %v1056_v41, %v234_v39  ;;  %v521_v39 = vsel %vm520_vm9, 1, %v1327_v9 }
 0x3a1   :  { %v1058_v43 = vmul.f32 -1.442695, %v237_v42 }
 0x3a3   :  { %1282 = vpow2.f32 %v1058_v43  ;;  %271 = vperm.xlu0 %1275, %v269_v47  }
 0x3ad   :  { %v1283_v44 = vpop.eup %1282 }
 0x3ae   :  { %v241_v45 = vadd.f32 1.0, %v1283_v44 }
 0x3b0   :  { %1284 = vrcp.f32 %v241_v45 }
 0x3ba   :  { %v1285_v48 = vpop.eup %1284 }
 0x3bb   :  { %v255_v55 = vsub.f32 1.0, %v1285_v48 }
 0x411   :  { %v246_v49 = vpop.permute.xlu0 %245 }
 0x412   :  { %v248_v50 = vmul.f32 %v1285_v48, %v246_v49 }
 0x414   :  { %250 = vrot.lane.b32.xlu1 %v248_v50, %s1328_s29 }
 0x422   :  { %v272_v56 = vpop.permute.xlu0 %271 }
 0x423   :  { %vm273_vm6 = vcmp.eq.s32.totalorder %v272_v56, 1 }
 0x486   :  { %v251_v51 = vpop.permute.xlu1 %250 }
 0x487   :  { %v253_v52 = vadd.f32 %v1056_v41, %v251_v51 }
 0x489   :  { %1286 = vtanh.f32 %v253_v52 }
 0x493   :  { %v1287_v53 = vpop.eup %1286 }
 0x494   :  { %257 = vrot.lane.b32.xlu1 %v1287_v53, %s1330_s7 }
 0x498   :  { %261 = vrot.lane.b32.xlu1 %v163_v37, %s1329_s3 }
 0x506   :  { %v258_v54 = vpop.permute.xlu1 %257 }
 0x507   :  { %v260_v58 = vmul.f32 %v258_v54, %v255_v55 }
 0x50a   :  { %v262_v57 = vpop.permute.xlu1 %261 }
 0x50b   :  { %v264_v59 = vmul.f32 %v1285_v48, %v262_v57 }
 0x50d   :  { %v265_v60 = vadd.f32 %v264_v59, %v260_v58 }
 0x50f   :  { %v1442_v61 = vsel %vm273_vm6, %v265_v60, 0.0  ;;  %v274_v62 = vsel %vm273_vm6, %v265_v60, %v262_v57 }
 0x510   :  { %276 = vrot.lane.b32.xlu0 %v274_v62, %s1330_s7 }
 0x582   :  { %v277_v63 = vpop.permute.xlu0 %276 }
 0x583   :  { %279 = vst.msk [vmem:[#allocation2] sm:$0x3f] %vm23_vm0, %v277_v63  ;;  %v1074_v63 = vld [vmem:[%s1618_s1 + $0x20] sm:$0x3f] }
 0x584   :  { %vm646_vm11 = vcmp.gt.f32.partialorder %v1074_v63, 0.5 }
 0x58a   :  { %v289_v1 = vld [vmem:[#allocation2] sm:$0x3f] }
 0x58b   :  { %1162 = vmatmul.mubr.msk.f32.vlgmr.msra.gmra.mrb[2].mxu0 %vm38_vm2, %v289_v1 }
 0x58c   :  { %1245 = vmatpush3.bf16.msra.mxu0 %v1375_v5  ;;  %1183 = vmatprep.mubr.msk.f32.mxu0 %vm1326_vm1, %v1325_v4 }
 0x58d   :  { %1246 = vmatprep.subr.bf16.mxu0 %v1324_v0 }
 0x590   :  { %1248 = vmatpush3.bf16.msra.mxu0 %v1384_v7 }
 0x591   :  { %1255 = vmatprep.subr.bf16.mxu0 %v1324_v0 }
 0x65e   :  { %v359_v3 = vpop.f32.mrb[2].mxu0 }
 0x65f   :  { %v360_v6 = vadd.f32 %v1408_v11, %v359_v3  ;;  %v1163_v8 = vpop.f32.mrb[3].mxu0 }
 0x660   :  { %v1071_v8 = vld [vmem:[%s1619_s0 + $0x20] sm:$0x3f] }
 0x661   :  { %371 = vrot.lane.b32.xlu1 %v360_v6, %s1328_s29  ;;  %v363_v13 = vadd.f32 %v1061_v12, %v360_v6  ;;  %v647_v6 = vsel %vm646_vm11, 1, %v1327_v9 }
 0x663   :  { %v1063_v14 = vmul.f32 -1.442695, %v363_v13 }
 0x665   :  { %397 = vperm.xlu1 %1274, %v395_v10   ;;  %1288 = vpow2.f32 %v1063_v14 }
 0x669   :  { %387 = vrot.lane.b32.xlu1 %v289_v1, %s1329_s3 }
 0x66f   :  { %v1289_v15 = vpop.eup %1288 }
 0x670   :  { %v367_v16 = vadd.f32 1.0, %v1289_v15 }
 0x672   :  { %1290 = vrcp.f32 %v367_v16 }
 0x67c   :  { %v1291_v17 = vpop.eup %1290 }
 0x67d   :  { %v381_v25 = vsub.f32 1.0, %v1291_v17 }
 0x6d3   :  { %v372_v18 = vpop.permute.xlu1 %371 }
 0x6d4   :  { %v374_v19 = vmul.f32 %v1291_v17, %v372_v18 }
 0x6d6   :  { %376 = vrot.lane.b32.xlu0 %v374_v19, %s1328_s29 }
 0x6e4   :  { %v398_v23 = vpop.permute.xlu1 %397 }
 0x6e5   :  { %vm399_vm8 = vcmp.eq.s32.totalorder %v398_v23, 1 }
 0x6e8   :  { %v388_v24 = vpop.permute.xlu1 %387 }
 0x6e9   :  { %v390_v27 = vmul.f32 %v1291_v17, %v388_v24 }
 0x748   :  { %v377_v20 = vpop.permute.xlu0 %376 }
 0x749   :  { %v379_v21 = vadd.f32 %v1061_v12, %v377_v20 }
 0x74b   :  { %1292 = vtanh.f32 %v379_v21 }
 0x755   :  { %v1293_v22 = vpop.eup %1292 }
 0x756   :  { %383 = vrot.lane.b32.xlu0 %v1293_v22, %s1330_s7 }
 0x7c8   :  { %v384_v26 = vpop.permute.xlu0 %383 }
 0x7c9   :  { %v386_v28 = vmul.f32 %v384_v26, %v381_v25 }
 0x7cb   :  { %v391_v29 = vadd.f32 %v390_v27, %v386_v28 }
 0x7cd   :  { %v400_v30 = vsel %vm399_vm8, %v391_v29, %v388_v24  ;;  %v1465_v31 = vsel %vm399_vm8, %v391_v29, 0.0 }
 0x7ce   :  { %402 = vrot.lane.b32.xlu0 %v400_v30, %s1330_s7 }
 0x840   :  { %v403_v32 = vpop.permute.xlu0 %402 }
 0x841   :  { %405 = vst.msk [vmem:[#allocation2] sm:$0x3f] %vm23_vm0, %v403_v32 }
 0x848   :  { %v415_v33 = vld [vmem:[#allocation2] sm:$0x3f] }
 0x849   :  { %1173 = vmatmul.mubr.msk.f32.vlgmr.msra.gmra.mrb[2].mxu1 %vm38_vm2, %v415_v33 }
 0x84a   :  { %1251 = vmatpush3.bf16.msra.mxu1 %v1375_v5  ;;  %1194 = vmatprep.mubr.msk.f32.mxu1 %vm1326_vm1, %v1325_v4 }
 0x84b   :  { %1252 = vmatprep.subr.bf16.mxu1 %v1324_v0 }
 0x84e   :  { %1254 = vmatpush3.bf16.msra.mxu1 %v1384_v7 }
 0x84f   :  { %1261 = vmatprep.subr.bf16.mxu1 %v1324_v0 }
 0x91c   :  { %v485_v36 = vpop.f32.mrb[2].mxu1 }
 0x91d   :  { %v486_v37 = vadd.f32 %v1408_v11, %v485_v36  ;;  %v1174_v38 = vpop.f32.mrb[3].mxu1 }
 0x91f   :  { %497 = vrot.lane.b32.xlu1 %v486_v37, %s1328_s29  ;;  %v489_v41 = vadd.f32 %v1066_v40, %v486_v37 }
 0x921   :  { %v1068_v42 = vmul.f32 -1.442695, %v489_v41 }
 0x923   :  { %523 = vperm.xlu1 %1274, %v521_v39   ;;  %1294 = vpow2.f32 %v1068_v42 }
 0x927   :  { %513 = vrot.lane.b32.xlu1 %v415_v33, %s1329_s3  ;;  %v1079_v33 = vld [vmem:[%s1618_s1 + $0x28] sm:$0x3f] }
 0x928   :  { %vm772_vm13 = vcmp.gt.f32.partialorder %v1079_v33, 0.5 }
 0x92d   :  { %v1295_v43 = vpop.eup %1294 }
 0x92e   :  { %v493_v44 = vadd.f32 1.0, %v1295_v43 }
 0x930   :  { %1296 = vrcp.f32 %v493_v44 }
 0x93a   :  { %v1297_v45 = vpop.eup %1296 }
 0x93b   :  { %v507_v53 = vsub.f32 1.0, %v1297_v45 }
 0x991   :  { %v498_v46 = vpop.permute.xlu1 %497 }
 0x992   :  { %v500_v47 = vmul.f32 %v1297_v45, %v498_v46 }
 0x994   :  { %502 = vrot.lane.b32.xlu0 %v500_v47, %s1328_s29 }
 0x9a2   :  { %v524_v51 = vpop.permute.xlu1 %523 }
 0x9a3   :  { %vm525_vm10 = vcmp.eq.s32.totalorder %v524_v51, 1 }
 0x9a6   :  { %v514_v52 = vpop.permute.xlu1 %513 }
 0x9a7   :  { %v516_v55 = vmul.f32 %v1297_v45, %v514_v52 }
 0xa06   :  { %v503_v48 = vpop.permute.xlu0 %502 }
 0xa07   :  { %v505_v49 = vadd.f32 %v1066_v40, %v503_v48 }
 0xa09   :  { %1298 = vtanh.f32 %v505_v49 }
 0xa13   :  { %v1299_v50 = vpop.eup %1298 }
 0xa14   :  { %509 = vrot.lane.b32.xlu0 %v1299_v50, %s1330_s7 }
 0xa86   :  { %v510_v54 = vpop.permute.xlu0 %509 }
 0xa87   :  { %v512_v56 = vmul.f32 %v510_v54, %v507_v53 }
 0xa89   :  { %v517_v57 = vadd.f32 %v516_v55, %v512_v56 }
 0xa8b   :  { %v526_v58 = vsel %vm525_vm10, %v517_v57, %v514_v52  ;;  %v1488_v59 = vsel %vm525_vm10, %v517_v57, 0.0  ;;  %v1084_v57 = vld [vmem:[%s1618_s1 + $0x30] sm:$0x3f] }
 0xa8c   :  { %528 = vrot.lane.b32.xlu0 %v526_v58, %s1330_s7  ;;  %vm898_vm15 = vcmp.gt.f32.partialorder %v1084_v57, 0.5 }
 0xa8d   :  { %v899_v63 = vsel %vm898_vm15, 1, %v1327_v9 }
 0xafe   :  { %v529_v60 = vpop.permute.xlu0 %528 }
 0xaff   :  { %531 = vst.msk [vmem:[#allocation2] sm:$0x3f] %vm23_vm0, %v529_v60 }
 0xb06   :  { %v541_v62 = vld [vmem:[#allocation2] sm:$0x3f] }
 0xb07   :  { %1184 = vmatmul.mubr.msk.f32.vlgmr.msra.gmra.mrb[4].mxu0 %vm38_vm2, %v541_v62 }
 0xb08   :  { %1257 = vmatpush3.bf16.msra.mxu0 %v1375_v5  ;;  %1205 = vmatprep.mubr.msk.f32.mxu0 %vm1326_vm1, %v1325_v4 }
 0xb09   :  { %1258 = vmatprep.subr.bf16.mxu0 %v1324_v0 }
 0xb0c   :  { %1260 = vmatpush3.bf16.msra.mxu0 %v1384_v7 }
 0xbda   :  { %v611_v1 = vpop.f32.mrb[4].mxu0 }
 0xbdb   :  { %v612_v2 = vadd.f32 %v1408_v11, %v611_v1  ;;  %v1185_v3 = vpop.f32.mrb[5].mxu0  ;;  %v1081_v1 = vld [vmem:[%s1619_s0 + $0x30] sm:$0x3f] }
 0xbdd   :  { %623 = vrot.lane.b32.xlu1 %v612_v2, %s1328_s29  ;;  %v615_v10 = vadd.f32 %v1071_v8, %v612_v2 }
 0xbdf   :  { %v1073_v12 = vmul.f32 -1.442695, %v615_v10 }
 0xbe1   :  { %649 = vperm.xlu1 %1274, %v647_v6   ;;  %1300 = vpow2.f32 %v1073_v12 }
 0xbe5   :  { %639 = vrot.lane.b32.xlu1 %v541_v62, %s1329_s3 }
 0xbeb   :  { %v1301_v13 = vpop.eup %1300 }
 0xbec   :  { %v619_v14 = vadd.f32 1.0, %v1301_v13 }
 0xbee   :  { %1302 = vrcp.f32 %v619_v14 }
 0xbf8   :  { %v1303_v15 = vpop.eup %1302 }
 0xbf9   :  { %v633_v23 = vsub.f32 1.0, %v1303_v15 }
 0xc4f   :  { %v624_v16 = vpop.permute.xlu1 %623 }
 0xc50   :  { %v626_v17 = vmul.f32 %v1303_v15, %v624_v16 }
 0xc52   :  { %628 = vrot.lane.b32.xlu0 %v626_v17, %s1328_s29 }
 0xc60   :  { %v650_v21 = vpop.permute.xlu1 %649 }
 0xc61   :  { %vm651_vm12 = vcmp.eq.s32.totalorder %v650_v21, 1 }
 0xc64   :  { %v640_v22 = vpop.permute.xlu1 %639 }
 0xc65   :  { %v642_v25 = vmul.f32 %v1303_v15, %v640_v22 }
 0xcc4   :  { %v629_v18 = vpop.permute.xlu0 %628 }
 0xcc5   :  { %v631_v19 = vadd.f32 %v1071_v8, %v629_v18 }
 0xcc7   :  { %1304 = vtanh.f32 %v631_v19 }
 0xcd1   :  { %v1305_v20 = vpop.eup %1304 }
 0xcd2   :  { %635 = vrot.lane.b32.xlu0 %v1305_v20, %s1330_s7 }
 0xd44   :  { %v636_v24 = vpop.permute.xlu0 %635 }
 0xd45   :  { %v638_v26 = vmul.f32 %v636_v24, %v633_v23 }
 0xd47   :  { %v643_v27 = vadd.f32 %v642_v25, %v638_v26 }
 0xd49   :  { %v652_v28 = vsel %vm651_vm12, %v643_v27, %v640_v22  ;;  %v1510_v29 = vsel %vm651_vm12, %v643_v27, 0.0 }
 0xd4a   :  { %654 = vrot.lane.b32.xlu0 %v652_v28, %s1330_s7  ;;  %v1089_v28 = vld [vmem:[%s1618_s1 + $0x38] sm:$0x3f] }
 0xd4b   :  { %vm1024_vm3 = vcmp.gt.f32.partialorder %v1089_v28, 0.5 }
 0xdbc   :  { %v655_v30 = vpop.permute.xlu0 %654 }
 0xdbd   :  { %657 = vst.msk [vmem:[#allocation2] sm:$0x3f] %vm23_vm0, %v655_v30 }
 0xdc4   :  { %v667_v32 = vld [vmem:[#allocation2] sm:$0x3f] }
 0xdc5   :  { %1195 = vmatmul.mubr.msk.f32.vlgmr.msra.gmra.mrb[4].mxu1 %vm38_vm2, %v667_v32 }
 0xdc6   :  { %1263 = vmatpush3.bf16.msra.mxu1 %v1375_v5  ;;  %1216 = vmatprep.mubr.msk.f32.mxu1 %vm1326_vm1, %v1325_v4  ;;  %v773_v5 = vsel %vm772_vm13, 1, %v1327_v9 }
 0xdc7   :  { %1264 = vmatprep.subr.bf16.mxu1 %v1324_v0  ;;  %v1076_v0 = vld [vmem:[%s1619_s0 + $0x28] sm:$0x3f] }
 0xdca   :  { %1266 = vmatpush3.bf16.msra.mxu1 %v1384_v7 }
 0xe98   :  { %v737_v34 = vpop.f32.mrb[4].mxu1 }
 0xe99   :  { %v738_v36 = vadd.f32 %v1408_v11, %v737_v34  ;;  %v1196_v37 = vpop.f32.mrb[5].mxu1  ;;  %v1025_v34 = vsel %vm1024_vm3, 1, %v1327_v9 }
 0xe9b   :  { %749 = vrot.lane.b32.xlu1 %v738_v36, %s1328_s29  ;;  %v741_v4 = vadd.f32 %v1076_v0, %v738_v36 }
 0xe9d   :  { %v1078_v7 = vmul.f32 -1.442695, %v741_v4 }
 0xe9f   :  { %775 = vperm.xlu1 %1274, %v773_v5   ;;  %1306 = vpow2.f32 %v1078_v7 }
 0xea3   :  { %765 = vrot.lane.b32.xlu1 %v667_v32, %s1329_s3 }
 0xea9   :  { %v1307_v38 = vpop.eup %1306 }
 0xeaa   :  { %v745_v39 = vadd.f32 1.0, %v1307_v38 }
 0xeac   :  { %1308 = vrcp.f32 %v745_v39 }
 0xeb6   :  { %v1309_v40 = vpop.eup %1308 }
 0xeb7   :  { %v759_v48 = vsub.f32 1.0, %v1309_v40 }
 0xf0d   :  { %v750_v41 = vpop.permute.xlu1 %749 }
 0xf0e   :  { %v752_v42 = vmul.f32 %v1309_v40, %v750_v41 }
 0xf10   :  { %754 = vrot.lane.b32.xlu0 %v752_v42, %s1328_s29 }
 0xf1e   :  { %v776_v46 = vpop.permute.xlu1 %775 }
 0xf1f   :  { %vm777_vm14 = vcmp.eq.s32.totalorder %v776_v46, 1 }
 0xf22   :  { %v766_v47 = vpop.permute.xlu1 %765 }
 0xf23   :  { %v768_v50 = vmul.f32 %v1309_v40, %v766_v47 }
 0xf82   :  { %v755_v43 = vpop.permute.xlu0 %754 }
 0xf83   :  { %v757_v44 = vadd.f32 %v1076_v0, %v755_v43 }
 0xf85   :  { %1310 = vtanh.f32 %v757_v44 }
 0xf8f   :  { %v1311_v45 = vpop.eup %1310 }
 0xf90   :  { %761 = vrot.lane.b32.xlu0 %v1311_v45, %s1330_s7 }
0x1002   :  { %v762_v49 = vpop.permute.xlu0 %761 }
0x1003   :  { %v764_v51 = vmul.f32 %v762_v49, %v759_v48 }
0x1005   :  { %v769_v52 = vadd.f32 %v768_v50, %v764_v51 }
0x1007   :  { %v778_v53 = vsel %vm777_vm14, %v769_v52, %v766_v47  ;;  %v1532_v54 = vsel %vm777_vm14, %v769_v52, 0.0 }
0x1008   :  { %780 = vrot.lane.b32.xlu0 %v778_v53, %s1330_s7 }
0x107a   :  { %v781_v55 = vpop.permute.xlu0 %780 }
0x107b   :  { %783 = vst.msk [vmem:[#allocation2] sm:$0x3f] %vm23_vm0, %v781_v55 }
0x1082   :  { %v793_v56 = vld [vmem:[#allocation2] sm:$0x3f] }
0x1083   :  { %1206 = vmatmul.mubr.msk.f32.vlgmr.msra.gmra.mrb[6].mxu0 %vm38_vm2, %v793_v56 }
0x1156   :  { %v863_v58 = vpop.f32.mrb[6].mxu0 }
0x1157   :  { %v864_v60 = vadd.f32 %v1408_v11, %v863_v58  ;;  %v1207_v62 = vpop.f32.mrb[7].mxu0 }
0x1159   :  { %875 = vrot.lane.b32.xlu1 %v864_v60, %s1328_s29  ;;  %v867_v2 = vadd.f32 %v1081_v1, %v864_v60 }
0x115b   :  { %v1083_v3 = vmul.f32 -1.442695, %v867_v2 }
0x115d   :  { %901 = vperm.xlu1 %1274, %v899_v63   ;;  %1312 = vpow2.f32 %v1083_v3 }
0x1161   :  { %891 = vrot.lane.b32.xlu1 %v793_v56, %s1329_s3 }
0x1167   :  { %v1313_v6 = vpop.eup %1312 }
0x1168   :  { %v871_v8 = vadd.f32 1.0, %v1313_v6 }
0x116a   :  { %1314 = vrcp.f32 %v871_v8 }
0x1174   :  { %v1315_v10 = vpop.eup %1314 }
0x1175   :  { %v885_v19 = vsub.f32 1.0, %v1315_v10 }
0x11cb   :  { %v876_v12 = vpop.permute.xlu1 %875 }
0x11cc   :  { %v878_v13 = vmul.f32 %v1315_v10, %v876_v12 }
0x11ce   :  { %880 = vrot.lane.b32.xlu0 %v878_v13, %s1328_s29 }
0x11dc   :  { %v902_v17 = vpop.permute.xlu1 %901 }
0x11dd   :  { %vm903_vm1 = vcmp.eq.s32.totalorder %v902_v17, 1 }
0x11e0   :  { %v892_v18 = vpop.permute.xlu1 %891 }
0x11e1   :  { %v894_v21 = vmul.f32 %v1315_v10, %v892_v18 }
0x1240   :  { %v881_v14 = vpop.permute.xlu0 %880 }
0x1241   :  { %v883_v15 = vadd.f32 %v1081_v1, %v881_v14 }
0x1243   :  { %1316 = vtanh.f32 %v883_v15 }
0x124d   :  { %v1317_v16 = vpop.eup %1316 }
0x124e   :  { %887 = vrot.lane.b32.xlu0 %v1317_v16, %s1330_s7 }
0x12c0   :  { %v888_v20 = vpop.permute.xlu0 %887 }
0x12c1   :  { %v890_v22 = vmul.f32 %v888_v20, %v885_v19 }
0x12c3   :  { %v895_v23 = vadd.f32 %v894_v21, %v890_v22 }
0x12c5   :  { %v904_v24 = vsel %vm903_vm1, %v895_v23, %v892_v18  ;;  %v910_v25 = vsel %vm903_vm1, %v895_v23, 0.0 }
0x12c6   :  { %906 = vrot.lane.b32.xlu0 %v904_v24, %s1330_s7 }
0x1338   :  { %v907_v26 = vpop.permute.xlu0 %906 }
0x1339   :  { %909 = vst.msk [vmem:[#allocation2] sm:$0x3f] %vm23_vm0, %v907_v26 }
0x1340   :  { %v919_v27 = vld [vmem:[#allocation2] sm:$0x3f] }
0x1341   :  { %1217 = vmatmul.mubr.msk.f32.vlgmr.msra.gmra.mrb[6].mxu1 %vm38_vm2, %v919_v27 }
0x1414   :  { %v989_v30 = vpop.f32.mrb[6].mxu1 }
0x1415   :  { %v990_v32 = vadd.f32 %v1408_v11, %v989_v30  ;;  %v1218_v33 = vpop.f32.mrb[7].mxu1  ;;  %v1086_v11 = vld [vmem:[%s1619_s0 + $0x38] sm:$0x3f] }
0x1417   :  { %1001 = vrot.lane.b32.xlu1 %v990_v32, %s1328_s29  ;;  %v993_v36 = vadd.f32 %v1086_v11, %v990_v32 }
0x1419   :  { %v1088_v9 = vmul.f32 -1.442695, %v993_v36 }
0x141b   :  { %1027 = vperm.xlu1 %1274, %v1025_v34   ;;  %1318 = vpow2.f32 %v1088_v9 }
0x141f   :  { %1017 = vrot.lane.b32.xlu1 %v919_v27, %s1329_s3 }
0x1423   :  { %157 = vrot.lane.b32.xlu1 %v1419_v35, %s1330_s7 }
0x1425   :  { %v1319_v37 = vpop.eup %1318 }
0x1426   :  { %v997_v5 = vadd.f32 1.0, %v1319_v37 }
0x1427   :  { %408 = vrot.lane.b32.xlu1 %v1465_v31, %s1330_s7 }
0x1428   :  { %1320 = vrcp.f32 %v997_v5 }
0x142b   :  { %660 = vrot.lane.b32.xlu1 %v1510_v29, %s1330_s7 }
0x142f   :  { %912 = vrot.lane.b32.xlu1 %v910_v25, %s1330_s7 }
0x1432   :  { %v1321_v0 = vpop.eup %1320 }
0x1433   :  { %v1011_v44 = vsub.f32 1.0, %v1321_v0 }
0x1489   :  { %v1002_v35 = vpop.permute.xlu1 %1001 }
0x148a   :  { %v1004_v4 = vmul.f32 %v1321_v0, %v1002_v35 }
0x148c   :  { %1006 = vrot.lane.b32.xlu0 %v1004_v4, %s1328_s29 }
0x149a   :  { %v1028_v31 = vpop.permute.xlu1 %1027 }
0x149b   :  { %vm1029_vm2 = vcmp.eq.s32.totalorder %v1028_v31, 1 }
0x149e   :  { %v1018_v7 = vpop.permute.xlu1 %1017 }
0x149f   :  { %v1020_v46 = vmul.f32 %v1321_v0, %v1018_v7 }
0x14a2   :  { %v158_v29 = vpop.permute.xlu1 %157 }
0x14a3   :  { %160 = vst.msk [vmem:[%s1620_s4] sm:$0x3f] %vm23_vm0, %v158_v29 }
0x14a6   :  { %v409_v38 = vpop.permute.xlu1 %408 }
0x14a7   :  { %1065 = vst.msk [vmem:[%s1620_s4 + $0x10] sm:$0x3f] %vm23_vm0, %v409_v38 }
0x14aa   :  { %v661_v39 = vpop.permute.xlu1 %660 }
0x14ab   :  { %1075 = vst.msk [vmem:[%s1620_s4 + $0x20] sm:$0x3f] %vm23_vm0, %v661_v39 }
0x14ae   :  { %v913_v40 = vpop.permute.xlu1 %912 }
0x14af   :  { %1085 = vst.msk [vmem:[%s1620_s4 + $0x30] sm:$0x3f] %vm23_vm0, %v913_v40 }
0x14fe   :  { %v1007_v41 = vpop.permute.xlu0 %1006 }
0x14ff   :  { %v1009_v42 = vadd.f32 %v1086_v11, %v1007_v41 }
0x1501   :  { %1322 = vtanh.f32 %v1009_v42 }
0x150b   :  { %v1323_v43 = vpop.eup %1322 }
0x150c   :  { %1013 = vrot.lane.b32.xlu0 %v1323_v43, %s1330_s7 }
0x1510   :  { %282 = vrot.lane.b32.xlu0 %v1442_v61, %s1330_s7 }
0x1514   :  { %534 = vrot.lane.b32.xlu0 %v1488_v59, %s1330_s7 }
0x157e   :  { %v1014_v45 = vpop.permute.xlu0 %1013 }
0x157f   :  { %v1016_v47 = vmul.f32 %v1014_v45, %v1011_v44 }
0x1581   :  { %v1021_v48 = vadd.f32 %v1020_v46, %v1016_v47 }
0x1582   :  { %v283_v49 = vpop.permute.xlu0 %282 }
0x1583   :  { %1060 = vst.msk [vmem:[%s1620_s4 + $0x8] sm:$0x3f] %vm23_vm0, %v283_v49  ;;  %v1030_v50 = vsel %vm1029_vm2, %v1021_v48, %v1018_v7  ;;  %v1036_v61 = vsel %vm1029_vm2, %v1021_v48, 0.0 }
0x1584   :  { %1032 = vrot.lane.b32.xlu0 %v1030_v50, %s1330_s7 }
0x1586   :  { %v535_v51 = vpop.permute.xlu0 %534 }
0x1587   :  { %1070 = vst.msk [vmem:[%s1620_s4 + $0x18] sm:$0x3f] %vm23_vm0, %v535_v51 }
0x1588   :  { %786 = vrot.lane.b32.xlu0 %v1532_v54, %s1330_s7 }
0x158c   :  { %1038 = vrot.lane.b32.xlu0 %v1036_v61, %s1330_s7 }
0x15f6   :  { %v1033_v59 = vpop.permute.xlu0 %1032 }
0x15f7   :  { %1035 = vst.msk [vmem:[#allocation2] sm:$0x3f] %vm23_vm0, %v1033_v59 }
0x15fa   :  { %v787_v52 = vpop.permute.xlu0 %786 }
0x15fb   :  { %1080 = vst.msk [vmem:[%s1620_s4 + $0x28] sm:$0x3f] %vm23_vm0, %v787_v52 }
0x15fe   :  { %v1043_v53 = vld [vmem:[#allocation2] sm:$0x3f]  ;;  %v1039_v55 = vpop.permute.xlu0 %1038 }
0x15ff   :  { %1044 = vst.msk [vmem:[%s1621_s5] sm:$0x3f] %vm23_vm0, %v1043_v53  ;;  %1090 = vst.msk [vmem:[%s1620_s4 + $0x38] sm:$0x3f] %vm23_vm0, %v1039_v55 }

// kernel: seq2seq_forward.7
= control target key start
LH: loop header
LB: loop body
LE: loop exit
PB: predicated region body
PF: predicated region fallthrough
CT: control target
= control target key end

     0   :  { %v169_v0 = vmov 0.0   ;;  %vm170_vm0 = vmmov 0   ;;  %vm77_vm1 = vcmask 785408   ;;  %s221_s1 = inlined_call_operand.vmem [shape: bf16[96,128], index: 1, kind: input, shape index: {}]   ;;  %s222_s0 = inlined_call_operand.vmem [shape: bf16[14,96], index: 0, kind: input, shape index: {}]   ;;  %s223_s2 = inlined_call_operand.vmem [shape: f32[1,128], index: 2, kind: input, shape index: {}]   ;;  %s224_s3 = inlined_call_operand.vmem [shape: f32[14,128], index: 3, kind: output, shape index: {}]  }
   0x1   :  { %144 = vmatprep.subr.bf16.mxu0 %v169_v0  ;;  %v162_v1 = vld [vmem:[%s221_s1] sm:$0xff]   ;;  %156 = vmatprep.mubr.msk.bf16.mxu0 %vm170_vm0, %v169_v0  ;;  %v163_v2 = vld [vmem:[%s221_s1 + $0x8] sm:$0xff]   ;;  %v164_v3 = vld [vmem:[%s221_s1 + $0x10] sm:$0xff]  }
   0x2   :  { %145 = vmatpush3.bf16.msra.mxu0 %v162_v1  ;;  %v165_v4 = vld [vmem:[%s221_s1 + $0x18] sm:$0xff]   ;;  %v166_v5 = vld [vmem:[%s221_s1 + $0x20] sm:$0xff]   ;;  %v167_v6 = vld [vmem:[%s221_s1 + $0x28] sm:$0xff]  }
   0x3   :  { %146 = vmatprep.subr.bf16.mxu0 %v169_v0  ;;  %v168_v7 = vld [vmem:[%s222_s0] sm:$0x7f]  }
   0x4   :  { %v128_v8 = vld [vmem:[%s223_s2] ss:$0 sm:$0xff] }
   0x6   :  { %147 = vmatpush3.bf16.msra.mxu0 %v163_v2 }
   0x7   :  { %148 = vmatprep.subr.bf16.mxu0 %v169_v0 }
   0xa   :  { %149 = vmatpush3.bf16.msra.mxu0 %v164_v3 }
   0xb   :  { %150 = vmatprep.subr.bf16.mxu0 %v169_v0 }
   0xe   :  { %151 = vmatpush3.bf16.msra.mxu0 %v165_v4 }
   0xf   :  { %152 = vmatprep.subr.bf16.mxu0 %v169_v0 }
  0x12   :  { %153 = vmatpush3.bf16.msra.mxu0 %v166_v5 }
  0x13   :  { %154 = vmatprep.subr.bf16.mxu0 %v169_v0 }
  0x16   :  { %155 = vmatpush3.bf16.msra.mxu0 %v167_v6 }
  0x19   :  { %157 = vmatmul.mubr.msk.bf16.vlgmr.msra.gmra.mrb[0].mxu0 %vm77_vm1, %v168_v7 }
  0xec   :  { %v115_v9 = vpop.f32.mrb[0].mxu0 }
  0xed   :  { %v116_v10 = vadd.f32 %v128_v8, %v115_v9  ;;  %v158_v11 = vpop.f32.mrb[1].mxu0 }
  0xee   :  { %v118_v12 = vpop.f32.mrb[2].mxu0 }
  0xef   :  { %122 = vst [vmem:[%s224_s3] sm:$0xff] %v116_v10  ;;  %v119_v13 = vadd.f32 %v128_v8, %v118_v12  ;;  %v159_v14 = vpop.f32.mrb[3].mxu0 }
  0xf1   :  { %123 = vst [vmem:[%s224_s3 + $0x8] sm:$0x3f] %v119_v13 }

// kernel: seq2seq_forward.6
= control target key start
LH: loop header
LB: loop body
LE: loop exit
PB: predicated region body
PF: predicated region fallthrough
CT: control target
= control target key end

     0   :  { %v6308_v3 = vmov 0.0|0.0   ;;  %vm6309_vm0 = vmmov 0   ;;  %v6310_v6 = vmov 0.0   ;;  %vm32_vm1 = vcmask 254976   ;;  %s7619_s0 = inlined_call_operand.vmem [shape: f32[8,2,96], index: 0, kind: input, shape index: {}]   ;;  %s7620_s1 = inlined_call_operand.vmem [shape: f32[2,32], index: 1, kind: input, shape index: {}]   ;;  %s7621_s2 = inlined_call_operand.vmem [shape: bf16[2,26,32], index: 2, kind: input, shape index: {}]   ;;  %s7622_s3 = inlined_call_operand.vmem [shape: f32[2,26], index: 3, kind: input, shape index: {}]   ;;  %s7623_s4 = inlined_call_operand.vmem [shape: f32[32,96], index: 4, kind: input, shape index: {}]   ;;  %s7624_s5 = inlined_call_operand.vmem [shape: f32[1,96], index: 5, kind: input, shape index: {}]   ;;  %s7625_s6 = inlined_call_operand.vmem [shape: bf16[8,2,96], index: 6, kind: output, shape index: {0}]   ;;  %s7626_s7 = inlined_call_operand.hbm [shape: f32[2,32], index: 7, kind: output, shape index: {1}]  }
   0x1   :  { %v34_v0 = vld [vmem:[%s7623_s4] sm:$0xff]  ;;  %v35_v1 = vld [vmem:[%s7623_s4 + $0x8] sm:$0xff]  ;;  %v36_v2 = vld [vmem:[%s7623_s4 + $0x10] sm:$0xff]  ;;  %6040 = vmatprep.subr.bf16.mxu0 %v6308_v3  ;;  %5608 = vmatprep.mubr.msk.f32.mxu0 %vm6309_vm0, %v6310_v6 }
   0x2   :  { %v6368_v4 = vpack.c.bf16 %v35_v1, %v34_v0  ;;  %v37_v5 = vld [vmem:[%s7623_s4 + $0x18] sm:$0xff]  ;;  %v31_v7 = vld [vmem:[%s7620_s1] sm:$0x3]  ;;  %5611 = vmatprep.subr.bf16.mxu1 %v6310_v6  ;;  %5615 = vmatprep.mubr.msk.bf16.mxu1 %vm6309_vm0, %v6310_v6 }
   0x3   :  { %33 = vst.msk [vmem:[#allocation2] sm:$0x3] %vm32_vm1, %v31_v7 }
   0x4   :  { %13 = vsyncpa [#allocation4], 0  ;;  %6042 = vmatpush3.bf16.msra.mxu0 %v6368_v4  ;;  %v6383_v8 = vpack.c.bf16 %v37_v5, %v36_v2  ;;  %vm56_vm2 = vcmask 261120   ;;  %v6394_v10 = vld [vmem:[%s7624_s5] ss:$0 sm:$0xff]  ;;  %s6311_s11 = smov 64   ;;  %v170_v45 = vlaneseq }
   0x5   :  { %6043 = vmatprep.subr.bf16.mxu0 %v6308_v3  ;;  %v48_v14 = vld [vmem:[%s7619_s0] sm:$0x3]  ;;  %s6312_s14 = smov 96   ;;  %s6313_s15 = smov 32   ;;  %v40_v26 = vld [vmem:[%s7621_s2 + $0x4] sm:$0xf] }
   0x6   :  { %v6407_v25 = vld [vmem:[%s7621_s2] sm:$0xf]  ;;  %v6415_v27 = vld [vmem:[%s7621_s2 + $0x10] sm:$0xf]  ;;  %v44_v29 = vld [vmem:[%s7621_s2 + $0x14] sm:$0xf] }
   0x7   :  { %v5327_v28 = vcombine.low %v6407_v25, %v40_v26  ;;  %v41_v30 = vld [vmem:[%s7621_s2 + $0x8] sm:$0xf]  ;;  %v5330_v31 = vcombine.low %v6415_v27, %v44_v29  ;;  %v6428_v32 = vld [vmem:[%s7621_s2 + $0xc] sm:$0x1]  ;;  %v45_v34 = vld [vmem:[%s7621_s2 + $0x18] sm:$0xf] }
   0x8   :  { %6045 = vmatpush3.bf16.msra.mxu0 %v6383_v8  ;;  %v6430_v33 = vcombine.low %v40_v26, %v41_v30  ;;  %v6441_v36 = vld [vmem:[%s7621_s2 + $0x1c] sm:$0x1]  ;;  %v6443_v37 = vcombine.low %v44_v29, %v45_v34  ;;  %v5328_v39 = vcombine.low %v41_v30, %v6428_v32  ;;  %v6314_v43 = vmov 1966171168   ;;  %v6496_v2 = vld [vmem:[%s7622_s3] sm:$0x3] }
   0x9   :  { %5619 = vmatprep.subr.bf16.mxu0 %v6310_v6  ;;  %v6436_v35 = vsel %vm56_vm2, %v5327_v28, 0  ;;  %v6447_v38 = vsel %vm56_vm2, %v5330_v31, 0  ;;  %v5331_v40 = vcombine.low %v45_v34, %v6441_v36  ;;  %v168_v44 = vunpack.c.l.s4 %v6314_v43  ;;  %s6315_s10 = smov 120  }
   0xa   :  { %v49_v9 = vld [vmem:[#allocation2] sm:$0x3]  ;;  %5612 = vmatpush3.bf16.xpose.msra.mxu1 %v6436_v35  ;;  %v6455_v41 = vsel %vm56_vm2, %v5328_v39, 0  ;;  %v6464_v49 = vshrl.u32 %v170_v45, 7  ;;  %v6499_v5 = vrot.slane %v6496_v2, 1  ;;  %vm324_vm3 = vcmask 1041409  }
   0xb   :  { %5609 = vmatmul.mubr.msk.f32.vlgmr.msra.gmra.mrb[0].mxu0 %vm56_vm2, %v49_v9  ;;  %5613 = vmatprep.subr.bf16.mxu1 %v6310_v6  ;;  %v6458_v42 = vsel %vm56_vm2, %v5331_v40, 0  ;;  %v169_v48 = vunpack.c.0.s8 %v168_v44  ;;  %vm359_vm4 = vcmask 205888   ;;  %vm327_vm5 = vcmask 58368  }
   0xc   :  { %5623 = vmatprep.mubr.msk.bf16.mxu0 %vm6309_vm0, %v6310_v6  ;;  %v6478_v58 = vsub.s32 0, %v6464_v49  ;;  %vm380_vm6 = vcmask 140288   ;;  %vm398_vm7 = vcmask 1043456   ;;  %vm394_vm8 = vcmask 64512  }
   0xd   :  { %v6467_v53 = vsub.s32 %v169_v48, %v6464_v49  ;;  %vm498_vm9 = vcmask 1040384   ;;  %vm494_vm10 = vcmask 146432   ;;  %vm597_vm11 = vcmask 253952  }
   0xe   :  { %vm681_vm12 = vcmask 516352   ;;  %vm765_vm13 = vcmask 778752  }
  0x11   :  { %5620 = vmatpush3.bf16.xpose.msra.mxu0 %v6447_v38 }
  0x12   :  { %5621 = vmatprep.subr.bf16.mxu0 %v6310_v6  ;;  %5614 = vmatpush3.bf16.xpose.msra.mxu1 %v6455_v41 }
  0x13   :  { %5627 = vmatprep.subr.bf16.mxu1 %v6310_v6 }
  0x19   :  { %5622 = vmatpush3.bf16.xpose.msra.mxu0 %v6458_v42 }
  0x1a   :  { %5633 = vmatprep.subr.bf16.mxu0 %v6310_v6 }
  0xde   :  { %v126_v11 = vpop.f32.mrb[0].mxu0 }
  0xdf   :  { %v127_v12 = vadd.f32 %v6394_v10, %v126_v11  ;;  %v5610_v13 = vpop.f32.mrb[1].mxu0 }
  0xe1   :  { %138 = vrot.lane.b32.xlu0 %v127_v12, %s6311_s11  ;;  %v130_v15 = vadd.f32 %v127_v12, %v48_v14 }
  0xe3   :  { %v5325_v16 = vmul.f32 -1.442695, %v130_v15 }
  0xe5   :  { %6104 = vpow2.f32 %v5325_v16 }
  0xef   :  { %v6105_v17 = vpop.eup %6104 }
  0xf0   :  { %v134_v18 = vadd.f32 1.0, %v6105_v17 }
  0xf2   :  { %6106 = vrcp.f32 %v134_v18 }
  0xfc   :  { %v6107_v19 = vpop.eup %6106 }
  0xfd   :  { %v148_v47 = vsub.f32 1.0, %v6107_v19 }
 0x153   :  { %v139_v20 = vpop.permute.xlu0 %138 }
 0x154   :  { %v141_v21 = vmul.f32 %v6107_v19, %v139_v20 }
 0x156   :  { %143 = vrot.lane.b32.xlu0 %v141_v21, %s6311_s11 }
 0x1c8   :  { %v144_v22 = vpop.permute.xlu0 %143 }
 0x1c9   :  { %v146_v23 = vadd.f32 %v144_v22, %v48_v14 }
 0x1cb   :  { %6108 = vtanh.f32 %v146_v23 }
 0x1d5   :  { %v6109_v24 = vpop.eup %6108 }
 0x1d6   :  { %150 = vrot.lane.b32.xlu1 %v6109_v24, %s6312_s14 }
 0x1da   :  { %154 = vrot.lane.b32.xlu1 %v49_v9, %s6313_s15 }
 0x248   :  { %v151_v46 = vpop.permute.xlu1 %150 }
 0x249   :  { %v153_v51 = vmul.f32 %v151_v46, %v148_v47 }
 0x24c   :  { %v155_v50 = vpop.permute.xlu1 %154 }
 0x24d   :  { %v157_v52 = vmul.f32 %v6107_v19, %v155_v50 }
 0x24f   :  { %v6469_v54 = vadd.f32 %v157_v52, %v153_v51 }
 0x251   :  { %v165_v55 = vpack.c.bf16 %v6469_v54, %v6469_v54 }
 0x253   :  { %v173_v56 = vrot.slane %v165_v55, %v6467_v53 }
 0x255   :  { %v6475_v57 = vrot.slane %v173_v56, %v6467_v53 }
 0x257   :  { %v5326_v59 = vpack.i.b16 %v6475_v57, %v6475_v57  ;;  %v182_v60 = vunpack.i.h.s16 %v6475_v57 }
 0x259   :  { %v187_v61 = vrot.slane %v5326_v59, %v6478_v58  ;;  %v249_v62 = vpack.i.b16 %v182_v60, %v182_v60 }
 0x25b   :  { %188 = vrot.lane.b32.xlu1 %v187_v61, %s6312_s14  ;;  %v253_v63 = vrot.slane %v249_v62, %v6478_v58  ;;  %v6515_v61 = vsel %vm398_vm7, %v6407_v25, 0  ;;  %v6518_v62 = vsel %vm398_vm7, %v6415_v27, 0 }
 0x25d   :  { %254 = vrot.lane.b32.xlu0 %v253_v63, %s6312_s14 }
 0x2cd   :  { %v189_v0 = vpop.permute.xlu1 %188 }
 0x2ce   :  { %5616 = vmatmul.mubr.msk.bf16.vlgmr.msra.gmra.mrb[0].mxu1 %vm56_vm2, %v189_v0 }
 0x2cf   :  { %v255_v1 = vpop.permute.xlu0 %254  ;;  %5629 = vmatprep.mubr.msk.bf16.mxu1 %vm6309_vm0, %v6310_v6  ;;  %5628 = vmatpush3.bf16.msra.mxu1 %v6515_v61 }
 0x2d0   :  { %5624 = vmatmul.mubr.msk.bf16.vlgmr.msra.gmra.mrb[4].mxu0 %vm56_vm2, %v255_v1  ;;  %5639 = vmatprep.subr.bf16.mxu1 %v6310_v6 }
 0x2d1   :  { %5635 = vmatprep.mubr.msk.bf16.mxu0 %vm6309_vm0, %v6310_v6  ;;  %5634 = vmatpush3.bf16.msra.mxu0 %v6518_v62 }
 0x2d2   :  { %5647 = vmatprep.subr.bf16.mxu0 %v6310_v6 }
 0x3a1   :  { %v243_v7 = vpop.f32.mrb[0].mxu1 }
 0x3a2   :  { %v5617_v9 = vpop.f32.mrb[1].mxu1  ;;  %v319_v17 = vadd.f32 %v243_v7, %v6496_v2 }
 0x3a3   :  { %v246_v11 = vpop.f32.mrb[2].mxu1  ;;  %v309_v12 = vpop.f32.mrb[4].mxu0 }
 0x3a4   :  { %v320_v13 = vadd.f32 %v6499_v5, %v309_v12  ;;  %v5618_v14 = vpop.f32.mrb[3].mxu1  ;;  %v5625_v15 = vpop.f32.mrb[5].mxu0 }
 0x3a5   :  { %v312_v16 = vpop.f32.mrb[6].mxu0  ;;  %v5336_v15 = vcombine.low %v6428_v32, %v6428_v32 }
 0x3a6   :  { %v323_v18 = vrot.slane %v320_v13, 7  ;;  %v5626_v19 = vpop.f32.mrb[7].mxu0 }
 0x3a7   :  { %v6316_v19 = vmov 1935823168  }
 0x3a8   :  { %v325_v20 = vsel %vm324_vm3, %v323_v18, %v319_v17 }
 0x3a9   :  { %v360_v21 = vsel %vm359_vm4, %v325_v20, -inf  ;;  %v328_v40 = vsel %vm327_vm5, %v325_v20, -inf  ;;  %v632_v20 = vunpack.c.l.s4 %v6316_v19 }
 0x3aa   :  { %361 = vmax.xlane.f32.xlu0 %v360_v21 }
 0x3ab   :  { %v633_v21 = vunpack.c.0.s8 %v632_v20  ;;  %v5339_v20 = vcombine.low %v6441_v36, %v6441_v36 }
 0x437   :  { %v362_v22 = vpop.xlane.xlu0 %361 }
 0x438   :  { %v364_v23 = vrot.slane %v362_v22, 1  ;;  %v367_v24 = vsub.f32 %v319_v17, %v362_v22 }
 0x43a   :  { %v368_v26 = vsub.f32 %v320_v13, %v364_v23  ;;  %v369_v28 = vmul.f32 1.442695, %v367_v24 }
 0x43c   :  { %v371_v29 = vmul.f32 1.442695, %v368_v26 }
 0x43e   :  { %6110 = vpow2.f32 %v371_v29  ;;  %v6563_v29 = vsub.s32 %v633_v21, %v6464_v49 }
 0x43f   :  { %6112 = vpow2.f32 %v369_v28 }
 0x448   :  { %v6505_v30 = vpop.eup %6110 }
 0x449   :  { %v375_v31 = vrot.slane %v6505_v30, 7  ;;  %v6113_v34 = vpop.eup %6112 }
 0x44b   :  { %v376_v39 = vsel %vm324_vm3, %v375_v31, %v6113_v34 }
 0x44c   :  { %377 = vrot.lane.b32.xlu1 %v376_v39, %s6315_s10 }
 0x470   :  { %329 = vmax.xlane.f32.xlu1 %v328_v40 }
 0x4be   :  { %v378_v43 = vpop.permute.xlu1 %377 }
 0x4bf   :  { %v381_v44 = vsel %vm380_vm6, %v378_v43, 0.0 }
 0x4c0   :  { %382 = vadd.xlane.f32.xlu0 %v381_v44 }
 0x4fd   :  { %v330_v45 = vpop.xlane.xlu1 %329 }
 0x4fe   :  { %v332_v46 = vrot.slane %v330_v45, 1  ;;  %v335_v47 = vsub.f32 %v319_v17, %v330_v45  ;;  %v6540_v17 = vsel %vm498_vm9, %v5336_v15, 0 }
 0x500   :  { %v336_v48 = vsub.f32 %v320_v13, %v332_v46  ;;  %v337_v50 = vmul.f32 1.442695, %v335_v47 }
 0x502   :  { %v339_v51 = vmul.f32 1.442695, %v336_v48 }
 0x504   :  { %6114 = vpow2.f32 %v339_v51 }
 0x505   :  { %6116 = vpow2.f32 %v337_v50 }
 0x50e   :  { %v6115_v52 = vpop.eup %6114 }
 0x50f   :  { %v343_v55 = vrot.slane %v6115_v52, 7  ;;  %v6117_v56 = vpop.eup %6116 }
 0x511   :  { %v344_v59 = vsel %vm324_vm3, %v343_v55, %v6117_v56 }
 0x512   :  { %v346_v60 = vsel %vm327_vm5, %v344_v59, 0.0 }
 0x513   :  { %347 = vadd.xlane.f32.xlu0 %v346_v60 }
 0x529   :  { %160 = vrot.lane.b32.xlu0 %v6469_v54, %s6312_s14 }
 0x54d   :  { %v6526_v63 = vpop.xlane.xlu0 %382 }
 0x54e   :  { %6118 = vrcp.f32 %v6526_v63  ;;  %v385_v19 = vrot.slane %v6526_v63, 1 }
 0x558   :  { %v6119_v25 = vpop.eup %6118 }
 0x559   :  { %v389_v0 = vmul.f32 %v6119_v25, %v6113_v34 }
 0x55b   :  { %v392_v1 = vpack.c.bf16 %v389_v0, %v389_v0 }
 0x55d   :  { %489 = vrot.lane.b32.xlu1 %v392_v1, %s6315_s10 }
 0x5a0   :  { %v348_v27 = vpop.xlane.xlu0 %347 }
 0x5a1   :  { %v350_v7 = vrot.slane %v348_v27, 1  ;;  %6120 = vrcp.f32 %v348_v27 }
 0x5a3   :  { %6122 = vrcp.f32 %v350_v7 }
 0x5a4   :  { %v161_v9 = vpop.permute.xlu0 %160 }
 0x5a5   :  { %164 = vst.msk [vmem:[#allocation2] sm:$0x3] %vm32_vm1, %v161_v9 }
 0x5ab   :  { %v6121_v11 = vpop.eup %6120 }
 0x5ac   :  { %v354_v12 = vmul.f32 %v6121_v11, %v6117_v56  ;;  %v769_v18 = vld [vmem:[#allocation2] sm:$0x3]  ;;  %v5341_v11 = vld [vmem:[%s7619_s0 + $0x2] sm:$0x3] }
 0x5ad   :  { %v6123_v13 = vpop.eup %6122 }
 0x5ae   :  { %v357_v54 = vpack.c.bf16 %v354_v12, %v354_v12  ;;  %v356_v14 = vmul.f32 %v6123_v13, %v6115_v52 }
 0x5b0   :  { %5630 = vmatmul.mubr.msk.bf16.vlgmr.msra.gmra.mrb[4].mxu1 %vm394_vm8, %v357_v54  ;;  %v358_v16 = vpack.c.bf16 %v356_v14, %v356_v14 }
 0x5b1   :  { %5640 = vmatpush3.bf16.msra.mxu1 %v6430_v33  ;;  %5643 = vmatprep.mubr.msk.bf16.mxu1 %vm6309_vm0, %v6310_v6 }
 0x5b2   :  { %5636 = vmatmul.mubr.msk.bf16.vlgmr.msra.gmra.mrb[8].mxu0 %vm394_vm8, %v358_v16  ;;  %5641 = vmatprep.subr.bf16.mxu1 %v6310_v6 }
 0x5b3   :  { %5648 = vmatpush3.bf16.msra.mxu0 %v6443_v37  ;;  %5651 = vmatprep.mubr.msk.bf16.mxu0 %vm6309_vm0, %v6310_v6 }
 0x5b4   :  { %5649 = vmatprep.subr.bf16.mxu0 %v6310_v6 }
 0x5b5   :  { %5642 = vmatpush3.bf16.msra.mxu1 %v6540_v17 }
 0x5b6   :  { %6046 = vmatprep.subr.bf16.mxu1 %v6308_v3 }
 0x5cf   :  { %v490_v32 = vpop.permute.xlu1 %489 }
 0x5d0   :  { %5644 = vmatmul.mubr.msk.bf16.vlgmr.msra.gmra.mrb[8].mxu1 %vm494_vm10, %v490_v32 }
 0x5d1   :  { %6048 = vmatpush3.bf16.msra.mxu1 %v6368_v4  ;;  %5663 = vmatprep.mubr.msk.f32.mxu1 %vm6309_vm0, %v6310_v6 }
 0x5d2   :  { %6049 = vmatprep.subr.bf16.mxu1 %v6308_v3 }
 0x5d5   :  { %6051 = vmatpush3.bf16.msra.mxu1 %v6383_v8 }
 0x5d6   :  { %5674 = vmatprep.subr.bf16.mxu1 %v6310_v6 }
 0x5d8   :  { %5664 = vmatmul.mubr.msk.f32.vlgmr.msra.gmra.mrb[12].mxu1 %vm56_vm2, %v769_v18 }
 0x5d9   :  { %5678 = vmatprep.mubr.msk.bf16.mxu1 %vm6309_vm0, %v6310_v6 }
 0x5de   :  { %5675 = vmatpush3.bf16.xpose.msra.mxu1 %v6447_v38 }
 0x5df   :  { %5676 = vmatprep.subr.bf16.mxu1 %v6310_v6 }
 0x5e6   :  { %5677 = vmatpush3.bf16.xpose.msra.mxu1 %v6458_v42 }
 0x5e7   :  { %5688 = vmatprep.subr.bf16.mxu1 %v6310_v6 }
 0x683   :  { %v436_v22 = vpop.f32.mrb[4].mxu1 }
 0x684   :  { %v599_v23 = vpack.c.bf16 %v436_v22, %v436_v22  ;;  %v5631_v24 = vpop.f32.mrb[5].mxu1 }
 0x685   :  { %v439_v26 = vpop.f32.mrb[6].mxu1  ;;  %v482_v28 = vpop.f32.mrb[8].mxu0 }
 0x686   :  { %v609_v31 = vrot.slane %v599_v23, %v6467_v53  ;;  %v600_v34 = vpack.c.bf16 %v482_v28, %v482_v28  ;;  %v5632_v39 = vpop.f32.mrb[7].mxu1  ;;  %v5637_v40 = vpop.f32.mrb[9].mxu0  ;;  %v6589_v23 = vsel %vm498_vm9, %v5339_v20, 0 }
 0x687   :  { %v485_v43 = vpop.f32.mrb[10].mxu0  ;;  %5650 = vmatpush3.bf16.msra.mxu0 %v6589_v23 }
 0x688   :  { %v616_v44 = vrot.slane %v609_v31, %v6467_v53  ;;  %v623_v45 = vrot.slane %v600_v34, %v6467_v53  ;;  %v5638_v46 = vpop.f32.mrb[11].mxu0  ;;  %5666 = vmatprep.subr.bf16.mxu0 %v6310_v6 }
 0x68a   :  { %v637_v47 = vrot.slane %v616_v44, %v6563_v29  ;;  %v630_v48 = vrot.slane %v623_v45, %v6467_v53 }
 0x68c   :  { %v651_v50 = vrot.slane %v630_v48, %v6563_v29  ;;  %v644_v49 = vrot.slane %v637_v47, %v6563_v29 }
 0x68e   :  { %v658_v51 = vrot.slane %v651_v50, %v6563_v29  ;;  %v659_v55 = vunpack.c.l.b16 %v644_v49 }
 0x690   :  { %v660_v52 = vunpack.c.l.b16 %v658_v51 }
 0x692   :  { %v661_v56 = vrot.slane %v660_v52, 7 }
 0x694   :  { %v6574_v59 = vsel %vm324_vm3, %v661_v56, %v659_v55 }
 0x6a3   :  { %v6576_v60 = vpop.f32.mrb[8].mxu1 }
 0x6a4   :  { %v5645_v25 = vpop.f32.mrb[9].mxu1  ;;  %v683_v55 = vpack.c.bf16 %v6576_v60, %v6576_v60 }
 0x6a5   :  { %v539_v0 = vpop.f32.mrb[10].mxu1 }
 0x6a6   :  { %v5646_v1 = vpop.f32.mrb[11].mxu1  ;;  %v693_v56 = vrot.slane %v683_v55, %v6467_v53 }
 0x6a8   :  { %v700_v0 = vrot.slane %v693_v56, %v6467_v53 }
 0x6ab   :  { %v839_v27 = vpop.f32.mrb[12].mxu1 }
 0x6ac   :  { %v840_v7 = vadd.f32 %v6394_v10, %v839_v27  ;;  %v5665_v9 = vpop.f32.mrb[13].mxu1 }
 0x6ae   :  { %851 = vrot.lane.b32.xlu1 %v840_v7, %s6311_s11  ;;  %v843_v12 = vadd.f32 %v5341_v11, %v840_v7 }
 0x6b0   :  { %v5343_v13 = vmul.f32 -1.442695, %v843_v12  ;;  %v721_v12 = vrot.slane %v700_v0, %v6563_v29 }
 0x6b2   :  { %6124 = vpow2.f32 %v5343_v13 }
 0x6bc   :  { %v6125_v54 = vpop.eup %6124 }
 0x6bd   :  { %v847_v14 = vadd.f32 1.0, %v6125_v54 }
 0x6bf   :  { %6126 = vrcp.f32 %v847_v14  ;;  %v728_v14 = vrot.slane %v721_v12, %v6563_v29 }
 0x6c0   :  { %6128 = vrcp.f32 %v385_v19 }
 0x6c9   :  { %v6127_v15 = vpop.eup %6126 }
 0x6ca   :  { %v6129_v24 = vpop.eup %6128  ;;  %v861_v28 = vsub.f32 1.0, %v6127_v15 }
 0x6cb   :  { %v391_v26 = vmul.f32 %v6129_v24, %v6505_v30 }
 0x6cd   :  { %v393_v63 = vpack.c.bf16 %v391_v26, %v391_v26 }
 0x720   :  { %v852_v16 = vpop.permute.xlu1 %851 }
 0x721   :  { %v854_v32 = vmul.f32 %v6127_v15, %v852_v16  ;;  %v743_v16 = vunpack.c.l.b16 %v728_v14 }
 0x723   :  { %856 = vrot.lane.b32.xlu0 %v854_v32, %s6311_s11 }
 0x727   :  { %867 = vrot.lane.b32.xlu0 %v769_v18, %s6313_s15 }
 0x795   :  { %v857_v21 = vpop.permute.xlu0 %856 }
 0x796   :  { %v859_v22 = vadd.f32 %v5341_v11, %v857_v21 }
 0x798   :  { %6130 = vtanh.f32 %v859_v22 }
 0x799   :  { %v868_v36 = vpop.permute.xlu0 %867 }
 0x79a   :  { %v870_v34 = vmul.f32 %v6127_v15, %v868_v36 }
 0x7a2   :  { %v6131_v18 = vpop.eup %6130 }
 0x7a3   :  { %863 = vrot.lane.b32.xlu1 %v6131_v18, %s6312_s14 }
 0x7a7   :  { %543 = vrot.lane.b32.xlu1 %v393_v63, %s6315_s10 }
 0x815   :  { %v864_v31 = vpop.permute.xlu1 %863 }
 0x816   :  { %v866_v39 = vmul.f32 %v864_v31, %v861_v28 }
 0x818   :  { %v6596_v40 = vadd.f32 %v870_v34, %v866_v39 }
 0x819   :  { %v544_v43 = vpop.permute.xlu1 %543 }
 0x81a   :  { %v877_v44 = vpack.c.bf16 %v6596_v40, %v6596_v40  ;;  %5652 = vmatmul.mubr.msk.bf16.vlgmr.msra.gmra.mrb[12].mxu0 %vm494_vm10, %v544_v43 }
 0x81b   :  { %5667 = vmatpush3.bf16.xpose.msra.mxu0 %v6436_v35  ;;  %5670 = vmatprep.mubr.msk.bf16.mxu0 %vm6309_vm0, %v6310_v6 }
 0x81c   :  { %v885_v30 = vrot.slane %v877_v44, %v6467_v53  ;;  %5668 = vmatprep.subr.bf16.mxu0 %v6310_v6 }
 0x81e   :  { %v6607_v45 = vrot.slane %v885_v30, %v6467_v53 }
 0x820   :  { %v5344_v46 = vpack.i.b16 %v6607_v45, %v6607_v45  ;;  %v894_v47 = vunpack.i.h.s16 %v6607_v45 }
 0x822   :  { %v899_v48 = vrot.slane %v5344_v46, %v6478_v58  ;;  %v945_v50 = vpack.i.b16 %v894_v47, %v894_v47 }
 0x823   :  { %5669 = vmatpush3.bf16.xpose.msra.mxu0 %v6455_v41 }
 0x824   :  { %900 = vrot.lane.b32.xlu1 %v899_v48, %s6312_s14  ;;  %v949_v49 = vrot.slane %v945_v50, %v6478_v58  ;;  %5682 = vmatprep.subr.bf16.mxu0 %v6310_v6 }
 0x826   :  { %950 = vrot.lane.b32.xlu0 %v949_v49, %s6312_s14 }
 0x896   :  { %v901_v51 = vpop.permute.xlu1 %900 }
 0x897   :  { %5671 = vmatmul.mubr.msk.bf16.vlgmr.msra.gmra.mrb[16].mxu0 %vm56_vm2, %v901_v51 }
 0x898   :  { %v951_v52 = vpop.permute.xlu0 %950  ;;  %5683 = vmatpush3.bf16.msra.mxu0 %v6515_v61  ;;  %5684 = vmatprep.mubr.msk.bf16.mxu0 %vm6309_vm0, %v6310_v6 }
 0x899   :  { %5679 = vmatmul.mubr.msk.bf16.vlgmr.msra.gmra.mrb[16].mxu1 %vm56_vm2, %v951_v52  ;;  %5694 = vmatprep.subr.bf16.mxu0 %v6310_v6 }
 0x89a   :  { %5689 = vmatpush3.bf16.msra.mxu1 %v6518_v62  ;;  %5690 = vmatprep.mubr.msk.bf16.mxu1 %vm6309_vm0, %v6310_v6 }
 0x89b   :  { %5702 = vmatprep.subr.bf16.mxu1 %v6310_v6 }
 0x8ed   :  { %v588_v25 = vpop.f32.mrb[12].mxu0 }
 0x8ee   :  { %v684_v1 = vpack.c.bf16 %v588_v25, %v588_v25  ;;  %v5653_v27 = vpop.f32.mrb[13].mxu0 }
 0x8ef   :  { %v591_v7 = vpop.f32.mrb[14].mxu0 }
 0x8f0   :  { %v707_v9 = vrot.slane %v684_v1, %v6467_v53  ;;  %v5654_v11 = vpop.f32.mrb[15].mxu0 }
 0x8f2   :  { %v714_v13 = vrot.slane %v707_v9, %v6467_v53 }
 0x8f4   :  { %v735_v54 = vrot.slane %v714_v13, %v6563_v29 }
 0x8f6   :  { %v742_v60 = vrot.slane %v735_v54, %v6563_v29 }
 0x8f8   :  { %v744_v15 = vunpack.c.l.b16 %v742_v60 }
 0x8fa   :  { %v745_v32 = vrot.slane %v744_v15, 7 }
 0x8fc   :  { %v6639_v19 = vsel %vm324_vm3, %v745_v32, %v743_v16 }
 0x96a   :  { %v939_v20 = vpop.f32.mrb[16].mxu0 }
 0x96b   :  { %v5672_v21 = vpop.f32.mrb[17].mxu0  ;;  %v995_v28 = vadd.f32 %v939_v20, %v6496_v2 }
 0x96c   :  { %v942_v22 = vpop.f32.mrb[18].mxu0  ;;  %v989_v24 = vpop.f32.mrb[16].mxu1 }
 0x96d   :  { %v996_v26 = vadd.f32 %v989_v24, %v6499_v5  ;;  %v5673_v18 = vpop.f32.mrb[19].mxu0  ;;  %v5680_v63 = vpop.f32.mrb[17].mxu1 }
 0x96e   :  { %v992_v36 = vpop.f32.mrb[18].mxu1 }
 0x96f   :  { %v999_v31 = vrot.slane %v996_v26, 7  ;;  %v5681_v34 = vpop.f32.mrb[19].mxu1 }
 0x971   :  { %v1000_v39 = vsel %vm324_vm3, %v999_v31, %v995_v28 }
 0x972   :  { %v1033_v43 = vsel %vm359_vm4, %v1000_v39, -inf  ;;  %v1002_v56 = vsel %vm327_vm5, %v1000_v39, -inf }
 0x973   :  { %1034 = vmax.xlane.f32.xlu0 %v1033_v43 }
 0xa00   :  { %v1035_v44 = vpop.xlane.xlu0 %1034 }
 0xa01   :  { %v1037_v30 = vrot.slane %v1035_v44, 1  ;;  %v1040_v46 = vsub.f32 %v995_v28, %v1035_v44 }
 0xa03   :  { %v1041_v47 = vsub.f32 %v996_v26, %v1037_v30  ;;  %v1042_v48 = vmul.f32 1.442695, %v1040_v46 }
 0xa05   :  { %v1044_v50 = vmul.f32 1.442695, %v1041_v47 }
 0xa07   :  { %6132 = vpow2.f32 %v1044_v50 }
 0xa08   :  { %6134 = vpow2.f32 %v1042_v48 }
 0xa11   :  { %v6645_v49 = vpop.eup %6132 }
 0xa12   :  { %v1048_v51 = vrot.slane %v6645_v49, 7  ;;  %v6135_v52 = vpop.eup %6134 }
 0xa14   :  { %v1049_v55 = vsel %vm324_vm3, %v1048_v51, %v6135_v52 }
 0xa15   :  { %1050 = vrot.lane.b32.xlu1 %v1049_v55, %s6315_s10 }
 0xa39   :  { %1003 = vmax.xlane.f32.xlu1 %v1002_v56 }
 0xa87   :  { %v1051_v25 = vpop.permute.xlu1 %1050 }
 0xa88   :  { %v1053_v0 = vsel %vm380_vm6, %v1051_v25, 0.0 }
 0xa89   :  { %1054 = vadd.xlane.f32.xlu0 %v1053_v0 }
 0xac6   :  { %v1004_v1 = vpop.xlane.xlu1 %1003 }
 0xac7   :  { %v1006_v27 = vrot.slane %v1004_v1, 1  ;;  %v1009_v7 = vsub.f32 %v995_v28, %v1004_v1 }
 0xac9   :  { %v1010_v9 = vsub.f32 %v996_v26, %v1006_v27  ;;  %v1011_v11 = vmul.f32 1.442695, %v1009_v7 }
 0xacb   :  { %v1013_v12 = vmul.f32 1.442695, %v1010_v9 }
 0xacd   :  { %6136 = vpow2.f32 %v1013_v12 }
 0xace   :  { %6138 = vpow2.f32 %v1011_v11 }
 0xad7   :  { %v6137_v13 = vpop.eup %6136 }
 0xad8   :  { %v1017_v54 = vrot.slane %v6137_v13, 7  ;;  %v6139_v14 = vpop.eup %6138 }
 0xada   :  { %v1018_v60 = vsel %vm324_vm3, %v1017_v54, %v6139_v14 }
 0xadb   :  { %v1020_v15 = vsel %vm327_vm5, %v1018_v60, 0.0 }
 0xadc   :  { %1021 = vadd.xlane.f32.xlu0 %v1020_v15 }
 0xaf2   :  { %873 = vrot.lane.b32.xlu0 %v6596_v40, %s6312_s14 }
 0xb16   :  { %v6656_v16 = vpop.xlane.xlu0 %1054 }
 0xb17   :  { %6140 = vrcp.f32 %v6656_v16 }
 0xb21   :  { %v6141_v32 = vpop.eup %6140 }
 0xb22   :  { %v1061_v20 = vmul.f32 %v6141_v32, %v6135_v52 }
 0xb24   :  { %v1064_v21 = vpack.c.bf16 %v1061_v20, %v1061_v20 }
 0xb26   :  { %1153 = vrot.lane.b32.xlu1 %v1064_v21, %s6315_s10 }
 0xb69   :  { %v1022_v22 = vpop.xlane.xlu0 %1021 }
 0xb6a   :  { %v1024_v24 = vrot.slane %v1022_v22, 1  ;;  %6142 = vrcp.f32 %v1022_v22 }
 0xb6c   :  { %6144 = vrcp.f32 %v1024_v24 }
 0xb6d   :  { %v874_v26 = vpop.permute.xlu0 %873 }
 0xb6e   :  { %876 = vst.msk [vmem:[#allocation2] sm:$0x3] %vm32_vm1, %v874_v26  ;;  %v5354_v26 = vld [vmem:[%s7619_s0 + $0x4] sm:$0x3] }
 0xb74   :  { %v6143_v18 = vpop.eup %6142 }
 0xb75   :  { %v1028_v63 = vmul.f32 %v6143_v18, %v6139_v14  ;;  %v1417_v39 = vld [vmem:[#allocation2] sm:$0x3] }
 0xb76   :  { %v6145_v36 = vpop.eup %6144 }
 0xb77   :  { %v1031_v40 = vpack.c.bf16 %v1028_v63, %v1028_v63  ;;  %v1030_v28 = vmul.f32 %v6145_v36, %v6137_v13 }
 0xb79   :  { %5685 = vmatmul.mubr.msk.bf16.vlgmr.msra.gmra.mrb[20].mxu0 %vm394_vm8, %v1031_v40  ;;  %v1032_v31 = vpack.c.bf16 %v1030_v28, %v1030_v28 }
 0xb7a   :  { %5695 = vmatpush3.bf16.msra.mxu0 %v6430_v33  ;;  %5698 = vmatprep.mubr.msk.bf16.mxu0 %vm6309_vm0, %v6310_v6 }
 0xb7b   :  { %5691 = vmatmul.mubr.msk.bf16.vlgmr.msra.gmra.mrb[20].mxu1 %vm394_vm8, %v1032_v31  ;;  %5696 = vmatprep.subr.bf16.mxu0 %v6310_v6 }
 0xb7c   :  { %5703 = vmatpush3.bf16.msra.mxu1 %v6443_v37  ;;  %5706 = vmatprep.mubr.msk.bf16.mxu1 %vm6309_vm0, %v6310_v6 }
 0xb7d   :  { %5704 = vmatprep.subr.bf16.mxu1 %v6310_v6 }
 0xb7e   :  { %5697 = vmatpush3.bf16.msra.mxu0 %v6540_v17 }
 0xb7f   :  { %6052 = vmatprep.subr.bf16.mxu0 %v6308_v3 }
 0xb80   :  { %5705 = vmatpush3.bf16.msra.mxu1 %v6589_v23 }
 0xb81   :  { %5721 = vmatprep.subr.bf16.mxu1 %v6310_v6 }
 0xb98   :  { %v1154_v34 = vpop.permute.xlu1 %1153 }
 0xb99   :  { %5699 = vmatmul.mubr.msk.bf16.vlgmr.msra.gmra.mrb[24].mxu0 %vm494_vm10, %v1154_v34 }
 0xb9a   :  { %6054 = vmatpush3.bf16.msra.mxu0 %v6368_v4  ;;  %5718 = vmatprep.mubr.msk.f32.mxu0 %vm6309_vm0, %v6310_v6 }
 0xb9b   :  { %6055 = vmatprep.subr.bf16.mxu0 %v6308_v3 }
 0xb9e   :  { %6057 = vmatpush3.bf16.msra.mxu0 %v6383_v8 }
 0xb9f   :  { %5729 = vmatprep.subr.bf16.mxu0 %v6310_v6 }
 0xba1   :  { %5719 = vmatmul.mubr.msk.f32.vlgmr.msra.gmra.mrb[2].mxu0 %vm56_vm2, %v1417_v39 }
 0xba2   :  { %5733 = vmatprep.mubr.msk.bf16.mxu0 %vm6309_vm0, %v6310_v6 }
 0xba7   :  { %5730 = vmatpush3.bf16.xpose.msra.mxu0 %v6447_v38 }
 0xba8   :  { %5731 = vmatprep.subr.bf16.mxu0 %v6310_v6 }
 0xbaf   :  { %5732 = vmatpush3.bf16.xpose.msra.mxu0 %v6458_v42 }
 0xbb0   :  { %5743 = vmatprep.subr.bf16.mxu0 %v6310_v6 }
 0xc4c   :  { %v1103_v43 = vpop.f32.mrb[20].mxu0 }
 0xc4d   :  { %v1249_v44 = vpack.c.bf16 %v1103_v43, %v1103_v43  ;;  %v5686_v30 = vpop.f32.mrb[21].mxu0 }
 0xc4e   :  { %v1106_v46 = vpop.f32.mrb[22].mxu0  ;;  %v1146_v47 = vpop.f32.mrb[20].mxu1 }
 0xc4f   :  { %v1259_v48 = vrot.slane %v1249_v44, %v6467_v53  ;;  %v1250_v50 = vpack.c.bf16 %v1146_v47, %v1146_v47  ;;  %v5687_v51 = vpop.f32.mrb[23].mxu0  ;;  %v5692_v52 = vpop.f32.mrb[21].mxu1 }
 0xc50   :  { %v1149_v55 = vpop.f32.mrb[22].mxu1 }
 0xc51   :  { %v1266_v56 = vrot.slane %v1259_v48, %v6467_v53  ;;  %v1273_v25 = vrot.slane %v1250_v50, %v6467_v53  ;;  %v5693_v0 = vpop.f32.mrb[23].mxu1 }
 0xc53   :  { %v1287_v1 = vrot.slane %v1266_v56, %v6563_v29  ;;  %v1280_v27 = vrot.slane %v1273_v25, %v6467_v53 }
 0xc55   :  { %v1301_v7 = vrot.slane %v1280_v27, %v6563_v29  ;;  %v1294_v9 = vrot.slane %v1287_v1, %v6563_v29 }
 0xc57   :  { %v1308_v11 = vrot.slane %v1301_v7, %v6563_v29  ;;  %v1309_v13 = vunpack.c.l.b16 %v1294_v9 }
 0xc59   :  { %v1310_v12 = vunpack.c.l.b16 %v1308_v11 }
 0xc5b   :  { %v1311_v54 = vrot.slane %v1310_v12, 7 }
 0xc5d   :  { %v6698_v14 = vsel %vm324_vm3, %v1311_v54, %v1309_v13 }
 0xc6c   :  { %v6700_v60 = vpop.f32.mrb[24].mxu0 }
 0xc6d   :  { %v5700_v15 = vpop.f32.mrb[25].mxu0  ;;  %v1332_v54 = vpack.c.bf16 %v6700_v60, %v6700_v60 }
 0xc6e   :  { %v1195_v32 = vpop.f32.mrb[26].mxu0 }
 0xc6f   :  { %v5701_v20 = vpop.f32.mrb[27].mxu0  ;;  %v1342_v15 = vrot.slane %v1332_v54, %v6467_v53 }
 0xc71   :  { %v1349_v20 = vrot.slane %v1342_v15, %v6467_v53 }
 0xc74   :  { %v1487_v21 = vpop.f32.mrb[2].mxu0 }
 0xc75   :  { %v1488_v22 = vadd.f32 %v6394_v10, %v1487_v21  ;;  %v5720_v24 = vpop.f32.mrb[3].mxu0  ;;  %v1057_v10 = vrot.slane %v6656_v16, 1 }
 0xc77   :  { %1499 = vrot.lane.b32.xlu1 %v1488_v22, %s6311_s11  ;;  %v1491_v18 = vadd.f32 %v5354_v26, %v1488_v22 }
 0xc79   :  { %v5356_v63 = vmul.f32 -1.442695, %v1491_v18 }
 0xc7b   :  { %6146 = vpow2.f32 %v5356_v63  ;;  %v1370_v63 = vrot.slane %v1349_v20, %v6563_v29 }
 0xc85   :  { %v6147_v36 = vpop.eup %6146 }
 0xc86   :  { %v1495_v40 = vadd.f32 1.0, %v6147_v36 }
 0xc88   :  { %6148 = vrcp.f32 %v1495_v40 }
 0xc89   :  { %6150 = vrcp.f32 %v1057_v10 }
 0xc92   :  { %v6149_v28 = vpop.eup %6148 }
 0xc93   :  { %v6151_v30 = vpop.eup %6150  ;;  %v1509_v51 = vsub.f32 1.0, %v6149_v28 }
 0xc94   :  { %v1063_v46 = vmul.f32 %v6151_v30, %v6645_v49 }
 0xc96   :  { %v1065_v48 = vpack.c.bf16 %v1063_v46, %v1063_v46 }
 0xce9   :  { %v1500_v31 = vpop.permute.xlu1 %1499 }
 0xcea   :  { %v1502_v34 = vmul.f32 %v6149_v28, %v1500_v31 }
 0xcec   :  { %1504 = vrot.lane.b32.xlu0 %v1502_v34, %s6311_s11 }
 0xcf0   :  { %1515 = vrot.lane.b32.xlu0 %v1417_v39, %s6313_s15 }
 0xd5e   :  { %v1505_v43 = vpop.permute.xlu0 %1504 }
 0xd5f   :  { %v1507_v44 = vadd.f32 %v5354_v26, %v1505_v43 }
 0xd61   :  { %6152 = vtanh.f32 %v1507_v44 }
 0xd62   :  { %v1516_v50 = vpop.permute.xlu0 %1515 }
 0xd63   :  { %v1518_v55 = vmul.f32 %v6149_v28, %v1516_v50  ;;  %v1377_v28 = vrot.slane %v1370_v63, %v6563_v29 }
 0xd65   :  { %v1392_v34 = vunpack.c.l.b16 %v1377_v28 }
 0xd6b   :  { %v6153_v47 = vpop.eup %6152 }
 0xd6c   :  { %1511 = vrot.lane.b32.xlu1 %v6153_v47, %s6312_s14 }
 0xd70   :  { %1199 = vrot.lane.b32.xlu1 %v1065_v48, %s6315_s10 }
 0xdde   :  { %v1512_v52 = vpop.permute.xlu1 %1511 }
 0xddf   :  { %v1514_v39 = vmul.f32 %v1512_v52, %v1509_v51 }
 0xde1   :  { %v6713_v56 = vadd.f32 %v1518_v55, %v1514_v39 }
 0xde2   :  { %v1200_v16 = vpop.permute.xlu1 %1199 }
 0xde3   :  { %v1525_v25 = vpack.c.bf16 %v6713_v56, %v6713_v56  ;;  %5707 = vmatmul.mubr.msk.bf16.vlgmr.msra.gmra.mrb[24].mxu1 %vm494_vm10, %v1200_v16 }
 0xde4   :  { %5722 = vmatpush3.bf16.xpose.msra.mxu1 %v6436_v35  ;;  %5725 = vmatprep.mubr.msk.bf16.mxu1 %vm6309_vm0, %v6310_v6 }
 0xde5   :  { %v1533_v49 = vrot.slane %v1525_v25, %v6467_v53  ;;  %5723 = vmatprep.subr.bf16.mxu1 %v6310_v6 }
 0xde7   :  { %v6724_v0 = vrot.slane %v1533_v49, %v6467_v53 }
 0xde9   :  { %v5357_v1 = vpack.i.b16 %v6724_v0, %v6724_v0  ;;  %v1542_v27 = vunpack.i.h.s16 %v6724_v0 }
 0xdeb   :  { %v1547_v7 = vrot.slane %v5357_v1, %v6478_v58  ;;  %v1593_v9 = vpack.i.b16 %v1542_v27, %v1542_v27 }
 0xdec   :  { %5724 = vmatpush3.bf16.xpose.msra.mxu1 %v6455_v41 }
 0xded   :  { %1548 = vrot.lane.b32.xlu1 %v1547_v7, %s6312_s14  ;;  %v1597_v11 = vrot.slane %v1593_v9, %v6478_v58  ;;  %5737 = vmatprep.subr.bf16.mxu1 %v6310_v6 }
 0xdef   :  { %1598 = vrot.lane.b32.xlu0 %v1597_v11, %s6312_s14 }
 0xe5f   :  { %v1549_v12 = vpop.permute.xlu1 %1548 }
 0xe60   :  { %5726 = vmatmul.mubr.msk.bf16.vlgmr.msra.gmra.mrb[28].mxu1 %vm56_vm2, %v1549_v12 }
 0xe61   :  { %v1599_v13 = vpop.permute.xlu0 %1598  ;;  %5738 = vmatpush3.bf16.msra.mxu1 %v6515_v61  ;;  %5739 = vmatprep.mubr.msk.bf16.mxu1 %vm6309_vm0, %v6310_v6 }
 0xe62   :  { %5734 = vmatmul.mubr.msk.bf16.vlgmr.msra.gmra.mrb[28].mxu0 %vm56_vm2, %v1599_v13  ;;  %5749 = vmatprep.subr.bf16.mxu1 %v6310_v6 }
 0xe63   :  { %5744 = vmatpush3.bf16.msra.mxu0 %v6518_v62  ;;  %5745 = vmatprep.mubr.msk.bf16.mxu0 %vm6309_vm0, %v6310_v6 }
 0xe64   :  { %5757 = vmatprep.subr.bf16.mxu0 %v6310_v6 }
 0xeb6   :  { %v1238_v32 = vpop.f32.mrb[24].mxu1 }
 0xeb7   :  { %v1333_v21 = vpack.c.bf16 %v1238_v32, %v1238_v32  ;;  %v5708_v22 = vpop.f32.mrb[25].mxu1 }
 0xeb8   :  { %v1241_v24 = vpop.f32.mrb[26].mxu1 }
 0xeb9   :  { %v1356_v26 = vrot.slane %v1333_v21, %v6467_v53  ;;  %v5709_v18 = vpop.f32.mrb[27].mxu1 }
 0xebb   :  { %v1363_v36 = vrot.slane %v1356_v26, %v6467_v53 }
 0xebd   :  { %v1384_v40 = vrot.slane %v1363_v36, %v6563_v29 }
 0xebf   :  { %v1391_v60 = vrot.slane %v1384_v40, %v6563_v29 }
 0xec1   :  { %v1393_v31 = vunpack.c.l.b16 %v1391_v60 }
 0xec3   :  { %v1394_v10 = vrot.slane %v1393_v31, 7 }
 0xec5   :  { %v6756_v43 = vsel %vm324_vm3, %v1394_v10, %v1392_v34 }
 0xf33   :  { %v1587_v44 = vpop.f32.mrb[28].mxu1 }
 0xf34   :  { %v5727_v30 = vpop.f32.mrb[29].mxu1  ;;  %v1643_v55 = vadd.f32 %v1587_v44, %v6496_v2 }
 0xf35   :  { %v1590_v46 = vpop.f32.mrb[30].mxu1  ;;  %v1637_v47 = vpop.f32.mrb[28].mxu0 }
 0xf36   :  { %v1644_v48 = vadd.f32 %v1637_v47, %v6499_v5  ;;  %v5728_v50 = vpop.f32.mrb[31].mxu1  ;;  %v5735_v51 = vpop.f32.mrb[29].mxu0 }
 0xf37   :  { %v1640_v52 = vpop.f32.mrb[30].mxu0 }
 0xf38   :  { %v1647_v39 = vrot.slane %v1644_v48, 7  ;;  %v5736_v16 = vpop.f32.mrb[31].mxu0 }
 0xf3a   :  { %v1648_v25 = vsel %vm324_vm3, %v1647_v39, %v1643_v55 }
 0xf3b   :  { %v1681_v49 = vsel %vm359_vm4, %v1648_v25, -inf  ;;  %v1650_v32 = vsel %vm327_vm5, %v1648_v25, -inf }
 0xf3c   :  { %1682 = vmax.xlane.f32.xlu0 %v1681_v49 }
 0xfc9   :  { %v1683_v1 = vpop.xlane.xlu0 %1682 }
 0xfca   :  { %v1685_v27 = vrot.slane %v1683_v1, 1  ;;  %v1688_v7 = vsub.f32 %v1643_v55, %v1683_v1 }
 0xfcc   :  { %v1689_v9 = vsub.f32 %v1644_v48, %v1685_v27  ;;  %v1690_v11 = vmul.f32 1.442695, %v1688_v7 }
 0xfce   :  { %v1692_v12 = vmul.f32 1.442695, %v1689_v9 }
 0xfd0   :  { %6154 = vpow2.f32 %v1692_v12 }
 0xfd1   :  { %6156 = vpow2.f32 %v1690_v11 }
 0xfda   :  { %v6762_v13 = vpop.eup %6154 }
 0xfdb   :  { %v1696_v54 = vrot.slane %v6762_v13, 7  ;;  %v6157_v2 = vpop.eup %6156 }
 0xfdd   :  { %v1697_v15 = vsel %vm324_vm3, %v1696_v54, %v6157_v2 }
 0xfde   :  { %1698 = vrot.lane.b32.xlu1 %v1697_v15, %s6315_s10 }
0x1002   :  { %1651 = vmax.xlane.f32.xlu1 %v1650_v32 }
0x1050   :  { %v1699_v20 = vpop.permute.xlu1 %1698 }
0x1051   :  { %v1701_v21 = vsel %vm380_vm6, %v1699_v20, 0.0 }
0x1052   :  { %1702 = vadd.xlane.f32.xlu0 %v1701_v21 }
0x108f   :  { %v1652_v22 = vpop.xlane.xlu1 %1651 }
0x1090   :  { %v1654_v24 = vrot.slane %v1652_v22, 1  ;;  %v1657_v26 = vsub.f32 %v1643_v55, %v1652_v22 }
0x1092   :  { %v1658_v18 = vsub.f32 %v1644_v48, %v1654_v24  ;;  %v1659_v63 = vmul.f32 1.442695, %v1657_v26 }
0x1094   :  { %v1661_v36 = vmul.f32 1.442695, %v1658_v18 }
0x1096   :  { %6158 = vpow2.f32 %v1661_v36 }
0x1097   :  { %6160 = vpow2.f32 %v1659_v63 }
0x10a0   :  { %v6159_v40 = vpop.eup %6158 }
0x10a1   :  { %v1665_v28 = vrot.slane %v6159_v40, 7  ;;  %v6161_v60 = vpop.eup %6160 }
0x10a3   :  { %v1666_v31 = vsel %vm324_vm3, %v1665_v28, %v6161_v60 }
0x10a4   :  { %v1668_v34 = vsel %vm327_vm5, %v1666_v31, 0.0 }
0x10a5   :  { %1669 = vadd.xlane.f32.xlu0 %v1668_v34 }
0x10bb   :  { %1521 = vrot.lane.b32.xlu0 %v6713_v56, %s6312_s14 }
0x10df   :  { %v6773_v10 = vpop.xlane.xlu0 %1702 }
0x10e0   :  { %6162 = vrcp.f32 %v6773_v10 }
0x10ea   :  { %v6163_v44 = vpop.eup %6162 }
0x10eb   :  { %v1709_v30 = vmul.f32 %v6163_v44, %v6157_v2 }
0x10ed   :  { %v1712_v46 = vpack.c.bf16 %v1709_v30, %v1709_v30 }
0x10ef   :  { %1801 = vrot.lane.b32.xlu1 %v1712_v46, %s6315_s10 }
0x1132   :  { %v1670_v47 = vpop.xlane.xlu0 %1669 }
0x1133   :  { %v1672_v48 = vrot.slane %v1670_v47, 1  ;;  %6164 = vrcp.f32 %v1670_v47 }
0x1135   :  { %6166 = vrcp.f32 %v1672_v48  ;;  %v6822_v48 = vld [vmem:[%s7624_s5] ss:$0 sm:$0xff] }
0x1136   :  { %v1522_v50 = vpop.permute.xlu0 %1521 }
0x1137   :  { %1524 = vst.msk [vmem:[#allocation2] sm:$0x3] %vm32_vm1, %v1522_v50 }
0x113d   :  { %v6165_v51 = vpop.eup %6164 }
0x113e   :  { %v1676_v52 = vmul.f32 %v6165_v51, %v6161_v60  ;;  %v2065_v49 = vld [vmem:[#allocation2] sm:$0x3] }
0x113f   :  { %v6167_v55 = vpop.eup %6166 }
0x1140   :  { %v1679_v56 = vpack.c.bf16 %v1676_v52, %v1676_v52  ;;  %v1678_v39 = vmul.f32 %v6167_v55, %v6159_v40  ;;  %v5367_v52 = vld [vmem:[%s7619_s0 + $0x6] sm:$0x3] }
0x1142   :  { %5740 = vmatmul.mubr.msk.bf16.vlgmr.msra.gmra.mrb[32].mxu1 %vm394_vm8, %v1679_v56  ;;  %v1680_v16 = vpack.c.bf16 %v1678_v39, %v1678_v39 }
0x1143   :  { %5750 = vmatpush3.bf16.msra.mxu1 %v6430_v33  ;;  %5753 = vmatprep.mubr.msk.bf16.mxu1 %vm6309_vm0, %v6310_v6 }
0x1144   :  { %5746 = vmatmul.mubr.msk.bf16.vlgmr.msra.gmra.mrb[32].mxu0 %vm394_vm8, %v1680_v16  ;;  %5751 = vmatprep.subr.bf16.mxu1 %v6310_v6 }
0x1145   :  { %5758 = vmatpush3.bf16.msra.mxu0 %v6443_v37  ;;  %5761 = vmatprep.mubr.msk.bf16.mxu0 %vm6309_vm0, %v6310_v6 }
0x1146   :  { %5759 = vmatprep.subr.bf16.mxu0 %v6310_v6 }
0x1147   :  { %5752 = vmatpush3.bf16.msra.mxu1 %v6540_v17 }
0x1148   :  { %6058 = vmatprep.subr.bf16.mxu1 %v6308_v3 }
0x1149   :  { %5760 = vmatpush3.bf16.msra.mxu0 %v6589_v23 }
0x114a   :  { %5776 = vmatprep.subr.bf16.mxu0 %v6310_v6 }
0x1161   :  { %v1802_v25 = vpop.permute.xlu1 %1801 }
0x1162   :  { %5754 = vmatmul.mubr.msk.bf16.vlgmr.msra.gmra.mrb[36].mxu1 %vm494_vm10, %v1802_v25 }
0x1163   :  { %6060 = vmatpush3.bf16.msra.mxu1 %v6368_v4  ;;  %5773 = vmatprep.mubr.msk.f32.mxu1 %vm6309_vm0, %v6310_v6 }
0x1164   :  { %6061 = vmatprep.subr.bf16.mxu1 %v6308_v3 }
0x1167   :  { %6063 = vmatpush3.bf16.msra.mxu1 %v6383_v8 }
0x1168   :  { %5784 = vmatprep.subr.bf16.mxu1 %v6310_v6 }
0x116a   :  { %5774 = vmatmul.mubr.msk.f32.vlgmr.msra.gmra.mrb[14].mxu1 %vm56_vm2, %v2065_v49 }
0x116b   :  { %5788 = vmatprep.mubr.msk.bf16.mxu1 %vm6309_vm0, %v6310_v6 }
0x1170   :  { %5785 = vmatpush3.bf16.xpose.msra.mxu1 %v6447_v38 }
0x1171   :  { %5786 = vmatprep.subr.bf16.mxu1 %v6310_v6 }
0x1178   :  { %5787 = vmatpush3.bf16.xpose.msra.mxu1 %v6458_v42 }
0x1179   :  { %5798 = vmatprep.subr.bf16.mxu1 %v6310_v6 }
0x1215   :  { %v1751_v1 = vpop.f32.mrb[32].mxu1 }
0x1216   :  { %v1897_v27 = vpack.c.bf16 %v1751_v1, %v1751_v1  ;;  %v5741_v7 = vpop.f32.mrb[33].mxu1 }
0x1217   :  { %v1754_v9 = vpop.f32.mrb[34].mxu1  ;;  %v1794_v11 = vpop.f32.mrb[32].mxu0  ;;  %v1705_v7 = vrot.slane %v6773_v10, 1 }
0x1218   :  { %v1907_v12 = vrot.slane %v1897_v27, %v6467_v53  ;;  %v1898_v54 = vpack.c.bf16 %v1794_v11, %v1794_v11  ;;  %v5742_v2 = vpop.f32.mrb[35].mxu1  ;;  %v5747_v15 = vpop.f32.mrb[33].mxu0 }
0x1219   :  { %v1797_v32 = vpop.f32.mrb[34].mxu0 }
0x121a   :  { %v1914_v20 = vrot.slane %v1907_v12, %v6467_v53  ;;  %v1921_v21 = vrot.slane %v1898_v54, %v6467_v53  ;;  %v5748_v22 = vpop.f32.mrb[35].mxu0 }
0x121c   :  { %v1935_v24 = vrot.slane %v1914_v20, %v6563_v29  ;;  %v1928_v26 = vrot.slane %v1921_v21, %v6467_v53 }
0x121e   :  { %v1949_v18 = vrot.slane %v1928_v26, %v6563_v29  ;;  %v1942_v63 = vrot.slane %v1935_v24, %v6563_v29 }
0x1220   :  { %v1956_v36 = vrot.slane %v1949_v18, %v6563_v29  ;;  %v1957_v28 = vunpack.c.l.b16 %v1942_v63 }
0x1222   :  { %v1958_v40 = vunpack.c.l.b16 %v1956_v36 }
0x1224   :  { %v1959_v60 = vrot.slane %v1958_v40, 7 }
0x1226   :  { %v6815_v31 = vsel %vm324_vm3, %v1959_v60, %v1957_v28 }
0x1235   :  { %v6817_v34 = vpop.f32.mrb[36].mxu1 }
0x1236   :  { %v5755_v44 = vpop.f32.mrb[37].mxu1 }
0x1237   :  { %v1843_v30 = vpop.f32.mrb[38].mxu1 }
0x1238   :  { %v5756_v46 = vpop.f32.mrb[39].mxu1 }
0x1239   :  { %v1980_v46 = vpack.c.bf16 %v6817_v34, %v6817_v34 }
0x123d   :  { %v2135_v47 = vpop.f32.mrb[14].mxu1 }
0x123e   :  { %v2136_v50 = vadd.f32 %v6822_v48, %v2135_v47  ;;  %v5775_v51 = vpop.f32.mrb[15].mxu1  ;;  %v1990_v47 = vrot.slane %v1980_v46, %v6467_v53 }
0x1240   :  { %2147 = vrot.lane.b32.xlu1 %v2136_v50, %s6311_s11  ;;  %v2139_v55 = vadd.f32 %v5367_v52, %v2136_v50  ;;  %v1997_v51 = vrot.slane %v1990_v47, %v6467_v53 }
0x1242   :  { %v5369_v56 = vmul.f32 -1.442695, %v2139_v55 }
0x1244   :  { %6168 = vpow2.f32 %v5369_v56 }
0x124e   :  { %v6169_v39 = vpop.eup %6168 }
0x124f   :  { %v2143_v16 = vadd.f32 1.0, %v6169_v39 }
0x1251   :  { %6170 = vrcp.f32 %v2143_v16 }
0x1252   :  { %6172 = vrcp.f32 %v1705_v7 }
0x125b   :  { %v6171_v25 = vpop.eup %6170 }
0x125c   :  { %v6173_v12 = vpop.eup %6172  ;;  %v2157_v20 = vsub.f32 1.0, %v6171_v25 }
0x125d   :  { %v1711_v54 = vmul.f32 %v6173_v12, %v6762_v13 }
0x125f   :  { %v1713_v15 = vpack.c.bf16 %v1711_v54, %v1711_v54 }
0x12b2   :  { %v2148_v1 = vpop.permute.xlu1 %2147 }
0x12b3   :  { %v2150_v27 = vmul.f32 %v6171_v25, %v2148_v1 }
0x12b5   :  { %2152 = vrot.lane.b32.xlu0 %v2150_v27, %s6311_s11 }
0x12b9   :  { %2163 = vrot.lane.b32.xlu0 %v2065_v49, %s6313_s15 }
0x1327   :  { %v2153_v9 = vpop.permute.xlu0 %2152 }
0x1328   :  { %v2155_v11 = vadd.f32 %v5367_v52, %v2153_v9 }
0x132a   :  { %6174 = vtanh.f32 %v2155_v11 }
0x132b   :  { %v2164_v32 = vpop.permute.xlu0 %2163 }
0x132c   :  { %v2166_v22 = vmul.f32 %v6171_v25, %v2164_v32  ;;  %v2018_v25 = vrot.slane %v1997_v51, %v6563_v29 }
0x132e   :  { %v2025_v7 = vrot.slane %v2018_v25, %v6563_v29 }
0x1330   :  { %v2040_v11 = vunpack.c.l.b16 %v2025_v7 }
0x1334   :  { %v6175_v2 = vpop.eup %6174 }
0x1335   :  { %2159 = vrot.lane.b32.xlu1 %v6175_v2, %s6312_s14 }
0x1339   :  { %1847 = vrot.lane.b32.xlu1 %v1713_v15, %s6315_s10 }
0x13a7   :  { %v2160_v21 = vpop.permute.xlu1 %2159 }
0x13a8   :  { %v2162_v49 = vmul.f32 %v2160_v21, %v2157_v20 }
0x13aa   :  { %v6835_v24 = vadd.f32 %v2166_v22, %v2162_v49 }
0x13ab   :  { %v1848_v10 = vpop.permute.xlu1 %1847 }
0x13ac   :  { %v2173_v26 = vpack.c.bf16 %v6835_v24, %v6835_v24  ;;  %5762 = vmatmul.mubr.msk.bf16.vlgmr.msra.gmra.mrb[36].mxu0 %vm494_vm10, %v1848_v10 }
0x13ad   :  { %5777 = vmatpush3.bf16.xpose.msra.mxu0 %v6436_v35  ;;  %5780 = vmatprep.mubr.msk.bf16.mxu0 %vm6309_vm0, %v6310_v6 }
0x13ae   :  { %v2181_v13 = vrot.slane %v2173_v26, %v6467_v53  ;;  %5778 = vmatprep.subr.bf16.mxu0 %v6310_v6  ;;  %v6884_v26 = vld [vmem:[%s7622_s3] sm:$0x3] }
0x13b0   :  { %v6846_v18 = vrot.slane %v2181_v13, %v6467_v53 }
0x13b2   :  { %v5370_v63 = vpack.i.b16 %v6846_v18, %v6846_v18  ;;  %v2190_v36 = vunpack.i.h.s16 %v6846_v18 }
0x13b4   :  { %v2195_v40 = vrot.slane %v5370_v63, %v6478_v58  ;;  %v2241_v28 = vpack.i.b16 %v2190_v36, %v2190_v36 }
0x13b5   :  { %5779 = vmatpush3.bf16.xpose.msra.mxu0 %v6455_v41 }
0x13b6   :  { %2196 = vrot.lane.b32.xlu1 %v2195_v40, %s6312_s14  ;;  %v2245_v60 = vrot.slane %v2241_v28, %v6478_v58  ;;  %5792 = vmatprep.subr.bf16.mxu0 %v6310_v6 }
0x13b8   :  { %2246 = vrot.lane.b32.xlu0 %v2245_v60, %s6312_s14 }
0x1428   :  { %v2197_v44 = vpop.permute.xlu1 %2196 }
0x1429   :  { %5781 = vmatmul.mubr.msk.bf16.vlgmr.msra.gmra.mrb[40].mxu0 %vm56_vm2, %v2197_v44 }
0x142a   :  { %v2247_v30 = vpop.permute.xlu0 %2246  ;;  %5793 = vmatpush3.bf16.msra.mxu0 %v6515_v61  ;;  %5794 = vmatprep.mubr.msk.bf16.mxu0 %vm6309_vm0, %v6310_v6 }
0x142b   :  { %5789 = vmatmul.mubr.msk.bf16.vlgmr.msra.gmra.mrb[40].mxu1 %vm56_vm2, %v2247_v30  ;;  %5804 = vmatprep.subr.bf16.mxu0 %v6310_v6 }
0x142c   :  { %5799 = vmatpush3.bf16.msra.mxu1 %v6518_v62  ;;  %5800 = vmatprep.mubr.msk.bf16.mxu1 %vm6309_vm0, %v6310_v6 }
0x142d   :  { %5812 = vmatprep.subr.bf16.mxu1 %v6310_v6 }
0x147f   :  { %v1886_v50 = vpop.f32.mrb[36].mxu0 }
0x1480   :  { %v1981_v52 = vpack.c.bf16 %v1886_v50, %v1886_v50  ;;  %v5763_v55 = vpop.f32.mrb[37].mxu0 }
0x1481   :  { %v1889_v56 = vpop.f32.mrb[38].mxu0 }
0x1482   :  { %v2004_v39 = vrot.slane %v1981_v52, %v6467_v53  ;;  %v5764_v16 = vpop.f32.mrb[39].mxu0 }
0x1484   :  { %v2011_v1 = vrot.slane %v2004_v39, %v6467_v53 }
0x1486   :  { %v2032_v27 = vrot.slane %v2011_v1, %v6563_v29 }
0x1488   :  { %v2039_v34 = vrot.slane %v2032_v27, %v6563_v29 }
0x148a   :  { %v2041_v9 = vunpack.c.l.b16 %v2039_v34 }
0x148c   :  { %v2042_v12 = vrot.slane %v2041_v9, 7 }
0x148e   :  { %v6878_v54 = vsel %vm324_vm3, %v2042_v12, %v2040_v11 }
0x14fc   :  { %v2235_v2 = vpop.f32.mrb[40].mxu0 }
0x14fd   :  { %v5782_v15 = vpop.f32.mrb[41].mxu0  ;;  %v2291_v13 = vadd.f32 %v6884_v26, %v2235_v2 }
0x14fe   :  { %v2238_v32 = vpop.f32.mrb[42].mxu0  ;;  %v2285_v20 = vpop.f32.mrb[40].mxu1 }
0x14ff   :  { %v2292_v21 = vadd.f32 %v2285_v20, %v6499_v5  ;;  %v5783_v22 = vpop.f32.mrb[43].mxu0  ;;  %v5790_v49 = vpop.f32.mrb[41].mxu1 }
0x1500   :  { %v2288_v10 = vpop.f32.mrb[42].mxu1 }
0x1501   :  { %v2295_v63 = vrot.slane %v2292_v21, 7  ;;  %v5791_v36 = vpop.f32.mrb[43].mxu1 }
0x1503   :  { %v2296_v40 = vsel %vm324_vm3, %v2295_v63, %v2291_v13 }
0x1504   :  { %v2329_v28 = vsel %vm359_vm4, %v2296_v40, -inf  ;;  %v2298_v39 = vsel %vm327_vm5, %v2296_v40, -inf }
0x1505   :  { %2330 = vmax.xlane.f32.xlu0 %v2329_v28 }
0x1592   :  { %v2331_v60 = vpop.xlane.xlu0 %2330 }
0x1593   :  { %v2333_v44 = vrot.slane %v2331_v60, 1  ;;  %v2336_v30 = vsub.f32 %v2291_v13, %v2331_v60 }
0x1595   :  { %v2337_v46 = vsub.f32 %v2292_v21, %v2333_v44  ;;  %v2338_v47 = vmul.f32 1.442695, %v2336_v30 }
0x1597   :  { %v2340_v50 = vmul.f32 1.442695, %v2337_v46 }
0x1599   :  { %6176 = vpow2.f32 %v2340_v50 }
0x159a   :  { %6178 = vpow2.f32 %v2338_v47 }
0x15a3   :  { %v6889_v51 = vpop.eup %6176 }
0x15a4   :  { %v2344_v52 = vrot.slane %v6889_v51, 7  ;;  %v6179_v55 = vpop.eup %6178 }
0x15a6   :  { %v2345_v56 = vsel %vm324_vm3, %v2344_v52, %v6179_v55 }
0x15a7   :  { %2346 = vrot.lane.b32.xlu1 %v2345_v56, %s6315_s10 }
0x15cb   :  { %2299 = vmax.xlane.f32.xlu1 %v2298_v39 }
0x1619   :  { %v2347_v16 = vpop.permute.xlu1 %2346 }
0x161a   :  { %v2349_v25 = vsel %vm380_vm6, %v2347_v16, 0.0 }
0x161b   :  { %2350 = vadd.xlane.f32.xlu0 %v2349_v25 }
0x1658   :  { %v2300_v1 = vpop.xlane.xlu1 %2299 }
0x1659   :  { %v2302_v27 = vrot.slane %v2300_v1, 1  ;;  %v2305_v7 = vsub.f32 %v2291_v13, %v2300_v1 }
0x165b   :  { %v2306_v34 = vsub.f32 %v2292_v21, %v2302_v27  ;;  %v2307_v9 = vmul.f32 1.442695, %v2305_v7 }
0x165d   :  { %v2309_v11 = vmul.f32 1.442695, %v2306_v34 }
0x165f   :  { %6180 = vpow2.f32 %v2309_v11 }
0x1660   :  { %6182 = vpow2.f32 %v2307_v9 }
0x1669   :  { %v6181_v12 = vpop.eup %6180 }
0x166a   :  { %v2313_v2 = vrot.slane %v6181_v12, 7  ;;  %v6183_v15 = vpop.eup %6182 }
0x166c   :  { %v2314_v32 = vsel %vm324_vm3, %v2313_v2, %v6183_v15 }
0x166d   :  { %v2316_v20 = vsel %vm327_vm5, %v2314_v32, 0.0 }
0x166e   :  { %2317 = vadd.xlane.f32.xlu0 %v2316_v20 }
0x1684   :  { %2169 = vrot.lane.b32.xlu0 %v6835_v24, %s6312_s14 }
0x16a8   :  { %v6900_v22 = vpop.xlane.xlu0 %2350 }
0x16a9   :  { %6184 = vrcp.f32 %v6900_v22 }
0x16b3   :  { %v6185_v21 = vpop.eup %6184 }
0x16b4   :  { %v2357_v49 = vmul.f32 %v6185_v21, %v6179_v55 }
0x16b6   :  { %v2360_v10 = vpack.c.bf16 %v2357_v49, %v2357_v49 }
0x16b8   :  { %2449 = vrot.lane.b32.xlu1 %v2360_v10, %s6315_s10 }
0x16fb   :  { %v2318_v13 = vpop.xlane.xlu0 %2317 }
0x16fc   :  { %v2320_v63 = vrot.slane %v2318_v13, 1  ;;  %6186 = vrcp.f32 %v2318_v13 }
0x16fe   :  { %6188 = vrcp.f32 %v2320_v63 }
0x16ff   :  { %v2170_v36 = vpop.permute.xlu0 %2169 }
0x1700   :  { %2172 = vst.msk [vmem:[#allocation2] sm:$0x3] %vm32_vm1, %v2170_v36 }
0x1706   :  { %v6187_v40 = vpop.eup %6186 }
0x1707   :  { %v2324_v28 = vmul.f32 %v6187_v40, %v6183_v15  ;;  %v2713_v47 = vld [vmem:[#allocation2] sm:$0x3] }
0x1708   :  { %v6189_v60 = vpop.eup %6188 }
0x1709   :  { %v2327_v24 = vpack.c.bf16 %v2324_v28, %v2324_v28  ;;  %v2326_v44 = vmul.f32 %v6189_v60, %v6181_v12 }
0x170b   :  { %5795 = vmatmul.mubr.msk.bf16.vlgmr.msra.gmra.mrb[44].mxu0 %vm394_vm8, %v2327_v24  ;;  %v2328_v30 = vpack.c.bf16 %v2326_v44, %v2326_v44 }
0x170c   :  { %5805 = vmatpush3.bf16.msra.mxu0 %v6430_v33  ;;  %5808 = vmatprep.mubr.msk.bf16.mxu0 %vm6309_vm0, %v6310_v6 }
0x170d   :  { %5801 = vmatmul.mubr.msk.bf16.vlgmr.msra.gmra.mrb[44].mxu1 %vm394_vm8, %v2328_v30  ;;  %5806 = vmatprep.subr.bf16.mxu0 %v6310_v6  ;;  %v5380_v30 = vld [vmem:[%s7619_s0 + $0x8] sm:$0x3] }
0x170e   :  { %5813 = vmatpush3.bf16.msra.mxu1 %v6443_v37  ;;  %5816 = vmatprep.mubr.msk.bf16.mxu1 %vm6309_vm0, %v6310_v6 }
0x170f   :  { %5814 = vmatprep.subr.bf16.mxu1 %v6310_v6 }
0x1710   :  { %5807 = vmatpush3.bf16.msra.mxu0 %v6540_v17 }
0x1711   :  { %6064 = vmatprep.subr.bf16.mxu0 %v6308_v3 }
0x1712   :  { %5815 = vmatpush3.bf16.msra.mxu1 %v6589_v23 }
0x1713   :  { %5831 = vmatprep.subr.bf16.mxu1 %v6310_v6 }
0x172a   :  { %v2450_v46 = vpop.permute.xlu1 %2449 }
0x172b   :  { %5809 = vmatmul.mubr.msk.bf16.vlgmr.msra.gmra.mrb[48].mxu0 %vm494_vm10, %v2450_v46 }
0x172c   :  { %6066 = vmatpush3.bf16.msra.mxu0 %v6368_v4  ;;  %5828 = vmatprep.mubr.msk.f32.mxu0 %vm6309_vm0, %v6310_v6 }
0x172d   :  { %6067 = vmatprep.subr.bf16.mxu0 %v6308_v3 }
0x1730   :  { %6069 = vmatpush3.bf16.msra.mxu0 %v6383_v8 }
0x1731   :  { %5839 = vmatprep.subr.bf16.mxu0 %v6310_v6 }
0x1733   :  { %5829 = vmatmul.mubr.msk.f32.vlgmr.msra.gmra.mrb[52].mxu0 %vm56_vm2, %v2713_v47 }
0x1734   :  { %5843 = vmatprep.mubr.msk.bf16.mxu0 %vm6309_vm0, %v6310_v6 }
0x1739   :  { %5840 = vmatpush3.bf16.xpose.msra.mxu0 %v6447_v38 }
0x173a   :  { %5841 = vmatprep.subr.bf16.mxu0 %v6310_v6 }
0x1741   :  { %5842 = vmatpush3.bf16.xpose.msra.mxu0 %v6458_v42 }
0x1742   :  { %5853 = vmatprep.subr.bf16.mxu0 %v6310_v6 }
0x17de   :  { %v2399_v50 = vpop.f32.mrb[44].mxu0 }
0x17df   :  { %v2545_v52 = vpack.c.bf16 %v2399_v50, %v2399_v50  ;;  %v5796_v55 = vpop.f32.mrb[45].mxu0 }
0x17e0   :  { %v2402_v56 = vpop.f32.mrb[46].mxu0  ;;  %v2442_v39 = vpop.f32.mrb[44].mxu1 }
0x17e1   :  { %v2555_v16 = vrot.slane %v2545_v52, %v6467_v53  ;;  %v2546_v25 = vpack.c.bf16 %v2442_v39, %v2442_v39  ;;  %v5797_v1 = vpop.f32.mrb[47].mxu0  ;;  %v5802_v27 = vpop.f32.mrb[45].mxu1 }
0x17e2   :  { %v2445_v7 = vpop.f32.mrb[46].mxu1 }
0x17e3   :  { %v2562_v34 = vrot.slane %v2555_v16, %v6467_v53  ;;  %v2569_v9 = vrot.slane %v2546_v25, %v6467_v53  ;;  %v5803_v11 = vpop.f32.mrb[47].mxu1  ;;  %v2353_v25 = vrot.slane %v6900_v22, 1 }
0x17e5   :  { %v2583_v12 = vrot.slane %v2562_v34, %v6563_v29  ;;  %v2576_v2 = vrot.slane %v2569_v9, %v6467_v53 }
0x17e7   :  { %v2597_v15 = vrot.slane %v2576_v2, %v6563_v29  ;;  %v2590_v32 = vrot.slane %v2583_v12, %v6563_v29 }
0x17e9   :  { %v2604_v20 = vrot.slane %v2597_v15, %v6563_v29  ;;  %v2605_v49 = vunpack.c.l.b16 %v2590_v32 }
0x17eb   :  { %v2606_v21 = vunpack.c.l.b16 %v2604_v20 }
0x17ed   :  { %v2607_v10 = vrot.slane %v2606_v21, 7 }
0x17ef   :  { %v6942_v13 = vsel %vm324_vm3, %v2607_v10, %v2605_v49 }
0x17fe   :  { %v6944_v63 = vpop.f32.mrb[48].mxu0 }
0x17ff   :  { %v5810_v36 = vpop.f32.mrb[49].mxu0 }
0x1800   :  { %v2491_v40 = vpop.f32.mrb[50].mxu0 }
0x1801   :  { %v5811_v28 = vpop.f32.mrb[51].mxu0 }
0x1806   :  { %v2783_v60 = vpop.f32.mrb[52].mxu0 }
0x1807   :  { %v2784_v24 = vadd.f32 %v6822_v48, %v2783_v60  ;;  %v5830_v44 = vpop.f32.mrb[53].mxu0 }
0x1809   :  { %2795 = vrot.lane.b32.xlu1 %v2784_v24, %s6311_s11  ;;  %v2787_v46 = vadd.f32 %v5380_v30, %v2784_v24 }
0x180b   :  { %v5382_v50 = vmul.f32 -1.442695, %v2787_v46 }
0x180d   :  { %6190 = vpow2.f32 %v5382_v50 }
0x1817   :  { %v6191_v52 = vpop.eup %6190 }
0x1818   :  { %v2791_v55 = vadd.f32 1.0, %v6191_v52 }
0x181a   :  { %6192 = vrcp.f32 %v2791_v55 }
0x181b   :  { %6194 = vrcp.f32 %v2353_v25 }
0x1824   :  { %v6193_v56 = vpop.eup %6192 }
0x1825   :  { %v6195_v7 = vpop.eup %6194  ;;  %v2805_v2 = vsub.f32 1.0, %v6193_v56 }
0x1826   :  { %v2359_v34 = vmul.f32 %v6195_v7, %v6889_v51 }
0x1828   :  { %v2361_v11 = vpack.c.bf16 %v2359_v34, %v2359_v34 }
0x187b   :  { %v2796_v39 = vpop.permute.xlu1 %2795 }
0x187c   :  { %v2798_v16 = vmul.f32 %v6193_v56, %v2796_v39 }
0x187e   :  { %2800 = vrot.lane.b32.xlu0 %v2798_v16, %s6311_s11 }
0x1882   :  { %2811 = vrot.lane.b32.xlu0 %v2713_v47, %s6313_s15 }
0x18f0   :  { %v2801_v1 = vpop.permute.xlu0 %2800 }
0x18f1   :  { %v2803_v27 = vadd.f32 %v5380_v30, %v2801_v1  ;;  %v2628_v30 = vpack.c.bf16 %v6944_v63, %v6944_v63 }
0x18f3   :  { %6196 = vtanh.f32 %v2803_v27  ;;  %v2638_v46 = vrot.slane %v2628_v30, %v6467_v53 }
0x18f4   :  { %v2812_v12 = vpop.permute.xlu0 %2811 }
0x18f5   :  { %v2814_v32 = vmul.f32 %v6193_v56, %v2812_v12  ;;  %v2645_v52 = vrot.slane %v2638_v46, %v6467_v53 }
0x18f7   :  { %v2666_v1 = vrot.slane %v2645_v52, %v6563_v29 }
0x18f9   :  { %v2673_v34 = vrot.slane %v2666_v1, %v6563_v29 }
0x18fd   :  { %v6197_v9 = vpop.eup %6196 }
0x18fe   :  { %2807 = vrot.lane.b32.xlu1 %v6197_v9, %s6312_s14 }
0x1902   :  { %2495 = vrot.lane.b32.xlu1 %v2361_v11, %s6315_s10  ;;  %v2688_v11 = vunpack.c.l.b16 %v2673_v34 }
0x1970   :  { %v2808_v15 = vpop.permute.xlu1 %2807 }
0x1971   :  { %v2810_v47 = vmul.f32 %v2808_v15, %v2805_v2 }
0x1973   :  { %v6957_v20 = vadd.f32 %v2814_v32, %v2810_v47 }
0x1974   :  { %v2496_v22 = vpop.permute.xlu1 %2495 }
0x1975   :  { %v2821_v21 = vpack.c.bf16 %v6957_v20, %v6957_v20  ;;  %5817 = vmatmul.mubr.msk.bf16.vlgmr.msra.gmra.mrb[48].mxu1 %vm494_vm10, %v2496_v22 }
0x1976   :  { %5832 = vmatpush3.bf16.xpose.msra.mxu1 %v6436_v35  ;;  %5835 = vmatprep.mubr.msk.bf16.mxu1 %vm6309_vm0, %v6310_v6 }
0x1977   :  { %v2829_v51 = vrot.slane %v2821_v21, %v6467_v53  ;;  %5833 = vmatprep.subr.bf16.mxu1 %v6310_v6 }
0x1979   :  { %v6968_v49 = vrot.slane %v2829_v51, %v6467_v53 }
0x197b   :  { %v5383_v10 = vpack.i.b16 %v6968_v49, %v6968_v49  ;;  %v2838_v36 = vunpack.i.h.s16 %v6968_v49 }
0x197d   :  { %v2843_v40 = vrot.slane %v5383_v10, %v6478_v58  ;;  %v2889_v28 = vpack.i.b16 %v2838_v36, %v2838_v36 }
0x197e   :  { %5834 = vmatpush3.bf16.xpose.msra.mxu1 %v6455_v41 }
0x197f   :  { %2844 = vrot.lane.b32.xlu1 %v2843_v40, %s6312_s14  ;;  %v2893_v60 = vrot.slane %v2889_v28, %v6478_v58  ;;  %5847 = vmatprep.subr.bf16.mxu1 %v6310_v6 }
0x1981   :  { %2894 = vrot.lane.b32.xlu0 %v2893_v60, %s6312_s14 }
0x19f1   :  { %v2845_v24 = vpop.permute.xlu1 %2844 }
0x19f2   :  { %5836 = vmatmul.mubr.msk.bf16.vlgmr.msra.gmra.mrb[52].mxu1 %vm56_vm2, %v2845_v24 }
0x19f3   :  { %v2895_v44 = vpop.permute.xlu0 %2894  ;;  %5848 = vmatpush3.bf16.msra.mxu1 %v6515_v61  ;;  %5849 = vmatprep.mubr.msk.bf16.mxu1 %vm6309_vm0, %v6310_v6 }
0x19f4   :  { %5844 = vmatmul.mubr.msk.bf16.vlgmr.msra.gmra.mrb[56].mxu0 %vm56_vm2, %v2895_v44  ;;  %5859 = vmatprep.subr.bf16.mxu1 %v6310_v6 }
0x19f5   :  { %5854 = vmatpush3.bf16.msra.mxu0 %v6518_v62  ;;  %5855 = vmatprep.mubr.msk.bf16.mxu0 %vm6309_vm0, %v6310_v6 }
0x19f6   :  { %5867 = vmatprep.subr.bf16.mxu0 %v6310_v6 }
0x1a48   :  { %v2534_v50 = vpop.f32.mrb[48].mxu1 }
0x1a49   :  { %v2629_v55 = vpack.c.bf16 %v2534_v50, %v2534_v50  ;;  %v5818_v56 = vpop.f32.mrb[49].mxu1 }
0x1a4a   :  { %v2537_v39 = vpop.f32.mrb[50].mxu1 }
0x1a4b   :  { %v2652_v16 = vrot.slane %v2629_v55, %v6467_v53  ;;  %v5819_v25 = vpop.f32.mrb[51].mxu1 }
0x1a4d   :  { %v2659_v27 = vrot.slane %v2652_v16, %v6467_v53 }
0x1a4f   :  { %v2680_v7 = vrot.slane %v2659_v27, %v6563_v29 }
0x1a51   :  { %v2687_v63 = vrot.slane %v2680_v7, %v6563_v29 }
0x1a53   :  { %v2689_v9 = vunpack.c.l.b16 %v2687_v63 }
0x1a55   :  { %v2690_v12 = vrot.slane %v2689_v9, 7 }
0x1a57   :  { %v7000_v2 = vsel %vm324_vm3, %v2690_v12, %v2688_v11 }
0x1ac5   :  { %v2883_v15 = vpop.f32.mrb[52].mxu1 }
0x1ac6   :  { %v5837_v32 = vpop.f32.mrb[53].mxu1  ;;  %v2939_v40 = vadd.f32 %v6884_v26, %v2883_v15 }
0x1ac7   :  { %v2886_v47 = vpop.f32.mrb[54].mxu1  ;;  %v2933_v22 = vpop.f32.mrb[56].mxu0 }
0x1ac8   :  { %v2940_v21 = vadd.f32 %v2933_v22, %v6499_v5  ;;  %v5838_v51 = vpop.f32.mrb[55].mxu1  ;;  %v5845_v10 = vpop.f32.mrb[57].mxu0 }
0x1ac9   :  { %v2936_v36 = vpop.f32.mrb[58].mxu0 }
0x1aca   :  { %v2943_v28 = vrot.slane %v2940_v21, 7  ;;  %v5846_v60 = vpop.f32.mrb[59].mxu0 }
0x1acc   :  { %v2944_v24 = vsel %vm324_vm3, %v2943_v28, %v2939_v40 }
0x1acd   :  { %v2977_v44 = vsel %vm359_vm4, %v2944_v24, -inf  ;;  %v2946_v27 = vsel %vm327_vm5, %v2944_v24, -inf }
0x1ace   :  { %2978 = vmax.xlane.f32.xlu0 %v2977_v44 }
0x1b5b   :  { %v2979_v30 = vpop.xlane.xlu0 %2978 }
0x1b5c   :  { %v2981_v46 = vrot.slane %v2979_v30, 1  ;;  %v2984_v50 = vsub.f32 %v2939_v40, %v2979_v30 }
0x1b5e   :  { %v2985_v52 = vsub.f32 %v2940_v21, %v2981_v46  ;;  %v2986_v55 = vmul.f32 1.442695, %v2984_v50 }
0x1b60   :  { %v2988_v56 = vmul.f32 1.442695, %v2985_v52 }
0x1b62   :  { %6198 = vpow2.f32 %v2988_v56 }
0x1b63   :  { %6200 = vpow2.f32 %v2986_v55 }
0x1b6c   :  { %v7006_v39 = vpop.eup %6198 }
0x1b6d   :  { %v2992_v16 = vrot.slane %v7006_v39, 7  ;;  %v6201_v25 = vpop.eup %6200 }
0x1b6f   :  { %v2993_v1 = vsel %vm324_vm3, %v2992_v16, %v6201_v25 }
0x1b70   :  { %2994 = vrot.lane.b32.xlu1 %v2993_v1, %s6315_s10 }
0x1b94   :  { %2947 = vmax.xlane.f32.xlu1 %v2946_v27 }
0x1be2   :  { %v2995_v7 = vpop.permute.xlu1 %2994 }
0x1be3   :  { %v2997_v34 = vsel %vm380_vm6, %v2995_v7, 0.0 }
0x1be4   :  { %2998 = vadd.xlane.f32.xlu0 %v2997_v34 }
0x1c21   :  { %v2948_v63 = vpop.xlane.xlu1 %2947 }
0x1c22   :  { %v2950_v9 = vrot.slane %v2948_v63, 1  ;;  %v2953_v11 = vsub.f32 %v2939_v40, %v2948_v63 }
0x1c24   :  { %v2954_v12 = vsub.f32 %v2940_v21, %v2950_v9  ;;  %v2955_v15 = vmul.f32 1.442695, %v2953_v11 }
0x1c26   :  { %v2957_v32 = vmul.f32 1.442695, %v2954_v12 }
0x1c28   :  { %6202 = vpow2.f32 %v2957_v32 }
0x1c29   :  { %6204 = vpow2.f32 %v2955_v15 }
0x1c32   :  { %v6203_v47 = vpop.eup %6202 }
0x1c33   :  { %v2961_v22 = vrot.slane %v6203_v47, 7  ;;  %v6205_v51 = vpop.eup %6204 }
0x1c35   :  { %v2962_v10 = vsel %vm324_vm3, %v2961_v22, %v6205_v51 }
0x1c36   :  { %v2964_v36 = vsel %vm327_vm5, %v2962_v10, 0.0 }
0x1c37   :  { %2965 = vadd.xlane.f32.xlu0 %v2964_v36 }
0x1c4d   :  { %2817 = vrot.lane.b32.xlu0 %v6957_v20, %s6312_s14 }
0x1c71   :  { %v7017_v28 = vpop.xlane.xlu0 %2998 }
0x1c72   :  { %6206 = vrcp.f32 %v7017_v28 }
0x1c7c   :  { %v6207_v21 = vpop.eup %6206 }
0x1c7d   :  { %v3005_v40 = vmul.f32 %v6207_v21, %v6201_v25 }
0x1c7f   :  { %v3008_v60 = vpack.c.bf16 %v3005_v40, %v3005_v40 }
0x1c81   :  { %3097 = vrot.lane.b32.xlu1 %v3008_v60, %s6315_s10 }
0x1cc4   :  { %v2966_v24 = vpop.xlane.xlu0 %2965 }
0x1cc5   :  { %v2968_v44 = vrot.slane %v2966_v24, 1  ;;  %6208 = vrcp.f32 %v2966_v24 }
0x1cc7   :  { %6210 = vrcp.f32 %v2968_v44 }
0x1cc8   :  { %v2818_v30 = vpop.permute.xlu0 %2817 }
0x1cc9   :  { %2820 = vst.msk [vmem:[#allocation2] sm:$0x3] %vm32_vm1, %v2818_v30 }
0x1ccf   :  { %v6209_v46 = vpop.eup %6208 }
0x1cd0   :  { %v2972_v50 = vmul.f32 %v6209_v46, %v6205_v51  ;;  %v3361_v25 = vld [vmem:[#allocation2] sm:$0x3] }
0x1cd1   :  { %v6211_v52 = vpop.eup %6210 }
0x1cd2   :  { %v2975_v20 = vpack.c.bf16 %v2972_v50, %v2972_v50  ;;  %v2974_v55 = vmul.f32 %v6211_v52, %v6203_v47 }
0x1cd4   :  { %5850 = vmatmul.mubr.msk.bf16.vlgmr.msra.gmra.mrb[56].mxu1 %vm394_vm8, %v2975_v20  ;;  %v2976_v56 = vpack.c.bf16 %v2974_v55, %v2974_v55 }
0x1cd5   :  { %5860 = vmatpush3.bf16.msra.mxu1 %v6430_v33  ;;  %5863 = vmatprep.mubr.msk.bf16.mxu1 %vm6309_vm0, %v6310_v6 }
0x1cd6   :  { %5856 = vmatmul.mubr.msk.bf16.vlgmr.msra.gmra.mrb[60].mxu0 %vm394_vm8, %v2976_v56  ;;  %5861 = vmatprep.subr.bf16.mxu1 %v6310_v6 }
0x1cd7   :  { %5868 = vmatpush3.bf16.msra.mxu0 %v6443_v37  ;;  %5871 = vmatprep.mubr.msk.bf16.mxu0 %vm6309_vm0, %v6310_v6 }
0x1cd8   :  { %5869 = vmatprep.subr.bf16.mxu0 %v6310_v6 }
0x1cd9   :  { %5862 = vmatpush3.bf16.msra.mxu1 %v6540_v17 }
0x1cda   :  { %6070 = vmatprep.subr.bf16.mxu1 %v6308_v3 }
0x1cdb   :  { %5870 = vmatpush3.bf16.msra.mxu0 %v6589_v23 }
0x1cdc   :  { %5886 = vmatprep.subr.bf16.mxu0 %v6310_v6 }
0x1cf3   :  { %v3098_v16 = vpop.permute.xlu1 %3097 }
0x1cf4   :  { %5864 = vmatmul.mubr.msk.bf16.vlgmr.msra.gmra.mrb[60].mxu1 %vm494_vm10, %v3098_v16 }
0x1cf5   :  { %6072 = vmatpush3.bf16.msra.mxu1 %v6368_v4  ;;  %5883 = vmatprep.mubr.msk.f32.mxu1 %vm6309_vm0, %v6310_v6 }
0x1cf6   :  { %6073 = vmatprep.subr.bf16.mxu1 %v6308_v3 }
0x1cf9   :  { %6075 = vmatpush3.bf16.msra.mxu1 %v6383_v8 }
0x1cfa   :  { %5894 = vmatprep.subr.bf16.mxu1 %v6310_v6 }
0x1cfc   :  { %5884 = vmatmul.mubr.msk.f32.vlgmr.msra.gmra.mrb[64].mxu1 %vm56_vm2, %v3361_v25 }
0x1cfd   :  { %5898 = vmatprep.mubr.msk.bf16.mxu1 %vm6309_vm0, %v6310_v6 }
0x1d02   :  { %5895 = vmatpush3.bf16.xpose.msra.mxu1 %v6447_v38 }
0x1d03   :  { %5896 = vmatprep.subr.bf16.mxu1 %v6310_v6 }
0x1d0a   :  { %5897 = vmatpush3.bf16.xpose.msra.mxu1 %v6458_v42 }
0x1d0b   :  { %5908 = vmatprep.subr.bf16.mxu1 %v6310_v6 }
0x1da7   :  { %v3047_v1 = vpop.f32.mrb[56].mxu1 }
0x1da8   :  { %v3193_v27 = vpack.c.bf16 %v3047_v1, %v3047_v1  ;;  %v5851_v7 = vpop.f32.mrb[57].mxu1 }
0x1da9   :  { %v3050_v34 = vpop.f32.mrb[58].mxu1  ;;  %v3090_v63 = vpop.f32.mrb[60].mxu0 }
0x1daa   :  { %v3203_v9 = vrot.slane %v3193_v27, %v6467_v53  ;;  %v3194_v11 = vpack.c.bf16 %v3090_v63, %v3090_v63  ;;  %v5852_v12 = vpop.f32.mrb[59].mxu1  ;;  %v5857_v15 = vpop.f32.mrb[61].mxu0  ;;  %v5393_v27 = vld [vmem:[%s7619_s0 + $0xa] sm:$0x3] }
0x1dab   :  { %v3093_v32 = vpop.f32.mrb[62].mxu0 }
0x1dac   :  { %v3210_v47 = vrot.slane %v3203_v9, %v6467_v53  ;;  %v3217_v22 = vrot.slane %v3194_v11, %v6467_v53  ;;  %v5858_v51 = vpop.f32.mrb[63].mxu0 }
0x1dae   :  { %v3231_v10 = vrot.slane %v3210_v47, %v6563_v29  ;;  %v3224_v36 = vrot.slane %v3217_v22, %v6467_v53 }
0x1db0   :  { %v3245_v21 = vrot.slane %v3224_v36, %v6563_v29  ;;  %v3238_v40 = vrot.slane %v3231_v10, %v6563_v29 }
0x1db2   :  { %v3252_v60 = vrot.slane %v3245_v21, %v6563_v29  ;;  %v3253_v44 = vunpack.c.l.b16 %v3238_v40 }
0x1db4   :  { %v3254_v24 = vunpack.c.l.b16 %v3252_v60 }
0x1db6   :  { %v3255_v30 = vrot.slane %v3254_v24, 7 }
0x1db8   :  { %v7059_v46 = vsel %vm324_vm3, %v3255_v30, %v3253_v44 }
0x1dc7   :  { %v7061_v50 = vpop.f32.mrb[60].mxu1 }
0x1dc8   :  { %v5865_v52 = vpop.f32.mrb[61].mxu1 }
0x1dc9   :  { %v3139_v20 = vpop.f32.mrb[62].mxu1 }
0x1dca   :  { %v5866_v55 = vpop.f32.mrb[63].mxu1 }
0x1dcf   :  { %v3431_v56 = vpop.f32.mrb[64].mxu1 }
0x1dd0   :  { %v3432_v16 = vadd.f32 %v6822_v48, %v3431_v56  ;;  %v5885_v1 = vpop.f32.mrb[65].mxu1  ;;  %v3001_v48 = vrot.slane %v7017_v28, 1 }
0x1dd2   :  { %3443 = vrot.lane.b32.xlu1 %v3432_v16, %s6311_s11  ;;  %v3435_v7 = vadd.f32 %v5393_v27, %v3432_v16 }
0x1dd4   :  { %v5395_v34 = vmul.f32 -1.442695, %v3435_v7 }
0x1dd6   :  { %6212 = vpow2.f32 %v5395_v34  ;;  %v3276_v34 = vpack.c.bf16 %v7061_v50, %v7061_v50 }
0x1de0   :  { %v6213_v63 = vpop.eup %6212 }
0x1de1   :  { %v3439_v9 = vadd.f32 1.0, %v6213_v63  ;;  %v3286_v63 = vrot.slane %v3276_v34, %v6467_v53 }
0x1de3   :  { %6214 = vrcp.f32 %v3439_v9 }
0x1de4   :  { %6216 = vrcp.f32 %v3001_v48 }
0x1ded   :  { %v6215_v11 = vpop.eup %6214 }
0x1dee   :  { %v6217_v22 = vpop.eup %6216  ;;  %v3453_v40 = vsub.f32 1.0, %v6215_v11 }
0x1def   :  { %v3007_v51 = vmul.f32 %v6217_v22, %v7006_v39 }
0x1df1   :  { %v3009_v36 = vpack.c.bf16 %v3007_v51, %v3007_v51 }
0x1e44   :  { %v3444_v12 = vpop.permute.xlu1 %3443 }
0x1e45   :  { %v3446_v15 = vmul.f32 %v6215_v11, %v3444_v12 }
0x1e47   :  { %3448 = vrot.lane.b32.xlu0 %v3446_v15, %s6311_s11 }
0x1e4b   :  { %3459 = vrot.lane.b32.xlu0 %v3361_v25, %s6313_s15 }
0x1eb9   :  { %v3449_v32 = vpop.permute.xlu0 %3448 }
0x1eba   :  { %v3451_v47 = vadd.f32 %v5393_v27, %v3449_v32 }
0x1ebc   :  { %6218 = vtanh.f32 %v3451_v47 }
0x1ebd   :  { %v3460_v21 = vpop.permute.xlu0 %3459 }
0x1ebe   :  { %v3462_v24 = vmul.f32 %v6215_v11, %v3460_v21  ;;  %v3293_v11 = vrot.slane %v3286_v63, %v6467_v53 }
0x1ec0   :  { %v3314_v22 = vrot.slane %v3293_v11, %v6563_v29 }
0x1ec6   :  { %v6219_v10 = vpop.eup %6218 }
0x1ec7   :  { %3455 = vrot.lane.b32.xlu1 %v6219_v10, %s6312_s14 }
0x1ecb   :  { %3143 = vrot.lane.b32.xlu1 %v3009_v36, %s6315_s10  ;;  %v3321_v36 = vrot.slane %v3314_v22, %v6563_v29 }
0x1f39   :  { %v3456_v60 = vpop.permute.xlu1 %3455 }
0x1f3a   :  { %v3458_v25 = vmul.f32 %v3456_v60, %v3453_v40  ;;  %v3336_v40 = vunpack.c.l.b16 %v3321_v36 }
0x1f3c   :  { %v7074_v44 = vadd.f32 %v3462_v24, %v3458_v25 }
0x1f3d   :  { %v3144_v28 = vpop.permute.xlu1 %3143 }
0x1f3e   :  { %v3469_v30 = vpack.c.bf16 %v7074_v44, %v7074_v44  ;;  %5872 = vmatmul.mubr.msk.bf16.vlgmr.msra.gmra.mrb[64].mxu0 %vm494_vm10, %v3144_v28 }
0x1f3f   :  { %5887 = vmatpush3.bf16.xpose.msra.mxu0 %v6436_v35  ;;  %5890 = vmatprep.mubr.msk.bf16.mxu0 %vm6309_vm0, %v6310_v6 }
0x1f40   :  { %v3477_v39 = vrot.slane %v3469_v30, %v6467_v53  ;;  %5888 = vmatprep.subr.bf16.mxu0 %v6310_v6 }
0x1f42   :  { %v7085_v52 = vrot.slane %v3477_v39, %v6467_v53 }
0x1f44   :  { %v5396_v20 = vpack.i.b16 %v7085_v52, %v7085_v52  ;;  %v3486_v55 = vunpack.i.h.s16 %v7085_v52 }
0x1f46   :  { %v3491_v56 = vrot.slane %v5396_v20, %v6478_v58  ;;  %v3537_v16 = vpack.i.b16 %v3486_v55, %v3486_v55 }
0x1f47   :  { %5889 = vmatpush3.bf16.xpose.msra.mxu0 %v6455_v41 }
0x1f48   :  { %3492 = vrot.lane.b32.xlu1 %v3491_v56, %s6312_s14  ;;  %v3541_v1 = vrot.slane %v3537_v16, %v6478_v58  ;;  %5902 = vmatprep.subr.bf16.mxu0 %v6310_v6 }
0x1f4a   :  { %3542 = vrot.lane.b32.xlu0 %v3541_v1, %s6312_s14 }
0x1fba   :  { %v3493_v27 = vpop.permute.xlu1 %3492 }
0x1fbb   :  { %5891 = vmatmul.mubr.msk.bf16.vlgmr.msra.gmra.mrb[68].mxu0 %vm56_vm2, %v3493_v27 }
0x1fbc   :  { %v3543_v7 = vpop.permute.xlu0 %3542  ;;  %5903 = vmatpush3.bf16.msra.mxu0 %v6515_v61  ;;  %5904 = vmatprep.mubr.msk.bf16.mxu0 %vm6309_vm0, %v6310_v6 }
0x1fbd   :  { %5899 = vmatmul.mubr.msk.bf16.vlgmr.msra.gmra.mrb[68].mxu1 %vm56_vm2, %v3543_v7  ;;  %5914 = vmatprep.subr.bf16.mxu0 %v6310_v6 }
0x1fbe   :  { %5909 = vmatpush3.bf16.msra.mxu1 %v6518_v62  ;;  %5910 = vmatprep.mubr.msk.bf16.mxu1 %vm6309_vm0, %v6310_v6 }
0x1fbf   :  { %5922 = vmatprep.subr.bf16.mxu1 %v6310_v6 }
0x2011   :  { %v3182_v9 = vpop.f32.mrb[64].mxu0 }
0x2012   :  { %v3277_v12 = vpack.c.bf16 %v3182_v9, %v3182_v9  ;;  %v5873_v15 = vpop.f32.mrb[65].mxu0 }
0x2013   :  { %v3185_v48 = vpop.f32.mrb[66].mxu0 }
0x2014   :  { %v3300_v32 = vrot.slane %v3277_v12, %v6467_v53  ;;  %v5874_v47 = vpop.f32.mrb[67].mxu0 }
0x2016   :  { %v3307_v51 = vrot.slane %v3300_v32, %v6467_v53 }
0x2018   :  { %v3328_v10 = vrot.slane %v3307_v51, %v6563_v29 }
0x201a   :  { %v3335_v50 = vrot.slane %v3328_v10, %v6563_v29 }
0x201c   :  { %v3337_v21 = vunpack.c.l.b16 %v3335_v50 }
0x201e   :  { %v3338_v60 = vrot.slane %v3337_v21, 7 }
0x2020   :  { %v7117_v24 = vsel %vm324_vm3, %v3338_v60, %v3336_v40 }
0x208e   :  { %v3531_v25 = vpop.f32.mrb[68].mxu0 }
0x208f   :  { %v5892_v28 = vpop.f32.mrb[69].mxu0  ;;  %v3587_v1 = vadd.f32 %v6884_v26, %v3531_v25 }
0x2090   :  { %v3534_v30 = vpop.f32.mrb[70].mxu0  ;;  %v3581_v39 = vpop.f32.mrb[68].mxu1 }
0x2091   :  { %v3588_v20 = vadd.f32 %v3581_v39, %v6499_v5  ;;  %v5893_v55 = vpop.f32.mrb[71].mxu0  ;;  %v5900_v56 = vpop.f32.mrb[69].mxu1 }
0x2092   :  { %v3584_v16 = vpop.f32.mrb[70].mxu1 }
0x2093   :  { %v3591_v27 = vrot.slane %v3588_v20, 7  ;;  %v5901_v7 = vpop.f32.mrb[71].mxu1 }
0x2095   :  { %v3592_v34 = vsel %vm324_vm3, %v3591_v27, %v3587_v1 }
0x2096   :  { %v3625_v63 = vsel %vm359_vm4, %v3592_v34, -inf  ;;  %v3594_v10 = vsel %vm327_vm5, %v3592_v34, -inf }
0x2097   :  { %3626 = vmax.xlane.f32.xlu0 %v3625_v63 }
0x2124   :  { %v3627_v9 = vpop.xlane.xlu0 %3626 }
0x2125   :  { %v3629_v11 = vrot.slane %v3627_v9, 1  ;;  %v3632_v12 = vsub.f32 %v3587_v1, %v3627_v9 }
0x2127   :  { %v3633_v15 = vsub.f32 %v3588_v20, %v3629_v11  ;;  %v3634_v48 = vmul.f32 1.442695, %v3632_v12 }
0x2129   :  { %v3636_v32 = vmul.f32 1.442695, %v3633_v15 }
0x212b   :  { %6220 = vpow2.f32 %v3636_v32 }
0x212c   :  { %6222 = vpow2.f32 %v3634_v48 }
0x2135   :  { %v7123_v47 = vpop.eup %6220 }
0x2136   :  { %v3640_v22 = vrot.slane %v7123_v47, 7  ;;  %v6223_v26 = vpop.eup %6222 }
0x2138   :  { %v3641_v51 = vsel %vm324_vm3, %v3640_v22, %v6223_v26 }
0x2139   :  { %3642 = vrot.lane.b32.xlu1 %v3641_v51, %s6315_s10 }
0x215d   :  { %3595 = vmax.xlane.f32.xlu1 %v3594_v10 }
0x21ab   :  { %v3643_v36 = vpop.permute.xlu1 %3642 }
0x21ac   :  { %v3645_v50 = vsel %vm380_vm6, %v3643_v36, 0.0 }
0x21ad   :  { %3646 = vadd.xlane.f32.xlu0 %v3645_v50 }
0x21ea   :  { %v3596_v21 = vpop.xlane.xlu1 %3595 }
0x21eb   :  { %v3598_v40 = vrot.slane %v3596_v21, 1  ;;  %v3601_v60 = vsub.f32 %v3587_v1, %v3596_v21 }
0x21ed   :  { %v3602_v25 = vsub.f32 %v3588_v20, %v3598_v40  ;;  %v3603_v28 = vmul.f32 1.442695, %v3601_v60 }
0x21ef   :  { %v3605_v30 = vmul.f32 1.442695, %v3602_v25 }
0x21f1   :  { %6224 = vpow2.f32 %v3605_v30 }
0x21f2   :  { %6226 = vpow2.f32 %v3603_v28 }
0x21fb   :  { %v6225_v39 = vpop.eup %6224 }
0x21fc   :  { %v3609_v55 = vrot.slane %v6225_v39, 7  ;;  %v6227_v56 = vpop.eup %6226 }
0x21fe   :  { %v3610_v16 = vsel %vm324_vm3, %v3609_v55, %v6227_v56 }
0x21ff   :  { %v3612_v27 = vsel %vm327_vm5, %v3610_v16, 0.0 }
0x2200   :  { %3613 = vadd.xlane.f32.xlu0 %v3612_v27 }
0x2216   :  { %3465 = vrot.lane.b32.xlu0 %v7074_v44, %s6312_s14 }
0x223a   :  { %v7134_v7 = vpop.xlane.xlu0 %3646 }
0x223b   :  { %6228 = vrcp.f32 %v7134_v7 }
0x2245   :  { %v6229_v20 = vpop.eup %6228 }
0x2246   :  { %v3653_v1 = vmul.f32 %v6229_v20, %v6223_v26 }
0x2248   :  { %v3656_v34 = vpack.c.bf16 %v3653_v1, %v3653_v1 }
0x224a   :  { %3745 = vrot.lane.b32.xlu1 %v3656_v34, %s6315_s10 }
0x228d   :  { %v3614_v63 = vpop.xlane.xlu0 %3613 }
0x228e   :  { %v3616_v9 = vrot.slane %v3614_v63, 1  ;;  %6230 = vrcp.f32 %v3614_v63 }
0x2290   :  { %6232 = vrcp.f32 %v3616_v9 }
0x2291   :  { %v3466_v11 = vpop.permute.xlu0 %3465 }
0x2292   :  { %3468 = vst.msk [vmem:[#allocation2] sm:$0x3] %vm32_vm1, %v3466_v11 }
0x2298   :  { %v6231_v12 = vpop.eup %6230 }
0x2299   :  { %v3620_v15 = vmul.f32 %v6231_v12, %v6227_v56  ;;  %v4009_v51 = vld [vmem:[#allocation2] sm:$0x3] }
0x229a   :  { %v6233_v48 = vpop.eup %6232 }
0x229b   :  { %v3623_v44 = vpack.c.bf16 %v3620_v15, %v3620_v15  ;;  %v3622_v32 = vmul.f32 %v6233_v48, %v6225_v39 }
0x229d   :  { %5905 = vmatmul.mubr.msk.bf16.vlgmr.msra.gmra.mrb[72].mxu0 %vm394_vm8, %v3623_v44  ;;  %v3624_v22 = vpack.c.bf16 %v3622_v32, %v3622_v32 }
0x229e   :  { %5915 = vmatpush3.bf16.msra.mxu0 %v6430_v33  ;;  %5918 = vmatprep.mubr.msk.bf16.mxu0 %vm6309_vm0, %v6310_v6 }
0x229f   :  { %5911 = vmatmul.mubr.msk.bf16.vlgmr.msra.gmra.mrb[72].mxu1 %vm394_vm8, %v3624_v22  ;;  %5916 = vmatprep.subr.bf16.mxu0 %v6310_v6 }
0x22a0   :  { %5923 = vmatpush3.bf16.msra.mxu1 %v6443_v37  ;;  %5926 = vmatprep.mubr.msk.bf16.mxu1 %vm6309_vm0, %v6310_v6 }
0x22a1   :  { %5924 = vmatprep.subr.bf16.mxu1 %v6310_v6 }
0x22a2   :  { %5917 = vmatpush3.bf16.msra.mxu0 %v6540_v17 }
0x22a3   :  { %6076 = vmatprep.subr.bf16.mxu0 %v6308_v3 }
0x22a4   :  { %5925 = vmatpush3.bf16.msra.mxu1 %v6589_v23 }
0x22a5   :  { %5941 = vmatprep.subr.bf16.mxu1 %v6310_v6 }
0x22bc   :  { %v3746_v26 = vpop.permute.xlu1 %3745 }
0x22bd   :  { %5919 = vmatmul.mubr.msk.bf16.vlgmr.msra.gmra.mrb[76].mxu0 %vm494_vm10, %v3746_v26 }
0x22be   :  { %6078 = vmatpush3.bf16.msra.mxu0 %v6368_v4  ;;  %5938 = vmatprep.mubr.msk.f32.mxu0 %vm6309_vm0, %v6310_v6 }
0x22bf   :  { %6079 = vmatprep.subr.bf16.mxu0 %v6308_v3 }
0x22c2   :  { %6081 = vmatpush3.bf16.msra.mxu0 %v6383_v8 }
0x22c3   :  { %5949 = vmatprep.subr.bf16.mxu0 %v6310_v6 }
0x22c5   :  { %5939 = vmatmul.mubr.msk.f32.vlgmr.msra.gmra.mrb[54].mxu0 %vm56_vm2, %v4009_v51 }
0x22c6   :  { %5953 = vmatprep.mubr.msk.bf16.mxu0 %vm6309_vm0, %v6310_v6 }
0x22cb   :  { %5950 = vmatpush3.bf16.xpose.msra.mxu0 %v6447_v38 }
0x22cc   :  { %5951 = vmatprep.subr.bf16.mxu0 %v6310_v6 }
0x22d3   :  { %5952 = vmatpush3.bf16.xpose.msra.mxu0 %v6458_v42 }
0x22d4   :  { %5963 = vmatprep.subr.bf16.mxu0 %v6310_v6 }
0x2370   :  { %v3695_v10 = vpop.f32.mrb[72].mxu0 }
0x2371   :  { %v3841_v36 = vpack.c.bf16 %v3695_v10, %v3695_v10  ;;  %v5906_v50 = vpop.f32.mrb[73].mxu0  ;;  %v7183_v10 = vld [vmem:[%s7624_s5] ss:$0 sm:$0xff] }
0x2372   :  { %v3698_v21 = vpop.f32.mrb[74].mxu0  ;;  %v3738_v40 = vpop.f32.mrb[72].mxu1 }
0x2373   :  { %v3851_v60 = vrot.slane %v3841_v36, %v6467_v53  ;;  %v3842_v25 = vpack.c.bf16 %v3738_v40, %v3738_v40  ;;  %v5907_v28 = vpop.f32.mrb[75].mxu0  ;;  %v5912_v30 = vpop.f32.mrb[73].mxu1  ;;  %v5406_v21 = vld [vmem:[%s7619_s0 + $0xc] sm:$0x3] }
0x2374   :  { %v3741_v39 = vpop.f32.mrb[74].mxu1 }
0x2375   :  { %v3858_v55 = vrot.slane %v3851_v60, %v6467_v53  ;;  %v3865_v56 = vrot.slane %v3842_v25, %v6467_v53  ;;  %v5913_v16 = vpop.f32.mrb[75].mxu1 }
0x2377   :  { %v3879_v27 = vrot.slane %v3858_v55, %v6563_v29  ;;  %v3872_v20 = vrot.slane %v3865_v56, %v6467_v53  ;;  %v3649_v56 = vrot.slane %v7134_v7, 1 }
0x2379   :  { %v3893_v1 = vrot.slane %v3872_v20, %v6563_v29  ;;  %v3886_v34 = vrot.slane %v3879_v27, %v6563_v29 }
0x237b   :  { %v3900_v63 = vrot.slane %v3893_v1, %v6563_v29  ;;  %v3901_v11 = vunpack.c.l.b16 %v3886_v34 }
0x237d   :  { %v3902_v9 = vunpack.c.l.b16 %v3900_v63 }
0x237f   :  { %v3903_v12 = vrot.slane %v3902_v9, 7 }
0x2381   :  { %v7176_v15 = vsel %vm324_vm3, %v3903_v12, %v3901_v11 }
0x2390   :  { %v7178_v48 = vpop.f32.mrb[76].mxu0 }
0x2391   :  { %v5920_v44 = vpop.f32.mrb[77].mxu0 }
0x2392   :  { %v3787_v32 = vpop.f32.mrb[78].mxu0 }
0x2393   :  { %v5921_v22 = vpop.f32.mrb[79].mxu0 }
0x2398   :  { %v4079_v26 = vpop.f32.mrb[54].mxu0 }
0x2399   :  { %v4080_v36 = vadd.f32 %v7183_v10, %v4079_v26  ;;  %v5940_v50 = vpop.f32.mrb[55].mxu0 }
0x239b   :  { %4091 = vrot.lane.b32.xlu1 %v4080_v36, %s6311_s11  ;;  %v4083_v40 = vadd.f32 %v5406_v21, %v4080_v36 }
0x239d   :  { %v5408_v60 = vmul.f32 -1.442695, %v4083_v40 }
0x239f   :  { %6234 = vpow2.f32 %v5408_v60 }
0x23a9   :  { %v6235_v25 = vpop.eup %6234 }
0x23aa   :  { %v4087_v28 = vadd.f32 1.0, %v6235_v25 }
0x23ac   :  { %6236 = vrcp.f32 %v4087_v28 }
0x23ad   :  { %6238 = vrcp.f32 %v3649_v56 }
0x23b6   :  { %v6237_v30 = vpop.eup %6236 }
0x23b7   :  { %v6239_v20 = vpop.eup %6238  ;;  %v4101_v11 = vsub.f32 1.0, %v6237_v30 }
0x23b8   :  { %v3655_v1 = vmul.f32 %v6239_v20, %v7123_v47 }
0x23ba   :  { %v3657_v63 = vpack.c.bf16 %v3655_v1, %v3655_v1 }
0x240d   :  { %v4092_v39 = vpop.permute.xlu1 %4091 }
0x240e   :  { %v4094_v55 = vmul.f32 %v6237_v30, %v4092_v39 }
0x2410   :  { %4096 = vrot.lane.b32.xlu0 %v4094_v55, %s6311_s11 }
0x2414   :  { %4107 = vrot.lane.b32.xlu0 %v4009_v51, %s6313_s15 }
0x2482   :  { %v4097_v16 = vpop.permute.xlu0 %4096 }
0x2483   :  { %v4099_v27 = vadd.f32 %v5406_v21, %v4097_v16 }
0x2485   :  { %6240 = vtanh.f32 %v4099_v27 }
0x2486   :  { %v4108_v9 = vpop.permute.xlu0 %4107 }
0x2487   :  { %v4110_v44 = vmul.f32 %v6237_v30, %v4108_v9  ;;  %v3924_v30 = vpack.c.bf16 %v7178_v48, %v7178_v48 }
0x2489   :  { %v3934_v39 = vrot.slane %v3924_v30, %v6467_v53  ;;  %v7245_v30 = vld [vmem:[%s7622_s3] sm:$0x3] }
0x248b   :  { %v3941_v56 = vrot.slane %v3934_v39, %v6467_v53 }
0x248f   :  { %v6241_v34 = vpop.eup %6240 }
0x2490   :  { %4103 = vrot.lane.b32.xlu1 %v6241_v34, %s6312_s14 }
0x2494   :  { %3791 = vrot.lane.b32.xlu1 %v3657_v63, %s6315_s10  ;;  %v3962_v63 = vrot.slane %v3941_v56, %v6563_v29 }
0x2502   :  { %v4104_v12 = vpop.permute.xlu1 %4103 }
0x2503   :  { %v4106_v51 = vmul.f32 %v4104_v12, %v4101_v11  ;;  %v3969_v12 = vrot.slane %v3962_v63, %v6563_v29 }
0x2505   :  { %v7196_v32 = vadd.f32 %v4110_v44, %v4106_v51  ;;  %v3984_v51 = vunpack.c.l.b16 %v3969_v12 }
0x2506   :  { %v3792_v7 = vpop.permute.xlu1 %3791 }
0x2507   :  { %v4117_v22 = vpack.c.bf16 %v7196_v32, %v7196_v32  ;;  %5927 = vmatmul.mubr.msk.bf16.vlgmr.msra.gmra.mrb[76].mxu1 %vm494_vm10, %v3792_v7 }
0x2508   :  { %5942 = vmatpush3.bf16.xpose.msra.mxu1 %v6436_v35  ;;  %5945 = vmatprep.mubr.msk.bf16.mxu1 %vm6309_vm0, %v6310_v6 }
0x2509   :  { %v4125_v47 = vrot.slane %v4117_v22, %v6467_v53  ;;  %5943 = vmatprep.subr.bf16.mxu1 %v6310_v6 }
0x250b   :  { %v7207_v26 = vrot.slane %v4125_v47, %v6467_v53 }
0x250d   :  { %v5409_v36 = vpack.i.b16 %v7207_v26, %v7207_v26  ;;  %v4134_v50 = vunpack.i.h.s16 %v7207_v26 }
0x250f   :  { %v4139_v21 = vrot.slane %v5409_v36, %v6478_v58  ;;  %v4185_v40 = vpack.i.b16 %v4134_v50, %v4134_v50 }
0x2510   :  { %5944 = vmatpush3.bf16.xpose.msra.mxu1 %v6455_v41 }
0x2511   :  { %4140 = vrot.lane.b32.xlu1 %v4139_v21, %s6312_s14  ;;  %v4189_v60 = vrot.slane %v4185_v40, %v6478_v58  ;;  %5957 = vmatprep.subr.bf16.mxu1 %v6310_v6 }
0x2513   :  { %4190 = vrot.lane.b32.xlu0 %v4189_v60, %s6312_s14 }
0x2583   :  { %v4141_v25 = vpop.permute.xlu1 %4140 }
0x2584   :  { %5946 = vmatmul.mubr.msk.bf16.vlgmr.msra.gmra.mrb[80].mxu1 %vm56_vm2, %v4141_v25 }
0x2585   :  { %v4191_v28 = vpop.permute.xlu0 %4190  ;;  %5958 = vmatpush3.bf16.msra.mxu1 %v6515_v61  ;;  %5959 = vmatprep.mubr.msk.bf16.mxu1 %vm6309_vm0, %v6310_v6 }
0x2586   :  { %5954 = vmatmul.mubr.msk.bf16.vlgmr.msra.gmra.mrb[80].mxu0 %vm56_vm2, %v4191_v28  ;;  %5969 = vmatprep.subr.bf16.mxu1 %v6310_v6 }
0x2587   :  { %5964 = vmatpush3.bf16.msra.mxu0 %v6518_v62  ;;  %5965 = vmatprep.mubr.msk.bf16.mxu0 %vm6309_vm0, %v6310_v6 }
0x2588   :  { %5977 = vmatprep.subr.bf16.mxu0 %v6310_v6 }
0x25da   :  { %v3830_v55 = vpop.f32.mrb[76].mxu1 }
0x25db   :  { %v3925_v16 = vpack.c.bf16 %v3830_v55, %v3830_v55  ;;  %v5928_v27 = vpop.f32.mrb[77].mxu1 }
0x25dc   :  { %v3833_v20 = vpop.f32.mrb[78].mxu1 }
0x25dd   :  { %v3948_v1 = vrot.slane %v3925_v16, %v6467_v53  ;;  %v5929_v34 = vpop.f32.mrb[79].mxu1 }
0x25df   :  { %v3955_v9 = vrot.slane %v3948_v1, %v6467_v53 }
0x25e1   :  { %v3976_v11 = vrot.slane %v3955_v9, %v6563_v29 }
0x25e3   :  { %v3983_v48 = vrot.slane %v3976_v11, %v6563_v29 }
0x25e5   :  { %v3985_v44 = vunpack.c.l.b16 %v3983_v48 }
0x25e7   :  { %v3986_v7 = vrot.slane %v3985_v44, 7 }
0x25e9   :  { %v7239_v22 = vsel %vm324_vm3, %v3986_v7, %v3984_v51 }
0x2657   :  { %v4179_v47 = vpop.f32.mrb[80].mxu1 }
0x2658   :  { %v5947_v36 = vpop.f32.mrb[81].mxu1  ;;  %v4235_v39 = vadd.f32 %v7245_v30, %v4179_v47 }
0x2659   :  { %v4182_v50 = vpop.f32.mrb[82].mxu1  ;;  %v4229_v21 = vpop.f32.mrb[80].mxu0 }
0x265a   :  { %v4236_v40 = vadd.f32 %v4229_v21, %v6499_v5  ;;  %v5948_v60 = vpop.f32.mrb[83].mxu1  ;;  %v5955_v25 = vpop.f32.mrb[81].mxu0 }
0x265b   :  { %v4232_v28 = vpop.f32.mrb[82].mxu0 }
0x265c   :  { %v4239_v55 = vrot.slane %v4236_v40, 7  ;;  %v5956_v56 = vpop.f32.mrb[83].mxu0 }
0x265e   :  { %v4240_v16 = vsel %vm324_vm3, %v4239_v55, %v4235_v39 }
0x265f   :  { %v4273_v27 = vsel %vm359_vm4, %v4240_v16, -inf  ;;  %v4242_v7 = vsel %vm327_vm5, %v4240_v16, -inf }
0x2660   :  { %4274 = vmax.xlane.f32.xlu0 %v4273_v27 }
0x26ed   :  { %v4275_v20 = vpop.xlane.xlu0 %4274 }
0x26ee   :  { %v4277_v1 = vrot.slane %v4275_v20, 1  ;;  %v4280_v34 = vsub.f32 %v4235_v39, %v4275_v20 }
0x26f0   :  { %v4281_v63 = vsub.f32 %v4236_v40, %v4277_v1  ;;  %v4282_v9 = vmul.f32 1.442695, %v4280_v34 }
0x26f2   :  { %v4284_v11 = vmul.f32 1.442695, %v4281_v63 }
0x26f4   :  { %6242 = vpow2.f32 %v4284_v11 }
0x26f5   :  { %6244 = vpow2.f32 %v4282_v9 }
0x26fe   :  { %v7250_v12 = vpop.eup %6242 }
0x26ff   :  { %v4288_v48 = vrot.slane %v7250_v12, 7  ;;  %v6245_v44 = vpop.eup %6244 }
0x2701   :  { %v4289_v51 = vsel %vm324_vm3, %v4288_v48, %v6245_v44 }
0x2702   :  { %4290 = vrot.lane.b32.xlu1 %v4289_v51, %s6315_s10 }
0x2726   :  { %4243 = vmax.xlane.f32.xlu1 %v4242_v7 }
0x2774   :  { %v4291_v47 = vpop.permute.xlu1 %4290 }
0x2775   :  { %v4293_v36 = vsel %vm380_vm6, %v4291_v47, 0.0 }
0x2776   :  { %4294 = vadd.xlane.f32.xlu0 %v4293_v36 }
0x27b3   :  { %v4244_v50 = vpop.xlane.xlu1 %4243 }
0x27b4   :  { %v4246_v21 = vrot.slane %v4244_v50, 1  ;;  %v4249_v60 = vsub.f32 %v4235_v39, %v4244_v50 }
0x27b6   :  { %v4250_v25 = vsub.f32 %v4236_v40, %v4246_v21  ;;  %v4251_v28 = vmul.f32 1.442695, %v4249_v60 }
0x27b8   :  { %v4253_v55 = vmul.f32 1.442695, %v4250_v25 }
0x27ba   :  { %6246 = vpow2.f32 %v4253_v55 }
0x27bb   :  { %6248 = vpow2.f32 %v4251_v28 }
0x27c4   :  { %v6247_v56 = vpop.eup %6246 }
0x27c5   :  { %v4257_v27 = vrot.slane %v6247_v56, 7  ;;  %v6249_v20 = vpop.eup %6248 }
0x27c7   :  { %v4258_v1 = vsel %vm324_vm3, %v4257_v27, %v6249_v20 }
0x27c8   :  { %v4260_v16 = vsel %vm327_vm5, %v4258_v1, 0.0 }
0x27c9   :  { %4261 = vadd.xlane.f32.xlu0 %v4260_v16 }
0x27df   :  { %4113 = vrot.lane.b32.xlu0 %v7196_v32, %s6312_s14 }
0x2803   :  { %v7261_v34 = vpop.xlane.xlu0 %4294 }
0x2804   :  { %6250 = vrcp.f32 %v7261_v34 }
0x280e   :  { %v6251_v40 = vpop.eup %6250 }
0x280f   :  { %v4301_v39 = vmul.f32 %v6251_v40, %v6245_v44 }
0x2811   :  { %v4304_v63 = vpack.c.bf16 %v4301_v39, %v4301_v39 }
0x2813   :  { %4393 = vrot.lane.b32.xlu1 %v4304_v63, %s6315_s10 }
0x2856   :  { %v4262_v9 = vpop.xlane.xlu0 %4261 }
0x2857   :  { %v4264_v11 = vrot.slane %v4262_v9, 1  ;;  %6252 = vrcp.f32 %v4262_v9 }
0x2859   :  { %6254 = vrcp.f32 %v4264_v11 }
0x285a   :  { %v4114_v48 = vpop.permute.xlu0 %4113 }
0x285b   :  { %4116 = vst.msk [vmem:[#allocation2] sm:$0x3] %vm32_vm1, %v4114_v48 }
0x2861   :  { %v6253_v51 = vpop.eup %6252 }
0x2862   :  { %v4268_v7 = vmul.f32 %v6253_v51, %v6249_v20  ;;  %v4657_v21 = vld [vmem:[#allocation2] sm:$0x3] }
0x2863   :  { %v6255_v47 = vpop.eup %6254 }
0x2864   :  { %v4271_v32 = vpack.c.bf16 %v4268_v7, %v4268_v7  ;;  %v4270_v36 = vmul.f32 %v6255_v47, %v6247_v56 }
0x2866   :  { %5960 = vmatmul.mubr.msk.bf16.vlgmr.msra.gmra.mrb[84].mxu1 %vm394_vm8, %v4271_v32  ;;  %v4272_v50 = vpack.c.bf16 %v4270_v36, %v4270_v36 }
0x2867   :  { %5970 = vmatpush3.bf16.msra.mxu1 %v6430_v33  ;;  %5973 = vmatprep.mubr.msk.bf16.mxu1 %vm6309_vm0, %v6310_v6 }
0x2868   :  { %5966 = vmatmul.mubr.msk.bf16.vlgmr.msra.gmra.mrb[84].mxu0 %vm394_vm8, %v4272_v50  ;;  %5971 = vmatprep.subr.bf16.mxu1 %v6310_v6 }
0x2869   :  { %5978 = vmatpush3.bf16.msra.mxu0 %v6443_v37  ;;  %5981 = vmatprep.mubr.msk.bf16.mxu0 %vm6309_vm0, %v6310_v6 }
0x286a   :  { %5979 = vmatprep.subr.bf16.mxu0 %v6310_v6 }
0x286b   :  { %5972 = vmatpush3.bf16.msra.mxu1 %v6540_v17 }
0x286c   :  { %6082 = vmatprep.subr.bf16.mxu1 %v6308_v3 }
0x286d   :  { %5980 = vmatpush3.bf16.msra.mxu0 %v6589_v23 }
0x286e   :  { %5996 = vmatprep.subr.bf16.mxu0 %v6310_v6 }
0x2885   :  { %v4394_v44 = vpop.permute.xlu1 %4393 }
0x2886   :  { %5974 = vmatmul.mubr.msk.bf16.vlgmr.msra.gmra.mrb[88].mxu1 %vm494_vm10, %v4394_v44 }
0x2887   :  { %6084 = vmatpush3.bf16.msra.mxu1 %v6368_v4  ;;  %5993 = vmatprep.mubr.msk.f32.mxu1 %vm6309_vm0, %v6310_v6 }
0x2888   :  { %6085 = vmatprep.subr.bf16.mxu1 %v6308_v3 }
0x288b   :  { %6087 = vmatpush3.bf16.msra.mxu1 %v6383_v8 }
0x288c   :  { %6004 = vmatprep.subr.bf16.mxu1 %v6310_v6 }
0x288e   :  { %5994 = vmatmul.mubr.msk.f32.vlgmr.msra.gmra.mrb[66].mxu1 %vm56_vm2, %v4657_v21 }
0x288f   :  { %6008 = vmatprep.mubr.msk.bf16.mxu1 %vm6309_vm0, %v6310_v6 }
0x2894   :  { %6005 = vmatpush3.bf16.xpose.msra.mxu1 %v6447_v38 }
0x2895   :  { %6006 = vmatprep.subr.bf16.mxu1 %v6310_v6 }
0x289c   :  { %6007 = vmatpush3.bf16.xpose.msra.mxu1 %v6458_v42 }
0x289d   :  { %6018 = vmatprep.subr.bf16.mxu1 %v6310_v6 }
0x2939   :  { %v4343_v4 = vpop.f32.mrb[84].mxu1 }
0x293a   :  { %v4489_v3 = vpack.c.bf16 %v4343_v4, %v4343_v4  ;;  %v5961_v60 = vpop.f32.mrb[85].mxu1 }
0x293b   :  { %v4346_v8 = vpop.f32.mrb[86].mxu1  ;;  %v4386_v25 = vpop.f32.mrb[84].mxu0  ;;  %v5419_v60 = vld [vmem:[%s7619_s0 + $0xe] sm:$0x3] }
0x293c   :  { %v4499_v28 = vrot.slane %v4489_v3, %v6467_v53  ;;  %v4490_v55 = vpack.c.bf16 %v4386_v25, %v4386_v25  ;;  %v5962_v56 = vpop.f32.mrb[87].mxu1  ;;  %v5967_v27 = vpop.f32.mrb[85].mxu0 }
0x293d   :  { %v4389_v20 = vpop.f32.mrb[86].mxu0 }
0x293e   :  { %v4506_v1 = vrot.slane %v4499_v28, %v6467_v53  ;;  %v4513_v38 = vrot.slane %v4490_v55, %v6467_v53  ;;  %v5968_v16 = vpop.f32.mrb[87].mxu0 }
0x2940   :  { %v4527_v42 = vrot.slane %v4506_v1, %v6563_v29  ;;  %v4520_v40 = vrot.slane %v4513_v38, %v6467_v53 }
0x2942   :  { %v4541_v39 = vrot.slane %v4520_v40, %v6563_v29  ;;  %v4534_v63 = vrot.slane %v4527_v42, %v6563_v29 }
0x2944   :  { %v4548_v9 = vrot.slane %v4541_v39, %v6563_v29  ;;  %v4549_v48 = vunpack.c.l.b16 %v4534_v63 }
0x2946   :  { %v4550_v11 = vunpack.c.l.b16 %v4548_v9 }
0x2948   :  { %v4551_v51 = vrot.slane %v4550_v11, 7 }
0x294a   :  { %v7303_v7 = vsel %vm324_vm3, %v4551_v51, %v4549_v48 }
0x2959   :  { %v7305_v47 = vpop.f32.mrb[88].mxu1 }
0x295a   :  { %v5975_v32 = vpop.f32.mrb[89].mxu1 }
0x295b   :  { %v4435_v36 = vpop.f32.mrb[90].mxu1 }
0x295c   :  { %v5976_v50 = vpop.f32.mrb[91].mxu1 }
0x2961   :  { %v4727_v44 = vpop.f32.mrb[66].mxu1 }
0x2962   :  { %v4728_v4 = vadd.f32 %v7183_v10, %v4727_v44  ;;  %v5995_v3 = vpop.f32.mrb[67].mxu1  ;;  %v4297_v10 = vrot.slane %v7261_v34, 1 }
0x2964   :  { %4739 = vrot.lane.b32.xlu1 %v4728_v4, %s6311_s11  ;;  %v4731_v8 = vadd.f32 %v5419_v60, %v4728_v4 }
0x2966   :  { %v5421_v25 = vmul.f32 -1.442695, %v4731_v8 }
0x2968   :  { %6256 = vpow2.f32 %v5421_v25 }
0x2972   :  { %v6257_v28 = vpop.eup %6256 }
0x2973   :  { %v4735_v55 = vadd.f32 1.0, %v6257_v28 }
0x2975   :  { %6258 = vrcp.f32 %v4735_v55 }
0x2976   :  { %6260 = vrcp.f32 %v4297_v10 }
0x297f   :  { %v6259_v56 = vpop.eup %6258 }
0x2980   :  { %v6261_v16 = vpop.eup %6260  ;;  %v4749_v9 = vsub.f32 1.0, %v6259_v56 }
0x2981   :  { %v4303_v42 = vmul.f32 %v6261_v16, %v7250_v12 }
0x2983   :  { %v4305_v39 = vpack.c.bf16 %v4303_v42, %v4303_v42 }
0x29d6   :  { %v4740_v27 = vpop.permute.xlu1 %4739 }
0x29d7   :  { %v4742_v20 = vmul.f32 %v6259_v56, %v4740_v27 }
0x29d9   :  { %4744 = vrot.lane.b32.xlu0 %v4742_v20, %s6311_s11 }
0x29dd   :  { %4755 = vrot.lane.b32.xlu0 %v4657_v21, %s6313_s15 }
0x2a4b   :  { %v4745_v1 = vpop.permute.xlu0 %4744 }
0x2a4c   :  { %v4747_v38 = vadd.f32 %v5419_v60, %v4745_v1 }
0x2a4e   :  { %6262 = vtanh.f32 %v4747_v38 }
0x2a4f   :  { %v4756_v63 = vpop.permute.xlu0 %4755 }
0x2a50   :  { %v4758_v48 = vmul.f32 %v6259_v56, %v4756_v63 }
0x2a58   :  { %v6263_v40 = vpop.eup %6262 }
0x2a59   :  { %4751 = vrot.lane.b32.xlu1 %v6263_v40, %s6312_s14 }
0x2a5d   :  { %4439 = vrot.lane.b32.xlu1 %v4305_v39, %s6315_s10 }
0x2acb   :  { %v4752_v11 = vpop.permute.xlu1 %4751 }
0x2acc   :  { %v4754_v21 = vmul.f32 %v4752_v11, %v4749_v9 }
0x2ace   :  { %v7318_v51 = vadd.f32 %v4758_v48, %v4754_v21 }
0x2acf   :  { %v4440_v34 = vpop.permute.xlu1 %4439 }
0x2ad0   :  { %v4765_v32 = vpack.c.bf16 %v7318_v51, %v7318_v51  ;;  %5982 = vmatmul.mubr.msk.bf16.vlgmr.msra.gmra.mrb[88].mxu0 %vm494_vm10, %v4440_v34 }
0x2ad1   :  { %5997 = vmatpush3.bf16.xpose.msra.mxu0 %v6436_v35  ;;  %6000 = vmatprep.mubr.msk.bf16.mxu0 %vm6309_vm0, %v6310_v6 }
0x2ad2   :  { %v4773_v12 = vrot.slane %v4765_v32, %v6467_v53  ;;  %5998 = vmatprep.subr.bf16.mxu0 %v6310_v6 }
0x2ad4   :  { %v7329_v36 = vrot.slane %v4773_v12, %v6467_v53 }
0x2ad6   :  { %v5422_v50 = vpack.i.b16 %v7329_v36, %v7329_v36  ;;  %v4782_v44 = vunpack.i.h.s16 %v7329_v36 }
0x2ad8   :  { %v4787_v4 = vrot.slane %v5422_v50, %v6478_v58  ;;  %v4833_v3 = vpack.i.b16 %v4782_v44, %v4782_v44 }
0x2ad9   :  { %5999 = vmatpush3.bf16.xpose.msra.mxu0 %v6455_v41  ;;  %v4572_v41 = vpack.c.bf16 %v7305_v47, %v7305_v47 }
0x2ada   :  { %4788 = vrot.lane.b32.xlu1 %v4787_v4, %s6312_s14  ;;  %v4837_v35 = vrot.slane %v4833_v3, %v6478_v58  ;;  %6012 = vmatprep.subr.bf16.mxu0 %v6310_v6 }
0x2adb   :  { %v4582_v58 = vrot.slane %v4572_v41, %v6467_v53 }
0x2adc   :  { %4838 = vrot.lane.b32.xlu0 %v4837_v35, %s6312_s14 }
0x2add   :  { %v4589_v25 = vrot.slane %v4582_v58, %v6467_v53 }
0x2b4c   :  { %v4789_v60 = vpop.permute.xlu1 %4788 }
0x2b4d   :  { %6001 = vmatmul.mubr.msk.bf16.vlgmr.msra.gmra.mrb[92].mxu0 %vm56_vm2, %v4789_v60 }
0x2b4e   :  { %v4839_v8 = vpop.permute.xlu0 %4838  ;;  %6013 = vmatpush3.bf16.msra.mxu0 %v6515_v61  ;;  %6014 = vmatprep.mubr.msk.bf16.mxu0 %vm6309_vm0, %v6310_v6 }
0x2b4f   :  { %6009 = vmatmul.mubr.msk.bf16.vlgmr.msra.gmra.mrb[92].mxu1 %vm56_vm2, %v4839_v8  ;;  %6024 = vmatprep.subr.bf16.mxu0 %v6310_v6 }
0x2b50   :  { %6019 = vmatpush3.bf16.msra.mxu1 %v6518_v62  ;;  %6020 = vmatprep.mubr.msk.bf16.mxu1 %vm6309_vm0, %v6310_v6  ;;  %v4610_v62 = vrot.slane %v4589_v25, %v6563_v29 }
0x2b51   :  { %6032 = vmatprep.subr.bf16.mxu1 %v6310_v6 }
0x2b52   :  { %v4617_v38 = vrot.slane %v4610_v62, %v6563_v29 }
0x2b54   :  { %v4632_v42 = vunpack.c.l.b16 %v4617_v38 }
0x2ba3   :  { %v4478_v61 = vpop.f32.mrb[88].mxu0 }
0x2ba4   :  { %v4573_v28 = vpack.c.bf16 %v4478_v61, %v4478_v61  ;;  %v5983_v55 = vpop.f32.mrb[89].mxu0 }
0x2ba5   :  { %v4481_v56 = vpop.f32.mrb[90].mxu0 }
0x2ba6   :  { %v4596_v27 = vrot.slane %v4573_v28, %v6467_v53  ;;  %v5984_v20 = vpop.f32.mrb[91].mxu0 }
0x2ba8   :  { %v4603_v10 = vrot.slane %v4596_v27, %v6467_v53 }
0x2baa   :  { %v4624_v1 = vrot.slane %v4603_v10, %v6563_v29 }
0x2bac   :  { %v4631_v47 = vrot.slane %v4624_v1, %v6563_v29 }
0x2bae   :  { %v4633_v16 = vunpack.c.l.b16 %v4631_v47 }
0x2bb0   :  { %v4634_v40 = vrot.slane %v4633_v16, 7 }
0x2bb2   :  { %v7361_v39 = vsel %vm324_vm3, %v4634_v40, %v4632_v42 }
0x2c20   :  { %v4827_v63 = vpop.f32.mrb[92].mxu0 }
0x2c21   :  { %v6002_v9 = vpop.f32.mrb[93].mxu0  ;;  %v4883_v50 = vadd.f32 %v7245_v30, %v4827_v63 }
0x2c22   :  { %v4830_v11 = vpop.f32.mrb[94].mxu0  ;;  %v4877_v48 = vpop.f32.mrb[92].mxu1 }
0x2c23   :  { %v4884_v21 = vadd.f32 %v4877_v48, %v6499_v5  ;;  %v6003_v34 = vpop.f32.mrb[95].mxu0  ;;  %v6010_v32 = vpop.f32.mrb[93].mxu1 }
0x2c24   :  { %v4880_v12 = vpop.f32.mrb[94].mxu1 }
0x2c25   :  { %v4887_v44 = vrot.slane %v4884_v21, 7  ;;  %v6011_v4 = vpop.f32.mrb[95].mxu1 }
0x2c27   :  { %v4888_v3 = vsel %vm324_vm3, %v4887_v44, %v4883_v50 }
0x2c28   :  { %v4921_v35 = vsel %vm359_vm4, %v4888_v3, -inf  ;;  %v4890_v56 = vsel %vm327_vm5, %v4888_v3, -inf  ;;  %v663_v3 = vpack.c.b16 %v6574_v59, %v6574_v59  ;;  %v2609_v59 = vpack.c.b16 %v6942_v13, %v6942_v13 }
0x2c29   :  { %4922 = vmax.xlane.f32.xlu0 %v4921_v35  ;;  %v4553_v35 = vpack.c.b16 %v7303_v7, %v7303_v7 }
0x2cb6   :  { %v4923_v60 = vpop.xlane.xlu0 %4922 }
0x2cb7   :  { %v4925_v8 = vrot.slane %v4923_v60, 1  ;;  %v4928_v41 = vsub.f32 %v4883_v50, %v4923_v60 }
0x2cb9   :  { %v4929_v58 = vsub.f32 %v4884_v21, %v4925_v8  ;;  %v4930_v61 = vmul.f32 1.442695, %v4928_v41  ;;  %v1396_v8 = vpack.c.b16 %v6756_v43, %v6756_v43  ;;  %v4560_v41 = vrot.slane %v4553_v35, %v6467_v53 }
0x2cbb   :  { %v4932_v25 = vmul.f32 1.442695, %v4929_v58  ;;  %v747_v58 = vpack.c.b16 %v6639_v19, %v6639_v19  ;;  %v4567_v43 = vrot.slane %v4560_v41, %v6467_v53 }
0x2cbd   :  { %6264 = vpow2.f32 %v4932_v25  ;;  %v2692_v25 = vpack.c.b16 %v7000_v2, %v7000_v2 }
0x2cbe   :  { %6266 = vpow2.f32 %v4930_v61  ;;  %v1403_v61 = vrot.slane %v1396_v8, %v6467_v53 }
0x2cc0   :  { %v1410_v19 = vrot.slane %v1403_v61, %v6467_v53 }
0x2cc7   :  { %v6265_v5 = vpop.eup %6264 }
0x2cc8   :  { %v4936_v28 = vrot.slane %v6265_v5, 7  ;;  %v6267_v55 = vpop.eup %6266 }
0x2cca   :  { %v4937_v30 = vsel %vm324_vm3, %v4936_v28, %v6267_v55  ;;  %v2044_v28 = vpack.c.b16 %v6878_v54, %v6878_v54 }
0x2ccb   :  { %4938 = vrot.lane.b32.xlu1 %v4937_v30, %s6315_s10  ;;  %v3988_v30 = vpack.c.b16 %v7239_v22, %v7239_v22 }
0x2cef   :  { %4891 = vmax.xlane.f32.xlu1 %v4890_v56  ;;  %v2051_v56 = vrot.slane %v2044_v28, %v6467_v53 }
0x2d3d   :  { %v4939_v27 = vpop.permute.xlu1 %4938 }
0x2d3e   :  { %v4941_v20 = vsel %vm380_vm6, %v4939_v27, 0.0  ;;  %v3340_v27 = vpack.c.b16 %v7117_v24, %v7117_v24 }
0x2d3f   :  { %4942 = vadd.xlane.f32.xlu0 %v4941_v20  ;;  %v3995_v20 = vrot.slane %v3988_v30, %v6467_v53 }
0x2d40   :  { %v3347_v22 = vrot.slane %v3340_v27, %v6467_v53 }
0x2d42   :  { %v3354_v24 = vrot.slane %v3347_v22, %v6467_v53 }
0x2d7c   :  { %v4892_v62 = vpop.xlane.xlu1 %4891 }
0x2d7d   :  { %v4894_v10 = vrot.slane %v4892_v62, 1  ;;  %v4897_v1 = vsub.f32 %v4883_v50, %v4892_v62  ;;  %v2058_v62 = vrot.slane %v2051_v56, %v6467_v53 }
0x2d7f   :  { %v4898_v38 = vsub.f32 %v4884_v21, %v4894_v10  ;;  %v4899_v47 = vmul.f32 1.442695, %v4897_v1  ;;  %v4636_v10 = vpack.c.b16 %v7361_v39, %v7361_v39  ;;  %v4002_v1 = vrot.slane %v3995_v20, %v6467_v53 }
0x2d81   :  { %v4901_v16 = vmul.f32 1.442695, %v4898_v38  ;;  %v4643_v38 = vrot.slane %v4636_v10, %v6467_v53 }
0x2d83   :  { %6268 = vpow2.f32 %v4901_v16 }
0x2d84   :  { %6270 = vpow2.f32 %v4899_v47  ;;  %v4650_v47 = vrot.slane %v4643_v38, %v6467_v53 }
0x2d8d   :  { %v7371_v42 = vpop.eup %6268 }
0x2d8e   :  { %v4905_v40 = vrot.slane %v7371_v42, 7  ;;  %v7374_v63 = vpop.eup %6270 }
0x2d90   :  { %v4906_v9 = vsel %vm324_vm3, %v4905_v40, %v7374_v63 }
0x2d91   :  { %v4908_v11 = vsel %vm327_vm5, %v4906_v9, 0.0 }
0x2d92   :  { %4909 = vadd.xlane.f32.xlu0 %v4908_v11 }
0x2dcc   :  { %v4943_v48 = vpop.xlane.xlu0 %4942 }
0x2dcd   :  { %v4945_v34 = vrot.slane %v4943_v48, 1  ;;  %6272 = vrcp.f32 %v4943_v48 }
0x2dcf   :  { %6274 = vrcp.f32 %v4945_v34 }
0x2dd7   :  { %v6273_v21 = vpop.eup %6272 }
0x2dd8   :  { %v4949_v32 = vmul.f32 %v6273_v21, %v6267_v55  ;;  %v2699_v55 = vrot.slane %v2692_v25, %v6467_v53 }
0x2dd9   :  { %v6275_v12 = vpop.eup %6274 }
0x2dda   :  { %v4952_v50 = vpack.c.bf16 %v4949_v32, %v4949_v32  ;;  %v4951_v44 = vmul.f32 %v6275_v12, %v6265_v5  ;;  %v754_v5 = vrot.slane %v747_v58, %v6467_v53  ;;  %v2706_v54 = vrot.slane %v2699_v55, %v6467_v53 }
0x2ddc   :  { %5041 = vrot.lane.b32.xlu1 %v4952_v50, %s6315_s10  ;;  %v4953_v4 = vpack.c.bf16 %v4951_v44, %v4951_v44  ;;  %v761_v2 = vrot.slane %v754_v5, %v6467_v53 }
0x2dde   :  { %5087 = vrot.lane.b32.xlu0 %v4953_v4, %s6315_s10 }
0x2de0   :  { %4761 = vrot.lane.b32.xlu1 %v7318_v51, %s6312_s14  ;;  %v1313_v51 = vpack.c.b16 %v6698_v14, %v6698_v14 }
0x2de2   :  { %594 = vrot.lane.b32.xlu0 %v6475_v57, %s6312_s14  ;;  %v670_v57 = vrot.slane %v663_v3, %v6467_v53 }
0x2de4   :  { %1244 = vrot.lane.b32.xlu1 %v6607_v45, %s6312_s14  ;;  %v1961_v45 = vpack.c.b16 %v6815_v31, %v6815_v31  ;;  %v677_v14 = vrot.slane %v670_v57, %v6467_v53 }
0x2de6   :  { %1892 = vrot.lane.b32.xlu0 %v6724_v0, %s6312_s14  ;;  %v1320_v0 = vrot.slane %v1313_v51, %v6467_v53 }
0x2de8   :  { %2540 = vrot.lane.b32.xlu1 %v6846_v18, %s6312_s14  ;;  %v1968_v18 = vrot.slane %v1961_v45, %v6467_v53  ;;  %v1327_v31 = vrot.slane %v1320_v0, %v6467_v53 }
0x2dea   :  { %3188 = vrot.lane.b32.xlu0 %v6968_v49, %s6312_s14  ;;  %v3257_v49 = vpack.c.b16 %v7059_v46, %v7059_v46  ;;  %v1975_v13 = vrot.slane %v1968_v18, %v6467_v53 }
0x2dec   :  { %3836 = vrot.lane.b32.xlu1 %v7085_v52, %s6312_s14  ;;  %v2616_v52 = vrot.slane %v2609_v59, %v6467_v53 }
0x2dee   :  { %4484 = vrot.lane.b32.xlu0 %v7207_v26, %s6312_s14  ;;  %v3905_v26 = vpack.c.b16 %v7176_v15, %v7176_v15  ;;  %v2623_v46 = vrot.slane %v2616_v52, %v6467_v53 }
0x2df0   :  { %5132 = vrot.lane.b32.xlu1 %v7329_v36, %s6312_s14  ;;  %v3264_v36 = vrot.slane %v3257_v49, %v6467_v53  ;;  %v3912_v60 = vrot.slane %v3905_v26, %v6467_v53 }
0x2df2   :  { %678 = vrot.lane.b32.xlu0 %v677_v14, %s6313_s15  ;;  %v3271_v15 = vrot.slane %v3264_v36, %v6467_v53  ;;  %v3919_v7 = vrot.slane %v3912_v60, %v6467_v53 }
0x2df4   :  { %1328 = vrot.lane.b32.xlu1 %v1327_v31, %s6313_s15 }
0x2df6   :  { %1976 = vrot.lane.b32.xlu0 %v1975_v13, %s6313_s15 }
0x2df8   :  { %2624 = vrot.lane.b32.xlu1 %v2623_v46, %s6313_s15 }
0x2dfa   :  { %3272 = vrot.lane.b32.xlu0 %v3271_v15, %s6313_s15 }
0x2dfc   :  { %3920 = vrot.lane.b32.xlu1 %v3919_v7, %s6313_s15 }
0x2dfe   :  { %4568 = vrot.lane.b32.xlu0 %v4567_v43, %s6313_s15 }
0x2e00   :  { %1411 = vrot.lane.b32.xlu1 %v1410_v19, %s6311_s11 }
0x2e02   :  { %762 = vrot.lane.b32.xlu0 %v761_v2, %s6311_s11 }
0x2e04   :  { %2707 = vrot.lane.b32.xlu1 %v2706_v54, %s6311_s11 }
0x2e06   :  { %2059 = vrot.lane.b32.xlu0 %v2058_v62, %s6311_s11 }
0x2e08   :  { %4003 = vrot.lane.b32.xlu1 %v4002_v1, %s6311_s11 }
0x2e0a   :  { %3355 = vrot.lane.b32.xlu0 %v3354_v24, %s6311_s11 }
0x2e0e   :  { %4651 = vrot.lane.b32.xlu0 %v4650_v47, %s6311_s11 }
0x2e1f   :  { %v4910_v16 = vpop.xlane.xlu0 %4909 }
0x2e20   :  { %v4912_v40 = vrot.slane %v4910_v16, 1  ;;  %6276 = vrcp.f32 %v4910_v16 }
0x2e22   :  { %6278 = vrcp.f32 %v4912_v40 }
0x2e2a   :  { %v6277_v39 = vpop.eup %6276 }
0x2e2b   :  { %v4916_v9 = vmul.f32 %v6277_v39, %v7374_v63 }
0x2e2c   :  { %v6279_v11 = vpop.eup %6278 }
0x2e2d   :  { %v4919_v48 = vpack.c.bf16 %v4916_v9, %v4916_v9  ;;  %v4918_v34 = vmul.f32 %v6279_v11, %v7371_v42 }
0x2e2f   :  { %6015 = vmatmul.mubr.msk.bf16.vlgmr.msra.gmra.mrb[96].mxu0 %vm394_vm8, %v4919_v48  ;;  %v4920_v21 = vpack.c.bf16 %v4918_v34, %v4918_v34 }
0x2e30   :  { %6025 = vmatpush3.bf16.msra.mxu0 %v6430_v33  ;;  %6028 = vmatprep.mubr.msk.bf16.mxu0 %vm6309_vm0, %v6310_v6 }
0x2e31   :  { %6021 = vmatmul.mubr.msk.bf16.vlgmr.msra.gmra.mrb[96].mxu1 %vm394_vm8, %v4920_v21  ;;  %6026 = vmatprep.subr.bf16.mxu0 %v6310_v6 }
0x2e32   :  { %6033 = vmatpush3.bf16.msra.mxu1 %v6443_v37  ;;  %6036 = vmatprep.mubr.msk.bf16.mxu1 %vm6309_vm0, %v6310_v6 }
0x2e33   :  { %6034 = vmatprep.subr.bf16.mxu1 %v6310_v6 }
0x2e34   :  { %6027 = vmatpush3.bf16.msra.mxu0 %v6540_v17 }
0x2e36   :  { %6035 = vmatpush3.bf16.msra.mxu1 %v6589_v23 }
0x2e4e   :  { %v5042_v42 = vpop.permute.xlu1 %5041 }
0x2e4f   :  { %6029 = vmatmul.mubr.msk.bf16.vlgmr.msra.gmra.mrb[100].mxu0 %vm494_vm10, %v5042_v42 }
0x2e50   :  { %v5088_v33 = vpop.permute.xlu0 %5087 }
0x2e51   :  { %6037 = vmatmul.mubr.msk.bf16.vlgmr.msra.gmra.mrb[100].mxu1 %vm494_vm10, %v5088_v33 }
0x2e52   :  { %v4762_v63 = vpop.permute.xlu1 %4761 }
0x2e53   :  { %4764 = vst.msk [vmem:[#allocation2] sm:$0x3] %vm32_vm1, %v4762_v63 }
0x2e54   :  { %v595_v37 = vpop.permute.xlu0 %594 }
0x2e55   :  { %598 = vst.msk [vmem:[%s7625_s6] sm:$0x1] %vm597_vm11, %v595_v37 }
0x2e56   :  { %v1245_v6 = vpop.permute.xlu1 %1244 }
0x2e57   :  { %5351 = vst.msk [vmem:[%s7625_s6 + $0x1] sm:$0x1] %vm597_vm11, %v1245_v6 }
0x2e58   :  { %v1893_v17 = vpop.permute.xlu0 %1892 }
0x2e59   :  { %5364 = vst.msk [vmem:[%s7625_s6 + $0x2] sm:$0x1] %vm597_vm11, %v1893_v17 }
0x2e5a   :  { %v2541_v23 = vpop.permute.xlu1 %2540  ;;  %v5303_v32 = vld [vmem:[#allocation2] sm:$0x3] }
0x2e5b   :  { %5377 = vst.msk [vmem:[%s7625_s6 + $0x3] sm:$0x1] %vm597_vm11, %v2541_v23 }
0x2e5c   :  { %5304 = vst.msk [vmem:[#allocation3] sm:$0x3] %vm32_vm1, %v5303_v32  ;;  %v3189_v12 = vpop.permute.xlu0 %3188 }
0x2e5d   :  { %5390 = vst.msk [vmem:[%s7625_s6 + $0x4] sm:$0x1] %vm597_vm11, %v3189_v12 }
0x2e5e   :  { %v3837_v50 = vpop.permute.xlu1 %3836 }
0x2e5f   :  { %5403 = vst.msk [vmem:[%s7625_s6 + $0x5] sm:$0x1] %vm597_vm11, %v3837_v50 }
0x2e60   :  { %v4485_v44 = vpop.permute.xlu0 %4484 }
0x2e61   :  { %5416 = vst.msk [vmem:[%s7625_s6 + $0x6] sm:$0x1] %vm597_vm11, %v4485_v44 }
0x2e62   :  { %v5133_v4 = vpop.permute.xlu1 %5132 }
0x2e63   :  { %5429 = vst.msk [vmem:[%s7625_s6 + $0x7] sm:$0x1] %vm597_vm11, %v5133_v4 }
0x2e64   :  { %v679_v3 = vpop.permute.xlu0 %678 }
0x2e65   :  { %682 = vst.msk [vmem:[%s7625_s6] sm:$0x1] %vm681_vm12, %v679_v3 }
0x2e66   :  { %v1329_v51 = vpop.permute.xlu1 %1328 }
0x2e67   :  { %5352 = vst.msk [vmem:[%s7625_s6 + $0x1] sm:$0x1] %vm681_vm12, %v1329_v51 }
0x2e68   :  { %v1977_v57 = vpop.permute.xlu0 %1976 }
0x2e69   :  { %5365 = vst.msk [vmem:[%s7625_s6 + $0x2] sm:$0x1] %vm681_vm12, %v1977_v57 }
0x2e6a   :  { %v2625_v45 = vpop.permute.xlu1 %2624 }
0x2e6b   :  { %5378 = vst.msk [vmem:[%s7625_s6 + $0x3] sm:$0x1] %vm681_vm12, %v2625_v45 }
0x2e6c   :  { %v3273_v0 = vpop.permute.xlu0 %3272 }
0x2e6d   :  { %5391 = vst.msk [vmem:[%s7625_s6 + $0x4] sm:$0x1] %vm681_vm12, %v3273_v0 }
0x2e6e   :  { %v3921_v59 = vpop.permute.xlu1 %3920 }
0x2e6f   :  { %5404 = vst.msk [vmem:[%s7625_s6 + $0x5] sm:$0x1] %vm681_vm12, %v3921_v59 }
0x2e70   :  { %v4569_v14 = vpop.permute.xlu0 %4568 }
0x2e71   :  { %5417 = vst.msk [vmem:[%s7625_s6 + $0x6] sm:$0x1] %vm681_vm12, %v4569_v14 }
0x2e72   :  { %v1412_v18 = vpop.permute.xlu1 %1411 }
0x2e73   :  { %5353 = vst.msk [vmem:[%s7625_s6 + $0x1] sm:$0x1] %vm765_vm13, %v1412_v18 }
0x2e74   :  { %v763_v49 = vpop.permute.xlu0 %762 }
0x2e75   :  { %766 = vst.msk [vmem:[%s7625_s6] sm:$0x1] %vm765_vm13, %v763_v49 }
0x2e76   :  { %v2708_v31 = vpop.permute.xlu1 %2707 }
0x2e77   :  { %5379 = vst.msk [vmem:[%s7625_s6 + $0x3] sm:$0x1] %vm765_vm13, %v2708_v31 }
0x2e78   :  { %v2060_v52 = vpop.permute.xlu0 %2059 }
0x2e79   :  { %5366 = vst.msk [vmem:[%s7625_s6 + $0x2] sm:$0x1] %vm765_vm13, %v2060_v52 }
0x2e7a   :  { %v4004_v26 = vpop.permute.xlu1 %4003 }
0x2e7b   :  { %5405 = vst.msk [vmem:[%s7625_s6 + $0x5] sm:$0x1] %vm765_vm13, %v4004_v26 }
0x2e7c   :  { %v3356_v13 = vpop.permute.xlu0 %3355 }
0x2e7d   :  { %5392 = vst.msk [vmem:[%s7625_s6 + $0x4] sm:$0x1] %vm765_vm13, %v3356_v13 }
0x2e80   :  { %v4652_v36 = vpop.permute.xlu0 %4651 }
0x2e81   :  { %5418 = vst.msk [vmem:[%s7625_s6 + $0x6] sm:$0x1] %vm765_vm13, %v4652_v36 }
0x2f02   :  { %v4991_v35 = vpop.f32.mrb[96].mxu0 }
0x2f03   :  { %v5137_v46 = vpack.c.bf16 %v4991_v35, %v4991_v35  ;;  %v6016_v60 = vpop.f32.mrb[97].mxu0 }
0x2f04   :  { %v4994_v8 = vpop.f32.mrb[98].mxu0  ;;  %v5034_v15 = vpop.f32.mrb[96].mxu1 }
0x2f05   :  { %v5147_v41 = vrot.slane %v5137_v46, %v6467_v53  ;;  %v5138_v58 = vpack.c.bf16 %v5034_v15, %v5034_v15  ;;  %v6017_v7 = vpop.f32.mrb[99].mxu0  ;;  %v6022_v61 = vpop.f32.mrb[97].mxu1 }
0x2f06   :  { %v5037_v25 = vpop.f32.mrb[98].mxu1 }
0x2f07   :  { %v5154_v43 = vrot.slane %v5147_v41, %v6467_v53  ;;  %v5161_v5 = vrot.slane %v5138_v58, %v6467_v53  ;;  %v6023_v28 = vpop.f32.mrb[99].mxu1 }
0x2f09   :  { %v5175_v19 = vrot.slane %v5154_v43, %v6563_v29  ;;  %v5168_v55 = vrot.slane %v5161_v5, %v6467_v53 }
0x2f0b   :  { %v5189_v30 = vrot.slane %v5168_v55, %v6563_v29  ;;  %v5182_v2 = vrot.slane %v5175_v19, %v6563_v29 }
0x2f0d   :  { %v5196_v56 = vrot.slane %v5189_v30, %v6563_v29  ;;  %v5197_v54 = vunpack.c.l.b16 %v5182_v2 }
0x2f0f   :  { %v5198_v27 = vunpack.c.l.b16 %v5196_v56 }
0x2f11   :  { %v5199_v20 = vrot.slane %v5198_v27, 7 }
0x2f13   :  { %v5200_v62 = vsel %vm324_vm3, %v5199_v20, %v5197_v54 }
0x2f14   :  { %v5201_v22 = vpack.c.b16 %v5200_v62, %v5200_v62 }
0x2f16   :  { %v5208_v10 = vrot.slane %v5201_v22, %v6467_v53 }
0x2f18   :  { %v5215_v1 = vrot.slane %v5208_v10, %v6467_v53 }
0x2f1a   :  { %5216 = vrot.lane.b32.xlu1 %v5215_v1, %s6313_s15  ;;  %s6317_s15 = smov [#allocation3]  }
0x2f1b   :  { %s5313_s24 = sshll.u32 %s6317_s15, 4  ;;  %s5314_s24 = int_to_ptr.vmem [resolvable:$true] %s5313_s24 }
0x2f1c   :  { %s6284_s25 = scalar_lea.vmem %s5314_s24, 32  ;;  %p6289_p1 = scmp.lt.s32.totalorder %s5314_s24, %s5314_s24 }
0x2f1d   :  { %p6285_p0 = scmp.ne.s32.totalorder %s5314_s24, %s6284_s25  ;;  %p6290_p2 = scmp.lt.s32.totalorder %s6284_s25, %s6284_s25 }
0x2f1f   :  { %p6291_p3 = por %p6290_p2, %p6289_p1 }
0x2f21   :  { %p6292_p4 = pnand %p6291_p3, %p6285_p0 }
0x2f22   :  { %v5080_v24 = vpop.f32.mrb[100].mxu0 }
0x2f23   :  { %v5220_v38 = vpack.c.bf16 %v5080_v24, %v5080_v24  ;;  %v6030_v47 = vpop.f32.mrb[101].mxu0 }
0x2f24   :  { %v5083_v16 = vpop.f32.mrb[102].mxu0  ;;  %v5126_v40 = vpop.f32.mrb[100].mxu1 }
0x2f25   :  { %v5230_v39 = vrot.slane %v5220_v38, %v6467_v53  ;;  %v5221_v9 = vpack.c.bf16 %v5126_v40, %v5126_v40  ;;  %v6031_v11 = vpop.f32.mrb[103].mxu0  ;;  %v6038_v48 = vpop.f32.mrb[101].mxu1 }
0x2f26   :  { %v5129_v34 = vpop.f32.mrb[102].mxu1 }
0x2f27   :  { %v5237_v21 = vrot.slane %v5230_v39, %v6467_v53  ;;  %v5244_v42 = vrot.slane %v5221_v9, %v6467_v53  ;;  %v6039_v33 = vpop.f32.mrb[103].mxu1 }
0x2f29   :  { %v5258_v63 = vrot.slane %v5237_v21, %v6563_v29  ;;  %v5251_v37 = vrot.slane %v5244_v42, %v6467_v53 }
0x2f2b   :  { %v5272_v6 = vrot.slane %v5251_v37, %v6563_v29  ;;  %v5265_v17 = vrot.slane %v5258_v63, %v6563_v29 }
0x2f2d   :  { %v5279_v23 = vrot.slane %v5272_v6, %v6563_v29 }
0x2f2e   :  { %6295 = shalt.err (!%p6292_p4)
}
0x2f2f   :  { %s6296_s28 = scalar_lea.hbm %s7626_s7, 32 }
0x2f30   :  { %p6297_p5 = scmp.ne.s32.totalorder %s7626_s7, %s6296_s28  ;;  %p6300_p6 = scmp.lt.u32.totalorder %s6296_s28, %s7626_s7 }
0x2f32   :  { %p6302_p7 = pnand %p6300_p6, %p6297_p5 }
0x2f34   :  { %6305 = shalt.err (!%p6302_p7)
}
0x2f35   :  { %5316 = dma.vmem_to_hbm [thread:$0]  %s5314_s24, 32, %s7626_s7, [#allocation4]   ;;  %v5281_v29 = vunpack.c.l.b16 %v5279_v23  ;;  %v5280_v32 = vunpack.c.l.b16 %v5265_v17 }
0x2f37   :  { %v5282_v12 = vrot.slane %v5281_v29, 7 }
0x2f39   :  { %v5283_v50 = vsel %vm324_vm3, %v5282_v12, %v5280_v32 }
0x2f3a   :  { %v5284_v44 = vpack.c.b16 %v5283_v50, %v5283_v50 }
0x2f3c   :  { %v5291_v4 = vrot.slane %v5284_v44, %v6467_v53 }
0x2f3e   :  { %v5298_v3 = vrot.slane %v5291_v4, %v6467_v53 }
0x2f40   :  { %5299 = vrot.lane.b32.xlu1 %v5298_v3, %s6311_s11 }
0x2f8c   :  { %v5217_v51 = vpop.permute.xlu1 %5216 }
0x2f8d   :  { %5430 = vst.msk [vmem:[%s7625_s6 + $0x7] sm:$0x1] %vm681_vm12, %v5217_v51 }
0x2fb2   :  { %v5300_v57 = vpop.permute.xlu1 %5299 }
0x2fb3   :  { %5431 = vst.msk [vmem:[%s7625_s6 + $0x7] sm:$0x1] %vm765_vm13, %v5300_v57 }
0x2fb4   :  { %6306 = dma.done.wait [#allocation4], 32  }
0x2fb5   :  { %6307 = vsyncadd [#allocation4], 4294967264 }
0x2fb6   :  { %5322 = vsyncpa [#allocation4], 1 }

</bundles_post_ra>
